<compile_context>
chip_gen: v6e
topology: v6e:2x2x1
jax: 0.10.0
libtpu: 0.0.40
codegen_flags: <defaults>
</compile_context>

<pallas_src>
import functools
import math

import jax
import jax.numpy as jnp
from jax.experimental import pallas as pl
from jax.experimental.pallas import tpu as pltpu

D_MODEL = 32
N_HEADS = 4
D_HEAD = D_MODEL // N_HEADS
D_FF = 64
N_LAYERS = 2
EPS = 1e-6
NEG_INF = -1e9


# --------------------------------------------------------------------------- fused kernel
def _fused_forward_kernel(
    # per-tile (batched) inputs
    feat_ref,            # (B_TILE*Ts, F_src+F_ego+F_ped)
    tgt_ref,             # (B_TILE*Tt, F_tgt)
    enc_mask_ref,        # (1, B_TILE*Ts, B_TILE*Ts) additive (key mask + block-diag)
    cross_mask_ref,      # (1, 3, B_TILE*Tt, B_TILE*Ts) additive (src/spd/ped)
    # replicated constants
    dec_self_mask_ref,   # (B_TILE*Tt, B_TILE*Tt) additive block-diag (0 if B_TILE==1)
    emb_we_ref,          # (F_enc, 3*D) block-diag [src*sqrt(d) | ego | ped]
    emb_wt_ref,          # (F_tgt, D)   tgt*sqrt(d)
    enc_add_ref,         # (B_TILE*Ts, 3*D) [src_b*s + PE | ego_b | ped_b]
    tgt_add_ref,         # (B_TILE*Tt, D)   tgt_b*s + PE
    attn_w_ref,          # (5N, D, 4D)  [Wq|Wk|Wv|Wo] per attention block
    attn_b_ref,          # (5N, 1, 4D)
    xkv_w_ref,           # (3D, 6D*N)   all-layer block-diag cross K/V weights
    xkv_b_ref,           # (1, 6D*N)
    ffn_w1_ref,          # (2N, D, D_FF)
    ffn_w2_ref,          # (2N, D_FF, D)
    ffn_b_ref,           # (2N, 1, D_FF+D)
    ln_ref,              # (7N+2, 1, 2D)  [gamma | beta]
    # output
    out_ref,             # (B_TILE*Tt, D)
    *, b_tile,
):
    f32 = jnp.float32
    D = D_MODEL

    # ---------------- helpers (close over the weight refs) ----------------
    def ln_at(i, x):
        row = ln_ref[i]                                   # (1, 2D)
        mu = jnp.mean(x, axis=-1, keepdims=True)
        m2 = jnp.mean(x * x, axis=-1, keepdims=True)
        var = jnp.maximum(m2 - mu * mu, 0.0)              # one-pass variance
        return (x - mu) * jax.lax.rsqrt(var + EPS) * row[:, :D] + row[:, D:]

    def mha_core(q, k, v, wo, bo, add_mask):
        scale = 1.0 / math.sqrt(D_HEAD)
        out = None
        for h in range(N_HEADS):
            sl = slice(h * D_HEAD, (h + 1) * D_HEAD)
            s = jnp.einsum("qd,kd->qk", q[:, sl], k[:, sl],
                           preferred_element_type=f32) * scale
            if add_mask is not None:
                s = s + add_mask
            s = s - jnp.max(s, axis=-1, keepdims=True)
            p = jnp.exp(s)
            p = p * pl.reciprocal(jnp.sum(p, axis=-1, keepdims=True), approx=True)
            ctx = jnp.dot(p, v[:, sl], preferred_element_type=f32)       # (Rq, Dh)
            # per-head accumulation straight into the output projection
            ho = jnp.dot(ctx, wo[sl, :], preferred_element_type=f32)     # (Rq, D)
            out = ho if out is None else out + ho
        return out + bo

    def self_attn(x, blk, add_mask):
        w = attn_w_ref[blk]                               # (D, 4D)
        b = attn_b_ref[blk]                               # (1, 4D)
        qkv = jnp.dot(x, w[:, :3 * D], preferred_element_type=f32) + b[:, :3 * D]
        return mha_core(qkv[:, :D], qkv[:, D:2 * D], qkv[:, 2 * D:3 * D],
                        w[:, 3 * D:], b[:, 3 * D:], add_mask)

    def cross_attn(x, blk, k, v, add_mask):
        w = attn_w_ref[blk]
        b = attn_b_ref[blk]
        q = jnp.dot(x, w[:, :D], preferred_element_type=f32) + b[:, :D]
        return mha_core(q, k, v, w[:, 3 * D:], b[:, 3 * D:], add_mask)

    def ffn(x, idx):
        w1 = ffn_w1_ref[idx]
        w2 = ffn_w2_ref[idx]
        b = ffn_b_ref[idx]
        h = jnp.maximum(jnp.dot(x, w1, preferred_element_type=f32) + b[:, :D_FF], 0.0)
        return jnp.dot(h, w2, preferred_element_type=f32) + b[:, D_FF:]

    # ---------------- masks (already additive, hoisted once) ----------------
    enc_mask = enc_mask_ref[0]                            # (S, S)
    cm = cross_mask_ref[0]                                # (3, Tq, S)
    src_x_mask, spd_x_mask, ped_x_mask = cm[0], cm[1], cm[2]
    dec_self_mask = dec_self_mask_ref[...] if b_tile > 1 else None

    # ---------------- fused input embeddings (one block-diag matmul) --------
    emb = (jnp.dot(feat_ref[...], emb_we_ref[...], preferred_element_type=f32)
           + enc_add_ref[...])                            # (S, 3D)
    x = emb[:, :D]                                        # src*sqrt(d) + PE
    embed_ego = emb[:, D:2 * D]
    embed_ped = emb[:, 2 * D:3 * D]
    x_dec = (jnp.dot(tgt_ref[...], emb_wt_ref[...], preferred_element_type=f32)
             + tgt_add_ref[...])                          # (Tq, D)

    # ---------------- encoder (pre-norm) + final LayerNorm -------------------
    for l in range(N_LAYERS):
        h = ln_at(2 * l, x)
        x = x + self_attn(h, l, enc_mask)
        h = ln_at(2 * l + 1, x)
        x = x + ffn(h, l)
    memory = ln_at(2 * N_LAYERS, x)

    # ---------------- all decoder cross-attn K/V in ONE matmul ---------------
    kv_src = jnp.concatenate([memory, embed_ego, embed_ped], axis=-1)     # (S, 3D)
    kv_all = (jnp.dot(kv_src, xkv_w_ref[...], preferred_element_type=f32)
              + xkv_b_ref[...])                                           # (S, 6D*N)

    # ---------------- decoder (pre-norm) + final LayerNorm -------------------
    x = x_dec
    ln0 = 2 * N_LAYERS + 1
    for l in range(N_LAYERS):
        c = l * 6 * D
        blk = N_LAYERS + 4 * l
        h = ln_at(ln0 + 5 * l + 0, x)
        x = x + self_attn(h, blk + 0, dec_self_mask)
        h = ln_at(ln0 + 5 * l + 1, x)
        x = x + cross_attn(h, blk + 1,
                           kv_all[:, c:c + D], kv_all[:, c + D:c + 2 * D], src_x_mask)
        h = ln_at(ln0 + 5 * l + 2, x)
        x = x + cross_attn(h, blk + 2,
                           kv_all[:, c + 2 * D:c + 3 * D], kv_all[:, c + 3 * D:c + 4 * D],
                           spd_x_mask)
        h = ln_at(ln0 + 5 * l + 3, x)
        x = x + cross_attn(h, blk + 3,
                           kv_all[:, c + 4 * D:c + 5 * D], kv_all[:, c + 5 * D:c + 6 * D],
                           ped_x_mask)
        h = ln_at(ln0 + 5 * l + 4, x)
        x = x + ffn(h, N_LAYERS + l)

    out_ref[...] = ln_at(7 * N_LAYERS + 1, x).astype(out_ref.dtype)


# --------------------------------------------------------------------------- wrapper helpers
def _const_idx(g, *, rank):
    return (0,) * rank


def positional_encoding(T, D):
    pos = jnp.arange(T, dtype=jnp.float32)[:, None]
    div = jnp.exp(jnp.arange(0, D, 2, dtype=jnp.float32) * (-math.log(10000.0) / D))
    pe = jnp.zeros((T, D), jnp.float32)
    pe = pe.at[:, 0::2].set(jnp.sin(pos * div))
    pe = pe.at[:, 1::2].set(jnp.cos(pos * div))
    return pe


def _additive(mask):                       # (B, 1, Tk) -> (B, Tk) additive mask
    return jnp.where(mask[:, 0, :] > 0, 0.0, NEG_INF)


def _block_diag_mask(bt, tq, tk):          # (bt*tq, bt*tk): 0 within batch, NEG across
    rb = jnp.arange(bt * tq) // tq
    cb = jnp.arange(bt * tk) // tk
    return jnp.where(rb[:, None] == cb[None, :], 0.0, NEG_INF)


def _tile_masks(add_key, bt, tq):          # add_key (Bp, Tk) -> (G, bt*tq, bt*tk)
    bp, tk = add_key.shape
    g = bp // bt
    key = add_key.reshape(g, 1, bt * tk)
    return _block_diag_mask(bt, tq, tk)[None] + key


def _num_tensorcores() -> int:
    """Best-effort TensorCores-per-device detection (megacore parts)."""
    try:
        kind = jax.devices()[0].device_kind.lower()
    except Exception:
        return 1
    if any(tag in kind for tag in ("v4", "v5p", "7x", "tpu7")):
        return 2
    return 1


# --------------------------------------------------------------------------- forward
@functools.partial(jax.jit, static_argnames=("b_tile",))
def _forward(packed, src, enc_extra_ego, enc_extra_ped, tgt,
             src_mask, spd_mask, ped_mask, *, b_tile):
    B, Ts, _ = src.shape
    Tt = tgt.shape[1]
    bt = b_tile
    G = (B + bt - 1) // bt
    Bp = G * bt

    # PyTorch: enc_extra_*.permute(0, 2, 1) -> (B, T, C)
    ego_in = jnp.transpose(enc_extra_ego, (0, 2, 1))
    ped_in = jnp.transpose(enc_extra_ped, (0, 2, 1))

    def pad_b(a):
        return a if Bp == B else jnp.pad(a, ((0, Bp - B),) + ((0, 0),) * (a.ndim - 1))

    src_p, ego_p, ped_p, tgt_p = (pad_b(a) for a in (src, ego_in, ped_in, tgt))
    sm, spm, pm = (pad_b(a) for a in (src_mask, spd_mask, ped_mask))

    # token slabs: batch folded into the sublane axis
    feat = jnp.concatenate([src_p, ego_p, ped_p], axis=-1).reshape(Bp * Ts, -1)
    tgt2d = tgt_p.reshape(Bp * Tt, -1)

    # precombined additive masks (key mask + cross-batch block-diag), per tile
    enc_self_mask = _tile_masks(_additive(sm), bt, Ts)                     # (G,S,S)
    cross_masks = jnp.stack(
        [_tile_masks(_additive(m), bt, Tt) for m in (sm, spm, pm)], axis=1)  # (G,3,Tq,S)
    dec_self_mask = _block_diag_mask(bt, Tt, Tt)                           # (Tq,Tq)

    # bias (+ PE) additive constants, tiled per batch inside the slab
    pe_src = positional_encoding(Ts, D_MODEL)
    pe_tgt = positional_encoding(Tt, D_MODEL)
    enc_add = jnp.tile(jnp.concatenate(
        [packed["src_b"] + pe_src,
         jnp.broadcast_to(packed["ego_b"], (Ts, D_MODEL)),
         jnp.broadcast_to(packed["ped_b"], (Ts, D_MODEL))], axis=-1), (bt, 1))
    tgt_add = jnp.tile(packed["tgt_b"] + pe_tgt, (bt, 1))

    S = bt * Ts
    Tq = bt * Tt

    args = (feat, tgt2d, enc_self_mask, cross_masks, dec_self_mask,
            packed["emb_w_enc"], packed["emb_w_tgt"], enc_add, tgt_add,
            packed["attn_w"], packed["attn_b"], packed["xkv_w"], packed["xkv_b"],
            packed["ffn_w1"], packed["ffn_w2"], packed["ffn_b"], packed["ln"])

    in_specs = [
        pl.BlockSpec((S, feat.shape[-1]), lambda g: (g, 0)),
        pl.BlockSpec((Tq, tgt2d.shape[-1]), lambda g: (g, 0)),
        pl.BlockSpec((1, S, S), lambda g: (g, 0, 0)),
        pl.BlockSpec((1, 3, Tq, S), lambda g: (g, 0, 0, 0)),
    ] + [pl.BlockSpec(a.shape, functools.partial(_const_idx, rank=a.ndim))
         for a in args[4:]]

    out2d = pl.pallas_call(
        functools.partial(_fused_forward_kernel, b_tile=bt),
        out_shape=jax.ShapeDtypeStruct((Bp * Tt, D_MODEL), jnp.float32),
        grid=(G,),
        in_specs=in_specs,
        out_specs=pl.BlockSpec((Tq, D_MODEL), lambda g: (g, 0)),
        compiler_params=pltpu.CompilerParams(
            dimension_semantics=("parallel",)),   # shards batch tiles across TCs
    )(*args)

    return out2d.reshape(Bp, Tt, D_MODEL)[:B]


def encoder_decoder_forward(packed_params, src, enc_extra_ego, enc_extra_ped, tgt,
                            src_mask, spd_mask, ped_mask):
    B = src.shape[0]
    n_cores = _num_tensorcores()
    b_tile = max(1, -(-B // n_cores))   # one grid step on single-TC, >=2 on megacore
    return _forward(packed_params, src, enc_extra_ego, enc_extra_ped, tgt,
                    src_mask, spd_mask, ped_mask, b_tile=b_tile)


# --------------------------------------------------------------------------- params
def _uniform(key, shape, fan_in):
    lim = 1.0 / math.sqrt(fan_in)
    return jax.random.uniform(key, shape, jnp.float32, -lim, lim)


def init_params(key, src_feat, tgt_feat, ego_feat, ped_feat):
    keys = iter(jax.random.split(key, 160))
    p = {}
    for name, feat in (("src_embed", src_feat), ("tgt_embed", tgt_feat),
                       ("ego_embed", ego_feat), ("ped_embed", ped_feat)):
        p[name + "_w"] = _uniform(next(keys), (feat, D_MODEL), feat)
        p[name + "_b"] = _uniform(next(keys), (1, D_MODEL), feat)

    def mha_stack(n):
        wqkv = jnp.stack([jnp.concatenate(
            [_uniform(next(keys), (D_MODEL, D_MODEL), D_MODEL) for _ in range(3)], axis=1)
            for _ in range(n)])
        bqkv = jnp.stack([jnp.concatenate(
            [_uniform(next(keys), (1, D_MODEL), D_MODEL) for _ in range(3)], axis=1)
            for _ in range(n)])
        wo = jnp.stack([_uniform(next(keys), (D_MODEL, D_MODEL), D_MODEL) for _ in range(n)])
        bo = jnp.stack([_uniform(next(keys), (1, D_MODEL), D_MODEL) for _ in range(n)])
        return wqkv, bqkv, wo, bo

    def ffn_stack(n):
        w1 = jnp.stack([_uniform(next(keys), (D_MODEL, D_FF), D_MODEL) for _ in range(n)])
        b1 = jnp.stack([_uniform(next(keys), (1, D_FF), D_MODEL) for _ in range(n)])
        w2 = jnp.stack([_uniform(next(keys), (D_FF, D_MODEL), D_FF) for _ in range(n)])
        b2 = jnp.stack([_uniform(next(keys), (1, D_MODEL), D_FF) for _ in range(n)])
        return w1, b1, w2, b2

    p["enc_wqkv"], p["enc_bqkv"], p["enc_wo"], p["enc_bo"] = mha_stack(N_LAYERS)
    p["enc_w1"], p["enc_b1"], p["enc_w2"], p["enc_b2"] = ffn_stack(N_LAYERS)
    p["enc_ln_g"] = jnp.ones((2 * N_LAYERS, 1, D_MODEL), jnp.float32)
    p["enc_ln_b"] = jnp.zeros((2 * N_LAYERS, 1, D_MODEL), jnp.float32)
    p["enc_norm_g"] = jnp.ones((1, D_MODEL), jnp.float32)
    p["enc_norm_b"] = jnp.zeros((1, D_MODEL), jnp.float32)

    p["dec_wqkv"], p["dec_bqkv"], p["dec_wo"], p["dec_bo"] = mha_stack(4 * N_LAYERS)
    p["dec_w1"], p["dec_b1"], p["dec_w2"], p["dec_b2"] = ffn_stack(N_LAYERS)
    p["dec_ln_g"] = jnp.ones((5 * N_LAYERS, 1, D_MODEL), jnp.float32)
    p["dec_ln_b"] = jnp.zeros((5 * N_LAYERS, 1, D_MODEL), jnp.float32)
    p["dec_norm_g"] = jnp.ones((1, D_MODEL), jnp.float32)
    p["dec_norm_b"] = jnp.zeros((1, D_MODEL), jnp.float32)
    return p


def pack_params(p):
    """Pack the per-module parameters into a handful of fused kernel buffers."""
    s = math.sqrt(D_MODEL)
    D = D_MODEL
    N = N_LAYERS
    packed = {}

    # fused [src|ego|ped] embedding (block-diagonal), tgt separate
    packed["emb_w_enc"] = jax.scipy.linalg.block_diag(
        p["src_embed_w"] * s, p["ego_embed_w"], p["ped_embed_w"])
    packed["emb_w_tgt"] = p["tgt_embed_w"] * s
    packed["src_b"] = p["src_embed_b"] * s
    packed["ego_b"] = p["ego_embed_b"]
    packed["ped_b"] = p["ped_embed_b"]
    packed["tgt_b"] = p["tgt_embed_b"] * s

    # all attention blocks: [Wq|Wk|Wv|Wo] per block; encoder first, then decoder
    packed["attn_w"] = jnp.concatenate([
        jnp.concatenate([p["enc_wqkv"], p["enc_wo"]], axis=-1),
        jnp.concatenate([p["dec_wqkv"], p["dec_wo"]], axis=-1)], axis=0)
    packed["attn_b"] = jnp.concatenate([
        jnp.concatenate([p["enc_bqkv"], p["enc_bo"]], axis=-1),
        jnp.concatenate([p["dec_bqkv"], p["dec_bo"]], axis=-1)], axis=0)

    # per-decoder-layer block-diagonal cross K/V weights (mem / ego / ped)
    xw, xb = [], []
    for l in range(N):
        blocks = [p["dec_wqkv"][4 * l + j][:, D:3 * D] for j in (1, 2, 3)]
        xw.append(jax.scipy.linalg.block_diag(*blocks))                    # (3D, 6D)
        xb.append(jnp.concatenate(
            [p["dec_bqkv"][4 * l + j][:, D:3 * D] for j in (1, 2, 3)], axis=-1))
    packed["xkv_w"] = jnp.concatenate(xw, axis=-1)                         # (3D, 6D*N)
    packed["xkv_b"] = jnp.concatenate(xb, axis=-1)                         # (1, 6D*N)

    packed["ffn_w1"] = jnp.concatenate([p["enc_w1"], p["dec_w1"]], axis=0)
    packed["ffn_w2"] = jnp.concatenate([p["enc_w2"], p["dec_w2"]], axis=0)
    packed["ffn_b"] = jnp.concatenate([
        jnp.concatenate([p["enc_b1"], p["enc_b2"]], axis=-1),
        jnp.concatenate([p["dec_b1"], p["dec_b2"]], axis=-1)], axis=0)

    packed["ln"] = jnp.concatenate([
        jnp.concatenate([p["enc_ln_g"], p["enc_ln_b"]], axis=-1),
        jnp.concatenate([p["enc_norm_g"], p["enc_norm_b"]], axis=-1)[None],
        jnp.concatenate([p["dec_ln_g"], p["dec_ln_b"]], axis=-1),
        jnp.concatenate([p["dec_norm_g"], p["dec_norm_b"]], axis=-1)[None],
    ], axis=0)                                                             # (7N+2,1,2D)
    return packed


# --------------------------------------------------------------------------- main
if __name__ == "__main__":
    B, Ts, Tt = 2, 8, 8
    SRC_FEAT, TGT_FEAT, EGO_FEAT, PED_FEAT = 4, 4, 2, 4

    root = jax.random.PRNGKey(0)
    k_par, k_src, k_ego, k_ped, k_tgt = jax.random.split(root, 5)

    params = init_params(k_par, SRC_FEAT, TGT_FEAT, EGO_FEAT, PED_FEAT)
    packed = pack_params(params)   # one-time packing, outside the per-call path

    src = jax.random.normal(k_src, (B, Ts, SRC_FEAT), jnp.float32)
    enc_extra_ego = jax.random.normal(k_ego, (B, EGO_FEAT, Ts), jnp.float32)  # (B, C, T)
    enc_extra_ped = jax.random.normal(k_ped, (B, PED_FEAT, Ts), jnp.float32)  # (B, C, T)
    tgt = jax.random.normal(k_tgt, (B, Tt, TGT_FEAT), jnp.float32)
    src_mask = jnp.ones((B, 1, Ts), jnp.float32)
    spd_mask = jnp.ones((B, 1, Ts), jnp.float32)
    ped_mask = jnp.ones((B, 1, Ts), jnp.float32)

    out = encoder_decoder_forward(packed, src, enc_extra_ego, enc_extra_ped, tgt,
                                  src_mask, spd_mask, ped_mask)
    out = jax.block_until_ready(out)
    assert out.shape == (B, Tt, D_MODEL)
    assert bool(jnp.all(jnp.isfinite(out)))
    print("KERNEL_OK")
</pallas_src>

<mosaic_0001>
module attributes {stable_mosaic.version = 11 : i64} {
  func.func @_fused_forward_kernel(%arg0: i32, %arg1: memref<16x10xf32, #tpu.memory_space<vmem>>, %arg2: memref<16x4xf32, #tpu.memory_space<vmem>>, %arg3: memref<1x16x16xf32, #tpu.memory_space<vmem>>, %arg4: memref<1x3x16x16xf32, #tpu.memory_space<vmem>>, %arg5: memref<16x16xf32, #tpu.memory_space<vmem>>, %arg6: memref<10x96xf32, #tpu.memory_space<vmem>>, %arg7: memref<4x32xf32, #tpu.memory_space<vmem>>, %arg8: memref<16x96xf32, #tpu.memory_space<vmem>>, %arg9: memref<16x32xf32, #tpu.memory_space<vmem>>, %arg10: memref<10x32x128xf32, #tpu.memory_space<vmem>>, %arg11: memref<10x1x128xf32, #tpu.memory_space<vmem>>, %arg12: memref<96x384xf32, #tpu.memory_space<vmem>>, %arg13: memref<1x384xf32, #tpu.memory_space<vmem>>, %arg14: memref<4x32x64xf32, #tpu.memory_space<vmem>>, %arg15: memref<4x64x32xf32, #tpu.memory_space<vmem>>, %arg16: memref<4x1x96xf32, #tpu.memory_space<vmem>>, %arg17: memref<16x1x64xf32, #tpu.memory_space<vmem>>, %arg18: memref<16x32xf32, #tpu.memory_space<vmem>>) attributes {dimension_semantics = [#tpu.dimension_semantics<parallel>], iteration_bounds = array<i64: 1>, scalar_prefetch = 0 : i64, scratch_operands = 0 : i64, tpu.core_type = #tpu.core_type<tc>, window_params = [{transform_indices = @transform_0, window_bounds = array<i64: 16, 10>}, {transform_indices = @transform_1, window_bounds = array<i64: 16, 4>}, {transform_indices = @transform_2, window_bounds = array<i64: 1, 16, 16>}, {transform_indices = @transform_3, window_bounds = array<i64: 1, 3, 16, 16>}, {pipeline_mode = #tpu.pipeline_mode<synchronous>, transform_indices = @transform_4, window_bounds = array<i64: 16, 16>}, {pipeline_mode = #tpu.pipeline_mode<synchronous>, transform_indices = @transform_5, window_bounds = array<i64: 10, 96>}, {pipeline_mode = #tpu.pipeline_mode<synchronous>, transform_indices = @transform_6, window_bounds = array<i64: 4, 32>}, {pipeline_mode = #tpu.pipeline_mode<synchronous>, transform_indices = @transform_7, window_bounds = array<i64: 16, 96>}, {pipeline_mode = #tpu.pipeline_mode<synchronous>, transform_indices = @transform_8, window_bounds = array<i64: 16, 32>}, {pipeline_mode = #tpu.pipeline_mode<synchronous>, transform_indices = @transform_9, window_bounds = array<i64: 10, 32, 128>}, {pipeline_mode = #tpu.pipeline_mode<synchronous>, transform_indices = @transform_10, window_bounds = array<i64: 10, 1, 128>}, {pipeline_mode = #tpu.pipeline_mode<synchronous>, transform_indices = @transform_11, window_bounds = array<i64: 96, 384>}, {pipeline_mode = #tpu.pipeline_mode<synchronous>, transform_indices = @transform_12, window_bounds = array<i64: 1, 384>}, {pipeline_mode = #tpu.pipeline_mode<synchronous>, transform_indices = @transform_13, window_bounds = array<i64: 4, 32, 64>}, {pipeline_mode = #tpu.pipeline_mode<synchronous>, transform_indices = @transform_14, window_bounds = array<i64: 4, 64, 32>}, {pipeline_mode = #tpu.pipeline_mode<synchronous>, transform_indices = @transform_15, window_bounds = array<i64: 4, 1, 96>}, {pipeline_mode = #tpu.pipeline_mode<synchronous>, transform_indices = @transform_16, window_bounds = array<i64: 16, 1, 64>}, {transform_indices = @transform_17, window_bounds = array<i64: 16, 32>}]} {
    %c0 = arith.constant 0 : index
    %c0_0 = arith.constant 0 : index
    %c0_1 = arith.constant 0 : index
    %0 = vector.load %arg3[%c0, %c0_0, %c0_1] : memref<1x16x16xf32, #tpu.memory_space<vmem>>, vector<1x16x16xf32>
    %1 = vector.shape_cast %0 : vector<1x16x16xf32> to vector<16x16xf32>
    %c0_2 = arith.constant 0 : index
    %c0_3 = arith.constant 0 : index
    %c0_4 = arith.constant 0 : index
    %c0_5 = arith.constant 0 : index
    %2 = vector.load %arg4[%c0_2, %c0_3, %c0_4, %c0_5] : memref<1x3x16x16xf32, #tpu.memory_space<vmem>>, vector<1x3x16x16xf32>
    %3 = vector.shape_cast %2 : vector<1x3x16x16xf32> to vector<3x16x16xf32>
    %4 = vector.extract_strided_slice %3 {offsets = [0, 0, 0], sizes = [1, 16, 16], strides = [1, 1, 1]} : vector<3x16x16xf32> to vector<1x16x16xf32>
    %5 = vector.shape_cast %4 : vector<1x16x16xf32> to vector<16x16xf32>
    %6 = vector.extract_strided_slice %3 {offsets = [1, 0, 0], sizes = [1, 16, 16], strides = [1, 1, 1]} : vector<3x16x16xf32> to vector<1x16x16xf32>
    %7 = vector.shape_cast %6 : vector<1x16x16xf32> to vector<16x16xf32>
    %8 = vector.extract_strided_slice %3 {offsets = [2, 0, 0], sizes = [1, 16, 16], strides = [1, 1, 1]} : vector<3x16x16xf32> to vector<1x16x16xf32>
    %9 = vector.shape_cast %8 : vector<1x16x16xf32> to vector<16x16xf32>
    %c0_6 = arith.constant 0 : index
    %c0_7 = arith.constant 0 : index
    %10 = vector.load %arg5[%c0_6, %c0_7] : memref<16x16xf32, #tpu.memory_space<vmem>>, vector<16x16xf32>
    %11 = vector.shape_cast %10 : vector<16x16xf32> to vector<16x16xf32>
    %c0_8 = arith.constant 0 : index
    %c0_9 = arith.constant 0 : index
    %12 = vector.load %arg1[%c0_8, %c0_9] : memref<16x10xf32, #tpu.memory_space<vmem>>, vector<16x10xf32>
    %c0_10 = arith.constant 0 : index
    %c0_11 = arith.constant 0 : index
    %13 = vector.load %arg6[%c0_10, %c0_11] : memref<10x96xf32, #tpu.memory_space<vmem>>, vector<10x96xf32>
    %cst = arith.constant dense<0.000000e+00> : vector<16x96xf32>
    %14 = tpu.matmul %12, %13, %cst {dimension_numbers = #tpu.dot_dimension_numbers<[1], [0], [0], [1], [0, 0, 1, 1], [], []>} : vector<16x10xf32>, vector<10x96xf32>, vector<16x96xf32> -> vector<16x96xf32>
    %c0_12 = arith.constant 0 : index
    %c0_13 = arith.constant 0 : index
    %15 = vector.load %arg8[%c0_12, %c0_13] : memref<16x96xf32, #tpu.memory_space<vmem>>, vector<16x96xf32>
    %16 = arith.addf %14, %15 : vector<16x96xf32>
    %17 = vector.extract_strided_slice %16 {offsets = [0, 0], sizes = [16, 32], strides = [1, 1]} : vector<16x96xf32> to vector<16x32xf32>
    %18 = vector.extract_strided_slice %16 {offsets = [0, 32], sizes = [16, 32], strides = [1, 1]} : vector<16x96xf32> to vector<16x32xf32>
    %19 = vector.extract_strided_slice %16 {offsets = [0, 64], sizes = [16, 32], strides = [1, 1]} : vector<16x96xf32> to vector<16x32xf32>
    %c0_14 = arith.constant 0 : index
    %c0_15 = arith.constant 0 : index
    %20 = vector.load %arg2[%c0_14, %c0_15] : memref<16x4xf32, #tpu.memory_space<vmem>>, vector<16x4xf32>
    %c0_16 = arith.constant 0 : index
    %c0_17 = arith.constant 0 : index
    %21 = vector.load %arg7[%c0_16, %c0_17] : memref<4x32xf32, #tpu.memory_space<vmem>>, vector<4x32xf32>
    %cst_18 = arith.constant dense<0.000000e+00> : vector<16x32xf32>
    %22 = tpu.matmul %20, %21, %cst_18 {dimension_numbers = #tpu.dot_dimension_numbers<[1], [0], [0], [1], [0, 0, 1, 1], [], []>} : vector<16x4xf32>, vector<4x32xf32>, vector<16x32xf32> -> vector<16x32xf32>
    %c0_19 = arith.constant 0 : index
    %c0_20 = arith.constant 0 : index
    %23 = vector.load %arg9[%c0_19, %c0_20] : memref<16x32xf32, #tpu.memory_space<vmem>>, vector<16x32xf32>
    %24 = arith.addf %22, %23 : vector<16x32xf32>
    %c0_21 = arith.constant 0 : index
    %c0_22 = arith.constant 0 : index
    %c0_23 = arith.constant 0 : index
    %25 = vector.load %arg17[%c0_21, %c0_22, %c0_23] : memref<16x1x64xf32, #tpu.memory_space<vmem>>, vector<1x1x64xf32>
    %26 = vector.shape_cast %25 : vector<1x1x64xf32> to vector<1x64xf32>
    %cst_24 = arith.constant dense<0.000000e+00> : vector<16xf32>
    %27 = vector.multi_reduction <add>, %17, %cst_24 [1] : vector<16x32xf32> to vector<16xf32>
    %28 = vector.shape_cast %27 : vector<16xf32> to vector<16x1xf32>
    %cst_25 = arith.constant 3.200000e+01 : f32
    %29 = vector.broadcast %cst_25 : f32 to vector<16x1xf32>
    %30 = arith.divf %28, %29 : vector<16x1xf32>
    %31 = arith.mulf %17, %17 : vector<16x32xf32>
    %cst_26 = arith.constant dense<0.000000e+00> : vector<16xf32>
    %32 = vector.multi_reduction <add>, %31, %cst_26 [1] : vector<16x32xf32> to vector<16xf32>
    %33 = vector.shape_cast %32 : vector<16xf32> to vector<16x1xf32>
    %cst_27 = arith.constant 3.200000e+01 : f32
    %34 = vector.broadcast %cst_27 : f32 to vector<16x1xf32>
    %35 = arith.divf %33, %34 : vector<16x1xf32>
    %36 = arith.mulf %30, %30 : vector<16x1xf32>
    %37 = arith.subf %35, %36 : vector<16x1xf32>
    %cst_28 = arith.constant 0.000000e+00 : f32
    %38 = vector.broadcast %cst_28 : f32 to vector<16x1xf32>
    %39 = arith.maximumf %37, %38 : vector<16x1xf32>
    %40 = vector.broadcast %30 : vector<16x1xf32> to vector<16x32xf32>
    %41 = arith.subf %17, %40 : vector<16x32xf32>
    %cst_29 = arith.constant 9.99999997E-7 : f32
    %42 = vector.broadcast %cst_29 : f32 to vector<16x1xf32>
    %43 = arith.addf %39, %42 : vector<16x1xf32>
    %44 = math.rsqrt %43 : vector<16x1xf32>
    %45 = vector.broadcast %44 : vector<16x1xf32> to vector<16x32xf32>
    %46 = arith.mulf %41, %45 : vector<16x32xf32>
    %47 = vector.extract_strided_slice %26 {offsets = [0, 0], sizes = [1, 32], strides = [1, 1]} : vector<1x64xf32> to vector<1x32xf32>
    %48 = vector.broadcast %47 : vector<1x32xf32> to vector<16x32xf32>
    %49 = arith.mulf %46, %48 : vector<16x32xf32>
    %50 = vector.extract_strided_slice %26 {offsets = [0, 32], sizes = [1, 32], strides = [1, 1]} : vector<1x64xf32> to vector<1x32xf32>
    %51 = vector.broadcast %50 : vector<1x32xf32> to vector<16x32xf32>
    %52 = arith.addf %49, %51 : vector<16x32xf32>
    %c0_30 = arith.constant 0 : index
    %c0_31 = arith.constant 0 : index
    %c0_32 = arith.constant 0 : index
    %53 = vector.load %arg10[%c0_30, %c0_31, %c0_32] : memref<10x32x128xf32, #tpu.memory_space<vmem>>, vector<1x32x128xf32>
    %54 = vector.shape_cast %53 : vector<1x32x128xf32> to vector<32x128xf32>
    %c0_33 = arith.constant 0 : index
    %c0_34 = arith.constant 0 : index
    %c0_35 = arith.constant 0 : index
    %55 = vector.load %arg11[%c0_33, %c0_34, %c0_35] : memref<10x1x128xf32, #tpu.memory_space<vmem>>, vector<1x1x128xf32>
    %56 = vector.shape_cast %55 : vector<1x1x128xf32> to vector<1x128xf32>
    %57 = vector.extract_strided_slice %54 {offsets = [0, 0], sizes = [32, 96], strides = [1, 1]} : vector<32x128xf32> to vector<32x96xf32>
    %cst_36 = arith.constant dense<0.000000e+00> : vector<16x96xf32>
    %58 = tpu.matmul %52, %57, %cst_36 {dimension_numbers = #tpu.dot_dimension_numbers<[1], [0], [0], [1], [0, 0, 1, 1], [], []>} : vector<16x32xf32>, vector<32x96xf32>, vector<16x96xf32> -> vector<16x96xf32>
    %59 = vector.extract_strided_slice %56 {offsets = [0, 0], sizes = [1, 96], strides = [1, 1]} : vector<1x128xf32> to vector<1x96xf32>
    %60 = vector.broadcast %59 : vector<1x96xf32> to vector<16x96xf32>
    %61 = arith.addf %58, %60 : vector<16x96xf32>
    %62 = vector.extract_strided_slice %61 {offsets = [0, 0], sizes = [16, 32], strides = [1, 1]} : vector<16x96xf32> to vector<16x32xf32>
    %63 = vector.extract_strided_slice %61 {offsets = [0, 32], sizes = [16, 32], strides = [1, 1]} : vector<16x96xf32> to vector<16x32xf32>
    %64 = vector.extract_strided_slice %61 {offsets = [0, 64], sizes = [16, 32], strides = [1, 1]} : vector<16x96xf32> to vector<16x32xf32>
    %65 = vector.extract_strided_slice %54 {offsets = [0, 96], sizes = [32, 32], strides = [1, 1]} : vector<32x128xf32> to vector<32x32xf32>
    %66 = vector.extract_strided_slice %56 {offsets = [0, 96], sizes = [1, 32], strides = [1, 1]} : vector<1x128xf32> to vector<1x32xf32>
    %67 = vector.extract_strided_slice %62 {offsets = [0, 0], sizes = [16, 8], strides = [1, 1]} : vector<16x32xf32> to vector<16x8xf32>
    %68 = vector.extract_strided_slice %63 {offsets = [0, 0], sizes = [16, 8], strides = [1, 1]} : vector<16x32xf32> to vector<16x8xf32>
    "tpu.trace_start"() <{level = 10 : i32, message = "qd,kd->qk"}> : () -> ()
    %cst_37 = arith.constant dense<0.000000e+00> : vector<16x16xf32>
    %69 = tpu.matmul %67, %68, %cst_37 {dimension_numbers = #tpu.dot_dimension_numbers<[1], [1], [0], [0], [0, 0, 1, 0], [], []>} : vector<16x8xf32>, vector<16x8xf32>, vector<16x16xf32> -> vector<16x16xf32>
    "tpu.trace_stop"() : () -> ()
    %cst_38 = arith.constant 0.353553385 : f32
    %70 = vector.broadcast %cst_38 : f32 to vector<16x16xf32>
    %71 = arith.mulf %69, %70 : vector<16x16xf32>
    %72 = arith.addf %71, %1 : vector<16x16xf32>
    %cst_39 = arith.constant dense<0xFF800000> : vector<16xf32>
    %73 = vector.multi_reduction <maximumf>, %72, %cst_39 [1] : vector<16x16xf32> to vector<16xf32>
    %74 = vector.shape_cast %73 : vector<16xf32> to vector<16x1xf32>
    %75 = vector.broadcast %74 : vector<16x1xf32> to vector<16x16xf32>
    %76 = arith.subf %72, %75 : vector<16x16xf32>
    %77 = math.exp %76 : vector<16x16xf32>
    %cst_40 = arith.constant dense<0.000000e+00> : vector<16xf32>
    %78 = vector.multi_reduction <add>, %77, %cst_40 [1] : vector<16x16xf32> to vector<16xf32>
    %79 = vector.shape_cast %78 : vector<16xf32> to vector<16x1xf32>
    %80 = tpu.reciprocal %79 {approx = true} : vector<16x1xf32> -> vector<16x1xf32>
    %81 = vector.broadcast %80 : vector<16x1xf32> to vector<16x16xf32>
    %82 = arith.mulf %77, %81 : vector<16x16xf32>
    %83 = vector.extract_strided_slice %64 {offsets = [0, 0], sizes = [16, 8], strides = [1, 1]} : vector<16x32xf32> to vector<16x8xf32>
    %cst_41 = arith.constant dense<0.000000e+00> : vector<16x8xf32>
    %84 = tpu.matmul %82, %83, %cst_41 {dimension_numbers = #tpu.dot_dimension_numbers<[1], [0], [0], [1], [0, 0, 1, 1], [], []>} : vector<16x16xf32>, vector<16x8xf32>, vector<16x8xf32> -> vector<16x8xf32>
    %85 = vector.extract_strided_slice %65 {offsets = [0, 0], sizes = [8, 32], strides = [1, 1]} : vector<32x32xf32> to vector<8x32xf32>
    %cst_42 = arith.constant dense<0.000000e+00> : vector<16x32xf32>
    %86 = tpu.matmul %84, %85, %cst_42 {dimension_numbers = #tpu.dot_dimension_numbers<[1], [0], [0], [1], [0, 0, 1, 1], [], []>} : vector<16x8xf32>, vector<8x32xf32>, vector<16x32xf32> -> vector<16x32xf32>
    %87 = vector.extract_strided_slice %62 {offsets = [0, 8], sizes = [16, 8], strides = [1, 1]} : vector<16x32xf32> to vector<16x8xf32>
    %88 = vector.extract_strided_slice %63 {offsets = [0, 8], sizes = [16, 8], strides = [1, 1]} : vector<16x32xf32> to vector<16x8xf32>
    "tpu.trace_start"() <{level = 10 : i32, message = "qd,kd->qk"}> : () -> ()
    %cst_43 = arith.constant dense<0.000000e+00> : vector<16x16xf32>
    %89 = tpu.matmul %87, %88, %cst_43 {dimension_numbers = #tpu.dot_dimension_numbers<[1], [1], [0], [0], [0, 0, 1, 0], [], []>} : vector<16x8xf32>, vector<16x8xf32>, vector<16x16xf32> -> vector<16x16xf32>
    "tpu.trace_stop"() : () -> ()
    %cst_44 = arith.constant 0.353553385 : f32
    %90 = vector.broadcast %cst_44 : f32 to vector<16x16xf32>
    %91 = arith.mulf %89, %90 : vector<16x16xf32>
    %92 = arith.addf %91, %1 : vector<16x16xf32>
    %cst_45 = arith.constant dense<0xFF800000> : vector<16xf32>
    %93 = vector.multi_reduction <maximumf>, %92, %cst_45 [1] : vector<16x16xf32> to vector<16xf32>
    %94 = vector.shape_cast %93 : vector<16xf32> to vector<16x1xf32>
    %95 = vector.broadcast %94 : vector<16x1xf32> to vector<16x16xf32>
    %96 = arith.subf %92, %95 : vector<16x16xf32>
    %97 = math.exp %96 : vector<16x16xf32>
    %cst_46 = arith.constant dense<0.000000e+00> : vector<16xf32>
    %98 = vector.multi_reduction <add>, %97, %cst_46 [1] : vector<16x16xf32> to vector<16xf32>
    %99 = vector.shape_cast %98 : vector<16xf32> to vector<16x1xf32>
    %100 = tpu.reciprocal %99 {approx = true} : vector<16x1xf32> -> vector<16x1xf32>
    %101 = vector.broadcast %100 : vector<16x1xf32> to vector<16x16xf32>
    %102 = arith.mulf %97, %101 : vector<16x16xf32>
    %103 = vector.extract_strided_slice %64 {offsets = [0, 8], sizes = [16, 8], strides = [1, 1]} : vector<16x32xf32> to vector<16x8xf32>
    %cst_47 = arith.constant dense<0.000000e+00> : vector<16x8xf32>
    %104 = tpu.matmul %102, %103, %cst_47 {dimension_numbers = #tpu.dot_dimension_numbers<[1], [0], [0], [1], [0, 0, 1, 1], [], []>} : vector<16x16xf32>, vector<16x8xf32>, vector<16x8xf32> -> vector<16x8xf32>
    %105 = vector.extract_strided_slice %65 {offsets = [8, 0], sizes = [8, 32], strides = [1, 1]} : vector<32x32xf32> to vector<8x32xf32>
    %cst_48 = arith.constant dense<0.000000e+00> : vector<16x32xf32>
    %106 = tpu.matmul %104, %105, %cst_48 {dimension_numbers = #tpu.dot_dimension_numbers<[1], [0], [0], [1], [0, 0, 1, 1], [], []>} : vector<16x8xf32>, vector<8x32xf32>, vector<16x32xf32> -> vector<16x32xf32>
    %107 = arith.addf %86, %106 : vector<16x32xf32>
    %108 = vector.extract_strided_slice %62 {offsets = [0, 16], sizes = [16, 8], strides = [1, 1]} : vector<16x32xf32> to vector<16x8xf32>
    %109 = vector.extract_strided_slice %63 {offsets = [0, 16], sizes = [16, 8], strides = [1, 1]} : vector<16x32xf32> to vector<16x8xf32>
    "tpu.trace_start"() <{level = 10 : i32, message = "qd,kd->qk"}> : () -> ()
    %cst_49 = arith.constant dense<0.000000e+00> : vector<16x16xf32>
    %110 = tpu.matmul %108, %109, %cst_49 {dimension_numbers = #tpu.dot_dimension_numbers<[1], [1], [0], [0], [0, 0, 1, 0], [], []>} : vector<16x8xf32>, vector<16x8xf32>, vector<16x16xf32> -> vector<16x16xf32>
    "tpu.trace_stop"() : () -> ()
    %cst_50 = arith.constant 0.353553385 : f32
    %111 = vector.broadcast %cst_50 : f32 to vector<16x16xf32>
    %112 = arith.mulf %110, %111 : vector<16x16xf32>
    %113 = arith.addf %112, %1 : vector<16x16xf32>
    %cst_51 = arith.constant dense<0xFF800000> : vector<16xf32>
    %114 = vector.multi_reduction <maximumf>, %113, %cst_51 [1] : vector<16x16xf32> to vector<16xf32>
    %115 = vector.shape_cast %114 : vector<16xf32> to vector<16x1xf32>
    %116 = vector.broadcast %115 : vector<16x1xf32> to vector<16x16xf32>
    %117 = arith.subf %113, %116 : vector<16x16xf32>
    %118 = math.exp %117 : vector<16x16xf32>
    %cst_52 = arith.constant dense<0.000000e+00> : vector<16xf32>
    %119 = vector.multi_reduction <add>, %118, %cst_52 [1] : vector<16x16xf32> to vector<16xf32>
    %120 = vector.shape_cast %119 : vector<16xf32> to vector<16x1xf32>
    %121 = tpu.reciprocal %120 {approx = true} : vector<16x1xf32> -> vector<16x1xf32>
    %122 = vector.broadcast %121 : vector<16x1xf32> to vector<16x16xf32>
    %123 = arith.mulf %118, %122 : vector<16x16xf32>
    %124 = vector.extract_strided_slice %64 {offsets = [0, 16], sizes = [16, 8], strides = [1, 1]} : vector<16x32xf32> to vector<16x8xf32>
    %cst_53 = arith.constant dense<0.000000e+00> : vector<16x8xf32>
    %125 = tpu.matmul %123, %124, %cst_53 {dimension_numbers = #tpu.dot_dimension_numbers<[1], [0], [0], [1], [0, 0, 1, 1], [], []>} : vector<16x16xf32>, vector<16x8xf32>, vector<16x8xf32> -> vector<16x8xf32>
    %126 = vector.extract_strided_slice %65 {offsets = [16, 0], sizes = [8, 32], strides = [1, 1]} : vector<32x32xf32> to vector<8x32xf32>
    %cst_54 = arith.constant dense<0.000000e+00> : vector<16x32xf32>
    %127 = tpu.matmul %125, %126, %cst_54 {dimension_numbers = #tpu.dot_dimension_numbers<[1], [0], [0], [1], [0, 0, 1, 1], [], []>} : vector<16x8xf32>, vector<8x32xf32>, vector<16x32xf32> -> vector<16x32xf32>
    %128 = arith.addf %107, %127 : vector<16x32xf32>
    %129 = vector.extract_strided_slice %62 {offsets = [0, 24], sizes = [16, 8], strides = [1, 1]} : vector<16x32xf32> to vector<16x8xf32>
    %130 = vector.extract_strided_slice %63 {offsets = [0, 24], sizes = [16, 8], strides = [1, 1]} : vector<16x32xf32> to vector<16x8xf32>
    "tpu.trace_start"() <{level = 10 : i32, message = "qd,kd->qk"}> : () -> ()
    %cst_55 = arith.constant dense<0.000000e+00> : vector<16x16xf32>
    %131 = tpu.matmul %129, %130, %cst_55 {dimension_numbers = #tpu.dot_dimension_numbers<[1], [1], [0], [0], [0, 0, 1, 0], [], []>} : vector<16x8xf32>, vector<16x8xf32>, vector<16x16xf32> -> vector<16x16xf32>
    "tpu.trace_stop"() : () -> ()
    %cst_56 = arith.constant 0.353553385 : f32
    %132 = vector.broadcast %cst_56 : f32 to vector<16x16xf32>
    %133 = arith.mulf %131, %132 : vector<16x16xf32>
    %134 = arith.addf %133, %1 : vector<16x16xf32>
    %cst_57 = arith.constant dense<0xFF800000> : vector<16xf32>
    %135 = vector.multi_reduction <maximumf>, %134, %cst_57 [1] : vector<16x16xf32> to vector<16xf32>
    %136 = vector.shape_cast %135 : vector<16xf32> to vector<16x1xf32>
    %137 = vector.broadcast %136 : vector<16x1xf32> to vector<16x16xf32>
    %138 = arith.subf %134, %137 : vector<16x16xf32>
    %139 = math.exp %138 : vector<16x16xf32>
    %cst_58 = arith.constant dense<0.000000e+00> : vector<16xf32>
    %140 = vector.multi_reduction <add>, %139, %cst_58 [1] : vector<16x16xf32> to vector<16xf32>
    %141 = vector.shape_cast %140 : vector<16xf32> to vector<16x1xf32>
    %142 = tpu.reciprocal %141 {approx = true} : vector<16x1xf32> -> vector<16x1xf32>
    %143 = vector.broadcast %142 : vector<16x1xf32> to vector<16x16xf32>
    %144 = arith.mulf %139, %143 : vector<16x16xf32>
    %145 = vector.extract_strided_slice %64 {offsets = [0, 24], sizes = [16, 8], strides = [1, 1]} : vector<16x32xf32> to vector<16x8xf32>
    %cst_59 = arith.constant dense<0.000000e+00> : vector<16x8xf32>
    %146 = tpu.matmul %144, %145, %cst_59 {dimension_numbers = #tpu.dot_dimension_numbers<[1], [0], [0], [1], [0, 0, 1, 1], [], []>} : vector<16x16xf32>, vector<16x8xf32>, vector<16x8xf32> -> vector<16x8xf32>
    %147 = vector.extract_strided_slice %65 {offsets = [24, 0], sizes = [8, 32], strides = [1, 1]} : vector<32x32xf32> to vector<8x32xf32>
    %cst_60 = arith.constant dense<0.000000e+00> : vector<16x32xf32>
    %148 = tpu.matmul %146, %147, %cst_60 {dimension_numbers = #tpu.dot_dimension_numbers<[1], [0], [0], [1], [0, 0, 1, 1], [], []>} : vector<16x8xf32>, vector<8x32xf32>, vector<16x32xf32> -> vector<16x32xf32>
    %149 = arith.addf %128, %148 : vector<16x32xf32>
    %150 = vector.broadcast %66 : vector<1x32xf32> to vector<16x32xf32>
    %151 = arith.addf %149, %150 : vector<16x32xf32>
    %152 = arith.addf %17, %151 : vector<16x32xf32>
    %c1 = arith.constant 1 : index
    %c0_61 = arith.constant 0 : index
    %c0_62 = arith.constant 0 : index
    %153 = vector.load %arg17[%c1, %c0_61, %c0_62] : memref<16x1x64xf32, #tpu.memory_space<vmem>>, vector<1x1x64xf32>
    %154 = vector.shape_cast %153 : vector<1x1x64xf32> to vector<1x64xf32>
    %cst_63 = arith.constant dense<0.000000e+00> : vector<16xf32>
    %155 = vector.multi_reduction <add>, %152, %cst_63 [1] : vector<16x32xf32> to vector<16xf32>
    %156 = vector.shape_cast %155 : vector<16xf32> to vector<16x1xf32>
    %cst_64 = arith.constant 3.200000e+01 : f32
    %157 = vector.broadcast %cst_64 : f32 to vector<16x1xf32>
    %158 = arith.divf %156, %157 : vector<16x1xf32>
    %159 = arith.mulf %152, %152 : vector<16x32xf32>
    %cst_65 = arith.constant dense<0.000000e+00> : vector<16xf32>
    %160 = vector.multi_reduction <add>, %159, %cst_65 [1] : vector<16x32xf32> to vector<16xf32>
    %161 = vector.shape_cast %160 : vector<16xf32> to vector<16x1xf32>
    %cst_66 = arith.constant 3.200000e+01 : f32
    %162 = vector.broadcast %cst_66 : f32 to vector<16x1xf32>
    %163 = arith.divf %161, %162 : vector<16x1xf32>
    %164 = arith.mulf %158, %158 : vector<16x1xf32>
    %165 = arith.subf %163, %164 : vector<16x1xf32>
    %cst_67 = arith.constant 0.000000e+00 : f32
    %166 = vector.broadcast %cst_67 : f32 to vector<16x1xf32>
    %167 = arith.maximumf %165, %166 : vector<16x1xf32>
    %168 = vector.broadcast %158 : vector<16x1xf32> to vector<16x32xf32>
    %169 = arith.subf %152, %168 : vector<16x32xf32>
    %cst_68 = arith.constant 9.99999997E-7 : f32
    %170 = vector.broadcast %cst_68 : f32 to vector<16x1xf32>
    %171 = arith.addf %167, %170 : vector<16x1xf32>
    %172 = math.rsqrt %171 : vector<16x1xf32>
    %173 = vector.broadcast %172 : vector<16x1xf32> to vector<16x32xf32>
    %174 = arith.mulf %169, %173 : vector<16x32xf32>
    %175 = vector.extract_strided_slice %154 {offsets = [0, 0], sizes = [1, 32], strides = [1, 1]} : vector<1x64xf32> to vector<1x32xf32>
    %176 = vector.broadcast %175 : vector<1x32xf32> to vector<16x32xf32>
    %177 = arith.mulf %174, %176 : vector<16x32xf32>
    %178 = vector.extract_strided_slice %154 {offsets = [0, 32], sizes = [1, 32], strides = [1, 1]} : vector<1x64xf32> to vector<1x32xf32>
    %179 = vector.broadcast %178 : vector<1x32xf32> to vector<16x32xf32>
    %180 = arith.addf %177, %179 : vector<16x32xf32>
    %c0_69 = arith.constant 0 : index
    %c0_70 = arith.constant 0 : index
    %c0_71 = arith.constant 0 : index
    %181 = vector.load %arg14[%c0_69, %c0_70, %c0_71] : memref<4x32x64xf32, #tpu.memory_space<vmem>>, vector<1x32x64xf32>
    %182 = vector.shape_cast %181 : vector<1x32x64xf32> to vector<32x64xf32>
    %c0_72 = arith.constant 0 : index
    %c0_73 = arith.constant 0 : index
    %c0_74 = arith.constant 0 : index
    %183 = vector.load %arg15[%c0_72, %c0_73, %c0_74] : memref<4x64x32xf32, #tpu.memory_space<vmem>>, vector<1x64x32xf32>
    %184 = vector.shape_cast %183 : vector<1x64x32xf32> to vector<64x32xf32>
    %c0_75 = arith.constant 0 : index
    %c0_76 = arith.constant 0 : index
    %c0_77 = arith.constant 0 : index
    %185 = vector.load %arg16[%c0_75, %c0_76, %c0_77] : memref<4x1x96xf32, #tpu.memory_space<vmem>>, vector<1x1x96xf32>
    %186 = vector.shape_cast %185 : vector<1x1x96xf32> to vector<1x96xf32>
    %cst_78 = arith.constant dense<0.000000e+00> : vector<16x64xf32>
    %187 = tpu.matmul %180, %182, %cst_78 {dimension_numbers = #tpu.dot_dimension_numbers<[1], [0], [0], [1], [0, 0, 1, 1], [], []>} : vector<16x32xf32>, vector<32x64xf32>, vector<16x64xf32> -> vector<16x64xf32>
    %188 = vector.extract_strided_slice %186 {offsets = [0, 0], sizes = [1, 64], strides = [1, 1]} : vector<1x96xf32> to vector<1x64xf32>
    %189 = vector.broadcast %188 : vector<1x64xf32> to vector<16x64xf32>
    %190 = arith.addf %187, %189 : vector<16x64xf32>
    %cst_79 = arith.constant 0.000000e+00 : f32
    %191 = vector.broadcast %cst_79 : f32 to vector<16x64xf32>
    %192 = arith.maximumf %190, %191 : vector<16x64xf32>
    %cst_80 = arith.constant dense<0.000000e+00> : vector<16x32xf32>
    %193 = tpu.matmul %192, %184, %cst_80 {dimension_numbers = #tpu.dot_dimension_numbers<[1], [0], [0], [1], [0, 0, 1, 1], [], []>} : vector<16x64xf32>, vector<64x32xf32>, vector<16x32xf32> -> vector<16x32xf32>
    %194 = vector.extract_strided_slice %186 {offsets = [0, 64], sizes = [1, 32], strides = [1, 1]} : vector<1x96xf32> to vector<1x32xf32>
    %195 = vector.broadcast %194 : vector<1x32xf32> to vector<16x32xf32>
    %196 = arith.addf %193, %195 : vector<16x32xf32>
    %197 = arith.addf %152, %196 : vector<16x32xf32>
    %c2 = arith.constant 2 : index
    %c0_81 = arith.constant 0 : index
    %c0_82 = arith.constant 0 : index
    %198 = vector.load %arg17[%c2, %c0_81, %c0_82] : memref<16x1x64xf32, #tpu.memory_space<vmem>>, vector<1x1x64xf32>
    %199 = vector.shape_cast %198 : vector<1x1x64xf32> to vector<1x64xf32>
    %cst_83 = arith.constant dense<0.000000e+00> : vector<16xf32>
    %200 = vector.multi_reduction <add>, %197, %cst_83 [1] : vector<16x32xf32> to vector<16xf32>
    %201 = vector.shape_cast %200 : vector<16xf32> to vector<16x1xf32>
    %cst_84 = arith.constant 3.200000e+01 : f32
    %202 = vector.broadcast %cst_84 : f32 to vector<16x1xf32>
    %203 = arith.divf %201, %202 : vector<16x1xf32>
    %204 = arith.mulf %197, %197 : vector<16x32xf32>
    %cst_85 = arith.constant dense<0.000000e+00> : vector<16xf32>
    %205 = vector.multi_reduction <add>, %204, %cst_85 [1] : vector<16x32xf32> to vector<16xf32>
    %206 = vector.shape_cast %205 : vector<16xf32> to vector<16x1xf32>
    %cst_86 = arith.constant 3.200000e+01 : f32
    %207 = vector.broadcast %cst_86 : f32 to vector<16x1xf32>
    %208 = arith.divf %206, %207 : vector<16x1xf32>
    %209 = arith.mulf %203, %203 : vector<16x1xf32>
    %210 = arith.subf %208, %209 : vector<16x1xf32>
    %cst_87 = arith.constant 0.000000e+00 : f32
    %211 = vector.broadcast %cst_87 : f32 to vector<16x1xf32>
    %212 = arith.maximumf %210, %211 : vector<16x1xf32>
    %213 = vector.broadcast %203 : vector<16x1xf32> to vector<16x32xf32>
    %214 = arith.subf %197, %213 : vector<16x32xf32>
    %cst_88 = arith.constant 9.99999997E-7 : f32
    %215 = vector.broadcast %cst_88 : f32 to vector<16x1xf32>
    %216 = arith.addf %212, %215 : vector<16x1xf32>
    %217 = math.rsqrt %216 : vector<16x1xf32>
    %218 = vector.broadcast %217 : vector<16x1xf32> to vector<16x32xf32>
    %219 = arith.mulf %214, %218 : vector<16x32xf32>
    %220 = vector.extract_strided_slice %199 {offsets = [0, 0], sizes = [1, 32], strides = [1, 1]} : vector<1x64xf32> to vector<1x32xf32>
    %221 = vector.broadcast %220 : vector<1x32xf32> to vector<16x32xf32>
    %222 = arith.mulf %219, %221 : vector<16x32xf32>
    %223 = vector.extract_strided_slice %199 {offsets = [0, 32], sizes = [1, 32], strides = [1, 1]} : vector<1x64xf32> to vector<1x32xf32>
    %224 = vector.broadcast %223 : vector<1x32xf32> to vector<16x32xf32>
    %225 = arith.addf %222, %224 : vector<16x32xf32>
    %c1_89 = arith.constant 1 : index
    %c0_90 = arith.constant 0 : index
    %c0_91 = arith.constant 0 : index
    %226 = vector.load %arg10[%c1_89, %c0_90, %c0_91] : memref<10x32x128xf32, #tpu.memory_space<vmem>>, vector<1x32x128xf32>
    %227 = vector.shape_cast %226 : vector<1x32x128xf32> to vector<32x128xf32>
    %c1_92 = arith.constant 1 : index
    %c0_93 = arith.constant 0 : index
    %c0_94 = arith.constant 0 : index
    %228 = vector.load %arg11[%c1_92, %c0_93, %c0_94] : memref<10x1x128xf32, #tpu.memory_space<vmem>>, vector<1x1x128xf32>
    %229 = vector.shape_cast %228 : vector<1x1x128xf32> to vector<1x128xf32>
    %230 = vector.extract_strided_slice %227 {offsets = [0, 0], sizes = [32, 96], strides = [1, 1]} : vector<32x128xf32> to vector<32x96xf32>
    %cst_95 = arith.constant dense<0.000000e+00> : vector<16x96xf32>
    %231 = tpu.matmul %225, %230, %cst_95 {dimension_numbers = #tpu.dot_dimension_numbers<[1], [0], [0], [1], [0, 0, 1, 1], [], []>} : vector<16x32xf32>, vector<32x96xf32>, vector<16x96xf32> -> vector<16x96xf32>
    %232 = vector.extract_strided_slice %229 {offsets = [0, 0], sizes = [1, 96], strides = [1, 1]} : vector<1x128xf32> to vector<1x96xf32>
    %233 = vector.broadcast %232 : vector<1x96xf32> to vector<16x96xf32>
    %234 = arith.addf %231, %233 : vector<16x96xf32>
    %235 = vector.extract_strided_slice %234 {offsets = [0, 0], sizes = [16, 32], strides = [1, 1]} : vector<16x96xf32> to vector<16x32xf32>
    %236 = vector.extract_strided_slice %234 {offsets = [0, 32], sizes = [16, 32], strides = [1, 1]} : vector<16x96xf32> to vector<16x32xf32>
    %237 = vector.extract_strided_slice %234 {offsets = [0, 64], sizes = [16, 32], strides = [1, 1]} : vector<16x96xf32> to vector<16x32xf32>
    %238 = vector.extract_strided_slice %227 {offsets = [0, 96], sizes = [32, 32], strides = [1, 1]} : vector<32x128xf32> to vector<32x32xf32>
    %239 = vector.extract_strided_slice %229 {offsets = [0, 96], sizes = [1, 32], strides = [1, 1]} : vector<1x128xf32> to vector<1x32xf32>
    %240 = vector.extract_strided_slice %235 {offsets = [0, 0], sizes = [16, 8], strides = [1, 1]} : vector<16x32xf32> to vector<16x8xf32>
    %241 = vector.extract_strided_slice %236 {offsets = [0, 0], sizes = [16, 8], strides = [1, 1]} : vector<16x32xf32> to vector<16x8xf32>
    "tpu.trace_start"() <{level = 10 : i32, message = "qd,kd->qk"}> : () -> ()
    %cst_96 = arith.constant dense<0.000000e+00> : vector<16x16xf32>
    %242 = tpu.matmul %240, %241, %cst_96 {dimension_numbers = #tpu.dot_dimension_numbers<[1], [1], [0], [0], [0, 0, 1, 0], [], []>} : vector<16x8xf32>, vector<16x8xf32>, vector<16x16xf32> -> vector<16x16xf32>
    "tpu.trace_stop"() : () -> ()
    %cst_97 = arith.constant 0.353553385 : f32
    %243 = vector.broadcast %cst_97 : f32 to vector<16x16xf32>
    %244 = arith.mulf %242, %243 : vector<16x16xf32>
    %245 = arith.addf %244, %1 : vector<16x16xf32>
    %cst_98 = arith.constant dense<0xFF800000> : vector<16xf32>
    %246 = vector.multi_reduction <maximumf>, %245, %cst_98 [1] : vector<16x16xf32> to vector<16xf32>
    %247 = vector.shape_cast %246 : vector<16xf32> to vector<16x1xf32>
    %248 = vector.broadcast %247 : vector<16x1xf32> to vector<16x16xf32>
    %249 = arith.subf %245, %248 : vector<16x16xf32>
    %250 = math.exp %249 : vector<16x16xf32>
    %cst_99 = arith.constant dense<0.000000e+00> : vector<16xf32>
    %251 = vector.multi_reduction <add>, %250, %cst_99 [1] : vector<16x16xf32> to vector<16xf32>
    %252 = vector.shape_cast %251 : vector<16xf32> to vector<16x1xf32>
    %253 = tpu.reciprocal %252 {approx = true} : vector<16x1xf32> -> vector<16x1xf32>
    %254 = vector.broadcast %253 : vector<16x1xf32> to vector<16x16xf32>
    %255 = arith.mulf %250, %254 : vector<16x16xf32>
    %256 = vector.extract_strided_slice %237 {offsets = [0, 0], sizes = [16, 8], strides = [1, 1]} : vector<16x32xf32> to vector<16x8xf32>
    %cst_100 = arith.constant dense<0.000000e+00> : vector<16x8xf32>
    %257 = tpu.matmul %255, %256, %cst_100 {dimension_numbers = #tpu.dot_dimension_numbers<[1], [0], [0], [1], [0, 0, 1, 1], [], []>} : vector<16x16xf32>, vector<16x8xf32>, vector<16x8xf32> -> vector<16x8xf32>
    %258 = vector.extract_strided_slice %238 {offsets = [0, 0], sizes = [8, 32], strides = [1, 1]} : vector<32x32xf32> to vector<8x32xf32>
    %cst_101 = arith.constant dense<0.000000e+00> : vector<16x32xf32>
    %259 = tpu.matmul %257, %258, %cst_101 {dimension_numbers = #tpu.dot_dimension_numbers<[1], [0], [0], [1], [0, 0, 1, 1], [], []>} : vector<16x8xf32>, vector<8x32xf32>, vector<16x32xf32> -> vector<16x32xf32>
    %260 = vector.extract_strided_slice %235 {offsets = [0, 8], sizes = [16, 8], strides = [1, 1]} : vector<16x32xf32> to vector<16x8xf32>
    %261 = vector.extract_strided_slice %236 {offsets = [0, 8], sizes = [16, 8], strides = [1, 1]} : vector<16x32xf32> to vector<16x8xf32>
    "tpu.trace_start"() <{level = 10 : i32, message = "qd,kd->qk"}> : () -> ()
    %cst_102 = arith.constant dense<0.000000e+00> : vector<16x16xf32>
    %262 = tpu.matmul %260, %261, %cst_102 {dimension_numbers = #tpu.dot_dimension_numbers<[1], [1], [0], [0], [0, 0, 1, 0], [], []>} : vector<16x8xf32>, vector<16x8xf32>, vector<16x16xf32> -> vector<16x16xf32>
    "tpu.trace_stop"() : () -> ()
    %cst_103 = arith.constant 0.353553385 : f32
    %263 = vector.broadcast %cst_103 : f32 to vector<16x16xf32>
    %264 = arith.mulf %262, %263 : vector<16x16xf32>
    %265 = arith.addf %264, %1 : vector<16x16xf32>
    %cst_104 = arith.constant dense<0xFF800000> : vector<16xf32>
    %266 = vector.multi_reduction <maximumf>, %265, %cst_104 [1] : vector<16x16xf32> to vector<16xf32>
    %267 = vector.shape_cast %266 : vector<16xf32> to vector<16x1xf32>
    %268 = vector.broadcast %267 : vector<16x1xf32> to vector<16x16xf32>
    %269 = arith.subf %265, %268 : vector<16x16xf32>
    %270 = math.exp %269 : vector<16x16xf32>
    %cst_105 = arith.constant dense<0.000000e+00> : vector<16xf32>
    %271 = vector.multi_reduction <add>, %270, %cst_105 [1] : vector<16x16xf32> to vector<16xf32>
    %272 = vector.shape_cast %271 : vector<16xf32> to vector<16x1xf32>
    %273 = tpu.reciprocal %272 {approx = true} : vector<16x1xf32> -> vector<16x1xf32>
    %274 = vector.broadcast %273 : vector<16x1xf32> to vector<16x16xf32>
    %275 = arith.mulf %270, %274 : vector<16x16xf32>
    %276 = vector.extract_strided_slice %237 {offsets = [0, 8], sizes = [16, 8], strides = [1, 1]} : vector<16x32xf32> to vector<16x8xf32>
    %cst_106 = arith.constant dense<0.000000e+00> : vector<16x8xf32>
    %277 = tpu.matmul %275, %276, %cst_106 {dimension_numbers = #tpu.dot_dimension_numbers<[1], [0], [0], [1], [0, 0, 1, 1], [], []>} : vector<16x16xf32>, vector<16x8xf32>, vector<16x8xf32> -> vector<16x8xf32>
    %278 = vector.extract_strided_slice %238 {offsets = [8, 0], sizes = [8, 32], strides = [1, 1]} : vector<32x32xf32> to vector<8x32xf32>
    %cst_107 = arith.constant dense<0.000000e+00> : vector<16x32xf32>
    %279 = tpu.matmul %277, %278, %cst_107 {dimension_numbers = #tpu.dot_dimension_numbers<[1], [0], [0], [1], [0, 0, 1, 1], [], []>} : vector<16x8xf32>, vector<8x32xf32>, vector<16x32xf32> -> vector<16x32xf32>
    %280 = arith.addf %259, %279 : vector<16x32xf32>
    %281 = vector.extract_strided_slice %235 {offsets = [0, 16], sizes = [16, 8], strides = [1, 1]} : vector<16x32xf32> to vector<16x8xf32>
    %282 = vector.extract_strided_slice %236 {offsets = [0, 16], sizes = [16, 8], strides = [1, 1]} : vector<16x32xf32> to vector<16x8xf32>
    "tpu.trace_start"() <{level = 10 : i32, message = "qd,kd->qk"}> : () -> ()
    %cst_108 = arith.constant dense<0.000000e+00> : vector<16x16xf32>
    %283 = tpu.matmul %281, %282, %cst_108 {dimension_numbers = #tpu.dot_dimension_numbers<[1], [1], [0], [0], [0, 0, 1, 0], [], []>} : vector<16x8xf32>, vector<16x8xf32>, vector<16x16xf32> -> vector<16x16xf32>
    "tpu.trace_stop"() : () -> ()
    %cst_109 = arith.constant 0.353553385 : f32
    %284 = vector.broadcast %cst_109 : f32 to vector<16x16xf32>
    %285 = arith.mulf %283, %284 : vector<16x16xf32>
    %286 = arith.addf %285, %1 : vector<16x16xf32>
    %cst_110 = arith.constant dense<0xFF800000> : vector<16xf32>
    %287 = vector.multi_reduction <maximumf>, %286, %cst_110 [1] : vector<16x16xf32> to vector<16xf32>
    %288 = vector.shape_cast %287 : vector<16xf32> to vector<16x1xf32>
    %289 = vector.broadcast %288 : vector<16x1xf32> to vector<16x16xf32>
    %290 = arith.subf %286, %289 : vector<16x16xf32>
    %291 = math.exp %290 : vector<16x16xf32>
    %cst_111 = arith.constant dense<0.000000e+00> : vector<16xf32>
    %292 = vector.multi_reduction <add>, %291, %cst_111 [1] : vector<16x16xf32> to vector<16xf32>
    %293 = vector.shape_cast %292 : vector<16xf32> to vector<16x1xf32>
    %294 = tpu.reciprocal %293 {approx = true} : vector<16x1xf32> -> vector<16x1xf32>
    %295 = vector.broadcast %294 : vector<16x1xf32> to vector<16x16xf32>
    %296 = arith.mulf %291, %295 : vector<16x16xf32>
    %297 = vector.extract_strided_slice %237 {offsets = [0, 16], sizes = [16, 8], strides = [1, 1]} : vector<16x32xf32> to vector<16x8xf32>
    %cst_112 = arith.constant dense<0.000000e+00> : vector<16x8xf32>
    %298 = tpu.matmul %296, %297, %cst_112 {dimension_numbers = #tpu.dot_dimension_numbers<[1], [0], [0], [1], [0, 0, 1, 1], [], []>} : vector<16x16xf32>, vector<16x8xf32>, vector<16x8xf32> -> vector<16x8xf32>
    %299 = vector.extract_strided_slice %238 {offsets = [16, 0], sizes = [8, 32], strides = [1, 1]} : vector<32x32xf32> to vector<8x32xf32>
    %cst_113 = arith.constant dense<0.000000e+00> : vector<16x32xf32>
    %300 = tpu.matmul %298, %299, %cst_113 {dimension_numbers = #tpu.dot_dimension_numbers<[1], [0], [0], [1], [0, 0, 1, 1], [], []>} : vector<16x8xf32>, vector<8x32xf32>, vector<16x32xf32> -> vector<16x32xf32>
    %301 = arith.addf %280, %300 : vector<16x32xf32>
    %302 = vector.extract_strided_slice %235 {offsets = [0, 24], sizes = [16, 8], strides = [1, 1]} : vector<16x32xf32> to vector<16x8xf32>
    %303 = vector.extract_strided_slice %236 {offsets = [0, 24], sizes = [16, 8], strides = [1, 1]} : vector<16x32xf32> to vector<16x8xf32>
    "tpu.trace_start"() <{level = 10 : i32, message = "qd,kd->qk"}> : () -> ()
    %cst_114 = arith.constant dense<0.000000e+00> : vector<16x16xf32>
    %304 = tpu.matmul %302, %303, %cst_114 {dimension_numbers = #tpu.dot_dimension_numbers<[1], [1], [0], [0], [0, 0, 1, 0], [], []>} : vector<16x8xf32>, vector<16x8xf32>, vector<16x16xf32> -> vector<16x16xf32>
    "tpu.trace_stop"() : () -> ()
    %cst_115 = arith.constant 0.353553385 : f32
    %305 = vector.broadcast %cst_115 : f32 to vector<16x16xf32>
    %306 = arith.mulf %304, %305 : vector<16x16xf32>
    %307 = arith.addf %306, %1 : vector<16x16xf32>
    %cst_116 = arith.constant dense<0xFF800000> : vector<16xf32>
    %308 = vector.multi_reduction <maximumf>, %307, %cst_116 [1] : vector<16x16xf32> to vector<16xf32>
    %309 = vector.shape_cast %308 : vector<16xf32> to vector<16x1xf32>
    %310 = vector.broadcast %309 : vector<16x1xf32> to vector<16x16xf32>
    %311 = arith.subf %307, %310 : vector<16x16xf32>
    %312 = math.exp %311 : vector<16x16xf32>
    %cst_117 = arith.constant dense<0.000000e+00> : vector<16xf32>
    %313 = vector.multi_reduction <add>, %312, %cst_117 [1] : vector<16x16xf32> to vector<16xf32>
    %314 = vector.shape_cast %313 : vector<16xf32> to vector<16x1xf32>
    %315 = tpu.reciprocal %314 {approx = true} : vector<16x1xf32> -> vector<16x1xf32>
    %316 = vector.broadcast %315 : vector<16x1xf32> to vector<16x16xf32>
    %317 = arith.mulf %312, %316 : vector<16x16xf32>
    %318 = vector.extract_strided_slice %237 {offsets = [0, 24], sizes = [16, 8], strides = [1, 1]} : vector<16x32xf32> to vector<16x8xf32>
    %cst_118 = arith.constant dense<0.000000e+00> : vector<16x8xf32>
    %319 = tpu.matmul %317, %318, %cst_118 {dimension_numbers = #tpu.dot_dimension_numbers<[1], [0], [0], [1], [0, 0, 1, 1], [], []>} : vector<16x16xf32>, vector<16x8xf32>, vector<16x8xf32> -> vector<16x8xf32>
    %320 = vector.extract_strided_slice %238 {offsets = [24, 0], sizes = [8, 32], strides = [1, 1]} : vector<32x32xf32> to vector<8x32xf32>
    %cst_119 = arith.constant dense<0.000000e+00> : vector<16x32xf32>
    %321 = tpu.matmul %319, %320, %cst_119 {dimension_numbers = #tpu.dot_dimension_numbers<[1], [0], [0], [1], [0, 0, 1, 1], [], []>} : vector<16x8xf32>, vector<8x32xf32>, vector<16x32xf32> -> vector<16x32xf32>
    %322 = arith.addf %301, %321 : vector<16x32xf32>
    %323 = vector.broadcast %239 : vector<1x32xf32> to vector<16x32xf32>
    %324 = arith.addf %322, %323 : vector<16x32xf32>
    %325 = arith.addf %197, %324 : vector<16x32xf32>
    %c3 = arith.constant 3 : index
    %c0_120 = arith.constant 0 : index
    %c0_121 = arith.constant 0 : index
    %326 = vector.load %arg17[%c3, %c0_120, %c0_121] : memref<16x1x64xf32, #tpu.memory_space<vmem>>, vector<1x1x64xf32>
    %327 = vector.shape_cast %326 : vector<1x1x64xf32> to vector<1x64xf32>
    %cst_122 = arith.constant dense<0.000000e+00> : vector<16xf32>
    %328 = vector.multi_reduction <add>, %325, %cst_122 [1] : vector<16x32xf32> to vector<16xf32>
    %329 = vector.shape_cast %328 : vector<16xf32> to vector<16x1xf32>
    %cst_123 = arith.constant 3.200000e+01 : f32
    %330 = vector.broadcast %cst_123 : f32 to vector<16x1xf32>
    %331 = arith.divf %329, %330 : vector<16x1xf32>
    %332 = arith.mulf %325, %325 : vector<16x32xf32>
    %cst_124 = arith.constant dense<0.000000e+00> : vector<16xf32>
    %333 = vector.multi_reduction <add>, %332, %cst_124 [1] : vector<16x32xf32> to vector<16xf32>
    %334 = vector.shape_cast %333 : vector<16xf32> to vector<16x1xf32>
    %cst_125 = arith.constant 3.200000e+01 : f32
    %335 = vector.broadcast %cst_125 : f32 to vector<16x1xf32>
    %336 = arith.divf %334, %335 : vector<16x1xf32>
    %337 = arith.mulf %331, %331 : vector<16x1xf32>
    %338 = arith.subf %336, %337 : vector<16x1xf32>
    %cst_126 = arith.constant 0.000000e+00 : f32
    %339 = vector.broadcast %cst_126 : f32 to vector<16x1xf32>
    %340 = arith.maximumf %338, %339 : vector<16x1xf32>
    %341 = vector.broadcast %331 : vector<16x1xf32> to vector<16x32xf32>
    %342 = arith.subf %325, %341 : vector<16x32xf32>
    %cst_127 = arith.constant 9.99999997E-7 : f32
    %343 = vector.broadcast %cst_127 : f32 to vector<16x1xf32>
    %344 = arith.addf %340, %343 : vector<16x1xf32>
    %345 = math.rsqrt %344 : vector<16x1xf32>
    %346 = vector.broadcast %345 : vector<16x1xf32> to vector<16x32xf32>
    %347 = arith.mulf %342, %346 : vector<16x32xf32>
    %348 = vector.extract_strided_slice %327 {offsets = [0, 0], sizes = [1, 32], strides = [1, 1]} : vector<1x64xf32> to vector<1x32xf32>
    %349 = vector.broadcast %348 : vector<1x32xf32> to vector<16x32xf32>
    %350 = arith.mulf %347, %349 : vector<16x32xf32>
    %351 = vector.extract_strided_slice %327 {offsets = [0, 32], sizes = [1, 32], strides = [1, 1]} : vector<1x64xf32> to vector<1x32xf32>
    %352 = vector.broadcast %351 : vector<1x32xf32> to vector<16x32xf32>
    %353 = arith.addf %350, %352 : vector<16x32xf32>
    %c1_128 = arith.constant 1 : index
    %c0_129 = arith.constant 0 : index
    %c0_130 = arith.constant 0 : index
    %354 = vector.load %arg14[%c1_128, %c0_129, %c0_130] : memref<4x32x64xf32, #tpu.memory_space<vmem>>, vector<1x32x64xf32>
    %355 = vector.shape_cast %354 : vector<1x32x64xf32> to vector<32x64xf32>
    %c1_131 = arith.constant 1 : index
    %c0_132 = arith.constant 0 : index
    %c0_133 = arith.constant 0 : index
    %356 = vector.load %arg15[%c1_131, %c0_132, %c0_133] : memref<4x64x32xf32, #tpu.memory_space<vmem>>, vector<1x64x32xf32>
    %357 = vector.shape_cast %356 : vector<1x64x32xf32> to vector<64x32xf32>
    %c1_134 = arith.constant 1 : index
    %c0_135 = arith.constant 0 : index
    %c0_136 = arith.constant 0 : index
    %358 = vector.load %arg16[%c1_134, %c0_135, %c0_136] : memref<4x1x96xf32, #tpu.memory_space<vmem>>, vector<1x1x96xf32>
    %359 = vector.shape_cast %358 : vector<1x1x96xf32> to vector<1x96xf32>
    %cst_137 = arith.constant dense<0.000000e+00> : vector<16x64xf32>
    %360 = tpu.matmul %353, %355, %cst_137 {dimension_numbers = #tpu.dot_dimension_numbers<[1], [0], [0], [1], [0, 0, 1, 1], [], []>} : vector<16x32xf32>, vector<32x64xf32>, vector<16x64xf32> -> vector<16x64xf32>
    %361 = vector.extract_strided_slice %359 {offsets = [0, 0], sizes = [1, 64], strides = [1, 1]} : vector<1x96xf32> to vector<1x64xf32>
    %362 = vector.broadcast %361 : vector<1x64xf32> to vector<16x64xf32>
    %363 = arith.addf %360, %362 : vector<16x64xf32>
    %cst_138 = arith.constant 0.000000e+00 : f32
    %364 = vector.broadcast %cst_138 : f32 to vector<16x64xf32>
    %365 = arith.maximumf %363, %364 : vector<16x64xf32>
    %cst_139 = arith.constant dense<0.000000e+00> : vector<16x32xf32>
    %366 = tpu.matmul %365, %357, %cst_139 {dimension_numbers = #tpu.dot_dimension_numbers<[1], [0], [0], [1], [0, 0, 1, 1], [], []>} : vector<16x64xf32>, vector<64x32xf32>, vector<16x32xf32> -> vector<16x32xf32>
    %367 = vector.extract_strided_slice %359 {offsets = [0, 64], sizes = [1, 32], strides = [1, 1]} : vector<1x96xf32> to vector<1x32xf32>
    %368 = vector.broadcast %367 : vector<1x32xf32> to vector<16x32xf32>
    %369 = arith.addf %366, %368 : vector<16x32xf32>
    %370 = arith.addf %325, %369 : vector<16x32xf32>
    %c4 = arith.constant 4 : index
    %c0_140 = arith.constant 0 : index
    %c0_141 = arith.constant 0 : index
    %371 = vector.load %arg17[%c4, %c0_140, %c0_141] : memref<16x1x64xf32, #tpu.memory_space<vmem>>, vector<1x1x64xf32>
    %372 = vector.shape_cast %371 : vector<1x1x64xf32> to vector<1x64xf32>
    %cst_142 = arith.constant dense<0.000000e+00> : vector<16xf32>
    %373 = vector.multi_reduction <add>, %370, %cst_142 [1] : vector<16x32xf32> to vector<16xf32>
    %374 = vector.shape_cast %373 : vector<16xf32> to vector<16x1xf32>
    %cst_143 = arith.constant 3.200000e+01 : f32
    %375 = vector.broadcast %cst_143 : f32 to vector<16x1xf32>
    %376 = arith.divf %374, %375 : vector<16x1xf32>
    %377 = arith.mulf %370, %370 : vector<16x32xf32>
    %cst_144 = arith.constant dense<0.000000e+00> : vector<16xf32>
    %378 = vector.multi_reduction <add>, %377, %cst_144 [1] : vector<16x32xf32> to vector<16xf32>
    %379 = vector.shape_cast %378 : vector<16xf32> to vector<16x1xf32>
    %cst_145 = arith.constant 3.200000e+01 : f32
    %380 = vector.broadcast %cst_145 : f32 to vector<16x1xf32>
    %381 = arith.divf %379, %380 : vector<16x1xf32>
    %382 = arith.mulf %376, %376 : vector<16x1xf32>
    %383 = arith.subf %381, %382 : vector<16x1xf32>
    %cst_146 = arith.constant 0.000000e+00 : f32
    %384 = vector.broadcast %cst_146 : f32 to vector<16x1xf32>
    %385 = arith.maximumf %383, %384 : vector<16x1xf32>
    %386 = vector.broadcast %376 : vector<16x1xf32> to vector<16x32xf32>
    %387 = arith.subf %370, %386 : vector<16x32xf32>
    %cst_147 = arith.constant 9.99999997E-7 : f32
    %388 = vector.broadcast %cst_147 : f32 to vector<16x1xf32>
    %389 = arith.addf %385, %388 : vector<16x1xf32>
    %390 = math.rsqrt %389 : vector<16x1xf32>
    %391 = vector.broadcast %390 : vector<16x1xf32> to vector<16x32xf32>
    %392 = arith.mulf %387, %391 : vector<16x32xf32>
    %393 = vector.extract_strided_slice %372 {offsets = [0, 0], sizes = [1, 32], strides = [1, 1]} : vector<1x64xf32> to vector<1x32xf32>
    %394 = vector.broadcast %393 : vector<1x32xf32> to vector<16x32xf32>
    %395 = arith.mulf %392, %394 : vector<16x32xf32>
    %396 = vector.extract_strided_slice %372 {offsets = [0, 32], sizes = [1, 32], strides = [1, 1]} : vector<1x64xf32> to vector<1x32xf32>
    %397 = vector.broadcast %396 : vector<1x32xf32> to vector<16x32xf32>
    %398 = arith.addf %395, %397 : vector<16x32xf32>
    %399 = tpu.concatenate %398, %18, %19 in 1 : vector<16x32xf32>, vector<16x32xf32>, vector<16x32xf32> -> vector<16x96xf32>
    %c0_148 = arith.constant 0 : index
    %c0_149 = arith.constant 0 : index
    %400 = vector.load %arg12[%c0_148, %c0_149] : memref<96x384xf32, #tpu.memory_space<vmem>>, vector<96x384xf32>
    %cst_150 = arith.constant dense<0.000000e+00> : vector<16x384xf32>
    %401 = tpu.matmul %399, %400, %cst_150 {dimension_numbers = #tpu.dot_dimension_numbers<[1], [0], [0], [1], [0, 0, 1, 1], [], []>} : vector<16x96xf32>, vector<96x384xf32>, vector<16x384xf32> -> vector<16x384xf32>
    %c0_151 = arith.constant 0 : index
    %c0_152 = arith.constant 0 : index
    %402 = vector.load %arg13[%c0_151, %c0_152] : memref<1x384xf32, #tpu.memory_space<vmem>>, vector<1x384xf32>
    %403 = vector.broadcast %402 : vector<1x384xf32> to vector<16x384xf32>
    %404 = arith.addf %401, %403 : vector<16x384xf32>
    %c5 = arith.constant 5 : index
    %c0_153 = arith.constant 0 : index
    %c0_154 = arith.constant 0 : index
    %405 = vector.load %arg17[%c5, %c0_153, %c0_154] : memref<16x1x64xf32, #tpu.memory_space<vmem>>, vector<1x1x64xf32>
    %406 = vector.shape_cast %405 : vector<1x1x64xf32> to vector<1x64xf32>
    %cst_155 = arith.constant dense<0.000000e+00> : vector<16xf32>
    %407 = vector.multi_reduction <add>, %24, %cst_155 [1] : vector<16x32xf32> to vector<16xf32>
    %408 = vector.shape_cast %407 : vector<16xf32> to vector<16x1xf32>
    %cst_156 = arith.constant 3.200000e+01 : f32
    %409 = vector.broadcast %cst_156 : f32 to vector<16x1xf32>
    %410 = arith.divf %408, %409 : vector<16x1xf32>
    %411 = arith.mulf %24, %24 : vector<16x32xf32>
    %cst_157 = arith.constant dense<0.000000e+00> : vector<16xf32>
    %412 = vector.multi_reduction <add>, %411, %cst_157 [1] : vector<16x32xf32> to vector<16xf32>
    %413 = vector.shape_cast %412 : vector<16xf32> to vector<16x1xf32>
    %cst_158 = arith.constant 3.200000e+01 : f32
    %414 = vector.broadcast %cst_158 : f32 to vector<16x1xf32>
    %415 = arith.divf %413, %414 : vector<16x1xf32>
    %416 = arith.mulf %410, %410 : vector<16x1xf32>
    %417 = arith.subf %415, %416 : vector<16x1xf32>
    %cst_159 = arith.constant 0.000000e+00 : f32
    %418 = vector.broadcast %cst_159 : f32 to vector<16x1xf32>
    %419 = arith.maximumf %417, %418 : vector<16x1xf32>
    %420 = vector.broadcast %410 : vector<16x1xf32> to vector<16x32xf32>
    %421 = arith.subf %24, %420 : vector<16x32xf32>
    %cst_160 = arith.constant 9.99999997E-7 : f32
    %422 = vector.broadcast %cst_160 : f32 to vector<16x1xf32>
    %423 = arith.addf %419, %422 : vector<16x1xf32>
    %424 = math.rsqrt %423 : vector<16x1xf32>
    %425 = vector.broadcast %424 : vector<16x1xf32> to vector<16x32xf32>
    %426 = arith.mulf %421, %425 : vector<16x32xf32>
    %427 = vector.extract_strided_slice %406 {offsets = [0, 0], sizes = [1, 32], strides = [1, 1]} : vector<1x64xf32> to vector<1x32xf32>
    %428 = vector.broadcast %427 : vector<1x32xf32> to vector<16x32xf32>
    %429 = arith.mulf %426, %428 : vector<16x32xf32>
    %430 = vector.extract_strided_slice %406 {offsets = [0, 32], sizes = [1, 32], strides = [1, 1]} : vector<1x64xf32> to vector<1x32xf32>
    %431 = vector.broadcast %430 : vector<1x32xf32> to vector<16x32xf32>
    %432 = arith.addf %429, %431 : vector<16x32xf32>
    %c2_161 = arith.constant 2 : index
    %c0_162 = arith.constant 0 : index
    %c0_163 = arith.constant 0 : index
    %433 = vector.load %arg10[%c2_161, %c0_162, %c0_163] : memref<10x32x128xf32, #tpu.memory_space<vmem>>, vector<1x32x128xf32>
    %434 = vector.shape_cast %433 : vector<1x32x128xf32> to vector<32x128xf32>
    %c2_164 = arith.constant 2 : index
    %c0_165 = arith.constant 0 : index
    %c0_166 = arith.constant 0 : index
    %435 = vector.load %arg11[%c2_164, %c0_165, %c0_166] : memref<10x1x128xf32, #tpu.memory_space<vmem>>, vector<1x1x128xf32>
    %436 = vector.shape_cast %435 : vector<1x1x128xf32> to vector<1x128xf32>
    %437 = vector.extract_strided_slice %434 {offsets = [0, 0], sizes = [32, 96], strides = [1, 1]} : vector<32x128xf32> to vector<32x96xf32>
    %cst_167 = arith.constant dense<0.000000e+00> : vector<16x96xf32>
    %438 = tpu.matmul %432, %437, %cst_167 {dimension_numbers = #tpu.dot_dimension_numbers<[1], [0], [0], [1], [0, 0, 1, 1], [], []>} : vector<16x32xf32>, vector<32x96xf32>, vector<16x96xf32> -> vector<16x96xf32>
    %439 = vector.extract_strided_slice %436 {offsets = [0, 0], sizes = [1, 96], strides = [1, 1]} : vector<1x128xf32> to vector<1x96xf32>
    %440 = vector.broadcast %439 : vector<1x96xf32> to vector<16x96xf32>
    %441 = arith.addf %438, %440 : vector<16x96xf32>
    %442 = vector.extract_strided_slice %441 {offsets = [0, 0], sizes = [16, 32], strides = [1, 1]} : vector<16x96xf32> to vector<16x32xf32>
    %443 = vector.extract_strided_slice %441 {offsets = [0, 32], sizes = [16, 32], strides = [1, 1]} : vector<16x96xf32> to vector<16x32xf32>
    %444 = vector.extract_strided_slice %441 {offsets = [0, 64], sizes = [16, 32], strides = [1, 1]} : vector<16x96xf32> to vector<16x32xf32>
    %445 = vector.extract_strided_slice %434 {offsets = [0, 96], sizes = [32, 32], strides = [1, 1]} : vector<32x128xf32> to vector<32x32xf32>
    %446 = vector.extract_strided_slice %436 {offsets = [0, 96], sizes = [1, 32], strides = [1, 1]} : vector<1x128xf32> to vector<1x32xf32>
    %447 = vector.extract_strided_slice %442 {offsets = [0, 0], sizes = [16, 8], strides = [1, 1]} : vector<16x32xf32> to vector<16x8xf32>
    %448 = vector.extract_strided_slice %443 {offsets = [0, 0], sizes = [16, 8], strides = [1, 1]} : vector<16x32xf32> to vector<16x8xf32>
    "tpu.trace_start"() <{level = 10 : i32, message = "qd,kd->qk"}> : () -> ()
    %cst_168 = arith.constant dense<0.000000e+00> : vector<16x16xf32>
    %449 = tpu.matmul %447, %448, %cst_168 {dimension_numbers = #tpu.dot_dimension_numbers<[1], [1], [0], [0], [0, 0, 1, 0], [], []>} : vector<16x8xf32>, vector<16x8xf32>, vector<16x16xf32> -> vector<16x16xf32>
    "tpu.trace_stop"() : () -> ()
    %cst_169 = arith.constant 0.353553385 : f32
    %450 = vector.broadcast %cst_169 : f32 to vector<16x16xf32>
    %451 = arith.mulf %449, %450 : vector<16x16xf32>
    %452 = arith.addf %451, %11 : vector<16x16xf32>
    %cst_170 = arith.constant dense<0xFF800000> : vector<16xf32>
    %453 = vector.multi_reduction <maximumf>, %452, %cst_170 [1] : vector<16x16xf32> to vector<16xf32>
    %454 = vector.shape_cast %453 : vector<16xf32> to vector<16x1xf32>
    %455 = vector.broadcast %454 : vector<16x1xf32> to vector<16x16xf32>
    %456 = arith.subf %452, %455 : vector<16x16xf32>
    %457 = math.exp %456 : vector<16x16xf32>
    %cst_171 = arith.constant dense<0.000000e+00> : vector<16xf32>
    %458 = vector.multi_reduction <add>, %457, %cst_171 [1] : vector<16x16xf32> to vector<16xf32>
    %459 = vector.shape_cast %458 : vector<16xf32> to vector<16x1xf32>
    %460 = tpu.reciprocal %459 {approx = true} : vector<16x1xf32> -> vector<16x1xf32>
    %461 = vector.broadcast %460 : vector<16x1xf32> to vector<16x16xf32>
    %462 = arith.mulf %457, %461 : vector<16x16xf32>
    %463 = vector.extract_strided_slice %444 {offsets = [0, 0], sizes = [16, 8], strides = [1, 1]} : vector<16x32xf32> to vector<16x8xf32>
    %cst_172 = arith.constant dense<0.000000e+00> : vector<16x8xf32>
    %464 = tpu.matmul %462, %463, %cst_172 {dimension_numbers = #tpu.dot_dimension_numbers<[1], [0], [0], [1], [0, 0, 1, 1], [], []>} : vector<16x16xf32>, vector<16x8xf32>, vector<16x8xf32> -> vector<16x8xf32>
    %465 = vector.extract_strided_slice %445 {offsets = [0, 0], sizes = [8, 32], strides = [1, 1]} : vector<32x32xf32> to vector<8x32xf32>
    %cst_173 = arith.constant dense<0.000000e+00> : vector<16x32xf32>
    %466 = tpu.matmul %464, %465, %cst_173 {dimension_numbers = #tpu.dot_dimension_numbers<[1], [0], [0], [1], [0, 0, 1, 1], [], []>} : vector<16x8xf32>, vector<8x32xf32>, vector<16x32xf32> -> vector<16x32xf32>
    %467 = vector.extract_strided_slice %442 {offsets = [0, 8], sizes = [16, 8], strides = [1, 1]} : vector<16x32xf32> to vector<16x8xf32>
    %468 = vector.extract_strided_slice %443 {offsets = [0, 8], sizes = [16, 8], strides = [1, 1]} : vector<16x32xf32> to vector<16x8xf32>
    "tpu.trace_start"() <{level = 10 : i32, message = "qd,kd->qk"}> : () -> ()
    %cst_174 = arith.constant dense<0.000000e+00> : vector<16x16xf32>
    %469 = tpu.matmul %467, %468, %cst_174 {dimension_numbers = #tpu.dot_dimension_numbers<[1], [1], [0], [0], [0, 0, 1, 0], [], []>} : vector<16x8xf32>, vector<16x8xf32>, vector<16x16xf32> -> vector<16x16xf32>
    "tpu.trace_stop"() : () -> ()
    %cst_175 = arith.constant 0.353553385 : f32
    %470 = vector.broadcast %cst_175 : f32 to vector<16x16xf32>
    %471 = arith.mulf %469, %470 : vector<16x16xf32>
    %472 = arith.addf %471, %11 : vector<16x16xf32>
    %cst_176 = arith.constant dense<0xFF800000> : vector<16xf32>
    %473 = vector.multi_reduction <maximumf>, %472, %cst_176 [1] : vector<16x16xf32> to vector<16xf32>
    %474 = vector.shape_cast %473 : vector<16xf32> to vector<16x1xf32>
    %475 = vector.broadcast %474 : vector<16x1xf32> to vector<16x16xf32>
    %476 = arith.subf %472, %475 : vector<16x16xf32>
    %477 = math.exp %476 : vector<16x16xf32>
    %cst_177 = arith.constant dense<0.000000e+00> : vector<16xf32>
    %478 = vector.multi_reduction <add>, %477, %cst_177 [1] : vector<16x16xf32> to vector<16xf32>
    %479 = vector.shape_cast %478 : vector<16xf32> to vector<16x1xf32>
    %480 = tpu.reciprocal %479 {approx = true} : vector<16x1xf32> -> vector<16x1xf32>
    %481 = vector.broadcast %480 : vector<16x1xf32> to vector<16x16xf32>
    %482 = arith.mulf %477, %481 : vector<16x16xf32>
    %483 = vector.extract_strided_slice %444 {offsets = [0, 8], sizes = [16, 8], strides = [1, 1]} : vector<16x32xf32> to vector<16x8xf32>
    %cst_178 = arith.constant dense<0.000000e+00> : vector<16x8xf32>
    %484 = tpu.matmul %482, %483, %cst_178 {dimension_numbers = #tpu.dot_dimension_numbers<[1], [0], [0], [1], [0, 0, 1, 1], [], []>} : vector<16x16xf32>, vector<16x8xf32>, vector<16x8xf32> -> vector<16x8xf32>
    %485 = vector.extract_strided_slice %445 {offsets = [8, 0], sizes = [8, 32], strides = [1, 1]} : vector<32x32xf32> to vector<8x32xf32>
    %cst_179 = arith.constant dense<0.000000e+00> : vector<16x32xf32>
    %486 = tpu.matmul %484, %485, %cst_179 {dimension_numbers = #tpu.dot_dimension_numbers<[1], [0], [0], [1], [0, 0, 1, 1], [], []>} : vector<16x8xf32>, vector<8x32xf32>, vector<16x32xf32> -> vector<16x32xf32>
    %487 = arith.addf %466, %486 : vector<16x32xf32>
    %488 = vector.extract_strided_slice %442 {offsets = [0, 16], sizes = [16, 8], strides = [1, 1]} : vector<16x32xf32> to vector<16x8xf32>
    %489 = vector.extract_strided_slice %443 {offsets = [0, 16], sizes = [16, 8], strides = [1, 1]} : vector<16x32xf32> to vector<16x8xf32>
    "tpu.trace_start"() <{level = 10 : i32, message = "qd,kd->qk"}> : () -> ()
    %cst_180 = arith.constant dense<0.000000e+00> : vector<16x16xf32>
    %490 = tpu.matmul %488, %489, %cst_180 {dimension_numbers = #tpu.dot_dimension_numbers<[1], [1], [0], [0], [0, 0, 1, 0], [], []>} : vector<16x8xf32>, vector<16x8xf32>, vector<16x16xf32> -> vector<16x16xf32>
    "tpu.trace_stop"() : () -> ()
    %cst_181 = arith.constant 0.353553385 : f32
    %491 = vector.broadcast %cst_181 : f32 to vector<16x16xf32>
    %492 = arith.mulf %490, %491 : vector<16x16xf32>
    %493 = arith.addf %492, %11 : vector<16x16xf32>
    %cst_182 = arith.constant dense<0xFF800000> : vector<16xf32>
    %494 = vector.multi_reduction <maximumf>, %493, %cst_182 [1] : vector<16x16xf32> to vector<16xf32>
    %495 = vector.shape_cast %494 : vector<16xf32> to vector<16x1xf32>
    %496 = vector.broadcast %495 : vector<16x1xf32> to vector<16x16xf32>
    %497 = arith.subf %493, %496 : vector<16x16xf32>
    %498 = math.exp %497 : vector<16x16xf32>
    %cst_183 = arith.constant dense<0.000000e+00> : vector<16xf32>
    %499 = vector.multi_reduction <add>, %498, %cst_183 [1] : vector<16x16xf32> to vector<16xf32>
    %500 = vector.shape_cast %499 : vector<16xf32> to vector<16x1xf32>
    %501 = tpu.reciprocal %500 {approx = true} : vector<16x1xf32> -> vector<16x1xf32>
    %502 = vector.broadcast %501 : vector<16x1xf32> to vector<16x16xf32>
    %503 = arith.mulf %498, %502 : vector<16x16xf32>
    %504 = vector.extract_strided_slice %444 {offsets = [0, 16], sizes = [16, 8], strides = [1, 1]} : vector<16x32xf32> to vector<16x8xf32>
    %cst_184 = arith.constant dense<0.000000e+00> : vector<16x8xf32>
    %505 = tpu.matmul %503, %504, %cst_184 {dimension_numbers = #tpu.dot_dimension_numbers<[1], [0], [0], [1], [0, 0, 1, 1], [], []>} : vector<16x16xf32>, vector<16x8xf32>, vector<16x8xf32> -> vector<16x8xf32>
    %506 = vector.extract_strided_slice %445 {offsets = [16, 0], sizes = [8, 32], strides = [1, 1]} : vector<32x32xf32> to vector<8x32xf32>
    %cst_185 = arith.constant dense<0.000000e+00> : vector<16x32xf32>
    %507 = tpu.matmul %505, %506, %cst_185 {dimension_numbers = #tpu.dot_dimension_numbers<[1], [0], [0], [1], [0, 0, 1, 1], [], []>} : vector<16x8xf32>, vector<8x32xf32>, vector<16x32xf32> -> vector<16x32xf32>
    %508 = arith.addf %487, %507 : vector<16x32xf32>
    %509 = vector.extract_strided_slice %442 {offsets = [0, 24], sizes = [16, 8], strides = [1, 1]} : vector<16x32xf32> to vector<16x8xf32>
    %510 = vector.extract_strided_slice %443 {offsets = [0, 24], sizes = [16, 8], strides = [1, 1]} : vector<16x32xf32> to vector<16x8xf32>
    "tpu.trace_start"() <{level = 10 : i32, message = "qd,kd->qk"}> : () -> ()
    %cst_186 = arith.constant dense<0.000000e+00> : vector<16x16xf32>
    %511 = tpu.matmul %509, %510, %cst_186 {dimension_numbers = #tpu.dot_dimension_numbers<[1], [1], [0], [0], [0, 0, 1, 0], [], []>} : vector<16x8xf32>, vector<16x8xf32>, vector<16x16xf32> -> vector<16x16xf32>
    "tpu.trace_stop"() : () -> ()
    %cst_187 = arith.constant 0.353553385 : f32
    %512 = vector.broadcast %cst_187 : f32 to vector<16x16xf32>
    %513 = arith.mulf %511, %512 : vector<16x16xf32>
    %514 = arith.addf %513, %11 : vector<16x16xf32>
    %cst_188 = arith.constant dense<0xFF800000> : vector<16xf32>
    %515 = vector.multi_reduction <maximumf>, %514, %cst_188 [1] : vector<16x16xf32> to vector<16xf32>
    %516 = vector.shape_cast %515 : vector<16xf32> to vector<16x1xf32>
    %517 = vector.broadcast %516 : vector<16x1xf32> to vector<16x16xf32>
    %518 = arith.subf %514, %517 : vector<16x16xf32>
    %519 = math.exp %518 : vector<16x16xf32>
    %cst_189 = arith.constant dense<0.000000e+00> : vector<16xf32>
    %520 = vector.multi_reduction <add>, %519, %cst_189 [1] : vector<16x16xf32> to vector<16xf32>
    %521 = vector.shape_cast %520 : vector<16xf32> to vector<16x1xf32>
    %522 = tpu.reciprocal %521 {approx = true} : vector<16x1xf32> -> vector<16x1xf32>
    %523 = vector.broadcast %522 : vector<16x1xf32> to vector<16x16xf32>
    %524 = arith.mulf %519, %523 : vector<16x16xf32>
    %525 = vector.extract_strided_slice %444 {offsets = [0, 24], sizes = [16, 8], strides = [1, 1]} : vector<16x32xf32> to vector<16x8xf32>
    %cst_190 = arith.constant dense<0.000000e+00> : vector<16x8xf32>
    %526 = tpu.matmul %524, %525, %cst_190 {dimension_numbers = #tpu.dot_dimension_numbers<[1], [0], [0], [1], [0, 0, 1, 1], [], []>} : vector<16x16xf32>, vector<16x8xf32>, vector<16x8xf32> -> vector<16x8xf32>
    %527 = vector.extract_strided_slice %445 {offsets = [24, 0], sizes = [8, 32], strides = [1, 1]} : vector<32x32xf32> to vector<8x32xf32>
    %cst_191 = arith.constant dense<0.000000e+00> : vector<16x32xf32>
    %528 = tpu.matmul %526, %527, %cst_191 {dimension_numbers = #tpu.dot_dimension_numbers<[1], [0], [0], [1], [0, 0, 1, 1], [], []>} : vector<16x8xf32>, vector<8x32xf32>, vector<16x32xf32> -> vector<16x32xf32>
    %529 = arith.addf %508, %528 : vector<16x32xf32>
    %530 = vector.broadcast %446 : vector<1x32xf32> to vector<16x32xf32>
    %531 = arith.addf %529, %530 : vector<16x32xf32>
    %532 = arith.addf %24, %531 : vector<16x32xf32>
    %c6 = arith.constant 6 : index
    %c0_192 = arith.constant 0 : index
    %c0_193 = arith.constant 0 : index
    %533 = vector.load %arg17[%c6, %c0_192, %c0_193] : memref<16x1x64xf32, #tpu.memory_space<vmem>>, vector<1x1x64xf32>
    %534 = vector.shape_cast %533 : vector<1x1x64xf32> to vector<1x64xf32>
    %cst_194 = arith.constant dense<0.000000e+00> : vector<16xf32>
    %535 = vector.multi_reduction <add>, %532, %cst_194 [1] : vector<16x32xf32> to vector<16xf32>
    %536 = vector.shape_cast %535 : vector<16xf32> to vector<16x1xf32>
    %cst_195 = arith.constant 3.200000e+01 : f32
    %537 = vector.broadcast %cst_195 : f32 to vector<16x1xf32>
    %538 = arith.divf %536, %537 : vector<16x1xf32>
    %539 = arith.mulf %532, %532 : vector<16x32xf32>
    %cst_196 = arith.constant dense<0.000000e+00> : vector<16xf32>
    %540 = vector.multi_reduction <add>, %539, %cst_196 [1] : vector<16x32xf32> to vector<16xf32>
    %541 = vector.shape_cast %540 : vector<16xf32> to vector<16x1xf32>
    %cst_197 = arith.constant 3.200000e+01 : f32
    %542 = vector.broadcast %cst_197 : f32 to vector<16x1xf32>
    %543 = arith.divf %541, %542 : vector<16x1xf32>
    %544 = arith.mulf %538, %538 : vector<16x1xf32>
    %545 = arith.subf %543, %544 : vector<16x1xf32>
    %cst_198 = arith.constant 0.000000e+00 : f32
    %546 = vector.broadcast %cst_198 : f32 to vector<16x1xf32>
    %547 = arith.maximumf %545, %546 : vector<16x1xf32>
    %548 = vector.broadcast %538 : vector<16x1xf32> to vector<16x32xf32>
    %549 = arith.subf %532, %548 : vector<16x32xf32>
    %cst_199 = arith.constant 9.99999997E-7 : f32
    %550 = vector.broadcast %cst_199 : f32 to vector<16x1xf32>
    %551 = arith.addf %547, %550 : vector<16x1xf32>
    %552 = math.rsqrt %551 : vector<16x1xf32>
    %553 = vector.broadcast %552 : vector<16x1xf32> to vector<16x32xf32>
    %554 = arith.mulf %549, %553 : vector<16x32xf32>
    %555 = vector.extract_strided_slice %534 {offsets = [0, 0], sizes = [1, 32], strides = [1, 1]} : vector<1x64xf32> to vector<1x32xf32>
    %556 = vector.broadcast %555 : vector<1x32xf32> to vector<16x32xf32>
    %557 = arith.mulf %554, %556 : vector<16x32xf32>
    %558 = vector.extract_strided_slice %534 {offsets = [0, 32], sizes = [1, 32], strides = [1, 1]} : vector<1x64xf32> to vector<1x32xf32>
    %559 = vector.broadcast %558 : vector<1x32xf32> to vector<16x32xf32>
    %560 = arith.addf %557, %559 : vector<16x32xf32>
    %561 = vector.extract_strided_slice %404 {offsets = [0, 0], sizes = [16, 32], strides = [1, 1]} : vector<16x384xf32> to vector<16x32xf32>
    %562 = vector.extract_strided_slice %404 {offsets = [0, 32], sizes = [16, 32], strides = [1, 1]} : vector<16x384xf32> to vector<16x32xf32>
    %c3_200 = arith.constant 3 : index
    %c0_201 = arith.constant 0 : index
    %c0_202 = arith.constant 0 : index
    %563 = vector.load %arg10[%c3_200, %c0_201, %c0_202] : memref<10x32x128xf32, #tpu.memory_space<vmem>>, vector<1x32x128xf32>
    %564 = vector.shape_cast %563 : vector<1x32x128xf32> to vector<32x128xf32>
    %c3_203 = arith.constant 3 : index
    %c0_204 = arith.constant 0 : index
    %c0_205 = arith.constant 0 : index
    %565 = vector.load %arg11[%c3_203, %c0_204, %c0_205] : memref<10x1x128xf32, #tpu.memory_space<vmem>>, vector<1x1x128xf32>
    %566 = vector.shape_cast %565 : vector<1x1x128xf32> to vector<1x128xf32>
    %567 = vector.extract_strided_slice %564 {offsets = [0, 0], sizes = [32, 32], strides = [1, 1]} : vector<32x128xf32> to vector<32x32xf32>
    %cst_206 = arith.constant dense<0.000000e+00> : vector<16x32xf32>
    %568 = tpu.matmul %560, %567, %cst_206 {dimension_numbers = #tpu.dot_dimension_numbers<[1], [0], [0], [1], [0, 0, 1, 1], [], []>} : vector<16x32xf32>, vector<32x32xf32>, vector<16x32xf32> -> vector<16x32xf32>
    %569 = vector.extract_strided_slice %566 {offsets = [0, 0], sizes = [1, 32], strides = [1, 1]} : vector<1x128xf32> to vector<1x32xf32>
    %570 = vector.broadcast %569 : vector<1x32xf32> to vector<16x32xf32>
    %571 = arith.addf %568, %570 : vector<16x32xf32>
    %572 = vector.extract_strided_slice %564 {offsets = [0, 96], sizes = [32, 32], strides = [1, 1]} : vector<32x128xf32> to vector<32x32xf32>
    %573 = vector.extract_strided_slice %566 {offsets = [0, 96], sizes = [1, 32], strides = [1, 1]} : vector<1x128xf32> to vector<1x32xf32>
    %574 = vector.extract_strided_slice %571 {offsets = [0, 0], sizes = [16, 8], strides = [1, 1]} : vector<16x32xf32> to vector<16x8xf32>
    %575 = vector.extract_strided_slice %561 {offsets = [0, 0], sizes = [16, 8], strides = [1, 1]} : vector<16x32xf32> to vector<16x8xf32>
    "tpu.trace_start"() <{level = 10 : i32, message = "qd,kd->qk"}> : () -> ()
    %cst_207 = arith.constant dense<0.000000e+00> : vector<16x16xf32>
    %576 = tpu.matmul %574, %575, %cst_207 {dimension_numbers = #tpu.dot_dimension_numbers<[1], [1], [0], [0], [0, 0, 1, 0], [], []>} : vector<16x8xf32>, vector<16x8xf32>, vector<16x16xf32> -> vector<16x16xf32>
    "tpu.trace_stop"() : () -> ()
    %cst_208 = arith.constant 0.353553385 : f32
    %577 = vector.broadcast %cst_208 : f32 to vector<16x16xf32>
    %578 = arith.mulf %576, %577 : vector<16x16xf32>
    %579 = arith.addf %578, %5 : vector<16x16xf32>
    %cst_209 = arith.constant dense<0xFF800000> : vector<16xf32>
    %580 = vector.multi_reduction <maximumf>, %579, %cst_209 [1] : vector<16x16xf32> to vector<16xf32>
    %581 = vector.shape_cast %580 : vector<16xf32> to vector<16x1xf32>
    %582 = vector.broadcast %581 : vector<16x1xf32> to vector<16x16xf32>
    %583 = arith.subf %579, %582 : vector<16x16xf32>
    %584 = math.exp %583 : vector<16x16xf32>
    %cst_210 = arith.constant dense<0.000000e+00> : vector<16xf32>
    %585 = vector.multi_reduction <add>, %584, %cst_210 [1] : vector<16x16xf32> to vector<16xf32>
    %586 = vector.shape_cast %585 : vector<16xf32> to vector<16x1xf32>
    %587 = tpu.reciprocal %586 {approx = true} : vector<16x1xf32> -> vector<16x1xf32>
    %588 = vector.broadcast %587 : vector<16x1xf32> to vector<16x16xf32>
    %589 = arith.mulf %584, %588 : vector<16x16xf32>
    %590 = vector.extract_strided_slice %562 {offsets = [0, 0], sizes = [16, 8], strides = [1, 1]} : vector<16x32xf32> to vector<16x8xf32>
    %cst_211 = arith.constant dense<0.000000e+00> : vector<16x8xf32>
    %591 = tpu.matmul %589, %590, %cst_211 {dimension_numbers = #tpu.dot_dimension_numbers<[1], [0], [0], [1], [0, 0, 1, 1], [], []>} : vector<16x16xf32>, vector<16x8xf32>, vector<16x8xf32> -> vector<16x8xf32>
    %592 = vector.extract_strided_slice %572 {offsets = [0, 0], sizes = [8, 32], strides = [1, 1]} : vector<32x32xf32> to vector<8x32xf32>
    %cst_212 = arith.constant dense<0.000000e+00> : vector<16x32xf32>
    %593 = tpu.matmul %591, %592, %cst_212 {dimension_numbers = #tpu.dot_dimension_numbers<[1], [0], [0], [1], [0, 0, 1, 1], [], []>} : vector<16x8xf32>, vector<8x32xf32>, vector<16x32xf32> -> vector<16x32xf32>
    %594 = vector.extract_strided_slice %571 {offsets = [0, 8], sizes = [16, 8], strides = [1, 1]} : vector<16x32xf32> to vector<16x8xf32>
    %595 = vector.extract_strided_slice %561 {offsets = [0, 8], sizes = [16, 8], strides = [1, 1]} : vector<16x32xf32> to vector<16x8xf32>
    "tpu.trace_start"() <{level = 10 : i32, message = "qd,kd->qk"}> : () -> ()
    %cst_213 = arith.constant dense<0.000000e+00> : vector<16x16xf32>
    %596 = tpu.matmul %594, %595, %cst_213 {dimension_numbers = #tpu.dot_dimension_numbers<[1], [1], [0], [0], [0, 0, 1, 0], [], []>} : vector<16x8xf32>, vector<16x8xf32>, vector<16x16xf32> -> vector<16x16xf32>
    "tpu.trace_stop"() : () -> ()
    %cst_214 = arith.constant 0.353553385 : f32
    %597 = vector.broadcast %cst_214 : f32 to vector<16x16xf32>
    %598 = arith.mulf %596, %597 : vector<16x16xf32>
    %599 = arith.addf %598, %5 : vector<16x16xf32>
    %cst_215 = arith.constant dense<0xFF800000> : vector<16xf32>
    %600 = vector.multi_reduction <maximumf>, %599, %cst_215 [1] : vector<16x16xf32> to vector<16xf32>
    %601 = vector.shape_cast %600 : vector<16xf32> to vector<16x1xf32>
    %602 = vector.broadcast %601 : vector<16x1xf32> to vector<16x16xf32>
    %603 = arith.subf %599, %602 : vector<16x16xf32>
    %604 = math.exp %603 : vector<16x16xf32>
    %cst_216 = arith.constant dense<0.000000e+00> : vector<16xf32>
    %605 = vector.multi_reduction <add>, %604, %cst_216 [1] : vector<16x16xf32> to vector<16xf32>
    %606 = vector.shape_cast %605 : vector<16xf32> to vector<16x1xf32>
    %607 = tpu.reciprocal %606 {approx = true} : vector<16x1xf32> -> vector<16x1xf32>
    %608 = vector.broadcast %607 : vector<16x1xf32> to vector<16x16xf32>
    %609 = arith.mulf %604, %608 : vector<16x16xf32>
    %610 = vector.extract_strided_slice %562 {offsets = [0, 8], sizes = [16, 8], strides = [1, 1]} : vector<16x32xf32> to vector<16x8xf32>
    %cst_217 = arith.constant dense<0.000000e+00> : vector<16x8xf32>
    %611 = tpu.matmul %609, %610, %cst_217 {dimension_numbers = #tpu.dot_dimension_numbers<[1], [0], [0], [1], [0, 0, 1, 1], [], []>} : vector<16x16xf32>, vector<16x8xf32>, vector<16x8xf32> -> vector<16x8xf32>
    %612 = vector.extract_strided_slice %572 {offsets = [8, 0], sizes = [8, 32], strides = [1, 1]} : vector<32x32xf32> to vector<8x32xf32>
    %cst_218 = arith.constant dense<0.000000e+00> : vector<16x32xf32>
    %613 = tpu.matmul %611, %612, %cst_218 {dimension_numbers = #tpu.dot_dimension_numbers<[1], [0], [0], [1], [0, 0, 1, 1], [], []>} : vector<16x8xf32>, vector<8x32xf32>, vector<16x32xf32> -> vector<16x32xf32>
    %614 = arith.addf %593, %613 : vector<16x32xf32>
    %615 = vector.extract_strided_slice %571 {offsets = [0, 16], sizes = [16, 8], strides = [1, 1]} : vector<16x32xf32> to vector<16x8xf32>
    %616 = vector.extract_strided_slice %561 {offsets = [0, 16], sizes = [16, 8], strides = [1, 1]} : vector<16x32xf32> to vector<16x8xf32>
    "tpu.trace_start"() <{level = 10 : i32, message = "qd,kd->qk"}> : () -> ()
    %cst_219 = arith.constant dense<0.000000e+00> : vector<16x16xf32>
    %617 = tpu.matmul %615, %616, %cst_219 {dimension_numbers = #tpu.dot_dimension_numbers<[1], [1], [0], [0], [0, 0, 1, 0], [], []>} : vector<16x8xf32>, vector<16x8xf32>, vector<16x16xf32> -> vector<16x16xf32>
    "tpu.trace_stop"() : () -> ()
    %cst_220 = arith.constant 0.353553385 : f32
    %618 = vector.broadcast %cst_220 : f32 to vector<16x16xf32>
    %619 = arith.mulf %617, %618 : vector<16x16xf32>
    %620 = arith.addf %619, %5 : vector<16x16xf32>
    %cst_221 = arith.constant dense<0xFF800000> : vector<16xf32>
    %621 = vector.multi_reduction <maximumf>, %620, %cst_221 [1] : vector<16x16xf32> to vector<16xf32>
    %622 = vector.shape_cast %621 : vector<16xf32> to vector<16x1xf32>
    %623 = vector.broadcast %622 : vector<16x1xf32> to vector<16x16xf32>
    %624 = arith.subf %620, %623 : vector<16x16xf32>
    %625 = math.exp %624 : vector<16x16xf32>
    %cst_222 = arith.constant dense<0.000000e+00> : vector<16xf32>
    %626 = vector.multi_reduction <add>, %625, %cst_222 [1] : vector<16x16xf32> to vector<16xf32>
    %627 = vector.shape_cast %626 : vector<16xf32> to vector<16x1xf32>
    %628 = tpu.reciprocal %627 {approx = true} : vector<16x1xf32> -> vector<16x1xf32>
    %629 = vector.broadcast %628 : vector<16x1xf32> to vector<16x16xf32>
    %630 = arith.mulf %625, %629 : vector<16x16xf32>
    %631 = vector.extract_strided_slice %562 {offsets = [0, 16], sizes = [16, 8], strides = [1, 1]} : vector<16x32xf32> to vector<16x8xf32>
    %cst_223 = arith.constant dense<0.000000e+00> : vector<16x8xf32>
    %632 = tpu.matmul %630, %631, %cst_223 {dimension_numbers = #tpu.dot_dimension_numbers<[1], [0], [0], [1], [0, 0, 1, 1], [], []>} : vector<16x16xf32>, vector<16x8xf32>, vector<16x8xf32> -> vector<16x8xf32>
    %633 = vector.extract_strided_slice %572 {offsets = [16, 0], sizes = [8, 32], strides = [1, 1]} : vector<32x32xf32> to vector<8x32xf32>
    %cst_224 = arith.constant dense<0.000000e+00> : vector<16x32xf32>
    %634 = tpu.matmul %632, %633, %cst_224 {dimension_numbers = #tpu.dot_dimension_numbers<[1], [0], [0], [1], [0, 0, 1, 1], [], []>} : vector<16x8xf32>, vector<8x32xf32>, vector<16x32xf32> -> vector<16x32xf32>
    %635 = arith.addf %614, %634 : vector<16x32xf32>
    %636 = vector.extract_strided_slice %571 {offsets = [0, 24], sizes = [16, 8], strides = [1, 1]} : vector<16x32xf32> to vector<16x8xf32>
    %637 = vector.extract_strided_slice %561 {offsets = [0, 24], sizes = [16, 8], strides = [1, 1]} : vector<16x32xf32> to vector<16x8xf32>
    "tpu.trace_start"() <{level = 10 : i32, message = "qd,kd->qk"}> : () -> ()
    %cst_225 = arith.constant dense<0.000000e+00> : vector<16x16xf32>
    %638 = tpu.matmul %636, %637, %cst_225 {dimension_numbers = #tpu.dot_dimension_numbers<[1], [1], [0], [0], [0, 0, 1, 0], [], []>} : vector<16x8xf32>, vector<16x8xf32>, vector<16x16xf32> -> vector<16x16xf32>
    "tpu.trace_stop"() : () -> ()
    %cst_226 = arith.constant 0.353553385 : f32
    %639 = vector.broadcast %cst_226 : f32 to vector<16x16xf32>
    %640 = arith.mulf %638, %639 : vector<16x16xf32>
    %641 = arith.addf %640, %5 : vector<16x16xf32>
    %cst_227 = arith.constant dense<0xFF800000> : vector<16xf32>
    %642 = vector.multi_reduction <maximumf>, %641, %cst_227 [1] : vector<16x16xf32> to vector<16xf32>
    %643 = vector.shape_cast %642 : vector<16xf32> to vector<16x1xf32>
    %644 = vector.broadcast %643 : vector<16x1xf32> to vector<16x16xf32>
    %645 = arith.subf %641, %644 : vector<16x16xf32>
    %646 = math.exp %645 : vector<16x16xf32>
    %cst_228 = arith.constant dense<0.000000e+00> : vector<16xf32>
    %647 = vector.multi_reduction <add>, %646, %cst_228 [1] : vector<16x16xf32> to vector<16xf32>
    %648 = vector.shape_cast %647 : vector<16xf32> to vector<16x1xf32>
    %649 = tpu.reciprocal %648 {approx = true} : vector<16x1xf32> -> vector<16x1xf32>
    %650 = vector.broadcast %649 : vector<16x1xf32> to vector<16x16xf32>
    %651 = arith.mulf %646, %650 : vector<16x16xf32>
    %652 = vector.extract_strided_slice %562 {offsets = [0, 24], sizes = [16, 8], strides = [1, 1]} : vector<16x32xf32> to vector<16x8xf32>
    %cst_229 = arith.constant dense<0.000000e+00> : vector<16x8xf32>
    %653 = tpu.matmul %651, %652, %cst_229 {dimension_numbers = #tpu.dot_dimension_numbers<[1], [0], [0], [1], [0, 0, 1, 1], [], []>} : vector<16x16xf32>, vector<16x8xf32>, vector<16x8xf32> -> vector<16x8xf32>
    %654 = vector.extract_strided_slice %572 {offsets = [24, 0], sizes = [8, 32], strides = [1, 1]} : vector<32x32xf32> to vector<8x32xf32>
    %cst_230 = arith.constant dense<0.000000e+00> : vector<16x32xf32>
    %655 = tpu.matmul %653, %654, %cst_230 {dimension_numbers = #tpu.dot_dimension_numbers<[1], [0], [0], [1], [0, 0, 1, 1], [], []>} : vector<16x8xf32>, vector<8x32xf32>, vector<16x32xf32> -> vector<16x32xf32>
    %656 = arith.addf %635, %655 : vector<16x32xf32>
    %657 = vector.broadcast %573 : vector<1x32xf32> to vector<16x32xf32>
    %658 = arith.addf %656, %657 : vector<16x32xf32>
    %659 = arith.addf %532, %658 : vector<16x32xf32>
    %c7 = arith.constant 7 : index
    %c0_231 = arith.constant 0 : index
    %c0_232 = arith.constant 0 : index
    %660 = vector.load %arg17[%c7, %c0_231, %c0_232] : memref<16x1x64xf32, #tpu.memory_space<vmem>>, vector<1x1x64xf32>
    %661 = vector.shape_cast %660 : vector<1x1x64xf32> to vector<1x64xf32>
    %cst_233 = arith.constant dense<0.000000e+00> : vector<16xf32>
    %662 = vector.multi_reduction <add>, %659, %cst_233 [1] : vector<16x32xf32> to vector<16xf32>
    %663 = vector.shape_cast %662 : vector<16xf32> to vector<16x1xf32>
    %cst_234 = arith.constant 3.200000e+01 : f32
    %664 = vector.broadcast %cst_234 : f32 to vector<16x1xf32>
    %665 = arith.divf %663, %664 : vector<16x1xf32>
    %666 = arith.mulf %659, %659 : vector<16x32xf32>
    %cst_235 = arith.constant dense<0.000000e+00> : vector<16xf32>
    %667 = vector.multi_reduction <add>, %666, %cst_235 [1] : vector<16x32xf32> to vector<16xf32>
    %668 = vector.shape_cast %667 : vector<16xf32> to vector<16x1xf32>
    %cst_236 = arith.constant 3.200000e+01 : f32
    %669 = vector.broadcast %cst_236 : f32 to vector<16x1xf32>
    %670 = arith.divf %668, %669 : vector<16x1xf32>
    %671 = arith.mulf %665, %665 : vector<16x1xf32>
    %672 = arith.subf %670, %671 : vector<16x1xf32>
    %cst_237 = arith.constant 0.000000e+00 : f32
    %673 = vector.broadcast %cst_237 : f32 to vector<16x1xf32>
    %674 = arith.maximumf %672, %673 : vector<16x1xf32>
    %675 = vector.broadcast %665 : vector<16x1xf32> to vector<16x32xf32>
    %676 = arith.subf %659, %675 : vector<16x32xf32>
    %cst_238 = arith.constant 9.99999997E-7 : f32
    %677 = vector.broadcast %cst_238 : f32 to vector<16x1xf32>
    %678 = arith.addf %674, %677 : vector<16x1xf32>
    %679 = math.rsqrt %678 : vector<16x1xf32>
    %680 = vector.broadcast %679 : vector<16x1xf32> to vector<16x32xf32>
    %681 = arith.mulf %676, %680 : vector<16x32xf32>
    %682 = vector.extract_strided_slice %661 {offsets = [0, 0], sizes = [1, 32], strides = [1, 1]} : vector<1x64xf32> to vector<1x32xf32>
    %683 = vector.broadcast %682 : vector<1x32xf32> to vector<16x32xf32>
    %684 = arith.mulf %681, %683 : vector<16x32xf32>
    %685 = vector.extract_strided_slice %661 {offsets = [0, 32], sizes = [1, 32], strides = [1, 1]} : vector<1x64xf32> to vector<1x32xf32>
    %686 = vector.broadcast %685 : vector<1x32xf32> to vector<16x32xf32>
    %687 = arith.addf %684, %686 : vector<16x32xf32>
    %688 = vector.extract_strided_slice %404 {offsets = [0, 64], sizes = [16, 32], strides = [1, 1]} : vector<16x384xf32> to vector<16x32xf32>
    %689 = vector.extract_strided_slice %404 {offsets = [0, 96], sizes = [16, 32], strides = [1, 1]} : vector<16x384xf32> to vector<16x32xf32>
    %c4_239 = arith.constant 4 : index
    %c0_240 = arith.constant 0 : index
    %c0_241 = arith.constant 0 : index
    %690 = vector.load %arg10[%c4_239, %c0_240, %c0_241] : memref<10x32x128xf32, #tpu.memory_space<vmem>>, vector<1x32x128xf32>
    %691 = vector.shape_cast %690 : vector<1x32x128xf32> to vector<32x128xf32>
    %c4_242 = arith.constant 4 : index
    %c0_243 = arith.constant 0 : index
    %c0_244 = arith.constant 0 : index
    %692 = vector.load %arg11[%c4_242, %c0_243, %c0_244] : memref<10x1x128xf32, #tpu.memory_space<vmem>>, vector<1x1x128xf32>
    %693 = vector.shape_cast %692 : vector<1x1x128xf32> to vector<1x128xf32>
    %694 = vector.extract_strided_slice %691 {offsets = [0, 0], sizes = [32, 32], strides = [1, 1]} : vector<32x128xf32> to vector<32x32xf32>
    %cst_245 = arith.constant dense<0.000000e+00> : vector<16x32xf32>
    %695 = tpu.matmul %687, %694, %cst_245 {dimension_numbers = #tpu.dot_dimension_numbers<[1], [0], [0], [1], [0, 0, 1, 1], [], []>} : vector<16x32xf32>, vector<32x32xf32>, vector<16x32xf32> -> vector<16x32xf32>
    %696 = vector.extract_strided_slice %693 {offsets = [0, 0], sizes = [1, 32], strides = [1, 1]} : vector<1x128xf32> to vector<1x32xf32>
    %697 = vector.broadcast %696 : vector<1x32xf32> to vector<16x32xf32>
    %698 = arith.addf %695, %697 : vector<16x32xf32>
    %699 = vector.extract_strided_slice %691 {offsets = [0, 96], sizes = [32, 32], strides = [1, 1]} : vector<32x128xf32> to vector<32x32xf32>
    %700 = vector.extract_strided_slice %693 {offsets = [0, 96], sizes = [1, 32], strides = [1, 1]} : vector<1x128xf32> to vector<1x32xf32>
    %701 = vector.extract_strided_slice %698 {offsets = [0, 0], sizes = [16, 8], strides = [1, 1]} : vector<16x32xf32> to vector<16x8xf32>
    %702 = vector.extract_strided_slice %688 {offsets = [0, 0], sizes = [16, 8], strides = [1, 1]} : vector<16x32xf32> to vector<16x8xf32>
    "tpu.trace_start"() <{level = 10 : i32, message = "qd,kd->qk"}> : () -> ()
    %cst_246 = arith.constant dense<0.000000e+00> : vector<16x16xf32>
    %703 = tpu.matmul %701, %702, %cst_246 {dimension_numbers = #tpu.dot_dimension_numbers<[1], [1], [0], [0], [0, 0, 1, 0], [], []>} : vector<16x8xf32>, vector<16x8xf32>, vector<16x16xf32> -> vector<16x16xf32>
    "tpu.trace_stop"() : () -> ()
    %cst_247 = arith.constant 0.353553385 : f32
    %704 = vector.broadcast %cst_247 : f32 to vector<16x16xf32>
    %705 = arith.mulf %703, %704 : vector<16x16xf32>
    %706 = arith.addf %705, %7 : vector<16x16xf32>
    %cst_248 = arith.constant dense<0xFF800000> : vector<16xf32>
    %707 = vector.multi_reduction <maximumf>, %706, %cst_248 [1] : vector<16x16xf32> to vector<16xf32>
    %708 = vector.shape_cast %707 : vector<16xf32> to vector<16x1xf32>
    %709 = vector.broadcast %708 : vector<16x1xf32> to vector<16x16xf32>
    %710 = arith.subf %706, %709 : vector<16x16xf32>
    %711 = math.exp %710 : vector<16x16xf32>
    %cst_249 = arith.constant dense<0.000000e+00> : vector<16xf32>
    %712 = vector.multi_reduction <add>, %711, %cst_249 [1] : vector<16x16xf32> to vector<16xf32>
    %713 = vector.shape_cast %712 : vector<16xf32> to vector<16x1xf32>
    %714 = tpu.reciprocal %713 {approx = true} : vector<16x1xf32> -> vector<16x1xf32>
    %715 = vector.broadcast %714 : vector<16x1xf32> to vector<16x16xf32>
    %716 = arith.mulf %711, %715 : vector<16x16xf32>
    %717 = vector.extract_strided_slice %689 {offsets = [0, 0], sizes = [16, 8], strides = [1, 1]} : vector<16x32xf32> to vector<16x8xf32>
    %cst_250 = arith.constant dense<0.000000e+00> : vector<16x8xf32>
    %718 = tpu.matmul %716, %717, %cst_250 {dimension_numbers = #tpu.dot_dimension_numbers<[1], [0], [0], [1], [0, 0, 1, 1], [], []>} : vector<16x16xf32>, vector<16x8xf32>, vector<16x8xf32> -> vector<16x8xf32>
    %719 = vector.extract_strided_slice %699 {offsets = [0, 0], sizes = [8, 32], strides = [1, 1]} : vector<32x32xf32> to vector<8x32xf32>
    %cst_251 = arith.constant dense<0.000000e+00> : vector<16x32xf32>
    %720 = tpu.matmul %718, %719, %cst_251 {dimension_numbers = #tpu.dot_dimension_numbers<[1], [0], [0], [1], [0, 0, 1, 1], [], []>} : vector<16x8xf32>, vector<8x32xf32>, vector<16x32xf32> -> vector<16x32xf32>
    %721 = vector.extract_strided_slice %698 {offsets = [0, 8], sizes = [16, 8], strides = [1, 1]} : vector<16x32xf32> to vector<16x8xf32>
    %722 = vector.extract_strided_slice %688 {offsets = [0, 8], sizes = [16, 8], strides = [1, 1]} : vector<16x32xf32> to vector<16x8xf32>
    "tpu.trace_start"() <{level = 10 : i32, message = "qd,kd->qk"}> : () -> ()
    %cst_252 = arith.constant dense<0.000000e+00> : vector<16x16xf32>
    %723 = tpu.matmul %721, %722, %cst_252 {dimension_numbers = #tpu.dot_dimension_numbers<[1], [1], [0], [0], [0, 0, 1, 0], [], []>} : vector<16x8xf32>, vector<16x8xf32>, vector<16x16xf32> -> vector<16x16xf32>
    "tpu.trace_stop"() : () -> ()
    %cst_253 = arith.constant 0.353553385 : f32
    %724 = vector.broadcast %cst_253 : f32 to vector<16x16xf32>
    %725 = arith.mulf %723, %724 : vector<16x16xf32>
    %726 = arith.addf %725, %7 : vector<16x16xf32>
    %cst_254 = arith.constant dense<0xFF800000> : vector<16xf32>
    %727 = vector.multi_reduction <maximumf>, %726, %cst_254 [1] : vector<16x16xf32> to vector<16xf32>
    %728 = vector.shape_cast %727 : vector<16xf32> to vector<16x1xf32>
    %729 = vector.broadcast %728 : vector<16x1xf32> to vector<16x16xf32>
    %730 = arith.subf %726, %729 : vector<16x16xf32>
    %731 = math.exp %730 : vector<16x16xf32>
    %cst_255 = arith.constant dense<0.000000e+00> : vector<16xf32>
    %732 = vector.multi_reduction <add>, %731, %cst_255 [1] : vector<16x16xf32> to vector<16xf32>
    %733 = vector.shape_cast %732 : vector<16xf32> to vector<16x1xf32>
    %734 = tpu.reciprocal %733 {approx = true} : vector<16x1xf32> -> vector<16x1xf32>
    %735 = vector.broadcast %734 : vector<16x1xf32> to vector<16x16xf32>
    %736 = arith.mulf %731, %735 : vector<16x16xf32>
    %737 = vector.extract_strided_slice %689 {offsets = [0, 8], sizes = [16, 8], strides = [1, 1]} : vector<16x32xf32> to vector<16x8xf32>
    %cst_256 = arith.constant dense<0.000000e+00> : vector<16x8xf32>
    %738 = tpu.matmul %736, %737, %cst_256 {dimension_numbers = #tpu.dot_dimension_numbers<[1], [0], [0], [1], [0, 0, 1, 1], [], []>} : vector<16x16xf32>, vector<16x8xf32>, vector<16x8xf32> -> vector<16x8xf32>
    %739 = vector.extract_strided_slice %699 {offsets = [8, 0], sizes = [8, 32], strides = [1, 1]} : vector<32x32xf32> to vector<8x32xf32>
    %cst_257 = arith.constant dense<0.000000e+00> : vector<16x32xf32>
    %740 = tpu.matmul %738, %739, %cst_257 {dimension_numbers = #tpu.dot_dimension_numbers<[1], [0], [0], [1], [0, 0, 1, 1], [], []>} : vector<16x8xf32>, vector<8x32xf32>, vector<16x32xf32> -> vector<16x32xf32>
    %741 = arith.addf %720, %740 : vector<16x32xf32>
    %742 = vector.extract_strided_slice %698 {offsets = [0, 16], sizes = [16, 8], strides = [1, 1]} : vector<16x32xf32> to vector<16x8xf32>
    %743 = vector.extract_strided_slice %688 {offsets = [0, 16], sizes = [16, 8], strides = [1, 1]} : vector<16x32xf32> to vector<16x8xf32>
    "tpu.trace_start"() <{level = 10 : i32, message = "qd,kd->qk"}> : () -> ()
    %cst_258 = arith.constant dense<0.000000e+00> : vector<16x16xf32>
    %744 = tpu.matmul %742, %743, %cst_258 {dimension_numbers = #tpu.dot_dimension_numbers<[1], [1], [0], [0], [0, 0, 1, 0], [], []>} : vector<16x8xf32>, vector<16x8xf32>, vector<16x16xf32> -> vector<16x16xf32>
    "tpu.trace_stop"() : () -> ()
    %cst_259 = arith.constant 0.353553385 : f32
    %745 = vector.broadcast %cst_259 : f32 to vector<16x16xf32>
    %746 = arith.mulf %744, %745 : vector<16x16xf32>
    %747 = arith.addf %746, %7 : vector<16x16xf32>
    %cst_260 = arith.constant dense<0xFF800000> : vector<16xf32>
    %748 = vector.multi_reduction <maximumf>, %747, %cst_260 [1] : vector<16x16xf32> to vector<16xf32>
    %749 = vector.shape_cast %748 : vector<16xf32> to vector<16x1xf32>
    %750 = vector.broadcast %749 : vector<16x1xf32> to vector<16x16xf32>
    %751 = arith.subf %747, %750 : vector<16x16xf32>
    %752 = math.exp %751 : vector<16x16xf32>
    %cst_261 = arith.constant dense<0.000000e+00> : vector<16xf32>
    %753 = vector.multi_reduction <add>, %752, %cst_261 [1] : vector<16x16xf32> to vector<16xf32>
    %754 = vector.shape_cast %753 : vector<16xf32> to vector<16x1xf32>
    %755 = tpu.reciprocal %754 {approx = true} : vector<16x1xf32> -> vector<16x1xf32>
    %756 = vector.broadcast %755 : vector<16x1xf32> to vector<16x16xf32>
    %757 = arith.mulf %752, %756 : vector<16x16xf32>
    %758 = vector.extract_strided_slice %689 {offsets = [0, 16], sizes = [16, 8], strides = [1, 1]} : vector<16x32xf32> to vector<16x8xf32>
    %cst_262 = arith.constant dense<0.000000e+00> : vector<16x8xf32>
    %759 = tpu.matmul %757, %758, %cst_262 {dimension_numbers = #tpu.dot_dimension_numbers<[1], [0], [0], [1], [0, 0, 1, 1], [], []>} : vector<16x16xf32>, vector<16x8xf32>, vector<16x8xf32> -> vector<16x8xf32>
    %760 = vector.extract_strided_slice %699 {offsets = [16, 0], sizes = [8, 32], strides = [1, 1]} : vector<32x32xf32> to vector<8x32xf32>
    %cst_263 = arith.constant dense<0.000000e+00> : vector<16x32xf32>
    %761 = tpu.matmul %759, %760, %cst_263 {dimension_numbers = #tpu.dot_dimension_numbers<[1], [0], [0], [1], [0, 0, 1, 1], [], []>} : vector<16x8xf32>, vector<8x32xf32>, vector<16x32xf32> -> vector<16x32xf32>
    %762 = arith.addf %741, %761 : vector<16x32xf32>
    %763 = vector.extract_strided_slice %698 {offsets = [0, 24], sizes = [16, 8], strides = [1, 1]} : vector<16x32xf32> to vector<16x8xf32>
    %764 = vector.extract_strided_slice %688 {offsets = [0, 24], sizes = [16, 8], strides = [1, 1]} : vector<16x32xf32> to vector<16x8xf32>
    "tpu.trace_start"() <{level = 10 : i32, message = "qd,kd->qk"}> : () -> ()
    %cst_264 = arith.constant dense<0.000000e+00> : vector<16x16xf32>
    %765 = tpu.matmul %763, %764, %cst_264 {dimension_numbers = #tpu.dot_dimension_numbers<[1], [1], [0], [0], [0, 0, 1, 0], [], []>} : vector<16x8xf32>, vector<16x8xf32>, vector<16x16xf32> -> vector<16x16xf32>
    "tpu.trace_stop"() : () -> ()
    %cst_265 = arith.constant 0.353553385 : f32
    %766 = vector.broadcast %cst_265 : f32 to vector<16x16xf32>
    %767 = arith.mulf %765, %766 : vector<16x16xf32>
    %768 = arith.addf %767, %7 : vector<16x16xf32>
    %cst_266 = arith.constant dense<0xFF800000> : vector<16xf32>
    %769 = vector.multi_reduction <maximumf>, %768, %cst_266 [1] : vector<16x16xf32> to vector<16xf32>
    %770 = vector.shape_cast %769 : vector<16xf32> to vector<16x1xf32>
    %771 = vector.broadcast %770 : vector<16x1xf32> to vector<16x16xf32>
    %772 = arith.subf %768, %771 : vector<16x16xf32>
    %773 = math.exp %772 : vector<16x16xf32>
    %cst_267 = arith.constant dense<0.000000e+00> : vector<16xf32>
    %774 = vector.multi_reduction <add>, %773, %cst_267 [1] : vector<16x16xf32> to vector<16xf32>
    %775 = vector.shape_cast %774 : vector<16xf32> to vector<16x1xf32>
    %776 = tpu.reciprocal %775 {approx = true} : vector<16x1xf32> -> vector<16x1xf32>
    %777 = vector.broadcast %776 : vector<16x1xf32> to vector<16x16xf32>
    %778 = arith.mulf %773, %777 : vector<16x16xf32>
    %779 = vector.extract_strided_slice %689 {offsets = [0, 24], sizes = [16, 8], strides = [1, 1]} : vector<16x32xf32> to vector<16x8xf32>
    %cst_268 = arith.constant dense<0.000000e+00> : vector<16x8xf32>
    %780 = tpu.matmul %778, %779, %cst_268 {dimension_numbers = #tpu.dot_dimension_numbers<[1], [0], [0], [1], [0, 0, 1, 1], [], []>} : vector<16x16xf32>, vector<16x8xf32>, vector<16x8xf32> -> vector<16x8xf32>
    %781 = vector.extract_strided_slice %699 {offsets = [24, 0], sizes = [8, 32], strides = [1, 1]} : vector<32x32xf32> to vector<8x32xf32>
    %cst_269 = arith.constant dense<0.000000e+00> : vector<16x32xf32>
    %782 = tpu.matmul %780, %781, %cst_269 {dimension_numbers = #tpu.dot_dimension_numbers<[1], [0], [0], [1], [0, 0, 1, 1], [], []>} : vector<16x8xf32>, vector<8x32xf32>, vector<16x32xf32> -> vector<16x32xf32>
    %783 = arith.addf %762, %782 : vector<16x32xf32>
    %784 = vector.broadcast %700 : vector<1x32xf32> to vector<16x32xf32>
    %785 = arith.addf %783, %784 : vector<16x32xf32>
    %786 = arith.addf %659, %785 : vector<16x32xf32>
    %c8 = arith.constant 8 : index
    %c0_270 = arith.constant 0 : index
    %c0_271 = arith.constant 0 : index
    %787 = vector.load %arg17[%c8, %c0_270, %c0_271] : memref<16x1x64xf32, #tpu.memory_space<vmem>>, vector<1x1x64xf32>
    %788 = vector.shape_cast %787 : vector<1x1x64xf32> to vector<1x64xf32>
    %cst_272 = arith.constant dense<0.000000e+00> : vector<16xf32>
    %789 = vector.multi_reduction <add>, %786, %cst_272 [1] : vector<16x32xf32> to vector<16xf32>
    %790 = vector.shape_cast %789 : vector<16xf32> to vector<16x1xf32>
    %cst_273 = arith.constant 3.200000e+01 : f32
    %791 = vector.broadcast %cst_273 : f32 to vector<16x1xf32>
    %792 = arith.divf %790, %791 : vector<16x1xf32>
    %793 = arith.mulf %786, %786 : vector<16x32xf32>
    %cst_274 = arith.constant dense<0.000000e+00> : vector<16xf32>
    %794 = vector.multi_reduction <add>, %793, %cst_274 [1] : vector<16x32xf32> to vector<16xf32>
    %795 = vector.shape_cast %794 : vector<16xf32> to vector<16x1xf32>
    %cst_275 = arith.constant 3.200000e+01 : f32
    %796 = vector.broadcast %cst_275 : f32 to vector<16x1xf32>
    %797 = arith.divf %795, %796 : vector<16x1xf32>
    %798 = arith.mulf %792, %792 : vector<16x1xf32>
    %799 = arith.subf %797, %798 : vector<16x1xf32>
    %cst_276 = arith.constant 0.000000e+00 : f32
    %800 = vector.broadcast %cst_276 : f32 to vector<16x1xf32>
    %801 = arith.maximumf %799, %800 : vector<16x1xf32>
    %802 = vector.broadcast %792 : vector<16x1xf32> to vector<16x32xf32>
    %803 = arith.subf %786, %802 : vector<16x32xf32>
    %cst_277 = arith.constant 9.99999997E-7 : f32
    %804 = vector.broadcast %cst_277 : f32 to vector<16x1xf32>
    %805 = arith.addf %801, %804 : vector<16x1xf32>
    %806 = math.rsqrt %805 : vector<16x1xf32>
    %807 = vector.broadcast %806 : vector<16x1xf32> to vector<16x32xf32>
    %808 = arith.mulf %803, %807 : vector<16x32xf32>
    %809 = vector.extract_strided_slice %788 {offsets = [0, 0], sizes = [1, 32], strides = [1, 1]} : vector<1x64xf32> to vector<1x32xf32>
    %810 = vector.broadcast %809 : vector<1x32xf32> to vector<16x32xf32>
    %811 = arith.mulf %808, %810 : vector<16x32xf32>
    %812 = vector.extract_strided_slice %788 {offsets = [0, 32], sizes = [1, 32], strides = [1, 1]} : vector<1x64xf32> to vector<1x32xf32>
    %813 = vector.broadcast %812 : vector<1x32xf32> to vector<16x32xf32>
    %814 = arith.addf %811, %813 : vector<16x32xf32>
    %815 = vector.extract_strided_slice %404 {offsets = [0, 128], sizes = [16, 32], strides = [1, 1]} : vector<16x384xf32> to vector<16x32xf32>
    %816 = vector.extract_strided_slice %404 {offsets = [0, 160], sizes = [16, 32], strides = [1, 1]} : vector<16x384xf32> to vector<16x32xf32>
    %c5_278 = arith.constant 5 : index
    %c0_279 = arith.constant 0 : index
    %c0_280 = arith.constant 0 : index
    %817 = vector.load %arg10[%c5_278, %c0_279, %c0_280] : memref<10x32x128xf32, #tpu.memory_space<vmem>>, vector<1x32x128xf32>
    %818 = vector.shape_cast %817 : vector<1x32x128xf32> to vector<32x128xf32>
    %c5_281 = arith.constant 5 : index
    %c0_282 = arith.constant 0 : index
    %c0_283 = arith.constant 0 : index
    %819 = vector.load %arg11[%c5_281, %c0_282, %c0_283] : memref<10x1x128xf32, #tpu.memory_space<vmem>>, vector<1x1x128xf32>
    %820 = vector.shape_cast %819 : vector<1x1x128xf32> to vector<1x128xf32>
    %821 = vector.extract_strided_slice %818 {offsets = [0, 0], sizes = [32, 32], strides = [1, 1]} : vector<32x128xf32> to vector<32x32xf32>
    %cst_284 = arith.constant dense<0.000000e+00> : vector<16x32xf32>
    %822 = tpu.matmul %814, %821, %cst_284 {dimension_numbers = #tpu.dot_dimension_numbers<[1], [0], [0], [1], [0, 0, 1, 1], [], []>} : vector<16x32xf32>, vector<32x32xf32>, vector<16x32xf32> -> vector<16x32xf32>
    %823 = vector.extract_strided_slice %820 {offsets = [0, 0], sizes = [1, 32], strides = [1, 1]} : vector<1x128xf32> to vector<1x32xf32>
    %824 = vector.broadcast %823 : vector<1x32xf32> to vector<16x32xf32>
    %825 = arith.addf %822, %824 : vector<16x32xf32>
    %826 = vector.extract_strided_slice %818 {offsets = [0, 96], sizes = [32, 32], strides = [1, 1]} : vector<32x128xf32> to vector<32x32xf32>
    %827 = vector.extract_strided_slice %820 {offsets = [0, 96], sizes = [1, 32], strides = [1, 1]} : vector<1x128xf32> to vector<1x32xf32>
    %828 = vector.extract_strided_slice %825 {offsets = [0, 0], sizes = [16, 8], strides = [1, 1]} : vector<16x32xf32> to vector<16x8xf32>
    %829 = vector.extract_strided_slice %815 {offsets = [0, 0], sizes = [16, 8], strides = [1, 1]} : vector<16x32xf32> to vector<16x8xf32>
    "tpu.trace_start"() <{level = 10 : i32, message = "qd,kd->qk"}> : () -> ()
    %cst_285 = arith.constant dense<0.000000e+00> : vector<16x16xf32>
    %830 = tpu.matmul %828, %829, %cst_285 {dimension_numbers = #tpu.dot_dimension_numbers<[1], [1], [0], [0], [0, 0, 1, 0], [], []>} : vector<16x8xf32>, vector<16x8xf32>, vector<16x16xf32> -> vector<16x16xf32>
    "tpu.trace_stop"() : () -> ()
    %cst_286 = arith.constant 0.353553385 : f32
    %831 = vector.broadcast %cst_286 : f32 to vector<16x16xf32>
    %832 = arith.mulf %830, %831 : vector<16x16xf32>
    %833 = arith.addf %832, %9 : vector<16x16xf32>
    %cst_287 = arith.constant dense<0xFF800000> : vector<16xf32>
    %834 = vector.multi_reduction <maximumf>, %833, %cst_287 [1] : vector<16x16xf32> to vector<16xf32>
    %835 = vector.shape_cast %834 : vector<16xf32> to vector<16x1xf32>
    %836 = vector.broadcast %835 : vector<16x1xf32> to vector<16x16xf32>
    %837 = arith.subf %833, %836 : vector<16x16xf32>
    %838 = math.exp %837 : vector<16x16xf32>
    %cst_288 = arith.constant dense<0.000000e+00> : vector<16xf32>
    %839 = vector.multi_reduction <add>, %838, %cst_288 [1] : vector<16x16xf32> to vector<16xf32>
    %840 = vector.shape_cast %839 : vector<16xf32> to vector<16x1xf32>
    %841 = tpu.reciprocal %840 {approx = true} : vector<16x1xf32> -> vector<16x1xf32>
    %842 = vector.broadcast %841 : vector<16x1xf32> to vector<16x16xf32>
    %843 = arith.mulf %838, %842 : vector<16x16xf32>
    %844 = vector.extract_strided_slice %816 {offsets = [0, 0], sizes = [16, 8], strides = [1, 1]} : vector<16x32xf32> to vector<16x8xf32>
    %cst_289 = arith.constant dense<0.000000e+00> : vector<16x8xf32>
    %845 = tpu.matmul %843, %844, %cst_289 {dimension_numbers = #tpu.dot_dimension_numbers<[1], [0], [0], [1], [0, 0, 1, 1], [], []>} : vector<16x16xf32>, vector<16x8xf32>, vector<16x8xf32> -> vector<16x8xf32>
    %846 = vector.extract_strided_slice %826 {offsets = [0, 0], sizes = [8, 32], strides = [1, 1]} : vector<32x32xf32> to vector<8x32xf32>
    %cst_290 = arith.constant dense<0.000000e+00> : vector<16x32xf32>
    %847 = tpu.matmul %845, %846, %cst_290 {dimension_numbers = #tpu.dot_dimension_numbers<[1], [0], [0], [1], [0, 0, 1, 1], [], []>} : vector<16x8xf32>, vector<8x32xf32>, vector<16x32xf32> -> vector<16x32xf32>
    %848 = vector.extract_strided_slice %825 {offsets = [0, 8], sizes = [16, 8], strides = [1, 1]} : vector<16x32xf32> to vector<16x8xf32>
    %849 = vector.extract_strided_slice %815 {offsets = [0, 8], sizes = [16, 8], strides = [1, 1]} : vector<16x32xf32> to vector<16x8xf32>
    "tpu.trace_start"() <{level = 10 : i32, message = "qd,kd->qk"}> : () -> ()
    %cst_291 = arith.constant dense<0.000000e+00> : vector<16x16xf32>
    %850 = tpu.matmul %848, %849, %cst_291 {dimension_numbers = #tpu.dot_dimension_numbers<[1], [1], [0], [0], [0, 0, 1, 0], [], []>} : vector<16x8xf32>, vector<16x8xf32>, vector<16x16xf32> -> vector<16x16xf32>
    "tpu.trace_stop"() : () -> ()
    %cst_292 = arith.constant 0.353553385 : f32
    %851 = vector.broadcast %cst_292 : f32 to vector<16x16xf32>
    %852 = arith.mulf %850, %851 : vector<16x16xf32>
    %853 = arith.addf %852, %9 : vector<16x16xf32>
    %cst_293 = arith.constant dense<0xFF800000> : vector<16xf32>
    %854 = vector.multi_reduction <maximumf>, %853, %cst_293 [1] : vector<16x16xf32> to vector<16xf32>
    %855 = vector.shape_cast %854 : vector<16xf32> to vector<16x1xf32>
    %856 = vector.broadcast %855 : vector<16x1xf32> to vector<16x16xf32>
    %857 = arith.subf %853, %856 : vector<16x16xf32>
    %858 = math.exp %857 : vector<16x16xf32>
    %cst_294 = arith.constant dense<0.000000e+00> : vector<16xf32>
    %859 = vector.multi_reduction <add>, %858, %cst_294 [1] : vector<16x16xf32> to vector<16xf32>
    %860 = vector.shape_cast %859 : vector<16xf32> to vector<16x1xf32>
    %861 = tpu.reciprocal %860 {approx = true} : vector<16x1xf32> -> vector<16x1xf32>
    %862 = vector.broadcast %861 : vector<16x1xf32> to vector<16x16xf32>
    %863 = arith.mulf %858, %862 : vector<16x16xf32>
    %864 = vector.extract_strided_slice %816 {offsets = [0, 8], sizes = [16, 8], strides = [1, 1]} : vector<16x32xf32> to vector<16x8xf32>
    %cst_295 = arith.constant dense<0.000000e+00> : vector<16x8xf32>
    %865 = tpu.matmul %863, %864, %cst_295 {dimension_numbers = #tpu.dot_dimension_numbers<[1], [0], [0], [1], [0, 0, 1, 1], [], []>} : vector<16x16xf32>, vector<16x8xf32>, vector<16x8xf32> -> vector<16x8xf32>
    %866 = vector.extract_strided_slice %826 {offsets = [8, 0], sizes = [8, 32], strides = [1, 1]} : vector<32x32xf32> to vector<8x32xf32>
    %cst_296 = arith.constant dense<0.000000e+00> : vector<16x32xf32>
    %867 = tpu.matmul %865, %866, %cst_296 {dimension_numbers = #tpu.dot_dimension_numbers<[1], [0], [0], [1], [0, 0, 1, 1], [], []>} : vector<16x8xf32>, vector<8x32xf32>, vector<16x32xf32> -> vector<16x32xf32>
    %868 = arith.addf %847, %867 : vector<16x32xf32>
    %869 = vector.extract_strided_slice %825 {offsets = [0, 16], sizes = [16, 8], strides = [1, 1]} : vector<16x32xf32> to vector<16x8xf32>
    %870 = vector.extract_strided_slice %815 {offsets = [0, 16], sizes = [16, 8], strides = [1, 1]} : vector<16x32xf32> to vector<16x8xf32>
    "tpu.trace_start"() <{level = 10 : i32, message = "qd,kd->qk"}> : () -> ()
    %cst_297 = arith.constant dense<0.000000e+00> : vector<16x16xf32>
    %871 = tpu.matmul %869, %870, %cst_297 {dimension_numbers = #tpu.dot_dimension_numbers<[1], [1], [0], [0], [0, 0, 1, 0], [], []>} : vector<16x8xf32>, vector<16x8xf32>, vector<16x16xf32> -> vector<16x16xf32>
    "tpu.trace_stop"() : () -> ()
    %cst_298 = arith.constant 0.353553385 : f32
    %872 = vector.broadcast %cst_298 : f32 to vector<16x16xf32>
    %873 = arith.mulf %871, %872 : vector<16x16xf32>
    %874 = arith.addf %873, %9 : vector<16x16xf32>
    %cst_299 = arith.constant dense<0xFF800000> : vector<16xf32>
    %875 = vector.multi_reduction <maximumf>, %874, %cst_299 [1] : vector<16x16xf32> to vector<16xf32>
    %876 = vector.shape_cast %875 : vector<16xf32> to vector<16x1xf32>
    %877 = vector.broadcast %876 : vector<16x1xf32> to vector<16x16xf32>
    %878 = arith.subf %874, %877 : vector<16x16xf32>
    %879 = math.exp %878 : vector<16x16xf32>
    %cst_300 = arith.constant dense<0.000000e+00> : vector<16xf32>
    %880 = vector.multi_reduction <add>, %879, %cst_300 [1] : vector<16x16xf32> to vector<16xf32>
    %881 = vector.shape_cast %880 : vector<16xf32> to vector<16x1xf32>
    %882 = tpu.reciprocal %881 {approx = true} : vector<16x1xf32> -> vector<16x1xf32>
    %883 = vector.broadcast %882 : vector<16x1xf32> to vector<16x16xf32>
    %884 = arith.mulf %879, %883 : vector<16x16xf32>
    %885 = vector.extract_strided_slice %816 {offsets = [0, 16], sizes = [16, 8], strides = [1, 1]} : vector<16x32xf32> to vector<16x8xf32>
    %cst_301 = arith.constant dense<0.000000e+00> : vector<16x8xf32>
    %886 = tpu.matmul %884, %885, %cst_301 {dimension_numbers = #tpu.dot_dimension_numbers<[1], [0], [0], [1], [0, 0, 1, 1], [], []>} : vector<16x16xf32>, vector<16x8xf32>, vector<16x8xf32> -> vector<16x8xf32>
    %887 = vector.extract_strided_slice %826 {offsets = [16, 0], sizes = [8, 32], strides = [1, 1]} : vector<32x32xf32> to vector<8x32xf32>
    %cst_302 = arith.constant dense<0.000000e+00> : vector<16x32xf32>
    %888 = tpu.matmul %886, %887, %cst_302 {dimension_numbers = #tpu.dot_dimension_numbers<[1], [0], [0], [1], [0, 0, 1, 1], [], []>} : vector<16x8xf32>, vector<8x32xf32>, vector<16x32xf32> -> vector<16x32xf32>
    %889 = arith.addf %868, %888 : vector<16x32xf32>
    %890 = vector.extract_strided_slice %825 {offsets = [0, 24], sizes = [16, 8], strides = [1, 1]} : vector<16x32xf32> to vector<16x8xf32>
    %891 = vector.extract_strided_slice %815 {offsets = [0, 24], sizes = [16, 8], strides = [1, 1]} : vector<16x32xf32> to vector<16x8xf32>
    "tpu.trace_start"() <{level = 10 : i32, message = "qd,kd->qk"}> : () -> ()
    %cst_303 = arith.constant dense<0.000000e+00> : vector<16x16xf32>
    %892 = tpu.matmul %890, %891, %cst_303 {dimension_numbers = #tpu.dot_dimension_numbers<[1], [1], [0], [0], [0, 0, 1, 0], [], []>} : vector<16x8xf32>, vector<16x8xf32>, vector<16x16xf32> -> vector<16x16xf32>
    "tpu.trace_stop"() : () -> ()
    %cst_304 = arith.constant 0.353553385 : f32
    %893 = vector.broadcast %cst_304 : f32 to vector<16x16xf32>
    %894 = arith.mulf %892, %893 : vector<16x16xf32>
    %895 = arith.addf %894, %9 : vector<16x16xf32>
    %cst_305 = arith.constant dense<0xFF800000> : vector<16xf32>
    %896 = vector.multi_reduction <maximumf>, %895, %cst_305 [1] : vector<16x16xf32> to vector<16xf32>
    %897 = vector.shape_cast %896 : vector<16xf32> to vector<16x1xf32>
    %898 = vector.broadcast %897 : vector<16x1xf32> to vector<16x16xf32>
    %899 = arith.subf %895, %898 : vector<16x16xf32>
    %900 = math.exp %899 : vector<16x16xf32>
    %cst_306 = arith.constant dense<0.000000e+00> : vector<16xf32>
    %901 = vector.multi_reduction <add>, %900, %cst_306 [1] : vector<16x16xf32> to vector<16xf32>
    %902 = vector.shape_cast %901 : vector<16xf32> to vector<16x1xf32>
    %903 = tpu.reciprocal %902 {approx = true} : vector<16x1xf32> -> vector<16x1xf32>
    %904 = vector.broadcast %903 : vector<16x1xf32> to vector<16x16xf32>
    %905 = arith.mulf %900, %904 : vector<16x16xf32>
    %906 = vector.extract_strided_slice %816 {offsets = [0, 24], sizes = [16, 8], strides = [1, 1]} : vector<16x32xf32> to vector<16x8xf32>
    %cst_307 = arith.constant dense<0.000000e+00> : vector<16x8xf32>
    %907 = tpu.matmul %905, %906, %cst_307 {dimension_numbers = #tpu.dot_dimension_numbers<[1], [0], [0], [1], [0, 0, 1, 1], [], []>} : vector<16x16xf32>, vector<16x8xf32>, vector<16x8xf32> -> vector<16x8xf32>
    %908 = vector.extract_strided_slice %826 {offsets = [24, 0], sizes = [8, 32], strides = [1, 1]} : vector<32x32xf32> to vector<8x32xf32>
    %cst_308 = arith.constant dense<0.000000e+00> : vector<16x32xf32>
    %909 = tpu.matmul %907, %908, %cst_308 {dimension_numbers = #tpu.dot_dimension_numbers<[1], [0], [0], [1], [0, 0, 1, 1], [], []>} : vector<16x8xf32>, vector<8x32xf32>, vector<16x32xf32> -> vector<16x32xf32>
    %910 = arith.addf %889, %909 : vector<16x32xf32>
    %911 = vector.broadcast %827 : vector<1x32xf32> to vector<16x32xf32>
    %912 = arith.addf %910, %911 : vector<16x32xf32>
    %913 = arith.addf %786, %912 : vector<16x32xf32>
    %c9 = arith.constant 9 : index
    %c0_309 = arith.constant 0 : index
    %c0_310 = arith.constant 0 : index
    %914 = vector.load %arg17[%c9, %c0_309, %c0_310] : memref<16x1x64xf32, #tpu.memory_space<vmem>>, vector<1x1x64xf32>
    %915 = vector.shape_cast %914 : vector<1x1x64xf32> to vector<1x64xf32>
    %cst_311 = arith.constant dense<0.000000e+00> : vector<16xf32>
    %916 = vector.multi_reduction <add>, %913, %cst_311 [1] : vector<16x32xf32> to vector<16xf32>
    %917 = vector.shape_cast %916 : vector<16xf32> to vector<16x1xf32>
    %cst_312 = arith.constant 3.200000e+01 : f32
    %918 = vector.broadcast %cst_312 : f32 to vector<16x1xf32>
    %919 = arith.divf %917, %918 : vector<16x1xf32>
    %920 = arith.mulf %913, %913 : vector<16x32xf32>
    %cst_313 = arith.constant dense<0.000000e+00> : vector<16xf32>
    %921 = vector.multi_reduction <add>, %920, %cst_313 [1] : vector<16x32xf32> to vector<16xf32>
    %922 = vector.shape_cast %921 : vector<16xf32> to vector<16x1xf32>
    %cst_314 = arith.constant 3.200000e+01 : f32
    %923 = vector.broadcast %cst_314 : f32 to vector<16x1xf32>
    %924 = arith.divf %922, %923 : vector<16x1xf32>
    %925 = arith.mulf %919, %919 : vector<16x1xf32>
    %926 = arith.subf %924, %925 : vector<16x1xf32>
    %cst_315 = arith.constant 0.000000e+00 : f32
    %927 = vector.broadcast %cst_315 : f32 to vector<16x1xf32>
    %928 = arith.maximumf %926, %927 : vector<16x1xf32>
    %929 = vector.broadcast %919 : vector<16x1xf32> to vector<16x32xf32>
    %930 = arith.subf %913, %929 : vector<16x32xf32>
    %cst_316 = arith.constant 9.99999997E-7 : f32
    %931 = vector.broadcast %cst_316 : f32 to vector<16x1xf32>
    %932 = arith.addf %928, %931 : vector<16x1xf32>
    %933 = math.rsqrt %932 : vector<16x1xf32>
    %934 = vector.broadcast %933 : vector<16x1xf32> to vector<16x32xf32>
    %935 = arith.mulf %930, %934 : vector<16x32xf32>
    %936 = vector.extract_strided_slice %915 {offsets = [0, 0], sizes = [1, 32], strides = [1, 1]} : vector<1x64xf32> to vector<1x32xf32>
    %937 = vector.broadcast %936 : vector<1x32xf32> to vector<16x32xf32>
    %938 = arith.mulf %935, %937 : vector<16x32xf32>
    %939 = vector.extract_strided_slice %915 {offsets = [0, 32], sizes = [1, 32], strides = [1, 1]} : vector<1x64xf32> to vector<1x32xf32>
    %940 = vector.broadcast %939 : vector<1x32xf32> to vector<16x32xf32>
    %941 = arith.addf %938, %940 : vector<16x32xf32>
    %c2_317 = arith.constant 2 : index
    %c0_318 = arith.constant 0 : index
    %c0_319 = arith.constant 0 : index
    %942 = vector.load %arg14[%c2_317, %c0_318, %c0_319] : memref<4x32x64xf32, #tpu.memory_space<vmem>>, vector<1x32x64xf32>
    %943 = vector.shape_cast %942 : vector<1x32x64xf32> to vector<32x64xf32>
    %c2_320 = arith.constant 2 : index
    %c0_321 = arith.constant 0 : index
    %c0_322 = arith.constant 0 : index
    %944 = vector.load %arg15[%c2_320, %c0_321, %c0_322] : memref<4x64x32xf32, #tpu.memory_space<vmem>>, vector<1x64x32xf32>
    %945 = vector.shape_cast %944 : vector<1x64x32xf32> to vector<64x32xf32>
    %c2_323 = arith.constant 2 : index
    %c0_324 = arith.constant 0 : index
    %c0_325 = arith.constant 0 : index
    %946 = vector.load %arg16[%c2_323, %c0_324, %c0_325] : memref<4x1x96xf32, #tpu.memory_space<vmem>>, vector<1x1x96xf32>
    %947 = vector.shape_cast %946 : vector<1x1x96xf32> to vector<1x96xf32>
    %cst_326 = arith.constant dense<0.000000e+00> : vector<16x64xf32>
    %948 = tpu.matmul %941, %943, %cst_326 {dimension_numbers = #tpu.dot_dimension_numbers<[1], [0], [0], [1], [0, 0, 1, 1], [], []>} : vector<16x32xf32>, vector<32x64xf32>, vector<16x64xf32> -> vector<16x64xf32>
    %949 = vector.extract_strided_slice %947 {offsets = [0, 0], sizes = [1, 64], strides = [1, 1]} : vector<1x96xf32> to vector<1x64xf32>
    %950 = vector.broadcast %949 : vector<1x64xf32> to vector<16x64xf32>
    %951 = arith.addf %948, %950 : vector<16x64xf32>
    %cst_327 = arith.constant 0.000000e+00 : f32
    %952 = vector.broadcast %cst_327 : f32 to vector<16x64xf32>
    %953 = arith.maximumf %951, %952 : vector<16x64xf32>
    %cst_328 = arith.constant dense<0.000000e+00> : vector<16x32xf32>
    %954 = tpu.matmul %953, %945, %cst_328 {dimension_numbers = #tpu.dot_dimension_numbers<[1], [0], [0], [1], [0, 0, 1, 1], [], []>} : vector<16x64xf32>, vector<64x32xf32>, vector<16x32xf32> -> vector<16x32xf32>
    %955 = vector.extract_strided_slice %947 {offsets = [0, 64], sizes = [1, 32], strides = [1, 1]} : vector<1x96xf32> to vector<1x32xf32>
    %956 = vector.broadcast %955 : vector<1x32xf32> to vector<16x32xf32>
    %957 = arith.addf %954, %956 : vector<16x32xf32>
    %958 = arith.addf %913, %957 : vector<16x32xf32>
    %c10 = arith.constant 10 : index
    %c0_329 = arith.constant 0 : index
    %c0_330 = arith.constant 0 : index
    %959 = vector.load %arg17[%c10, %c0_329, %c0_330] : memref<16x1x64xf32, #tpu.memory_space<vmem>>, vector<1x1x64xf32>
    %960 = vector.shape_cast %959 : vector<1x1x64xf32> to vector<1x64xf32>
    %cst_331 = arith.constant dense<0.000000e+00> : vector<16xf32>
    %961 = vector.multi_reduction <add>, %958, %cst_331 [1] : vector<16x32xf32> to vector<16xf32>
    %962 = vector.shape_cast %961 : vector<16xf32> to vector<16x1xf32>
    %cst_332 = arith.constant 3.200000e+01 : f32
    %963 = vector.broadcast %cst_332 : f32 to vector<16x1xf32>
    %964 = arith.divf %962, %963 : vector<16x1xf32>
    %965 = arith.mulf %958, %958 : vector<16x32xf32>
    %cst_333 = arith.constant dense<0.000000e+00> : vector<16xf32>
    %966 = vector.multi_reduction <add>, %965, %cst_333 [1] : vector<16x32xf32> to vector<16xf32>
    %967 = vector.shape_cast %966 : vector<16xf32> to vector<16x1xf32>
    %cst_334 = arith.constant 3.200000e+01 : f32
    %968 = vector.broadcast %cst_334 : f32 to vector<16x1xf32>
    %969 = arith.divf %967, %968 : vector<16x1xf32>
    %970 = arith.mulf %964, %964 : vector<16x1xf32>
    %971 = arith.subf %969, %970 : vector<16x1xf32>
    %cst_335 = arith.constant 0.000000e+00 : f32
    %972 = vector.broadcast %cst_335 : f32 to vector<16x1xf32>
    %973 = arith.maximumf %971, %972 : vector<16x1xf32>
    %974 = vector.broadcast %964 : vector<16x1xf32> to vector<16x32xf32>
    %975 = arith.subf %958, %974 : vector<16x32xf32>
    %cst_336 = arith.constant 9.99999997E-7 : f32
    %976 = vector.broadcast %cst_336 : f32 to vector<16x1xf32>
    %977 = arith.addf %973, %976 : vector<16x1xf32>
    %978 = math.rsqrt %977 : vector<16x1xf32>
    %979 = vector.broadcast %978 : vector<16x1xf32> to vector<16x32xf32>
    %980 = arith.mulf %975, %979 : vector<16x32xf32>
    %981 = vector.extract_strided_slice %960 {offsets = [0, 0], sizes = [1, 32], strides = [1, 1]} : vector<1x64xf32> to vector<1x32xf32>
    %982 = vector.broadcast %981 : vector<1x32xf32> to vector<16x32xf32>
    %983 = arith.mulf %980, %982 : vector<16x32xf32>
    %984 = vector.extract_strided_slice %960 {offsets = [0, 32], sizes = [1, 32], strides = [1, 1]} : vector<1x64xf32> to vector<1x32xf32>
    %985 = vector.broadcast %984 : vector<1x32xf32> to vector<16x32xf32>
    %986 = arith.addf %983, %985 : vector<16x32xf32>
    %c6_337 = arith.constant 6 : index
    %c0_338 = arith.constant 0 : index
    %c0_339 = arith.constant 0 : index
    %987 = vector.load %arg10[%c6_337, %c0_338, %c0_339] : memref<10x32x128xf32, #tpu.memory_space<vmem>>, vector<1x32x128xf32>
    %988 = vector.shape_cast %987 : vector<1x32x128xf32> to vector<32x128xf32>
    %c6_340 = arith.constant 6 : index
    %c0_341 = arith.constant 0 : index
    %c0_342 = arith.constant 0 : index
    %989 = vector.load %arg11[%c6_340, %c0_341, %c0_342] : memref<10x1x128xf32, #tpu.memory_space<vmem>>, vector<1x1x128xf32>
    %990 = vector.shape_cast %989 : vector<1x1x128xf32> to vector<1x128xf32>
    %991 = vector.extract_strided_slice %988 {offsets = [0, 0], sizes = [32, 96], strides = [1, 1]} : vector<32x128xf32> to vector<32x96xf32>
    %cst_343 = arith.constant dense<0.000000e+00> : vector<16x96xf32>
    %992 = tpu.matmul %986, %991, %cst_343 {dimension_numbers = #tpu.dot_dimension_numbers<[1], [0], [0], [1], [0, 0, 1, 1], [], []>} : vector<16x32xf32>, vector<32x96xf32>, vector<16x96xf32> -> vector<16x96xf32>
    %993 = vector.extract_strided_slice %990 {offsets = [0, 0], sizes = [1, 96], strides = [1, 1]} : vector<1x128xf32> to vector<1x96xf32>
    %994 = vector.broadcast %993 : vector<1x96xf32> to vector<16x96xf32>
    %995 = arith.addf %992, %994 : vector<16x96xf32>
    %996 = vector.extract_strided_slice %995 {offsets = [0, 0], sizes = [16, 32], strides = [1, 1]} : vector<16x96xf32> to vector<16x32xf32>
    %997 = vector.extract_strided_slice %995 {offsets = [0, 32], sizes = [16, 32], strides = [1, 1]} : vector<16x96xf32> to vector<16x32xf32>
    %998 = vector.extract_strided_slice %995 {offsets = [0, 64], sizes = [16, 32], strides = [1, 1]} : vector<16x96xf32> to vector<16x32xf32>
    %999 = vector.extract_strided_slice %988 {offsets = [0, 96], sizes = [32, 32], strides = [1, 1]} : vector<32x128xf32> to vector<32x32xf32>
    %1000 = vector.extract_strided_slice %990 {offsets = [0, 96], sizes = [1, 32], strides = [1, 1]} : vector<1x128xf32> to vector<1x32xf32>
    %1001 = vector.extract_strided_slice %996 {offsets = [0, 0], sizes = [16, 8], strides = [1, 1]} : vector<16x32xf32> to vector<16x8xf32>
    %1002 = vector.extract_strided_slice %997 {offsets = [0, 0], sizes = [16, 8], strides = [1, 1]} : vector<16x32xf32> to vector<16x8xf32>
    "tpu.trace_start"() <{level = 10 : i32, message = "qd,kd->qk"}> : () -> ()
    %cst_344 = arith.constant dense<0.000000e+00> : vector<16x16xf32>
    %1003 = tpu.matmul %1001, %1002, %cst_344 {dimension_numbers = #tpu.dot_dimension_numbers<[1], [1], [0], [0], [0, 0, 1, 0], [], []>} : vector<16x8xf32>, vector<16x8xf32>, vector<16x16xf32> -> vector<16x16xf32>
    "tpu.trace_stop"() : () -> ()
    %cst_345 = arith.constant 0.353553385 : f32
    %1004 = vector.broadcast %cst_345 : f32 to vector<16x16xf32>
    %1005 = arith.mulf %1003, %1004 : vector<16x16xf32>
    %1006 = arith.addf %1005, %11 : vector<16x16xf32>
    %cst_346 = arith.constant dense<0xFF800000> : vector<16xf32>
    %1007 = vector.multi_reduction <maximumf>, %1006, %cst_346 [1] : vector<16x16xf32> to vector<16xf32>
    %1008 = vector.shape_cast %1007 : vector<16xf32> to vector<16x1xf32>
    %1009 = vector.broadcast %1008 : vector<16x1xf32> to vector<16x16xf32>
    %1010 = arith.subf %1006, %1009 : vector<16x16xf32>
    %1011 = math.exp %1010 : vector<16x16xf32>
    %cst_347 = arith.constant dense<0.000000e+00> : vector<16xf32>
    %1012 = vector.multi_reduction <add>, %1011, %cst_347 [1] : vector<16x16xf32> to vector<16xf32>
    %1013 = vector.shape_cast %1012 : vector<16xf32> to vector<16x1xf32>
    %1014 = tpu.reciprocal %1013 {approx = true} : vector<16x1xf32> -> vector<16x1xf32>
    %1015 = vector.broadcast %1014 : vector<16x1xf32> to vector<16x16xf32>
    %1016 = arith.mulf %1011, %1015 : vector<16x16xf32>
    %1017 = vector.extract_strided_slice %998 {offsets = [0, 0], sizes = [16, 8], strides = [1, 1]} : vector<16x32xf32> to vector<16x8xf32>
    %cst_348 = arith.constant dense<0.000000e+00> : vector<16x8xf32>
    %1018 = tpu.matmul %1016, %1017, %cst_348 {dimension_numbers = #tpu.dot_dimension_numbers<[1], [0], [0], [1], [0, 0, 1, 1], [], []>} : vector<16x16xf32>, vector<16x8xf32>, vector<16x8xf32> -> vector<16x8xf32>
    %1019 = vector.extract_strided_slice %999 {offsets = [0, 0], sizes = [8, 32], strides = [1, 1]} : vector<32x32xf32> to vector<8x32xf32>
    %cst_349 = arith.constant dense<0.000000e+00> : vector<16x32xf32>
    %1020 = tpu.matmul %1018, %1019, %cst_349 {dimension_numbers = #tpu.dot_dimension_numbers<[1], [0], [0], [1], [0, 0, 1, 1], [], []>} : vector<16x8xf32>, vector<8x32xf32>, vector<16x32xf32> -> vector<16x32xf32>
    %1021 = vector.extract_strided_slice %996 {offsets = [0, 8], sizes = [16, 8], strides = [1, 1]} : vector<16x32xf32> to vector<16x8xf32>
    %1022 = vector.extract_strided_slice %997 {offsets = [0, 8], sizes = [16, 8], strides = [1, 1]} : vector<16x32xf32> to vector<16x8xf32>
    "tpu.trace_start"() <{level = 10 : i32, message = "qd,kd->qk"}> : () -> ()
    %cst_350 = arith.constant dense<0.000000e+00> : vector<16x16xf32>
    %1023 = tpu.matmul %1021, %1022, %cst_350 {dimension_numbers = #tpu.dot_dimension_numbers<[1], [1], [0], [0], [0, 0, 1, 0], [], []>} : vector<16x8xf32>, vector<16x8xf32>, vector<16x16xf32> -> vector<16x16xf32>
    "tpu.trace_stop"() : () -> ()
    %cst_351 = arith.constant 0.353553385 : f32
    %1024 = vector.broadcast %cst_351 : f32 to vector<16x16xf32>
    %1025 = arith.mulf %1023, %1024 : vector<16x16xf32>
    %1026 = arith.addf %1025, %11 : vector<16x16xf32>
    %cst_352 = arith.constant dense<0xFF800000> : vector<16xf32>
    %1027 = vector.multi_reduction <maximumf>, %1026, %cst_352 [1] : vector<16x16xf32> to vector<16xf32>
    %1028 = vector.shape_cast %1027 : vector<16xf32> to vector<16x1xf32>
    %1029 = vector.broadcast %1028 : vector<16x1xf32> to vector<16x16xf32>
    %1030 = arith.subf %1026, %1029 : vector<16x16xf32>
    %1031 = math.exp %1030 : vector<16x16xf32>
    %cst_353 = arith.constant dense<0.000000e+00> : vector<16xf32>
    %1032 = vector.multi_reduction <add>, %1031, %cst_353 [1] : vector<16x16xf32> to vector<16xf32>
    %1033 = vector.shape_cast %1032 : vector<16xf32> to vector<16x1xf32>
    %1034 = tpu.reciprocal %1033 {approx = true} : vector<16x1xf32> -> vector<16x1xf32>
    %1035 = vector.broadcast %1034 : vector<16x1xf32> to vector<16x16xf32>
    %1036 = arith.mulf %1031, %1035 : vector<16x16xf32>
    %1037 = vector.extract_strided_slice %998 {offsets = [0, 8], sizes = [16, 8], strides = [1, 1]} : vector<16x32xf32> to vector<16x8xf32>
    %cst_354 = arith.constant dense<0.000000e+00> : vector<16x8xf32>
    %1038 = tpu.matmul %1036, %1037, %cst_354 {dimension_numbers = #tpu.dot_dimension_numbers<[1], [0], [0], [1], [0, 0, 1, 1], [], []>} : vector<16x16xf32>, vector<16x8xf32>, vector<16x8xf32> -> vector<16x8xf32>
    %1039 = vector.extract_strided_slice %999 {offsets = [8, 0], sizes = [8, 32], strides = [1, 1]} : vector<32x32xf32> to vector<8x32xf32>
    %cst_355 = arith.constant dense<0.000000e+00> : vector<16x32xf32>
    %1040 = tpu.matmul %1038, %1039, %cst_355 {dimension_numbers = #tpu.dot_dimension_numbers<[1], [0], [0], [1], [0, 0, 1, 1], [], []>} : vector<16x8xf32>, vector<8x32xf32>, vector<16x32xf32> -> vector<16x32xf32>
    %1041 = arith.addf %1020, %1040 : vector<16x32xf32>
    %1042 = vector.extract_strided_slice %996 {offsets = [0, 16], sizes = [16, 8], strides = [1, 1]} : vector<16x32xf32> to vector<16x8xf32>
    %1043 = vector.extract_strided_slice %997 {offsets = [0, 16], sizes = [16, 8], strides = [1, 1]} : vector<16x32xf32> to vector<16x8xf32>
    "tpu.trace_start"() <{level = 10 : i32, message = "qd,kd->qk"}> : () -> ()
    %cst_356 = arith.constant dense<0.000000e+00> : vector<16x16xf32>
    %1044 = tpu.matmul %1042, %1043, %cst_356 {dimension_numbers = #tpu.dot_dimension_numbers<[1], [1], [0], [0], [0, 0, 1, 0], [], []>} : vector<16x8xf32>, vector<16x8xf32>, vector<16x16xf32> -> vector<16x16xf32>
    "tpu.trace_stop"() : () -> ()
    %cst_357 = arith.constant 0.353553385 : f32
    %1045 = vector.broadcast %cst_357 : f32 to vector<16x16xf32>
    %1046 = arith.mulf %1044, %1045 : vector<16x16xf32>
    %1047 = arith.addf %1046, %11 : vector<16x16xf32>
    %cst_358 = arith.constant dense<0xFF800000> : vector<16xf32>
    %1048 = vector.multi_reduction <maximumf>, %1047, %cst_358 [1] : vector<16x16xf32> to vector<16xf32>
    %1049 = vector.shape_cast %1048 : vector<16xf32> to vector<16x1xf32>
    %1050 = vector.broadcast %1049 : vector<16x1xf32> to vector<16x16xf32>
    %1051 = arith.subf %1047, %1050 : vector<16x16xf32>
    %1052 = math.exp %1051 : vector<16x16xf32>
    %cst_359 = arith.constant dense<0.000000e+00> : vector<16xf32>
    %1053 = vector.multi_reduction <add>, %1052, %cst_359 [1] : vector<16x16xf32> to vector<16xf32>
    %1054 = vector.shape_cast %1053 : vector<16xf32> to vector<16x1xf32>
    %1055 = tpu.reciprocal %1054 {approx = true} : vector<16x1xf32> -> vector<16x1xf32>
    %1056 = vector.broadcast %1055 : vector<16x1xf32> to vector<16x16xf32>
    %1057 = arith.mulf %1052, %1056 : vector<16x16xf32>
    %1058 = vector.extract_strided_slice %998 {offsets = [0, 16], sizes = [16, 8], strides = [1, 1]} : vector<16x32xf32> to vector<16x8xf32>
    %cst_360 = arith.constant dense<0.000000e+00> : vector<16x8xf32>
    %1059 = tpu.matmul %1057, %1058, %cst_360 {dimension_numbers = #tpu.dot_dimension_numbers<[1], [0], [0], [1], [0, 0, 1, 1], [], []>} : vector<16x16xf32>, vector<16x8xf32>, vector<16x8xf32> -> vector<16x8xf32>
    %1060 = vector.extract_strided_slice %999 {offsets = [16, 0], sizes = [8, 32], strides = [1, 1]} : vector<32x32xf32> to vector<8x32xf32>
    %cst_361 = arith.constant dense<0.000000e+00> : vector<16x32xf32>
    %1061 = tpu.matmul %1059, %1060, %cst_361 {dimension_numbers = #tpu.dot_dimension_numbers<[1], [0], [0], [1], [0, 0, 1, 1], [], []>} : vector<16x8xf32>, vector<8x32xf32>, vector<16x32xf32> -> vector<16x32xf32>
    %1062 = arith.addf %1041, %1061 : vector<16x32xf32>
    %1063 = vector.extract_strided_slice %996 {offsets = [0, 24], sizes = [16, 8], strides = [1, 1]} : vector<16x32xf32> to vector<16x8xf32>
    %1064 = vector.extract_strided_slice %997 {offsets = [0, 24], sizes = [16, 8], strides = [1, 1]} : vector<16x32xf32> to vector<16x8xf32>
    "tpu.trace_start"() <{level = 10 : i32, message = "qd,kd->qk"}> : () -> ()
    %cst_362 = arith.constant dense<0.000000e+00> : vector<16x16xf32>
    %1065 = tpu.matmul %1063, %1064, %cst_362 {dimension_numbers = #tpu.dot_dimension_numbers<[1], [1], [0], [0], [0, 0, 1, 0], [], []>} : vector<16x8xf32>, vector<16x8xf32>, vector<16x16xf32> -> vector<16x16xf32>
    "tpu.trace_stop"() : () -> ()
    %cst_363 = arith.constant 0.353553385 : f32
    %1066 = vector.broadcast %cst_363 : f32 to vector<16x16xf32>
    %1067 = arith.mulf %1065, %1066 : vector<16x16xf32>
    %1068 = arith.addf %1067, %11 : vector<16x16xf32>
    %cst_364 = arith.constant dense<0xFF800000> : vector<16xf32>
    %1069 = vector.multi_reduction <maximumf>, %1068, %cst_364 [1] : vector<16x16xf32> to vector<16xf32>
    %1070 = vector.shape_cast %1069 : vector<16xf32> to vector<16x1xf32>
    %1071 = vector.broadcast %1070 : vector<16x1xf32> to vector<16x16xf32>
    %1072 = arith.subf %1068, %1071 : vector<16x16xf32>
    %1073 = math.exp %1072 : vector<16x16xf32>
    %cst_365 = arith.constant dense<0.000000e+00> : vector<16xf32>
    %1074 = vector.multi_reduction <add>, %1073, %cst_365 [1] : vector<16x16xf32> to vector<16xf32>
    %1075 = vector.shape_cast %1074 : vector<16xf32> to vector<16x1xf32>
    %1076 = tpu.reciprocal %1075 {approx = true} : vector<16x1xf32> -> vector<16x1xf32>
    %1077 = vector.broadcast %1076 : vector<16x1xf32> to vector<16x16xf32>
    %1078 = arith.mulf %1073, %1077 : vector<16x16xf32>
    %1079 = vector.extract_strided_slice %998 {offsets = [0, 24], sizes = [16, 8], strides = [1, 1]} : vector<16x32xf32> to vector<16x8xf32>
    %cst_366 = arith.constant dense<0.000000e+00> : vector<16x8xf32>
    %1080 = tpu.matmul %1078, %1079, %cst_366 {dimension_numbers = #tpu.dot_dimension_numbers<[1], [0], [0], [1], [0, 0, 1, 1], [], []>} : vector<16x16xf32>, vector<16x8xf32>, vector<16x8xf32> -> vector<16x8xf32>
    %1081 = vector.extract_strided_slice %999 {offsets = [24, 0], sizes = [8, 32], strides = [1, 1]} : vector<32x32xf32> to vector<8x32xf32>
    %cst_367 = arith.constant dense<0.000000e+00> : vector<16x32xf32>
    %1082 = tpu.matmul %1080, %1081, %cst_367 {dimension_numbers = #tpu.dot_dimension_numbers<[1], [0], [0], [1], [0, 0, 1, 1], [], []>} : vector<16x8xf32>, vector<8x32xf32>, vector<16x32xf32> -> vector<16x32xf32>
    %1083 = arith.addf %1062, %1082 : vector<16x32xf32>
    %1084 = vector.broadcast %1000 : vector<1x32xf32> to vector<16x32xf32>
    %1085 = arith.addf %1083, %1084 : vector<16x32xf32>
    %1086 = arith.addf %958, %1085 : vector<16x32xf32>
    %c11 = arith.constant 11 : index
    %c0_368 = arith.constant 0 : index
    %c0_369 = arith.constant 0 : index
    %1087 = vector.load %arg17[%c11, %c0_368, %c0_369] : memref<16x1x64xf32, #tpu.memory_space<vmem>>, vector<1x1x64xf32>
    %1088 = vector.shape_cast %1087 : vector<1x1x64xf32> to vector<1x64xf32>
    %cst_370 = arith.constant dense<0.000000e+00> : vector<16xf32>
    %1089 = vector.multi_reduction <add>, %1086, %cst_370 [1] : vector<16x32xf32> to vector<16xf32>
    %1090 = vector.shape_cast %1089 : vector<16xf32> to vector<16x1xf32>
    %cst_371 = arith.constant 3.200000e+01 : f32
    %1091 = vector.broadcast %cst_371 : f32 to vector<16x1xf32>
    %1092 = arith.divf %1090, %1091 : vector<16x1xf32>
    %1093 = arith.mulf %1086, %1086 : vector<16x32xf32>
    %cst_372 = arith.constant dense<0.000000e+00> : vector<16xf32>
    %1094 = vector.multi_reduction <add>, %1093, %cst_372 [1] : vector<16x32xf32> to vector<16xf32>
    %1095 = vector.shape_cast %1094 : vector<16xf32> to vector<16x1xf32>
    %cst_373 = arith.constant 3.200000e+01 : f32
    %1096 = vector.broadcast %cst_373 : f32 to vector<16x1xf32>
    %1097 = arith.divf %1095, %1096 : vector<16x1xf32>
    %1098 = arith.mulf %1092, %1092 : vector<16x1xf32>
    %1099 = arith.subf %1097, %1098 : vector<16x1xf32>
    %cst_374 = arith.constant 0.000000e+00 : f32
    %1100 = vector.broadcast %cst_374 : f32 to vector<16x1xf32>
    %1101 = arith.maximumf %1099, %1100 : vector<16x1xf32>
    %1102 = vector.broadcast %1092 : vector<16x1xf32> to vector<16x32xf32>
    %1103 = arith.subf %1086, %1102 : vector<16x32xf32>
    %cst_375 = arith.constant 9.99999997E-7 : f32
    %1104 = vector.broadcast %cst_375 : f32 to vector<16x1xf32>
    %1105 = arith.addf %1101, %1104 : vector<16x1xf32>
    %1106 = math.rsqrt %1105 : vector<16x1xf32>
    %1107 = vector.broadcast %1106 : vector<16x1xf32> to vector<16x32xf32>
    %1108 = arith.mulf %1103, %1107 : vector<16x32xf32>
    %1109 = vector.extract_strided_slice %1088 {offsets = [0, 0], sizes = [1, 32], strides = [1, 1]} : vector<1x64xf32> to vector<1x32xf32>
    %1110 = vector.broadcast %1109 : vector<1x32xf32> to vector<16x32xf32>
    %1111 = arith.mulf %1108, %1110 : vector<16x32xf32>
    %1112 = vector.extract_strided_slice %1088 {offsets = [0, 32], sizes = [1, 32], strides = [1, 1]} : vector<1x64xf32> to vector<1x32xf32>
    %1113 = vector.broadcast %1112 : vector<1x32xf32> to vector<16x32xf32>
    %1114 = arith.addf %1111, %1113 : vector<16x32xf32>
    %1115 = vector.extract_strided_slice %404 {offsets = [0, 192], sizes = [16, 32], strides = [1, 1]} : vector<16x384xf32> to vector<16x32xf32>
    %1116 = vector.extract_strided_slice %404 {offsets = [0, 224], sizes = [16, 32], strides = [1, 1]} : vector<16x384xf32> to vector<16x32xf32>
    %c7_376 = arith.constant 7 : index
    %c0_377 = arith.constant 0 : index
    %c0_378 = arith.constant 0 : index
    %1117 = vector.load %arg10[%c7_376, %c0_377, %c0_378] : memref<10x32x128xf32, #tpu.memory_space<vmem>>, vector<1x32x128xf32>
    %1118 = vector.shape_cast %1117 : vector<1x32x128xf32> to vector<32x128xf32>
    %c7_379 = arith.constant 7 : index
    %c0_380 = arith.constant 0 : index
    %c0_381 = arith.constant 0 : index
    %1119 = vector.load %arg11[%c7_379, %c0_380, %c0_381] : memref<10x1x128xf32, #tpu.memory_space<vmem>>, vector<1x1x128xf32>
    %1120 = vector.shape_cast %1119 : vector<1x1x128xf32> to vector<1x128xf32>
    %1121 = vector.extract_strided_slice %1118 {offsets = [0, 0], sizes = [32, 32], strides = [1, 1]} : vector<32x128xf32> to vector<32x32xf32>
    %cst_382 = arith.constant dense<0.000000e+00> : vector<16x32xf32>
    %1122 = tpu.matmul %1114, %1121, %cst_382 {dimension_numbers = #tpu.dot_dimension_numbers<[1], [0], [0], [1], [0, 0, 1, 1], [], []>} : vector<16x32xf32>, vector<32x32xf32>, vector<16x32xf32> -> vector<16x32xf32>
    %1123 = vector.extract_strided_slice %1120 {offsets = [0, 0], sizes = [1, 32], strides = [1, 1]} : vector<1x128xf32> to vector<1x32xf32>
    %1124 = vector.broadcast %1123 : vector<1x32xf32> to vector<16x32xf32>
    %1125 = arith.addf %1122, %1124 : vector<16x32xf32>
    %1126 = vector.extract_strided_slice %1118 {offsets = [0, 96], sizes = [32, 32], strides = [1, 1]} : vector<32x128xf32> to vector<32x32xf32>
    %1127 = vector.extract_strided_slice %1120 {offsets = [0, 96], sizes = [1, 32], strides = [1, 1]} : vector<1x128xf32> to vector<1x32xf32>
    %1128 = vector.extract_strided_slice %1125 {offsets = [0, 0], sizes = [16, 8], strides = [1, 1]} : vector<16x32xf32> to vector<16x8xf32>
    %1129 = vector.extract_strided_slice %1115 {offsets = [0, 0], sizes = [16, 8], strides = [1, 1]} : vector<16x32xf32> to vector<16x8xf32>
    "tpu.trace_start"() <{level = 10 : i32, message = "qd,kd->qk"}> : () -> ()
    %cst_383 = arith.constant dense<0.000000e+00> : vector<16x16xf32>
    %1130 = tpu.matmul %1128, %1129, %cst_383 {dimension_numbers = #tpu.dot_dimension_numbers<[1], [1], [0], [0], [0, 0, 1, 0], [], []>} : vector<16x8xf32>, vector<16x8xf32>, vector<16x16xf32> -> vector<16x16xf32>
    "tpu.trace_stop"() : () -> ()
    %cst_384 = arith.constant 0.353553385 : f32
    %1131 = vector.broadcast %cst_384 : f32 to vector<16x16xf32>
    %1132 = arith.mulf %1130, %1131 : vector<16x16xf32>
    %1133 = arith.addf %1132, %5 : vector<16x16xf32>
    %cst_385 = arith.constant dense<0xFF800000> : vector<16xf32>
    %1134 = vector.multi_reduction <maximumf>, %1133, %cst_385 [1] : vector<16x16xf32> to vector<16xf32>
    %1135 = vector.shape_cast %1134 : vector<16xf32> to vector<16x1xf32>
    %1136 = vector.broadcast %1135 : vector<16x1xf32> to vector<16x16xf32>
    %1137 = arith.subf %1133, %1136 : vector<16x16xf32>
    %1138 = math.exp %1137 : vector<16x16xf32>
    %cst_386 = arith.constant dense<0.000000e+00> : vector<16xf32>
    %1139 = vector.multi_reduction <add>, %1138, %cst_386 [1] : vector<16x16xf32> to vector<16xf32>
    %1140 = vector.shape_cast %1139 : vector<16xf32> to vector<16x1xf32>
    %1141 = tpu.reciprocal %1140 {approx = true} : vector<16x1xf32> -> vector<16x1xf32>
    %1142 = vector.broadcast %1141 : vector<16x1xf32> to vector<16x16xf32>
    %1143 = arith.mulf %1138, %1142 : vector<16x16xf32>
    %1144 = vector.extract_strided_slice %1116 {offsets = [0, 0], sizes = [16, 8], strides = [1, 1]} : vector<16x32xf32> to vector<16x8xf32>
    %cst_387 = arith.constant dense<0.000000e+00> : vector<16x8xf32>
    %1145 = tpu.matmul %1143, %1144, %cst_387 {dimension_numbers = #tpu.dot_dimension_numbers<[1], [0], [0], [1], [0, 0, 1, 1], [], []>} : vector<16x16xf32>, vector<16x8xf32>, vector<16x8xf32> -> vector<16x8xf32>
    %1146 = vector.extract_strided_slice %1126 {offsets = [0, 0], sizes = [8, 32], strides = [1, 1]} : vector<32x32xf32> to vector<8x32xf32>
    %cst_388 = arith.constant dense<0.000000e+00> : vector<16x32xf32>
    %1147 = tpu.matmul %1145, %1146, %cst_388 {dimension_numbers = #tpu.dot_dimension_numbers<[1], [0], [0], [1], [0, 0, 1, 1], [], []>} : vector<16x8xf32>, vector<8x32xf32>, vector<16x32xf32> -> vector<16x32xf32>
    %1148 = vector.extract_strided_slice %1125 {offsets = [0, 8], sizes = [16, 8], strides = [1, 1]} : vector<16x32xf32> to vector<16x8xf32>
    %1149 = vector.extract_strided_slice %1115 {offsets = [0, 8], sizes = [16, 8], strides = [1, 1]} : vector<16x32xf32> to vector<16x8xf32>
    "tpu.trace_start"() <{level = 10 : i32, message = "qd,kd->qk"}> : () -> ()
    %cst_389 = arith.constant dense<0.000000e+00> : vector<16x16xf32>
    %1150 = tpu.matmul %1148, %1149, %cst_389 {dimension_numbers = #tpu.dot_dimension_numbers<[1], [1], [0], [0], [0, 0, 1, 0], [], []>} : vector<16x8xf32>, vector<16x8xf32>, vector<16x16xf32> -> vector<16x16xf32>
    "tpu.trace_stop"() : () -> ()
    %cst_390 = arith.constant 0.353553385 : f32
    %1151 = vector.broadcast %cst_390 : f32 to vector<16x16xf32>
    %1152 = arith.mulf %1150, %1151 : vector<16x16xf32>
    %1153 = arith.addf %1152, %5 : vector<16x16xf32>
    %cst_391 = arith.constant dense<0xFF800000> : vector<16xf32>
    %1154 = vector.multi_reduction <maximumf>, %1153, %cst_391 [1] : vector<16x16xf32> to vector<16xf32>
    %1155 = vector.shape_cast %1154 : vector<16xf32> to vector<16x1xf32>
    %1156 = vector.broadcast %1155 : vector<16x1xf32> to vector<16x16xf32>
    %1157 = arith.subf %1153, %1156 : vector<16x16xf32>
    %1158 = math.exp %1157 : vector<16x16xf32>
    %cst_392 = arith.constant dense<0.000000e+00> : vector<16xf32>
    %1159 = vector.multi_reduction <add>, %1158, %cst_392 [1] : vector<16x16xf32> to vector<16xf32>
    %1160 = vector.shape_cast %1159 : vector<16xf32> to vector<16x1xf32>
    %1161 = tpu.reciprocal %1160 {approx = true} : vector<16x1xf32> -> vector<16x1xf32>
    %1162 = vector.broadcast %1161 : vector<16x1xf32> to vector<16x16xf32>
    %1163 = arith.mulf %1158, %1162 : vector<16x16xf32>
    %1164 = vector.extract_strided_slice %1116 {offsets = [0, 8], sizes = [16, 8], strides = [1, 1]} : vector<16x32xf32> to vector<16x8xf32>
    %cst_393 = arith.constant dense<0.000000e+00> : vector<16x8xf32>
    %1165 = tpu.matmul %1163, %1164, %cst_393 {dimension_numbers = #tpu.dot_dimension_numbers<[1], [0], [0], [1], [0, 0, 1, 1], [], []>} : vector<16x16xf32>, vector<16x8xf32>, vector<16x8xf32> -> vector<16x8xf32>
    %1166 = vector.extract_strided_slice %1126 {offsets = [8, 0], sizes = [8, 32], strides = [1, 1]} : vector<32x32xf32> to vector<8x32xf32>
    %cst_394 = arith.constant dense<0.000000e+00> : vector<16x32xf32>
    %1167 = tpu.matmul %1165, %1166, %cst_394 {dimension_numbers = #tpu.dot_dimension_numbers<[1], [0], [0], [1], [0, 0, 1, 1], [], []>} : vector<16x8xf32>, vector<8x32xf32>, vector<16x32xf32> -> vector<16x32xf32>
    %1168 = arith.addf %1147, %1167 : vector<16x32xf32>
    %1169 = vector.extract_strided_slice %1125 {offsets = [0, 16], sizes = [16, 8], strides = [1, 1]} : vector<16x32xf32> to vector<16x8xf32>
    %1170 = vector.extract_strided_slice %1115 {offsets = [0, 16], sizes = [16, 8], strides = [1, 1]} : vector<16x32xf32> to vector<16x8xf32>
    "tpu.trace_start"() <{level = 10 : i32, message = "qd,kd->qk"}> : () -> ()
    %cst_395 = arith.constant dense<0.000000e+00> : vector<16x16xf32>
    %1171 = tpu.matmul %1169, %1170, %cst_395 {dimension_numbers = #tpu.dot_dimension_numbers<[1], [1], [0], [0], [0, 0, 1, 0], [], []>} : vector<16x8xf32>, vector<16x8xf32>, vector<16x16xf32> -> vector<16x16xf32>
    "tpu.trace_stop"() : () -> ()
    %cst_396 = arith.constant 0.353553385 : f32
    %1172 = vector.broadcast %cst_396 : f32 to vector<16x16xf32>
    %1173 = arith.mulf %1171, %1172 : vector<16x16xf32>
    %1174 = arith.addf %1173, %5 : vector<16x16xf32>
    %cst_397 = arith.constant dense<0xFF800000> : vector<16xf32>
    %1175 = vector.multi_reduction <maximumf>, %1174, %cst_397 [1] : vector<16x16xf32> to vector<16xf32>
    %1176 = vector.shape_cast %1175 : vector<16xf32> to vector<16x1xf32>
    %1177 = vector.broadcast %1176 : vector<16x1xf32> to vector<16x16xf32>
    %1178 = arith.subf %1174, %1177 : vector<16x16xf32>
    %1179 = math.exp %1178 : vector<16x16xf32>
    %cst_398 = arith.constant dense<0.000000e+00> : vector<16xf32>
    %1180 = vector.multi_reduction <add>, %1179, %cst_398 [1] : vector<16x16xf32> to vector<16xf32>
    %1181 = vector.shape_cast %1180 : vector<16xf32> to vector<16x1xf32>
    %1182 = tpu.reciprocal %1181 {approx = true} : vector<16x1xf32> -> vector<16x1xf32>
    %1183 = vector.broadcast %1182 : vector<16x1xf32> to vector<16x16xf32>
    %1184 = arith.mulf %1179, %1183 : vector<16x16xf32>
    %1185 = vector.extract_strided_slice %1116 {offsets = [0, 16], sizes = [16, 8], strides = [1, 1]} : vector<16x32xf32> to vector<16x8xf32>
    %cst_399 = arith.constant dense<0.000000e+00> : vector<16x8xf32>
    %1186 = tpu.matmul %1184, %1185, %cst_399 {dimension_numbers = #tpu.dot_dimension_numbers<[1], [0], [0], [1], [0, 0, 1, 1], [], []>} : vector<16x16xf32>, vector<16x8xf32>, vector<16x8xf32> -> vector<16x8xf32>
    %1187 = vector.extract_strided_slice %1126 {offsets = [16, 0], sizes = [8, 32], strides = [1, 1]} : vector<32x32xf32> to vector<8x32xf32>
    %cst_400 = arith.constant dense<0.000000e+00> : vector<16x32xf32>
    %1188 = tpu.matmul %1186, %1187, %cst_400 {dimension_numbers = #tpu.dot_dimension_numbers<[1], [0], [0], [1], [0, 0, 1, 1], [], []>} : vector<16x8xf32>, vector<8x32xf32>, vector<16x32xf32> -> vector<16x32xf32>
    %1189 = arith.addf %1168, %1188 : vector<16x32xf32>
    %1190 = vector.extract_strided_slice %1125 {offsets = [0, 24], sizes = [16, 8], strides = [1, 1]} : vector<16x32xf32> to vector<16x8xf32>
    %1191 = vector.extract_strided_slice %1115 {offsets = [0, 24], sizes = [16, 8], strides = [1, 1]} : vector<16x32xf32> to vector<16x8xf32>
    "tpu.trace_start"() <{level = 10 : i32, message = "qd,kd->qk"}> : () -> ()
    %cst_401 = arith.constant dense<0.000000e+00> : vector<16x16xf32>
    %1192 = tpu.matmul %1190, %1191, %cst_401 {dimension_numbers = #tpu.dot_dimension_numbers<[1], [1], [0], [0], [0, 0, 1, 0], [], []>} : vector<16x8xf32>, vector<16x8xf32>, vector<16x16xf32> -> vector<16x16xf32>
    "tpu.trace_stop"() : () -> ()
    %cst_402 = arith.constant 0.353553385 : f32
    %1193 = vector.broadcast %cst_402 : f32 to vector<16x16xf32>
    %1194 = arith.mulf %1192, %1193 : vector<16x16xf32>
    %1195 = arith.addf %1194, %5 : vector<16x16xf32>
    %cst_403 = arith.constant dense<0xFF800000> : vector<16xf32>
    %1196 = vector.multi_reduction <maximumf>, %1195, %cst_403 [1] : vector<16x16xf32> to vector<16xf32>
    %1197 = vector.shape_cast %1196 : vector<16xf32> to vector<16x1xf32>
    %1198 = vector.broadcast %1197 : vector<16x1xf32> to vector<16x16xf32>
    %1199 = arith.subf %1195, %1198 : vector<16x16xf32>
    %1200 = math.exp %1199 : vector<16x16xf32>
    %cst_404 = arith.constant dense<0.000000e+00> : vector<16xf32>
    %1201 = vector.multi_reduction <add>, %1200, %cst_404 [1] : vector<16x16xf32> to vector<16xf32>
    %1202 = vector.shape_cast %1201 : vector<16xf32> to vector<16x1xf32>
    %1203 = tpu.reciprocal %1202 {approx = true} : vector<16x1xf32> -> vector<16x1xf32>
    %1204 = vector.broadcast %1203 : vector<16x1xf32> to vector<16x16xf32>
    %1205 = arith.mulf %1200, %1204 : vector<16x16xf32>
    %1206 = vector.extract_strided_slice %1116 {offsets = [0, 24], sizes = [16, 8], strides = [1, 1]} : vector<16x32xf32> to vector<16x8xf32>
    %cst_405 = arith.constant dense<0.000000e+00> : vector<16x8xf32>
    %1207 = tpu.matmul %1205, %1206, %cst_405 {dimension_numbers = #tpu.dot_dimension_numbers<[1], [0], [0], [1], [0, 0, 1, 1], [], []>} : vector<16x16xf32>, vector<16x8xf32>, vector<16x8xf32> -> vector<16x8xf32>
    %1208 = vector.extract_strided_slice %1126 {offsets = [24, 0], sizes = [8, 32], strides = [1, 1]} : vector<32x32xf32> to vector<8x32xf32>
    %cst_406 = arith.constant dense<0.000000e+00> : vector<16x32xf32>
    %1209 = tpu.matmul %1207, %1208, %cst_406 {dimension_numbers = #tpu.dot_dimension_numbers<[1], [0], [0], [1], [0, 0, 1, 1], [], []>} : vector<16x8xf32>, vector<8x32xf32>, vector<16x32xf32> -> vector<16x32xf32>
    %1210 = arith.addf %1189, %1209 : vector<16x32xf32>
    %1211 = vector.broadcast %1127 : vector<1x32xf32> to vector<16x32xf32>
    %1212 = arith.addf %1210, %1211 : vector<16x32xf32>
    %1213 = arith.addf %1086, %1212 : vector<16x32xf32>
    %c12 = arith.constant 12 : index
    %c0_407 = arith.constant 0 : index
    %c0_408 = arith.constant 0 : index
    %1214 = vector.load %arg17[%c12, %c0_407, %c0_408] : memref<16x1x64xf32, #tpu.memory_space<vmem>>, vector<1x1x64xf32>
    %1215 = vector.shape_cast %1214 : vector<1x1x64xf32> to vector<1x64xf32>
    %cst_409 = arith.constant dense<0.000000e+00> : vector<16xf32>
    %1216 = vector.multi_reduction <add>, %1213, %cst_409 [1] : vector<16x32xf32> to vector<16xf32>
    %1217 = vector.shape_cast %1216 : vector<16xf32> to vector<16x1xf32>
    %cst_410 = arith.constant 3.200000e+01 : f32
    %1218 = vector.broadcast %cst_410 : f32 to vector<16x1xf32>
    %1219 = arith.divf %1217, %1218 : vector<16x1xf32>
    %1220 = arith.mulf %1213, %1213 : vector<16x32xf32>
    %cst_411 = arith.constant dense<0.000000e+00> : vector<16xf32>
    %1221 = vector.multi_reduction <add>, %1220, %cst_411 [1] : vector<16x32xf32> to vector<16xf32>
    %1222 = vector.shape_cast %1221 : vector<16xf32> to vector<16x1xf32>
    %cst_412 = arith.constant 3.200000e+01 : f32
    %1223 = vector.broadcast %cst_412 : f32 to vector<16x1xf32>
    %1224 = arith.divf %1222, %1223 : vector<16x1xf32>
    %1225 = arith.mulf %1219, %1219 : vector<16x1xf32>
    %1226 = arith.subf %1224, %1225 : vector<16x1xf32>
    %cst_413 = arith.constant 0.000000e+00 : f32
    %1227 = vector.broadcast %cst_413 : f32 to vector<16x1xf32>
    %1228 = arith.maximumf %1226, %1227 : vector<16x1xf32>
    %1229 = vector.broadcast %1219 : vector<16x1xf32> to vector<16x32xf32>
    %1230 = arith.subf %1213, %1229 : vector<16x32xf32>
    %cst_414 = arith.constant 9.99999997E-7 : f32
    %1231 = vector.broadcast %cst_414 : f32 to vector<16x1xf32>
    %1232 = arith.addf %1228, %1231 : vector<16x1xf32>
    %1233 = math.rsqrt %1232 : vector<16x1xf32>
    %1234 = vector.broadcast %1233 : vector<16x1xf32> to vector<16x32xf32>
    %1235 = arith.mulf %1230, %1234 : vector<16x32xf32>
    %1236 = vector.extract_strided_slice %1215 {offsets = [0, 0], sizes = [1, 32], strides = [1, 1]} : vector<1x64xf32> to vector<1x32xf32>
    %1237 = vector.broadcast %1236 : vector<1x32xf32> to vector<16x32xf32>
    %1238 = arith.mulf %1235, %1237 : vector<16x32xf32>
    %1239 = vector.extract_strided_slice %1215 {offsets = [0, 32], sizes = [1, 32], strides = [1, 1]} : vector<1x64xf32> to vector<1x32xf32>
    %1240 = vector.broadcast %1239 : vector<1x32xf32> to vector<16x32xf32>
    %1241 = arith.addf %1238, %1240 : vector<16x32xf32>
    %1242 = vector.extract_strided_slice %404 {offsets = [0, 256], sizes = [16, 32], strides = [1, 1]} : vector<16x384xf32> to vector<16x32xf32>
    %1243 = vector.extract_strided_slice %404 {offsets = [0, 288], sizes = [16, 32], strides = [1, 1]} : vector<16x384xf32> to vector<16x32xf32>
    %c8_415 = arith.constant 8 : index
    %c0_416 = arith.constant 0 : index
    %c0_417 = arith.constant 0 : index
    %1244 = vector.load %arg10[%c8_415, %c0_416, %c0_417] : memref<10x32x128xf32, #tpu.memory_space<vmem>>, vector<1x32x128xf32>
    %1245 = vector.shape_cast %1244 : vector<1x32x128xf32> to vector<32x128xf32>
    %c8_418 = arith.constant 8 : index
    %c0_419 = arith.constant 0 : index
    %c0_420 = arith.constant 0 : index
    %1246 = vector.load %arg11[%c8_418, %c0_419, %c0_420] : memref<10x1x128xf32, #tpu.memory_space<vmem>>, vector<1x1x128xf32>
    %1247 = vector.shape_cast %1246 : vector<1x1x128xf32> to vector<1x128xf32>
    %1248 = vector.extract_strided_slice %1245 {offsets = [0, 0], sizes = [32, 32], strides = [1, 1]} : vector<32x128xf32> to vector<32x32xf32>
    %cst_421 = arith.constant dense<0.000000e+00> : vector<16x32xf32>
    %1249 = tpu.matmul %1241, %1248, %cst_421 {dimension_numbers = #tpu.dot_dimension_numbers<[1], [0], [0], [1], [0, 0, 1, 1], [], []>} : vector<16x32xf32>, vector<32x32xf32>, vector<16x32xf32> -> vector<16x32xf32>
    %1250 = vector.extract_strided_slice %1247 {offsets = [0, 0], sizes = [1, 32], strides = [1, 1]} : vector<1x128xf32> to vector<1x32xf32>
    %1251 = vector.broadcast %1250 : vector<1x32xf32> to vector<16x32xf32>
    %1252 = arith.addf %1249, %1251 : vector<16x32xf32>
    %1253 = vector.extract_strided_slice %1245 {offsets = [0, 96], sizes = [32, 32], strides = [1, 1]} : vector<32x128xf32> to vector<32x32xf32>
    %1254 = vector.extract_strided_slice %1247 {offsets = [0, 96], sizes = [1, 32], strides = [1, 1]} : vector<1x128xf32> to vector<1x32xf32>
    %1255 = vector.extract_strided_slice %1252 {offsets = [0, 0], sizes = [16, 8], strides = [1, 1]} : vector<16x32xf32> to vector<16x8xf32>
    %1256 = vector.extract_strided_slice %1242 {offsets = [0, 0], sizes = [16, 8], strides = [1, 1]} : vector<16x32xf32> to vector<16x8xf32>
    "tpu.trace_start"() <{level = 10 : i32, message = "qd,kd->qk"}> : () -> ()
    %cst_422 = arith.constant dense<0.000000e+00> : vector<16x16xf32>
    %1257 = tpu.matmul %1255, %1256, %cst_422 {dimension_numbers = #tpu.dot_dimension_numbers<[1], [1], [0], [0], [0, 0, 1, 0], [], []>} : vector<16x8xf32>, vector<16x8xf32>, vector<16x16xf32> -> vector<16x16xf32>
    "tpu.trace_stop"() : () -> ()
    %cst_423 = arith.constant 0.353553385 : f32
    %1258 = vector.broadcast %cst_423 : f32 to vector<16x16xf32>
    %1259 = arith.mulf %1257, %1258 : vector<16x16xf32>
    %1260 = arith.addf %1259, %7 : vector<16x16xf32>
    %cst_424 = arith.constant dense<0xFF800000> : vector<16xf32>
    %1261 = vector.multi_reduction <maximumf>, %1260, %cst_424 [1] : vector<16x16xf32> to vector<16xf32>
    %1262 = vector.shape_cast %1261 : vector<16xf32> to vector<16x1xf32>
    %1263 = vector.broadcast %1262 : vector<16x1xf32> to vector<16x16xf32>
    %1264 = arith.subf %1260, %1263 : vector<16x16xf32>
    %1265 = math.exp %1264 : vector<16x16xf32>
    %cst_425 = arith.constant dense<0.000000e+00> : vector<16xf32>
    %1266 = vector.multi_reduction <add>, %1265, %cst_425 [1] : vector<16x16xf32> to vector<16xf32>
    %1267 = vector.shape_cast %1266 : vector<16xf32> to vector<16x1xf32>
    %1268 = tpu.reciprocal %1267 {approx = true} : vector<16x1xf32> -> vector<16x1xf32>
    %1269 = vector.broadcast %1268 : vector<16x1xf32> to vector<16x16xf32>
    %1270 = arith.mulf %1265, %1269 : vector<16x16xf32>
    %1271 = vector.extract_strided_slice %1243 {offsets = [0, 0], sizes = [16, 8], strides = [1, 1]} : vector<16x32xf32> to vector<16x8xf32>
    %cst_426 = arith.constant dense<0.000000e+00> : vector<16x8xf32>
    %1272 = tpu.matmul %1270, %1271, %cst_426 {dimension_numbers = #tpu.dot_dimension_numbers<[1], [0], [0], [1], [0, 0, 1, 1], [], []>} : vector<16x16xf32>, vector<16x8xf32>, vector<16x8xf32> -> vector<16x8xf32>
    %1273 = vector.extract_strided_slice %1253 {offsets = [0, 0], sizes = [8, 32], strides = [1, 1]} : vector<32x32xf32> to vector<8x32xf32>
    %cst_427 = arith.constant dense<0.000000e+00> : vector<16x32xf32>
    %1274 = tpu.matmul %1272, %1273, %cst_427 {dimension_numbers = #tpu.dot_dimension_numbers<[1], [0], [0], [1], [0, 0, 1, 1], [], []>} : vector<16x8xf32>, vector<8x32xf32>, vector<16x32xf32> -> vector<16x32xf32>
    %1275 = vector.extract_strided_slice %1252 {offsets = [0, 8], sizes = [16, 8], strides = [1, 1]} : vector<16x32xf32> to vector<16x8xf32>
    %1276 = vector.extract_strided_slice %1242 {offsets = [0, 8], sizes = [16, 8], strides = [1, 1]} : vector<16x32xf32> to vector<16x8xf32>
    "tpu.trace_start"() <{level = 10 : i32, message = "qd,kd->qk"}> : () -> ()
    %cst_428 = arith.constant dense<0.000000e+00> : vector<16x16xf32>
    %1277 = tpu.matmul %1275, %1276, %cst_428 {dimension_numbers = #tpu.dot_dimension_numbers<[1], [1], [0], [0], [0, 0, 1, 0], [], []>} : vector<16x8xf32>, vector<16x8xf32>, vector<16x16xf32> -> vector<16x16xf32>
    "tpu.trace_stop"() : () -> ()
    %cst_429 = arith.constant 0.353553385 : f32
    %1278 = vector.broadcast %cst_429 : f32 to vector<16x16xf32>
    %1279 = arith.mulf %1277, %1278 : vector<16x16xf32>
    %1280 = arith.addf %1279, %7 : vector<16x16xf32>
    %cst_430 = arith.constant dense<0xFF800000> : vector<16xf32>
    %1281 = vector.multi_reduction <maximumf>, %1280, %cst_430 [1] : vector<16x16xf32> to vector<16xf32>
    %1282 = vector.shape_cast %1281 : vector<16xf32> to vector<16x1xf32>
    %1283 = vector.broadcast %1282 : vector<16x1xf32> to vector<16x16xf32>
    %1284 = arith.subf %1280, %1283 : vector<16x16xf32>
    %1285 = math.exp %1284 : vector<16x16xf32>
    %cst_431 = arith.constant dense<0.000000e+00> : vector<16xf32>
    %1286 = vector.multi_reduction <add>, %1285, %cst_431 [1] : vector<16x16xf32> to vector<16xf32>
    %1287 = vector.shape_cast %1286 : vector<16xf32> to vector<16x1xf32>
    %1288 = tpu.reciprocal %1287 {approx = true} : vector<16x1xf32> -> vector<16x1xf32>
    %1289 = vector.broadcast %1288 : vector<16x1xf32> to vector<16x16xf32>
    %1290 = arith.mulf %1285, %1289 : vector<16x16xf32>
    %1291 = vector.extract_strided_slice %1243 {offsets = [0, 8], sizes = [16, 8], strides = [1, 1]} : vector<16x32xf32> to vector<16x8xf32>
    %cst_432 = arith.constant dense<0.000000e+00> : vector<16x8xf32>
    %1292 = tpu.matmul %1290, %1291, %cst_432 {dimension_numbers = #tpu.dot_dimension_numbers<[1], [0], [0], [1], [0, 0, 1, 1], [], []>} : vector<16x16xf32>, vector<16x8xf32>, vector<16x8xf32> -> vector<16x8xf32>
    %1293 = vector.extract_strided_slice %1253 {offsets = [8, 0], sizes = [8, 32], strides = [1, 1]} : vector<32x32xf32> to vector<8x32xf32>
    %cst_433 = arith.constant dense<0.000000e+00> : vector<16x32xf32>
    %1294 = tpu.matmul %1292, %1293, %cst_433 {dimension_numbers = #tpu.dot_dimension_numbers<[1], [0], [0], [1], [0, 0, 1, 1], [], []>} : vector<16x8xf32>, vector<8x32xf32>, vector<16x32xf32> -> vector<16x32xf32>
    %1295 = arith.addf %1274, %1294 : vector<16x32xf32>
    %1296 = vector.extract_strided_slice %1252 {offsets = [0, 16], sizes = [16, 8], strides = [1, 1]} : vector<16x32xf32> to vector<16x8xf32>
    %1297 = vector.extract_strided_slice %1242 {offsets = [0, 16], sizes = [16, 8], strides = [1, 1]} : vector<16x32xf32> to vector<16x8xf32>
    "tpu.trace_start"() <{level = 10 : i32, message = "qd,kd->qk"}> : () -> ()
    %cst_434 = arith.constant dense<0.000000e+00> : vector<16x16xf32>
    %1298 = tpu.matmul %1296, %1297, %cst_434 {dimension_numbers = #tpu.dot_dimension_numbers<[1], [1], [0], [0], [0, 0, 1, 0], [], []>} : vector<16x8xf32>, vector<16x8xf32>, vector<16x16xf32> -> vector<16x16xf32>
    "tpu.trace_stop"() : () -> ()
    %cst_435 = arith.constant 0.353553385 : f32
    %1299 = vector.broadcast %cst_435 : f32 to vector<16x16xf32>
    %1300 = arith.mulf %1298, %1299 : vector<16x16xf32>
    %1301 = arith.addf %1300, %7 : vector<16x16xf32>
    %cst_436 = arith.constant dense<0xFF800000> : vector<16xf32>
    %1302 = vector.multi_reduction <maximumf>, %1301, %cst_436 [1] : vector<16x16xf32> to vector<16xf32>
    %1303 = vector.shape_cast %1302 : vector<16xf32> to vector<16x1xf32>
    %1304 = vector.broadcast %1303 : vector<16x1xf32> to vector<16x16xf32>
    %1305 = arith.subf %1301, %1304 : vector<16x16xf32>
    %1306 = math.exp %1305 : vector<16x16xf32>
    %cst_437 = arith.constant dense<0.000000e+00> : vector<16xf32>
    %1307 = vector.multi_reduction <add>, %1306, %cst_437 [1] : vector<16x16xf32> to vector<16xf32>
    %1308 = vector.shape_cast %1307 : vector<16xf32> to vector<16x1xf32>
    %1309 = tpu.reciprocal %1308 {approx = true} : vector<16x1xf32> -> vector<16x1xf32>
    %1310 = vector.broadcast %1309 : vector<16x1xf32> to vector<16x16xf32>
    %1311 = arith.mulf %1306, %1310 : vector<16x16xf32>
    %1312 = vector.extract_strided_slice %1243 {offsets = [0, 16], sizes = [16, 8], strides = [1, 1]} : vector<16x32xf32> to vector<16x8xf32>
    %cst_438 = arith.constant dense<0.000000e+00> : vector<16x8xf32>
    %1313 = tpu.matmul %1311, %1312, %cst_438 {dimension_numbers = #tpu.dot_dimension_numbers<[1], [0], [0], [1], [0, 0, 1, 1], [], []>} : vector<16x16xf32>, vector<16x8xf32>, vector<16x8xf32> -> vector<16x8xf32>
    %1314 = vector.extract_strided_slice %1253 {offsets = [16, 0], sizes = [8, 32], strides = [1, 1]} : vector<32x32xf32> to vector<8x32xf32>
    %cst_439 = arith.constant dense<0.000000e+00> : vector<16x32xf32>
    %1315 = tpu.matmul %1313, %1314, %cst_439 {dimension_numbers = #tpu.dot_dimension_numbers<[1], [0], [0], [1], [0, 0, 1, 1], [], []>} : vector<16x8xf32>, vector<8x32xf32>, vector<16x32xf32> -> vector<16x32xf32>
    %1316 = arith.addf %1295, %1315 : vector<16x32xf32>
    %1317 = vector.extract_strided_slice %1252 {offsets = [0, 24], sizes = [16, 8], strides = [1, 1]} : vector<16x32xf32> to vector<16x8xf32>
    %1318 = vector.extract_strided_slice %1242 {offsets = [0, 24], sizes = [16, 8], strides = [1, 1]} : vector<16x32xf32> to vector<16x8xf32>
    "tpu.trace_start"() <{level = 10 : i32, message = "qd,kd->qk"}> : () -> ()
    %cst_440 = arith.constant dense<0.000000e+00> : vector<16x16xf32>
    %1319 = tpu.matmul %1317, %1318, %cst_440 {dimension_numbers = #tpu.dot_dimension_numbers<[1], [1], [0], [0], [0, 0, 1, 0], [], []>} : vector<16x8xf32>, vector<16x8xf32>, vector<16x16xf32> -> vector<16x16xf32>
    "tpu.trace_stop"() : () -> ()
    %cst_441 = arith.constant 0.353553385 : f32
    %1320 = vector.broadcast %cst_441 : f32 to vector<16x16xf32>
    %1321 = arith.mulf %1319, %1320 : vector<16x16xf32>
    %1322 = arith.addf %1321, %7 : vector<16x16xf32>
    %cst_442 = arith.constant dense<0xFF800000> : vector<16xf32>
    %1323 = vector.multi_reduction <maximumf>, %1322, %cst_442 [1] : vector<16x16xf32> to vector<16xf32>
    %1324 = vector.shape_cast %1323 : vector<16xf32> to vector<16x1xf32>
    %1325 = vector.broadcast %1324 : vector<16x1xf32> to vector<16x16xf32>
    %1326 = arith.subf %1322, %1325 : vector<16x16xf32>
    %1327 = math.exp %1326 : vector<16x16xf32>
    %cst_443 = arith.constant dense<0.000000e+00> : vector<16xf32>
    %1328 = vector.multi_reduction <add>, %1327, %cst_443 [1] : vector<16x16xf32> to vector<16xf32>
    %1329 = vector.shape_cast %1328 : vector<16xf32> to vector<16x1xf32>
    %1330 = tpu.reciprocal %1329 {approx = true} : vector<16x1xf32> -> vector<16x1xf32>
    %1331 = vector.broadcast %1330 : vector<16x1xf32> to vector<16x16xf32>
    %1332 = arith.mulf %1327, %1331 : vector<16x16xf32>
    %1333 = vector.extract_strided_slice %1243 {offsets = [0, 24], sizes = [16, 8], strides = [1, 1]} : vector<16x32xf32> to vector<16x8xf32>
    %cst_444 = arith.constant dense<0.000000e+00> : vector<16x8xf32>
    %1334 = tpu.matmul %1332, %1333, %cst_444 {dimension_numbers = #tpu.dot_dimension_numbers<[1], [0], [0], [1], [0, 0, 1, 1], [], []>} : vector<16x16xf32>, vector<16x8xf32>, vector<16x8xf32> -> vector<16x8xf32>
    %1335 = vector.extract_strided_slice %1253 {offsets = [24, 0], sizes = [8, 32], strides = [1, 1]} : vector<32x32xf32> to vector<8x32xf32>
    %cst_445 = arith.constant dense<0.000000e+00> : vector<16x32xf32>
    %1336 = tpu.matmul %1334, %1335, %cst_445 {dimension_numbers = #tpu.dot_dimension_numbers<[1], [0], [0], [1], [0, 0, 1, 1], [], []>} : vector<16x8xf32>, vector<8x32xf32>, vector<16x32xf32> -> vector<16x32xf32>
    %1337 = arith.addf %1316, %1336 : vector<16x32xf32>
    %1338 = vector.broadcast %1254 : vector<1x32xf32> to vector<16x32xf32>
    %1339 = arith.addf %1337, %1338 : vector<16x32xf32>
    %1340 = arith.addf %1213, %1339 : vector<16x32xf32>
    %c13 = arith.constant 13 : index
    %c0_446 = arith.constant 0 : index
    %c0_447 = arith.constant 0 : index
    %1341 = vector.load %arg17[%c13, %c0_446, %c0_447] : memref<16x1x64xf32, #tpu.memory_space<vmem>>, vector<1x1x64xf32>
    %1342 = vector.shape_cast %1341 : vector<1x1x64xf32> to vector<1x64xf32>
    %cst_448 = arith.constant dense<0.000000e+00> : vector<16xf32>
    %1343 = vector.multi_reduction <add>, %1340, %cst_448 [1] : vector<16x32xf32> to vector<16xf32>
    %1344 = vector.shape_cast %1343 : vector<16xf32> to vector<16x1xf32>
    %cst_449 = arith.constant 3.200000e+01 : f32
    %1345 = vector.broadcast %cst_449 : f32 to vector<16x1xf32>
    %1346 = arith.divf %1344, %1345 : vector<16x1xf32>
    %1347 = arith.mulf %1340, %1340 : vector<16x32xf32>
    %cst_450 = arith.constant dense<0.000000e+00> : vector<16xf32>
    %1348 = vector.multi_reduction <add>, %1347, %cst_450 [1] : vector<16x32xf32> to vector<16xf32>
    %1349 = vector.shape_cast %1348 : vector<16xf32> to vector<16x1xf32>
    %cst_451 = arith.constant 3.200000e+01 : f32
    %1350 = vector.broadcast %cst_451 : f32 to vector<16x1xf32>
    %1351 = arith.divf %1349, %1350 : vector<16x1xf32>
    %1352 = arith.mulf %1346, %1346 : vector<16x1xf32>
    %1353 = arith.subf %1351, %1352 : vector<16x1xf32>
    %cst_452 = arith.constant 0.000000e+00 : f32
    %1354 = vector.broadcast %cst_452 : f32 to vector<16x1xf32>
    %1355 = arith.maximumf %1353, %1354 : vector<16x1xf32>
    %1356 = vector.broadcast %1346 : vector<16x1xf32> to vector<16x32xf32>
    %1357 = arith.subf %1340, %1356 : vector<16x32xf32>
    %cst_453 = arith.constant 9.99999997E-7 : f32
    %1358 = vector.broadcast %cst_453 : f32 to vector<16x1xf32>
    %1359 = arith.addf %1355, %1358 : vector<16x1xf32>
    %1360 = math.rsqrt %1359 : vector<16x1xf32>
    %1361 = vector.broadcast %1360 : vector<16x1xf32> to vector<16x32xf32>
    %1362 = arith.mulf %1357, %1361 : vector<16x32xf32>
    %1363 = vector.extract_strided_slice %1342 {offsets = [0, 0], sizes = [1, 32], strides = [1, 1]} : vector<1x64xf32> to vector<1x32xf32>
    %1364 = vector.broadcast %1363 : vector<1x32xf32> to vector<16x32xf32>
    %1365 = arith.mulf %1362, %1364 : vector<16x32xf32>
    %1366 = vector.extract_strided_slice %1342 {offsets = [0, 32], sizes = [1, 32], strides = [1, 1]} : vector<1x64xf32> to vector<1x32xf32>
    %1367 = vector.broadcast %1366 : vector<1x32xf32> to vector<16x32xf32>
    %1368 = arith.addf %1365, %1367 : vector<16x32xf32>
    %1369 = vector.extract_strided_slice %404 {offsets = [0, 320], sizes = [16, 32], strides = [1, 1]} : vector<16x384xf32> to vector<16x32xf32>
    %1370 = vector.extract_strided_slice %404 {offsets = [0, 352], sizes = [16, 32], strides = [1, 1]} : vector<16x384xf32> to vector<16x32xf32>
    %c9_454 = arith.constant 9 : index
    %c0_455 = arith.constant 0 : index
    %c0_456 = arith.constant 0 : index
    %1371 = vector.load %arg10[%c9_454, %c0_455, %c0_456] : memref<10x32x128xf32, #tpu.memory_space<vmem>>, vector<1x32x128xf32>
    %1372 = vector.shape_cast %1371 : vector<1x32x128xf32> to vector<32x128xf32>
    %c9_457 = arith.constant 9 : index
    %c0_458 = arith.constant 0 : index
    %c0_459 = arith.constant 0 : index
    %1373 = vector.load %arg11[%c9_457, %c0_458, %c0_459] : memref<10x1x128xf32, #tpu.memory_space<vmem>>, vector<1x1x128xf32>
    %1374 = vector.shape_cast %1373 : vector<1x1x128xf32> to vector<1x128xf32>
    %1375 = vector.extract_strided_slice %1372 {offsets = [0, 0], sizes = [32, 32], strides = [1, 1]} : vector<32x128xf32> to vector<32x32xf32>
    %cst_460 = arith.constant dense<0.000000e+00> : vector<16x32xf32>
    %1376 = tpu.matmul %1368, %1375, %cst_460 {dimension_numbers = #tpu.dot_dimension_numbers<[1], [0], [0], [1], [0, 0, 1, 1], [], []>} : vector<16x32xf32>, vector<32x32xf32>, vector<16x32xf32> -> vector<16x32xf32>
    %1377 = vector.extract_strided_slice %1374 {offsets = [0, 0], sizes = [1, 32], strides = [1, 1]} : vector<1x128xf32> to vector<1x32xf32>
    %1378 = vector.broadcast %1377 : vector<1x32xf32> to vector<16x32xf32>
    %1379 = arith.addf %1376, %1378 : vector<16x32xf32>
    %1380 = vector.extract_strided_slice %1372 {offsets = [0, 96], sizes = [32, 32], strides = [1, 1]} : vector<32x128xf32> to vector<32x32xf32>
    %1381 = vector.extract_strided_slice %1374 {offsets = [0, 96], sizes = [1, 32], strides = [1, 1]} : vector<1x128xf32> to vector<1x32xf32>
    %1382 = vector.extract_strided_slice %1379 {offsets = [0, 0], sizes = [16, 8], strides = [1, 1]} : vector<16x32xf32> to vector<16x8xf32>
    %1383 = vector.extract_strided_slice %1369 {offsets = [0, 0], sizes = [16, 8], strides = [1, 1]} : vector<16x32xf32> to vector<16x8xf32>
    "tpu.trace_start"() <{level = 10 : i32, message = "qd,kd->qk"}> : () -> ()
    %cst_461 = arith.constant dense<0.000000e+00> : vector<16x16xf32>
    %1384 = tpu.matmul %1382, %1383, %cst_461 {dimension_numbers = #tpu.dot_dimension_numbers<[1], [1], [0], [0], [0, 0, 1, 0], [], []>} : vector<16x8xf32>, vector<16x8xf32>, vector<16x16xf32> -> vector<16x16xf32>
    "tpu.trace_stop"() : () -> ()
    %cst_462 = arith.constant 0.353553385 : f32
    %1385 = vector.broadcast %cst_462 : f32 to vector<16x16xf32>
    %1386 = arith.mulf %1384, %1385 : vector<16x16xf32>
    %1387 = arith.addf %1386, %9 : vector<16x16xf32>
    %cst_463 = arith.constant dense<0xFF800000> : vector<16xf32>
    %1388 = vector.multi_reduction <maximumf>, %1387, %cst_463 [1] : vector<16x16xf32> to vector<16xf32>
    %1389 = vector.shape_cast %1388 : vector<16xf32> to vector<16x1xf32>
    %1390 = vector.broadcast %1389 : vector<16x1xf32> to vector<16x16xf32>
    %1391 = arith.subf %1387, %1390 : vector<16x16xf32>
    %1392 = math.exp %1391 : vector<16x16xf32>
    %cst_464 = arith.constant dense<0.000000e+00> : vector<16xf32>
    %1393 = vector.multi_reduction <add>, %1392, %cst_464 [1] : vector<16x16xf32> to vector<16xf32>
    %1394 = vector.shape_cast %1393 : vector<16xf32> to vector<16x1xf32>
    %1395 = tpu.reciprocal %1394 {approx = true} : vector<16x1xf32> -> vector<16x1xf32>
    %1396 = vector.broadcast %1395 : vector<16x1xf32> to vector<16x16xf32>
    %1397 = arith.mulf %1392, %1396 : vector<16x16xf32>
    %1398 = vector.extract_strided_slice %1370 {offsets = [0, 0], sizes = [16, 8], strides = [1, 1]} : vector<16x32xf32> to vector<16x8xf32>
    %cst_465 = arith.constant dense<0.000000e+00> : vector<16x8xf32>
    %1399 = tpu.matmul %1397, %1398, %cst_465 {dimension_numbers = #tpu.dot_dimension_numbers<[1], [0], [0], [1], [0, 0, 1, 1], [], []>} : vector<16x16xf32>, vector<16x8xf32>, vector<16x8xf32> -> vector<16x8xf32>
    %1400 = vector.extract_strided_slice %1380 {offsets = [0, 0], sizes = [8, 32], strides = [1, 1]} : vector<32x32xf32> to vector<8x32xf32>
    %cst_466 = arith.constant dense<0.000000e+00> : vector<16x32xf32>
    %1401 = tpu.matmul %1399, %1400, %cst_466 {dimension_numbers = #tpu.dot_dimension_numbers<[1], [0], [0], [1], [0, 0, 1, 1], [], []>} : vector<16x8xf32>, vector<8x32xf32>, vector<16x32xf32> -> vector<16x32xf32>
    %1402 = vector.extract_strided_slice %1379 {offsets = [0, 8], sizes = [16, 8], strides = [1, 1]} : vector<16x32xf32> to vector<16x8xf32>
    %1403 = vector.extract_strided_slice %1369 {offsets = [0, 8], sizes = [16, 8], strides = [1, 1]} : vector<16x32xf32> to vector<16x8xf32>
    "tpu.trace_start"() <{level = 10 : i32, message = "qd,kd->qk"}> : () -> ()
    %cst_467 = arith.constant dense<0.000000e+00> : vector<16x16xf32>
    %1404 = tpu.matmul %1402, %1403, %cst_467 {dimension_numbers = #tpu.dot_dimension_numbers<[1], [1], [0], [0], [0, 0, 1, 0], [], []>} : vector<16x8xf32>, vector<16x8xf32>, vector<16x16xf32> -> vector<16x16xf32>
    "tpu.trace_stop"() : () -> ()
    %cst_468 = arith.constant 0.353553385 : f32
    %1405 = vector.broadcast %cst_468 : f32 to vector<16x16xf32>
    %1406 = arith.mulf %1404, %1405 : vector<16x16xf32>
    %1407 = arith.addf %1406, %9 : vector<16x16xf32>
    %cst_469 = arith.constant dense<0xFF800000> : vector<16xf32>
    %1408 = vector.multi_reduction <maximumf>, %1407, %cst_469 [1] : vector<16x16xf32> to vector<16xf32>
    %1409 = vector.shape_cast %1408 : vector<16xf32> to vector<16x1xf32>
    %1410 = vector.broadcast %1409 : vector<16x1xf32> to vector<16x16xf32>
    %1411 = arith.subf %1407, %1410 : vector<16x16xf32>
    %1412 = math.exp %1411 : vector<16x16xf32>
    %cst_470 = arith.constant dense<0.000000e+00> : vector<16xf32>
    %1413 = vector.multi_reduction <add>, %1412, %cst_470 [1] : vector<16x16xf32> to vector<16xf32>
    %1414 = vector.shape_cast %1413 : vector<16xf32> to vector<16x1xf32>
    %1415 = tpu.reciprocal %1414 {approx = true} : vector<16x1xf32> -> vector<16x1xf32>
    %1416 = vector.broadcast %1415 : vector<16x1xf32> to vector<16x16xf32>
    %1417 = arith.mulf %1412, %1416 : vector<16x16xf32>
    %1418 = vector.extract_strided_slice %1370 {offsets = [0, 8], sizes = [16, 8], strides = [1, 1]} : vector<16x32xf32> to vector<16x8xf32>
    %cst_471 = arith.constant dense<0.000000e+00> : vector<16x8xf32>
    %1419 = tpu.matmul %1417, %1418, %cst_471 {dimension_numbers = #tpu.dot_dimension_numbers<[1], [0], [0], [1], [0, 0, 1, 1], [], []>} : vector<16x16xf32>, vector<16x8xf32>, vector<16x8xf32> -> vector<16x8xf32>
    %1420 = vector.extract_strided_slice %1380 {offsets = [8, 0], sizes = [8, 32], strides = [1, 1]} : vector<32x32xf32> to vector<8x32xf32>
    %cst_472 = arith.constant dense<0.000000e+00> : vector<16x32xf32>
    %1421 = tpu.matmul %1419, %1420, %cst_472 {dimension_numbers = #tpu.dot_dimension_numbers<[1], [0], [0], [1], [0, 0, 1, 1], [], []>} : vector<16x8xf32>, vector<8x32xf32>, vector<16x32xf32> -> vector<16x32xf32>
    %1422 = arith.addf %1401, %1421 : vector<16x32xf32>
    %1423 = vector.extract_strided_slice %1379 {offsets = [0, 16], sizes = [16, 8], strides = [1, 1]} : vector<16x32xf32> to vector<16x8xf32>
    %1424 = vector.extract_strided_slice %1369 {offsets = [0, 16], sizes = [16, 8], strides = [1, 1]} : vector<16x32xf32> to vector<16x8xf32>
    "tpu.trace_start"() <{level = 10 : i32, message = "qd,kd->qk"}> : () -> ()
    %cst_473 = arith.constant dense<0.000000e+00> : vector<16x16xf32>
    %1425 = tpu.matmul %1423, %1424, %cst_473 {dimension_numbers = #tpu.dot_dimension_numbers<[1], [1], [0], [0], [0, 0, 1, 0], [], []>} : vector<16x8xf32>, vector<16x8xf32>, vector<16x16xf32> -> vector<16x16xf32>
    "tpu.trace_stop"() : () -> ()
    %cst_474 = arith.constant 0.353553385 : f32
    %1426 = vector.broadcast %cst_474 : f32 to vector<16x16xf32>
    %1427 = arith.mulf %1425, %1426 : vector<16x16xf32>
    %1428 = arith.addf %1427, %9 : vector<16x16xf32>
    %cst_475 = arith.constant dense<0xFF800000> : vector<16xf32>
    %1429 = vector.multi_reduction <maximumf>, %1428, %cst_475 [1] : vector<16x16xf32> to vector<16xf32>
    %1430 = vector.shape_cast %1429 : vector<16xf32> to vector<16x1xf32>
    %1431 = vector.broadcast %1430 : vector<16x1xf32> to vector<16x16xf32>
    %1432 = arith.subf %1428, %1431 : vector<16x16xf32>
    %1433 = math.exp %1432 : vector<16x16xf32>
    %cst_476 = arith.constant dense<0.000000e+00> : vector<16xf32>
    %1434 = vector.multi_reduction <add>, %1433, %cst_476 [1] : vector<16x16xf32> to vector<16xf32>
    %1435 = vector.shape_cast %1434 : vector<16xf32> to vector<16x1xf32>
    %1436 = tpu.reciprocal %1435 {approx = true} : vector<16x1xf32> -> vector<16x1xf32>
    %1437 = vector.broadcast %1436 : vector<16x1xf32> to vector<16x16xf32>
    %1438 = arith.mulf %1433, %1437 : vector<16x16xf32>
    %1439 = vector.extract_strided_slice %1370 {offsets = [0, 16], sizes = [16, 8], strides = [1, 1]} : vector<16x32xf32> to vector<16x8xf32>
    %cst_477 = arith.constant dense<0.000000e+00> : vector<16x8xf32>
    %1440 = tpu.matmul %1438, %1439, %cst_477 {dimension_numbers = #tpu.dot_dimension_numbers<[1], [0], [0], [1], [0, 0, 1, 1], [], []>} : vector<16x16xf32>, vector<16x8xf32>, vector<16x8xf32> -> vector<16x8xf32>
    %1441 = vector.extract_strided_slice %1380 {offsets = [16, 0], sizes = [8, 32], strides = [1, 1]} : vector<32x32xf32> to vector<8x32xf32>
    %cst_478 = arith.constant dense<0.000000e+00> : vector<16x32xf32>
    %1442 = tpu.matmul %1440, %1441, %cst_478 {dimension_numbers = #tpu.dot_dimension_numbers<[1], [0], [0], [1], [0, 0, 1, 1], [], []>} : vector<16x8xf32>, vector<8x32xf32>, vector<16x32xf32> -> vector<16x32xf32>
    %1443 = arith.addf %1422, %1442 : vector<16x32xf32>
    %1444 = vector.extract_strided_slice %1379 {offsets = [0, 24], sizes = [16, 8], strides = [1, 1]} : vector<16x32xf32> to vector<16x8xf32>
    %1445 = vector.extract_strided_slice %1369 {offsets = [0, 24], sizes = [16, 8], strides = [1, 1]} : vector<16x32xf32> to vector<16x8xf32>
    "tpu.trace_start"() <{level = 10 : i32, message = "qd,kd->qk"}> : () -> ()
    %cst_479 = arith.constant dense<0.000000e+00> : vector<16x16xf32>
    %1446 = tpu.matmul %1444, %1445, %cst_479 {dimension_numbers = #tpu.dot_dimension_numbers<[1], [1], [0], [0], [0, 0, 1, 0], [], []>} : vector<16x8xf32>, vector<16x8xf32>, vector<16x16xf32> -> vector<16x16xf32>
    "tpu.trace_stop"() : () -> ()
    %cst_480 = arith.constant 0.353553385 : f32
    %1447 = vector.broadcast %cst_480 : f32 to vector<16x16xf32>
    %1448 = arith.mulf %1446, %1447 : vector<16x16xf32>
    %1449 = arith.addf %1448, %9 : vector<16x16xf32>
    %cst_481 = arith.constant dense<0xFF800000> : vector<16xf32>
    %1450 = vector.multi_reduction <maximumf>, %1449, %cst_481 [1] : vector<16x16xf32> to vector<16xf32>
    %1451 = vector.shape_cast %1450 : vector<16xf32> to vector<16x1xf32>
    %1452 = vector.broadcast %1451 : vector<16x1xf32> to vector<16x16xf32>
    %1453 = arith.subf %1449, %1452 : vector<16x16xf32>
    %1454 = math.exp %1453 : vector<16x16xf32>
    %cst_482 = arith.constant dense<0.000000e+00> : vector<16xf32>
    %1455 = vector.multi_reduction <add>, %1454, %cst_482 [1] : vector<16x16xf32> to vector<16xf32>
    %1456 = vector.shape_cast %1455 : vector<16xf32> to vector<16x1xf32>
    %1457 = tpu.reciprocal %1456 {approx = true} : vector<16x1xf32> -> vector<16x1xf32>
    %1458 = vector.broadcast %1457 : vector<16x1xf32> to vector<16x16xf32>
    %1459 = arith.mulf %1454, %1458 : vector<16x16xf32>
    %1460 = vector.extract_strided_slice %1370 {offsets = [0, 24], sizes = [16, 8], strides = [1, 1]} : vector<16x32xf32> to vector<16x8xf32>
    %cst_483 = arith.constant dense<0.000000e+00> : vector<16x8xf32>
    %1461 = tpu.matmul %1459, %1460, %cst_483 {dimension_numbers = #tpu.dot_dimension_numbers<[1], [0], [0], [1], [0, 0, 1, 1], [], []>} : vector<16x16xf32>, vector<16x8xf32>, vector<16x8xf32> -> vector<16x8xf32>
    %1462 = vector.extract_strided_slice %1380 {offsets = [24, 0], sizes = [8, 32], strides = [1, 1]} : vector<32x32xf32> to vector<8x32xf32>
    %cst_484 = arith.constant dense<0.000000e+00> : vector<16x32xf32>
    %1463 = tpu.matmul %1461, %1462, %cst_484 {dimension_numbers = #tpu.dot_dimension_numbers<[1], [0], [0], [1], [0, 0, 1, 1], [], []>} : vector<16x8xf32>, vector<8x32xf32>, vector<16x32xf32> -> vector<16x32xf32>
    %1464 = arith.addf %1443, %1463 : vector<16x32xf32>
    %1465 = vector.broadcast %1381 : vector<1x32xf32> to vector<16x32xf32>
    %1466 = arith.addf %1464, %1465 : vector<16x32xf32>
    %1467 = arith.addf %1340, %1466 : vector<16x32xf32>
    %c14 = arith.constant 14 : index
    %c0_485 = arith.constant 0 : index
    %c0_486 = arith.constant 0 : index
    %1468 = vector.load %arg17[%c14, %c0_485, %c0_486] : memref<16x1x64xf32, #tpu.memory_space<vmem>>, vector<1x1x64xf32>
    %1469 = vector.shape_cast %1468 : vector<1x1x64xf32> to vector<1x64xf32>
    %cst_487 = arith.constant dense<0.000000e+00> : vector<16xf32>
    %1470 = vector.multi_reduction <add>, %1467, %cst_487 [1] : vector<16x32xf32> to vector<16xf32>
    %1471 = vector.shape_cast %1470 : vector<16xf32> to vector<16x1xf32>
    %cst_488 = arith.constant 3.200000e+01 : f32
    %1472 = vector.broadcast %cst_488 : f32 to vector<16x1xf32>
    %1473 = arith.divf %1471, %1472 : vector<16x1xf32>
    %1474 = arith.mulf %1467, %1467 : vector<16x32xf32>
    %cst_489 = arith.constant dense<0.000000e+00> : vector<16xf32>
    %1475 = vector.multi_reduction <add>, %1474, %cst_489 [1] : vector<16x32xf32> to vector<16xf32>
    %1476 = vector.shape_cast %1475 : vector<16xf32> to vector<16x1xf32>
    %cst_490 = arith.constant 3.200000e+01 : f32
    %1477 = vector.broadcast %cst_490 : f32 to vector<16x1xf32>
    %1478 = arith.divf %1476, %1477 : vector<16x1xf32>
    %1479 = arith.mulf %1473, %1473 : vector<16x1xf32>
    %1480 = arith.subf %1478, %1479 : vector<16x1xf32>
    %cst_491 = arith.constant 0.000000e+00 : f32
    %1481 = vector.broadcast %cst_491 : f32 to vector<16x1xf32>
    %1482 = arith.maximumf %1480, %1481 : vector<16x1xf32>
    %1483 = vector.broadcast %1473 : vector<16x1xf32> to vector<16x32xf32>
    %1484 = arith.subf %1467, %1483 : vector<16x32xf32>
    %cst_492 = arith.constant 9.99999997E-7 : f32
    %1485 = vector.broadcast %cst_492 : f32 to vector<16x1xf32>
    %1486 = arith.addf %1482, %1485 : vector<16x1xf32>
    %1487 = math.rsqrt %1486 : vector<16x1xf32>
    %1488 = vector.broadcast %1487 : vector<16x1xf32> to vector<16x32xf32>
    %1489 = arith.mulf %1484, %1488 : vector<16x32xf32>
    %1490 = vector.extract_strided_slice %1469 {offsets = [0, 0], sizes = [1, 32], strides = [1, 1]} : vector<1x64xf32> to vector<1x32xf32>
    %1491 = vector.broadcast %1490 : vector<1x32xf32> to vector<16x32xf32>
    %1492 = arith.mulf %1489, %1491 : vector<16x32xf32>
    %1493 = vector.extract_strided_slice %1469 {offsets = [0, 32], sizes = [1, 32], strides = [1, 1]} : vector<1x64xf32> to vector<1x32xf32>
    %1494 = vector.broadcast %1493 : vector<1x32xf32> to vector<16x32xf32>
    %1495 = arith.addf %1492, %1494 : vector<16x32xf32>
    %c3_493 = arith.constant 3 : index
    %c0_494 = arith.constant 0 : index
    %c0_495 = arith.constant 0 : index
    %1496 = vector.load %arg14[%c3_493, %c0_494, %c0_495] : memref<4x32x64xf32, #tpu.memory_space<vmem>>, vector<1x32x64xf32>
    %1497 = vector.shape_cast %1496 : vector<1x32x64xf32> to vector<32x64xf32>
    %c3_496 = arith.constant 3 : index
    %c0_497 = arith.constant 0 : index
    %c0_498 = arith.constant 0 : index
    %1498 = vector.load %arg15[%c3_496, %c0_497, %c0_498] : memref<4x64x32xf32, #tpu.memory_space<vmem>>, vector<1x64x32xf32>
    %1499 = vector.shape_cast %1498 : vector<1x64x32xf32> to vector<64x32xf32>
    %c3_499 = arith.constant 3 : index
    %c0_500 = arith.constant 0 : index
    %c0_501 = arith.constant 0 : index
    %1500 = vector.load %arg16[%c3_499, %c0_500, %c0_501] : memref<4x1x96xf32, #tpu.memory_space<vmem>>, vector<1x1x96xf32>
    %1501 = vector.shape_cast %1500 : vector<1x1x96xf32> to vector<1x96xf32>
    %cst_502 = arith.constant dense<0.000000e+00> : vector<16x64xf32>
    %1502 = tpu.matmul %1495, %1497, %cst_502 {dimension_numbers = #tpu.dot_dimension_numbers<[1], [0], [0], [1], [0, 0, 1, 1], [], []>} : vector<16x32xf32>, vector<32x64xf32>, vector<16x64xf32> -> vector<16x64xf32>
    %1503 = vector.extract_strided_slice %1501 {offsets = [0, 0], sizes = [1, 64], strides = [1, 1]} : vector<1x96xf32> to vector<1x64xf32>
    %1504 = vector.broadcast %1503 : vector<1x64xf32> to vector<16x64xf32>
    %1505 = arith.addf %1502, %1504 : vector<16x64xf32>
    %cst_503 = arith.constant 0.000000e+00 : f32
    %1506 = vector.broadcast %cst_503 : f32 to vector<16x64xf32>
    %1507 = arith.maximumf %1505, %1506 : vector<16x64xf32>
    %cst_504 = arith.constant dense<0.000000e+00> : vector<16x32xf32>
    %1508 = tpu.matmul %1507, %1499, %cst_504 {dimension_numbers = #tpu.dot_dimension_numbers<[1], [0], [0], [1], [0, 0, 1, 1], [], []>} : vector<16x64xf32>, vector<64x32xf32>, vector<16x32xf32> -> vector<16x32xf32>
    %1509 = vector.extract_strided_slice %1501 {offsets = [0, 64], sizes = [1, 32], strides = [1, 1]} : vector<1x96xf32> to vector<1x32xf32>
    %1510 = vector.broadcast %1509 : vector<1x32xf32> to vector<16x32xf32>
    %1511 = arith.addf %1508, %1510 : vector<16x32xf32>
    %1512 = arith.addf %1467, %1511 : vector<16x32xf32>
    %c15 = arith.constant 15 : index
    %c0_505 = arith.constant 0 : index
    %c0_506 = arith.constant 0 : index
    %1513 = vector.load %arg17[%c15, %c0_505, %c0_506] : memref<16x1x64xf32, #tpu.memory_space<vmem>>, vector<1x1x64xf32>
    %1514 = vector.shape_cast %1513 : vector<1x1x64xf32> to vector<1x64xf32>
    %cst_507 = arith.constant dense<0.000000e+00> : vector<16xf32>
    %1515 = vector.multi_reduction <add>, %1512, %cst_507 [1] : vector<16x32xf32> to vector<16xf32>
    %1516 = vector.shape_cast %1515 : vector<16xf32> to vector<16x1xf32>
    %cst_508 = arith.constant 3.200000e+01 : f32
    %1517 = vector.broadcast %cst_508 : f32 to vector<16x1xf32>
    %1518 = arith.divf %1516, %1517 : vector<16x1xf32>
    %1519 = arith.mulf %1512, %1512 : vector<16x32xf32>
    %cst_509 = arith.constant dense<0.000000e+00> : vector<16xf32>
    %1520 = vector.multi_reduction <add>, %1519, %cst_509 [1] : vector<16x32xf32> to vector<16xf32>
    %1521 = vector.shape_cast %1520 : vector<16xf32> to vector<16x1xf32>
    %cst_510 = arith.constant 3.200000e+01 : f32
    %1522 = vector.broadcast %cst_510 : f32 to vector<16x1xf32>
    %1523 = arith.divf %1521, %1522 : vector<16x1xf32>
    %1524 = arith.mulf %1518, %1518 : vector<16x1xf32>
    %1525 = arith.subf %1523, %1524 : vector<16x1xf32>
    %cst_511 = arith.constant 0.000000e+00 : f32
    %1526 = vector.broadcast %cst_511 : f32 to vector<16x1xf32>
    %1527 = arith.maximumf %1525, %1526 : vector<16x1xf32>
    %1528 = vector.broadcast %1518 : vector<16x1xf32> to vector<16x32xf32>
    %1529 = arith.subf %1512, %1528 : vector<16x32xf32>
    %cst_512 = arith.constant 9.99999997E-7 : f32
    %1530 = vector.broadcast %cst_512 : f32 to vector<16x1xf32>
    %1531 = arith.addf %1527, %1530 : vector<16x1xf32>
    %1532 = math.rsqrt %1531 : vector<16x1xf32>
    %1533 = vector.broadcast %1532 : vector<16x1xf32> to vector<16x32xf32>
    %1534 = arith.mulf %1529, %1533 : vector<16x32xf32>
    %1535 = vector.extract_strided_slice %1514 {offsets = [0, 0], sizes = [1, 32], strides = [1, 1]} : vector<1x64xf32> to vector<1x32xf32>
    %1536 = vector.broadcast %1535 : vector<1x32xf32> to vector<16x32xf32>
    %1537 = arith.mulf %1534, %1536 : vector<16x32xf32>
    %1538 = vector.extract_strided_slice %1514 {offsets = [0, 32], sizes = [1, 32], strides = [1, 1]} : vector<1x64xf32> to vector<1x32xf32>
    %1539 = vector.broadcast %1538 : vector<1x32xf32> to vector<16x32xf32>
    %1540 = arith.addf %1537, %1539 : vector<16x32xf32>
    %c0_513 = arith.constant 0 : index
    %c0_514 = arith.constant 0 : index
    %1541 = vector.load %arg18[%c0_513, %c0_514] : memref<16x32xf32, #tpu.memory_space<vmem>>, vector<16x32xf32>
    tpu.vector_store %arg18[%c0_513, %c0_514], %1540 {strides = array<i32>} : memref<16x32xf32, #tpu.memory_space<vmem>>, vector<16x32xf32>,
    return
  }
  func.func @transform_0(%arg0: i32) -> (i32, i32) {
    %c0_i32 = arith.constant 0 : i32
    %c0_i32_0 = arith.constant 0 : i32
    return %arg0, %c0_i32 : i32, i32
  }
  func.func @transform_1(%arg0: i32) -> (i32, i32) {
    %c0_i32 = arith.constant 0 : i32
    %c0_i32_0 = arith.constant 0 : i32
    return %arg0, %c0_i32 : i32, i32
  }
  func.func @transform_2(%arg0: i32) -> (i32, i32, i32) {
    %c0_i32 = arith.constant 0 : i32
    %c0_i32_0 = arith.constant 0 : i32
    %c0_i32_1 = arith.constant 0 : i32
    return %arg0, %c0_i32, %c0_i32_0 : i32, i32, i32
  }
  func.func @transform_3(%arg0: i32) -> (i32, i32, i32, i32) {
    %c0_i32 = arith.constant 0 : i32
    %c0_i32_0 = arith.constant 0 : i32
    %c0_i32_1 = arith.constant 0 : i32
    %c0_i32_2 = arith.constant 0 : i32
    return %arg0, %c0_i32, %c0_i32_0, %c0_i32_1 : i32, i32, i32, i32
  }
  func.func @transform_4(%arg0: i32) -> (i32, i32) {
    %c0_i32 = arith.constant 0 : i32
    %c0_i32_0 = arith.constant 0 : i32
    %c0_i32_1 = arith.constant 0 : i32
    return %c0_i32, %c0_i32_0 : i32, i32
  }
  func.func @transform_5(%arg0: i32) -> (i32, i32) {
    %c0_i32 = arith.constant 0 : i32
    %c0_i32_0 = arith.constant 0 : i32
    %c0_i32_1 = arith.constant 0 : i32
    return %c0_i32, %c0_i32_0 : i32, i32
  }
  func.func @transform_6(%arg0: i32) -> (i32, i32) {
    %c0_i32 = arith.constant 0 : i32
    %c0_i32_0 = arith.constant 0 : i32
    %c0_i32_1 = arith.constant 0 : i32
    return %c0_i32, %c0_i32_0 : i32, i32
  }
  func.func @transform_7(%arg0: i32) -> (i32, i32) {
    %c0_i32 = arith.constant 0 : i32
    %c0_i32_0 = arith.constant 0 : i32
    %c0_i32_1 = arith.constant 0 : i32
    return %c0_i32, %c0_i32_0 : i32, i32
  }
  func.func @transform_8(%arg0: i32) -> (i32, i32) {
    %c0_i32 = arith.constant 0 : i32
    %c0_i32_0 = arith.constant 0 : i32
    %c0_i32_1 = arith.constant 0 : i32
    return %c0_i32, %c0_i32_0 : i32, i32
  }
  func.func @transform_9(%arg0: i32) -> (i32, i32, i32) {
    %c0_i32 = arith.constant 0 : i32
    %c0_i32_0 = arith.constant 0 : i32
    %c0_i32_1 = arith.constant 0 : i32
    %c0_i32_2 = arith.constant 0 : i32
    return %c0_i32, %c0_i32_0, %c0_i32_1 : i32, i32, i32
  }
  func.func @transform_10(%arg0: i32) -> (i32, i32, i32) {
    %c0_i32 = arith.constant 0 : i32
    %c0_i32_0 = arith.constant 0 : i32
    %c0_i32_1 = arith.constant 0 : i32
    %c0_i32_2 = arith.constant 0 : i32
    return %c0_i32, %c0_i32_0, %c0_i32_1 : i32, i32, i32
  }
  func.func @transform_11(%arg0: i32) -> (i32, i32) {
    %c0_i32 = arith.constant 0 : i32
    %c0_i32_0 = arith.constant 0 : i32
    %c0_i32_1 = arith.constant 0 : i32
    return %c0_i32, %c0_i32_0 : i32, i32
  }
  func.func @transform_12(%arg0: i32) -> (i32, i32) {
    %c0_i32 = arith.constant 0 : i32
    %c0_i32_0 = arith.constant 0 : i32
    %c0_i32_1 = arith.constant 0 : i32
    return %c0_i32, %c0_i32_0 : i32, i32
  }
  func.func @transform_13(%arg0: i32) -> (i32, i32, i32) {
    %c0_i32 = arith.constant 0 : i32
    %c0_i32_0 = arith.constant 0 : i32
    %c0_i32_1 = arith.constant 0 : i32
    %c0_i32_2 = arith.constant 0 : i32
    return %c0_i32, %c0_i32_0, %c0_i32_1 : i32, i32, i32
  }
  func.func @transform_14(%arg0: i32) -> (i32, i32, i32) {
    %c0_i32 = arith.constant 0 : i32
    %c0_i32_0 = arith.constant 0 : i32
    %c0_i32_1 = arith.constant 0 : i32
    %c0_i32_2 = arith.constant 0 : i32
    return %c0_i32, %c0_i32_0, %c0_i32_1 : i32, i32, i32
  }
  func.func @transform_15(%arg0: i32) -> (i32, i32, i32) {
    %c0_i32 = arith.constant 0 : i32
    %c0_i32_0 = arith.constant 0 : i32
    %c0_i32_1 = arith.constant 0 : i32
    %c0_i32_2 = arith.constant 0 : i32
    return %c0_i32, %c0_i32_0, %c0_i32_1 : i32, i32, i32
  }
  func.func @transform_16(%arg0: i32) -> (i32, i32, i32) {
    %c0_i32 = arith.constant 0 : i32
    %c0_i32_0 = arith.constant 0 : i32
    %c0_i32_1 = arith.constant 0 : i32
    %c0_i32_2 = arith.constant 0 : i32
    return %c0_i32, %c0_i32_0, %c0_i32_1 : i32, i32, i32
  }
  func.func @transform_17(%arg0: i32) -> (i32, i32) {
    %c0_i32 = arith.constant 0 : i32
    %c0_i32_0 = arith.constant 0 : i32
    return %arg0, %c0_i32 : i32, i32
  }
}

</mosaic_0001>

<bundles_post_ra>
// kernel: _forward.1
= control target key start
LH: loop header
LB: loop body
LE: loop exit
PB: predicated region body
PF: predicated region fallthrough
CT: control target
= control target key end

     0   :  { %s19741_s0 = inlined_call_operand.vmem [shape: f32[16,10], index: 0, kind: input, shape index: {}]   ;;  %s19742_s1 = inlined_call_operand.vmem [shape: f32[16,4], index: 1, kind: input, shape index: {}]   ;;  %s19743_s2 = inlined_call_operand.vmem [shape: f32[1,16,16], index: 2, kind: input, shape index: {}]   ;;  %s19744_s3 = inlined_call_operand.vmem [shape: f32[1,3,16,16], index: 3, kind: input, shape index: {}]   ;;  %s19745_s4 = inlined_call_operand.vmem [shape: f32[16,16], index: 4, kind: input, shape index: {}]   ;;  %s19746_s5 = inlined_call_operand.vmem [shape: f32[10,96], index: 5, kind: input, shape index: {}]   ;;  %s19747_s6 = inlined_call_operand.vmem [shape: f32[4,32], index: 6, kind: input, shape index: {}]   ;;  %s19748_s7 = inlined_call_operand.vmem [shape: f32[16,96], index: 7, kind: input, shape index: {}]   ;;  %s19749_s8 = inlined_call_operand.vmem [shape: f32[16,32], index: 8, kind: input, shape index: {}]   ;;  %s19750_s9 = inlined_call_operand.vmem [shape: f32[10,32,128], index: 9, kind: input, shape index: {}]   ;;  %s19751_s10 = inlined_call_operand.vmem [shape: f32[10,1,128], index: 10, kind: input, shape index: {}]   ;;  %s19752_s11 = inlined_call_operand.vmem [shape: f32[96,384], index: 11, kind: input, shape index: {}]   ;;  %s19753_s12 = inlined_call_operand.vmem [shape: f32[1,384], index: 12, kind: input, shape index: {}]   ;;  %s19754_s13 = inlined_call_operand.vmem [shape: f32[4,32,64], index: 13, kind: input, shape index: {}]   ;;  %s19755_s14 = inlined_call_operand.vmem [shape: f32[4,64,32], index: 14, kind: input, shape index: {}]   ;;  %s19756_s15 = inlined_call_operand.vmem [shape: f32[4,1,96], index: 15, kind: input, shape index: {}]   ;;  %s19757_s16 = inlined_call_operand.vmem [shape: f32[16,1,64], index: 16, kind: input, shape index: {}]   ;;  %s19758_s17 = inlined_call_operand.hbm [shape: f32[16,32], index: 17, kind: output, shape index: {}]  }
   0x1   :  { %19773 = sst [smem:[#allocation5_spill]] %s19741_s0 }
   0x2   :  { %19774 = sst [smem:[#allocation6_spill]] %s19742_s1 }
   0x3   :  { %v70_v0 = vld [vmem:[%s19746_s5 + $0x8] sm:$0x3]  ;;  %vm80_vm0 = vcmask 1041408   ;;  %v69_v1 = vld [vmem:[%s19746_s5] sm:$0xff]  ;;  %s19775_s0 = sld [smem:[#allocation5_spill]]  ;;  %vm73_vm1 = vcmask 80896  }
   0x4   :  { %15663 = vmatprep.subr.msk.mxu1 %vm80_vm0, %v70_v0 }
   0x9   :  { %v67_v2 = vld [vmem:[%s19775_s0] sm:$0xff] }
   0xa   :  { %15667 = vmatprep.mubr.msk.f32.mxu1 %vm73_vm1, %v67_v2 }
   0xb   :  { %22 = vsyncpa [#allocation3], 0  ;;  %15664 = vmatpush3.msk.msra.mxu1 %vm80_vm0, %v70_v0  ;;  %v68_v3 = vld [vmem:[%s19775_s0 + $0x8] sm:$0xff]  ;;  %v71_v6 = vld [vmem:[%s19748_s7] sm:$0xff]  ;;  %vm251_vm2 = vcmask 261120   ;;  %vm171_vm3 = vcmask 1043456  }
   0xc   :  { %15665 = vmatprep.subr.mxu1 %v69_v1  ;;  %v72_v4 = vld [vmem:[%s19748_s7 + $0x8] sm:$0xff]  ;;  %v14589_v16 = vld [vmem:[%s19757_s16] ss:$0 sm:$0xff]  ;;  %s19776_s26 = sld [smem:[#allocation6_spill]]  ;;  %vm164_vm4 = vcmask 31744   ;;  %v17282_v20 = vld [vmem:[%s19750_s9 + $0x18] sm:$0xff] }
   0xd   :  { %15666 = vmatpush3.msra.mxu1 %v69_v1  ;;  %v161_v17 = vld [vmem:[%s19747_s6] sm:$0xf]  ;;  %s17127_s30 = smov 96   ;;  %v17290_v21 = vld [vmem:[%s19750_s9 + $0x10] sm:$0xff]  ;;  %v17297_v22 = vld [vmem:[%s19750_s9 + $0x8] sm:$0xff]  ;;  %vm396_vm5 = vcmask 64512  }
   0xe   :  { %15668 = vmatmul.mubr.msk.f32.vlgmr.msra.gmra.mxu1 %vm73_vm1, %v68_v3  ;;  %15670 = vmatprep.subr.msk.mxu1 %vm171_vm3, %v161_v17  ;;  %v17304_v23 = vld [vmem:[%s19750_s9] sm:$0xff]  ;;  %s17128_s22 = smov 88   ;;  %s17129_s23 = smov 120   ;;  %v17356_v1 = vld [vmem:[%s19743_s2 + $0x8] sm:$0xff]  ;;  %vm484_vm6 = vcmask 130048   ;;  %vm1709_vm7 = vcmask 523264  }
   0xf   :  { %15671 = vmatpush3.msk.msra.mxu1 %vm171_vm3, %v161_v17  ;;  %v17319_v53 = vld [vmem:[%s19751_s10] ss:$0 sm:$0xff]  ;;  %s17130_s28 = smov 64   ;;  %s17131_s29 = smov 56   ;;  %vm3441_vm8 = vcmask 785408  }
  0x10   :  { %15675 = vmatprep.subr.mxu1 %v17282_v20  ;;  %s17132_s0 = smov 80   ;;  %s17133_s6 = smov 112  }
  0x11   :  { %s19767_s18 = smov 72   ;;  %s19765_s19 = smov 104  }
  0x12   :  { %v159_v18 = vld [vmem:[%s19776_s26] sm:$0xff]  ;;  %v160_v19 = vld [vmem:[%s19776_s26 + $0x8] sm:$0xff]  ;;  %s17136_s1 = smov 32   ;;  %s19763_s5 = smov 48  }
  0x13   :  { %15672 = vmatprep.mubr.msk.f32.mxu1 %vm164_vm4, %v159_v18  ;;  %s19761_s20 = smov 40   ;;  %s19777_s26 = smov 48  }
  0x14   :  { %15673 = vmatmul.mubr.msk.f32.vlgmr.msra.gmra.mxu1 %vm164_vm4, %v160_v19  ;;  %s19780_s27 = smov 104   ;;  %s17140_s24 = smov 24  }
  0x15   :  { %15676 = vmatpush3.msra.mxu1 %v17282_v20  ;;  %s19781_s25 = smov 16  }
  0x16   :  { %15677 = vmatprep.subr.mxu1 %v17290_v21 }
  0x17   :  { %15678 = vmatpush3.msra.mxu1 %v17290_v21 }
  0x18   :  { %15679 = vmatprep.subr.mxu1 %v17297_v22 }
  0x19   :  { %15680 = vmatpush3.msra.mxu1 %v17297_v22 }
  0x1a   :  { %15681 = vmatprep.subr.mxu1 %v17304_v23 }
  0x1b   :  { %15682 = vmatpush3.msra.mxu1 %v17304_v23 }
  0xce   :  { %v15669_v5 = vpop.f32.mrf.mxu1 }
  0xcf   :  { %v17253_v8 = vadd.f32 %v15669_v5, %v72_v4  ;;  %v17361_v4 = vld [vmem:[%s19743_s2] sm:$0xff] }
  0xd0   :  { %v150_v7 = vpop.f32.mrf.mxu1 }
  0xd1   :  { %v17255_v9 = vadd.f32 %v150_v7, %v71_v6  ;;  %v262_v13 = vmul.f32 %v17253_v8, %v17253_v8  ;;  %v255_v14 = vsel %vm251_vm2, %v17253_v8, 0.0 }
  0xd3   :  { %v252_v10 = vsel %vm251_vm2, %v17255_v9, 0.0  ;;  %v261_v11 = vmul.f32 %v17255_v9, %v17255_v9  ;;  %v266_v15 = vsel %vm251_vm2, %v262_v13, 0.0 }
  0xd4   :  { %253 = vadd.xlane.f32.xlu0 %v252_v10  ;;  %v17312_v51 = vpop.f32.mrf.mxu1 }
  0xd5   :  { %v263_v12 = vsel %vm251_vm2, %v261_v11, 0.0 }
  0xd6   :  { %264 = vadd.xlane.f32.xlu1 %v263_v12  ;;  %v17314_v52 = vpop.f32.mrf.mxu1 }
  0xd8   :  { %256 = vadd.xlane.f32.xlu0 %v255_v14 }
  0xda   :  { %267 = vadd.xlane.f32.xlu1 %v266_v15 }
  0xee   :  { %293 = vrot.lane.b32.xlu0 %v14589_v16, %s17127_s30 }
 0x15d   :  { %v254_v24 = vpop.xlane.xlu0 %253 }
 0x15e   :  { %v259_v25 = vmul.f32 0.03125, %v254_v24 }
 0x15f   :  { %v265_v26 = vpop.xlane.xlu1 %264 }
 0x160   :  { %v271_v27 = vmul.f32 %v259_v25, %v259_v25  ;;  %v269_v28 = vmul.f32 0.03125, %v265_v26  ;;  %v277_v40 = vsub.f32 %v17255_v9, %v259_v25 }
 0x161   :  { %v257_v29 = vpop.xlane.xlu0 %256 }
 0x162   :  { %v273_v30 = vsub.f32 %v269_v28, %v271_v27  ;;  %v260_v31 = vmul.f32 0.03125, %v257_v29 }
 0x163   :  { %v268_v32 = vpop.xlane.xlu1 %267 }
 0x164   :  { %v275_v33 = vmax.f32 %v273_v30, 0.0  ;;  %v272_v34 = vmul.f32 %v260_v31, %v260_v31  ;;  %v270_v35 = vmul.f32 0.03125, %v268_v32  ;;  %v278_v44 = vsub.f32 %v17253_v8, %v260_v31 }
 0x165   :  { %v294_v43 = vpop.permute.xlu0 %293 }
 0x166   :  { %v279_v36 = vadd.f32 1e-06, %v275_v33  ;;  %v274_v37 = vsub.f32 %v270_v35, %v272_v34 }
 0x168   :  { %16710 = vrsqrt.f32 %v279_v36  ;;  %v276_v38 = vmax.f32 %v274_v37, 0.0 }
 0x16a   :  { %v280_v39 = vadd.f32 1e-06, %v276_v38 }
 0x16c   :  { %16712 = vrsqrt.f32 %v280_v39 }
 0x175   :  { %v16711_v41 = vpop.eup %16710 }
 0x176   :  { %v283_v42 = vmul.f32 %v16711_v41, %v277_v40 }
 0x178   :  { %v291_v45 = vmul.f32 %v14589_v16, %v283_v42 }
 0x179   :  { %v16713_v46 = vpop.eup %16712 }
 0x17a   :  { %v284_v47 = vmul.f32 %v16713_v46, %v278_v44  ;;  %v296_v48 = vadd.f32 %v294_v43, %v291_v45 }
 0x17c   :  { %v292_v49 = vmul.f32 %v14589_v16, %v284_v47  ;;  %15683 = vmatprep.mubr.msk.f32.mxu1 %vm251_vm2, %v296_v48 }
 0x17e   :  { %v297_v50 = vadd.f32 %v294_v43, %v292_v49 }
 0x180   :  { %15684 = vmatmul.mubr.msk.f32.vlgmr.msra.gmra.mxu1 %vm251_vm2, %v297_v50 }
 0x240   :  { %v15685_v54 = vpop.f32.mrf.mxu1 }
 0x241   :  { %v17322_v55 = vadd.f32 %v15685_v54, %v17319_v53 }
 0x242   :  { %v381_v56 = vpop.f32.mrf.mxu1 }
 0x243   :  { %v17325_v57 = vadd.f32 %v17319_v53, %v381_v56  ;;  %394 = vrot.lane.b32.xlu1 %v17322_v55, %s17127_s30 }
 0x245   :  { %598 = vrot.lane.b32.xlu0 %v17325_v57, %s17128_s22  ;;  %15690 = vmatprep.mubr.msk.f32.mxu0 %vm396_vm5, %v17325_v57 }
 0x247   :  { %392 = vrot.lane.b32.xlu1 %v17325_v57, %s17127_s30 }
 0x249   :  { %596 = vrot.lane.b32.xlu0 %v17322_v55, %s17129_s23 }
 0x24b   :  { %600 = vrot.lane.b32.xlu1 %v17322_v55, %s17128_s22 }
 0x24f   :  { %594 = vrot.lane.b32.xlu1 %v17325_v57, %s17129_s23 }
 0x2b5   :  { %v395_v58 = vpop.permute.xlu1 %394 }
 0x2b6   :  { %15686 = vmatprep.subr.msk.mxu0 %vm396_vm5, %v395_v58 }
 0x2b7   :  { %15687 = vmatpush3.xpose.msk.msra.mxu0 %vm396_vm5, %v395_v58  ;;  %v599_v61 = vpop.permute.xlu0 %598 }
 0x2b9   :  { %v393_v59 = vpop.permute.xlu1 %392 }
 0x2ba   :  { %15688 = vmatprep.subr.msk.mxu0 %vm396_vm5, %v393_v59 }
 0x2bb   :  { %15689 = vmatpush3.xpose.msk.msra.mxu0 %vm396_vm5, %v393_v59  ;;  %v597_v63 = vpop.permute.xlu0 %596 }
 0x2bd   :  { %v601_v60 = vpop.permute.xlu1 %600 }
 0x2be   :  { %15691 = vmatmul.mubr.msk.f32.vlgmr.msra.gmra.mxu0 %vm396_vm5, %v17322_v55  ;;  %15700 = vmatprep.subr.msk.mxu0 %vm396_vm5, %v601_v60 }
 0x2bf   :  { %15701 = vmatpush3.xpose.msk.msra.mxu0 %vm396_vm5, %v601_v60 }
 0x2c0   :  { %15702 = vmatprep.subr.msk.mxu0 %vm396_vm5, %v599_v61 }
 0x2c1   :  { %v595_v62 = vpop.permute.xlu1 %594 }
 0x2c2   :  { %15704 = vmatprep.mubr.msk.f32.mxu0 %vm396_vm5, %v595_v62 }
 0x2c3   :  { %15703 = vmatpush3.xpose.msk.msra.mxu0 %vm396_vm5, %v599_v61 }
 0x2c6   :  { %15705 = vmatmul.mubr.msk.f32.vlgmr.msra.gmra.mxu0 %vm396_vm5, %v597_v63 }
 0x37e   :  { %v15692_v0 = vpop.f32.mrf.mxu0 }
 0x37f   :  { %v481_v2 = vmul.f32 0.35355338, %v15692_v0 }
 0x380   :  { %v471_v3 = vpop.f32.mrf.mxu0 }
 0x381   :  { %v480_v5 = vmul.f32 0.35355338, %v471_v3  ;;  %v483_v6 = vadd.f32 %v481_v2, %v17356_v1 }
 0x383   :  { %v488_v7 = vsel %vm484_vm6, %v483_v6, -inf  ;;  %v482_v10 = vadd.f32 %v480_v5, %v17361_v4 }
 0x384   :  { %489 = vmax.xlane.f32.xlu0 %v488_v7 }
 0x385   :  { %v485_v11 = vsel %vm484_vm6, %v482_v10, -inf }
 0x386   :  { %v15706_v12 = vpop.f32.mrf.mxu0  ;;  %486 = vmax.xlane.f32.xlu1 %v485_v11 }
 0x387   :  { %v686_v14 = vmul.f32 0.35355338, %v15706_v12 }
 0x388   :  { %v676_v13 = vpop.f32.mrf.mxu0 }
 0x389   :  { %v685_v15 = vmul.f32 0.35355338, %v676_v13  ;;  %v688_v18 = vadd.f32 %v686_v14, %v17356_v1 }
 0x38b   :  { %v687_v16 = vadd.f32 %v685_v15, %v17361_v4  ;;  %v692_v19 = vsel %vm484_vm6, %v688_v18, -inf }
 0x38d   :  { %v689_v17 = vsel %vm484_vm6, %v687_v16, -inf }
 0x38e   :  { %690 = vmax.xlane.f32.xlu0 %v689_v17 }
 0x392   :  { %693 = vmax.xlane.f32.xlu0 %v692_v19 }
 0x397   :  { %509 = vrot.lane.b32.xlu1 %v17322_v55, %s17130_s28 }
 0x40d   :  { %v490_v24 = vpop.xlane.xlu0 %489 }
 0x40e   :  { %v492_v25 = vsub.f32 %v483_v6, %v490_v24 }
 0x40f   :  { %v487_v26 = vpop.xlane.xlu1 %486 }
 0x410   :  { %v495_v27 = vmul.f32 1.442695, %v492_v25  ;;  %v491_v28 = vsub.f32 %v482_v10, %v487_v26 }
 0x412   :  { %16714 = vpow2.f32 %v495_v27  ;;  %v493_v29 = vmul.f32 1.442695, %v491_v28 }
 0x413   :  { %v510_v30 = vpop.permute.xlu1 %509 }
 0x414   :  { %16716 = vpow2.f32 %v493_v29  ;;  %15693 = vmatprep.subr.mxu1 %v510_v30 }
 0x415   :  { %15694 = vmatpush3.msra.mxu1 %v510_v30 }
 0x417   :  { %v691_v31 = vpop.xlane.xlu0 %690 }
 0x418   :  { %v695_v41 = vsub.f32 %v687_v16, %v691_v31 }
 0x41a   :  { %v697_v42 = vmul.f32 1.442695, %v695_v41 }
 0x41b   :  { %v694_v32 = vpop.xlane.xlu0 %693 }
 0x41c   :  { %v696_v33 = vsub.f32 %v688_v18, %v694_v32 }
 0x41e   :  { %v699_v34 = vmul.f32 1.442695, %v696_v33 }
 0x41f   :  { %v16715_v35 = vpop.eup %16714 }
 0x420   :  { %16718 = vpow2.f32 %v699_v34  ;;  %v500_v36 = vsel %vm484_vm6, %v16715_v35, 0.0 }
 0x421   :  { %v16717_v37 = vpop.eup %16716  ;;  %501 = vadd.xlane.f32.xlu0 %v500_v36  ;;  %16720 = vpow2.f32 %v697_v42 }
 0x422   :  { %v497_v38 = vsel %vm484_vm6, %v16717_v37, 0.0 }
 0x423   :  { %498 = vadd.xlane.f32.xlu1 %v497_v38 }
 0x42d   :  { %v16719_v39 = vpop.eup %16718 }
 0x42e   :  { %v704_v40 = vsel %vm484_vm6, %v16719_v39, 0.0  ;;  %v16721_v43 = vpop.eup %16720 }
 0x42f   :  { %705 = vadd.xlane.f32.xlu0 %v704_v40  ;;  %v701_v44 = vsel %vm484_vm6, %v16721_v43, 0.0 }
 0x434   :  { %713 = vrot.lane.b32.xlu1 %v17322_v55, %s17131_s29 }
 0x445   :  { %507 = vrot.lane.b32.xlu0 %v17325_v57, %s17130_s28 }
 0x449   :  { %974 = vrot.lane.b32.xlu0 %v17322_v55, %s17132_s0 }
 0x44d   :  { %968 = vrot.lane.b32.xlu0 %v17325_v57, %s17133_s6 }
 0x451   :  { %1265 = vrot.lane.b32.xlu0 %v17322_v55, %s19767_s18 }
 0x455   :  { %1259 = vrot.lane.b32.xlu0 %v17325_v57, %s19765_s19 }
 0x458   :  { %702 = vadd.xlane.f32.xlu1 %v701_v44 }
 0x469   :  { %711 = vrot.lane.b32.xlu1 %v17325_v57, %s17131_s29 }
 0x46d   :  { %799 = vrot.lane.b32.xlu1 %v17297_v22, %s17136_s1 }
 0x471   :  { %972 = vrot.lane.b32.xlu1 %v17325_v57, %s17132_s0 }
 0x475   :  { %970 = vrot.lane.b32.xlu1 %v17322_v55, %s17133_s6 }
 0x479   :  { %1263 = vrot.lane.b32.xlu1 %v17325_v57, %s19767_s18 }
 0x47d   :  { %1261 = vrot.lane.b32.xlu1 %v17322_v55, %s19765_s19 }
 0x4aa   :  { %v502_v45 = vpop.xlane.xlu0 %501 }
 0x4ab   :  { %16722 = vrcp.f32 %v502_v45 }
 0x4ac   :  { %v499_v46 = vpop.xlane.xlu1 %498 }
 0x4ad   :  { %16724 = vrcp.f32 %v499_v46 }
 0x4b0   :  { %v714_v56 = vpop.permute.xlu1 %713 }
 0x4b8   :  { %v706_v47 = vpop.xlane.xlu0 %705  ;;  %v16723_v48 = vpop.eup %16722 }
 0x4b9   :  { %v506_v54 = vmul.f32 %v16723_v48, %v16715_v35  ;;  %16726 = vrcp.f32 %v706_v47 }
 0x4ba   :  { %v16725_v49 = vpop.eup %16724 }
 0x4bb   :  { %v505_v22 = vmul.f32 %v16725_v49, %v16717_v37 }
 0x4bc   :  { %v508_v50 = vpop.permute.xlu0 %507 }
 0x4bd   :  { %15695 = vmatprep.subr.mxu1 %v508_v50  ;;  %15697 = vmatprep.mubr.msk.f32.mxu1 %vm484_vm6, %v505_v22 }
 0x4be   :  { %15696 = vmatpush3.msra.mxu1 %v508_v50 }
 0x4bf   :  { %15698 = vmatmul.mubr.msk.f32.vlgmr.msra.gmra.mxu1 %vm484_vm6, %v506_v54  ;;  %15707 = vmatprep.subr.mxu1 %v714_v56 }
 0x4c0   :  { %15708 = vmatpush3.msra.mxu1 %v714_v56  ;;  %v975_v2 = vpop.permute.xlu0 %974 }
 0x4c4   :  { %v969_v6 = vpop.permute.xlu0 %968 }
 0x4c6   :  { %v16727_v61 = vpop.eup %16726 }
 0x4c7   :  { %v710_v0 = vmul.f32 %v16727_v61, %v16719_v39 }
 0x4c8   :  { %v1266_v12 = vpop.permute.xlu0 %1265 }
 0x4cc   :  { %v1260_v14 = vpop.permute.xlu0 %1259 }
 0x4e1   :  { %v703_v58 = vpop.xlane.xlu1 %702 }
 0x4e2   :  { %16728 = vrcp.f32 %v703_v58 }
 0x4e5   :  { %v712_v59 = vpop.permute.xlu1 %711 }
 0x4e6   :  { %15709 = vmatprep.subr.mxu1 %v712_v59 }
 0x4e7   :  { %15710 = vmatpush3.msra.mxu1 %v712_v59 }
 0x4e9   :  { %v800_v60 = vpop.permute.xlu1 %799 }
 0x4ea   :  { %15714 = vmatprep.subr.mxu1 %v800_v60 }
 0x4ed   :  { %v973_v10 = vpop.permute.xlu1 %972 }
 0x4ef   :  { %v16729_v62 = vpop.eup %16728 }
 0x4f0   :  { %v709_v63 = vmul.f32 %v16729_v62, %v16721_v43 }
 0x4f1   :  { %v971_v13 = vpop.permute.xlu1 %970 }
 0x4f2   :  { %15711 = vmatprep.mubr.msk.f32.mxu1 %vm484_vm6, %v709_v63 }
 0x4f3   :  { %15712 = vmatmul.mubr.msk.f32.vlgmr.msra.gmra.mxu1 %vm484_vm6, %v710_v0 }
 0x4f4   :  { %15715 = vmatpush3.msra.mxu1 %v800_v60 }
 0x4f5   :  { %15724 = vmatprep.subr.msk.mxu1 %vm396_vm5, %v975_v2  ;;  %v1264_v15 = vpop.permute.xlu1 %1263 }
 0x4f9   :  { %v1262_v16 = vpop.permute.xlu1 %1261 }
 0x57f   :  { %v17406_v3 = vpop.f32.mrf.mxu1 }
 0x581   :  { %v585_v5 = vpop.f32.mrf.mxu1 }
 0x582   :  { %15721 = vmatprep.mubr.msk.f32.mxu0 %vm396_vm5, %v585_v5 }
 0x5b3   :  { %v15713_v7 = vpop.f32.mrf.mxu1 }
 0x5b5   :  { %v789_v11 = vpop.f32.mrf.mxu1 }
 0x5b6   :  { %15716 = vmatprep.mubr.msk.f32.mxu1 %vm396_vm5, %v789_v11 }
 0x5b7   :  { %15717 = vmatmul.mubr.msk.f32.vlgmr.msra.gmra.mxu1 %vm396_vm5, %v15713_v7 }
 0x5b8   :  { %15725 = vmatpush3.xpose.msk.msra.mxu1 %vm396_vm5, %v975_v2  ;;  %15728 = vmatprep.mubr.msk.f32.mxu1 %vm396_vm5, %v969_v6 }
 0x5b9   :  { %15726 = vmatprep.subr.msk.mxu1 %vm396_vm5, %v973_v10 }
 0x5bc   :  { %15727 = vmatpush3.xpose.msk.msra.mxu1 %vm396_vm5, %v973_v10 }
 0x5bd   :  { %15743 = vmatprep.subr.msk.mxu1 %vm396_vm5, %v1266_v12 }
 0x5bf   :  { %15729 = vmatmul.mubr.msk.f32.vlgmr.msra.gmra.mxu1 %vm396_vm5, %v971_v13 }
 0x5c0   :  { %15744 = vmatpush3.xpose.msk.msra.mxu1 %vm396_vm5, %v1266_v12  ;;  %15747 = vmatprep.mubr.msk.f32.mxu1 %vm396_vm5, %v1260_v14 }
 0x5c1   :  { %15745 = vmatprep.subr.msk.mxu1 %vm396_vm5, %v1264_v15 }
 0x5c4   :  { %15746 = vmatpush3.xpose.msk.msra.mxu1 %vm396_vm5, %v1264_v15 }
 0x5c7   :  { %15748 = vmatmul.mubr.msk.f32.vlgmr.msra.gmra.mxu1 %vm396_vm5, %v1262_v16 }
 0x677   :  { %v17422_v17 = vpop.f32.mrf.mxu1 }
 0x679   :  { %v17424_v18 = vpop.f32.mrf.mxu1 }
 0x67f   :  { %v15730_v19 = vpop.f32.mrf.mxu1 }
 0x680   :  { %v1060_v24 = vmul.f32 0.35355338, %v15730_v19 }
 0x681   :  { %v1050_v25 = vpop.f32.mrf.mxu1 }
 0x682   :  { %v1059_v26 = vmul.f32 0.35355338, %v1050_v25  ;;  %v1062_v27 = vadd.f32 %v1060_v24, %v17356_v1 }
 0x684   :  { %v1066_v28 = vsel %vm484_vm6, %v1062_v27, -inf  ;;  %v1061_v29 = vadd.f32 %v1059_v26, %v17361_v4 }
 0x685   :  { %1067 = vmax.xlane.f32.xlu1 %v1066_v28 }
 0x686   :  { %v1063_v30 = vsel %vm484_vm6, %v1061_v29, -inf }
 0x687   :  { %1064 = vmax.xlane.f32.xlu0 %v1063_v30  ;;  %v15749_v31 = vpop.f32.mrf.mxu1 }
 0x689   :  { %v1341_v32 = vpop.f32.mrf.mxu1 }
 0x68a   :  { %v1350_v33 = vmul.f32 0.35355338, %v1341_v32 }
 0x68c   :  { %v1352_v34 = vadd.f32 %v1350_v33, %v17361_v4 }
 0x68e   :  { %v1354_v35 = vsel %vm484_vm6, %v1352_v34, -inf }
 0x696   :  { %1087 = vrot.lane.b32.xlu1 %v17322_v55, %s19763_s5 }
 0x69a   :  { %1085 = vrot.lane.b32.xlu1 %v17325_v57, %s19763_s5  ;;  %s19782_s5 = smov 8  }
 0x6be   :  { %1355 = vmax.xlane.f32.xlu1 %v1354_v35 }
 0x6cf   :  { %1173 = vrot.lane.b32.xlu1 %v17290_v21, %s17136_s1 }
 0x6d3   :  { %1376 = vrot.lane.b32.xlu1 %v17325_v57, %s19761_s20 }
 0x6d7   :  { %1464 = vrot.lane.b32.xlu1 %v17282_v20, %s17136_s1  ;;  %v1351_v20 = vmul.f32 0.35355338, %v15749_v31 }
 0x6db   :  { %1550 = vrot.lane.b32.xlu1 %v17319_v53, %s17136_s1  ;;  %v1353_v53 = vadd.f32 %v1351_v20, %v17356_v1 }
 0x6dd   :  { %v1357_v44 = vsel %vm484_vm6, %v1353_v53, -inf }
 0x70e   :  { %v1068_v36 = vpop.xlane.xlu1 %1067 }
 0x70f   :  { %v1070_v37 = vsub.f32 %v1062_v27, %v1068_v36 }
 0x710   :  { %v1065_v38 = vpop.xlane.xlu0 %1064 }
 0x711   :  { %v1073_v39 = vmul.f32 1.442695, %v1070_v37  ;;  %v1069_v40 = vsub.f32 %v1061_v29, %v1065_v38 }
 0x712   :  { %v1088_v45 = vpop.permute.xlu1 %1087 }
 0x713   :  { %16730 = vpow2.f32 %v1073_v39  ;;  %v1071_v41 = vmul.f32 1.442695, %v1069_v40 }
 0x715   :  { %16732 = vpow2.f32 %v1071_v41 }
 0x716   :  { %v1086_v47 = vpop.permute.xlu1 %1085 }
 0x720   :  { %v16731_v42 = vpop.eup %16730 }
 0x721   :  { %v1078_v21 = vsel %vm484_vm6, %v16731_v42, 0.0 }
 0x722   :  { %v16733_v43 = vpop.eup %16732  ;;  %1079 = vadd.xlane.f32.xlu0 %v1078_v21 }
 0x723   :  { %v1075_v57 = vsel %vm484_vm6, %v16733_v43, 0.0 }
 0x726   :  { %1076 = vadd.xlane.f32.xlu0 %v1075_v57 }
 0x73c   :  { %884 = vrot.lane.b32.xlu0 %v17304_v23, %s17136_s1 }
 0x747   :  { %v1356_v49 = vpop.xlane.xlu1 %1355 }
 0x748   :  { %v1360_v59 = vsub.f32 %v1352_v34, %v1356_v49  ;;  %v1614_v49 = vld [vmem:[%s19755_s14 + $0x30] sm:$0xff] }
 0x74a   :  { %v1362_v62 = vmul.f32 1.442695, %v1360_v59 }
 0x74b   :  { %v1174_v23 = vpop.permute.xlu1 %1173 }
 0x74f   :  { %v1377_v15 = vpop.permute.xlu1 %1376 }
 0x753   :  { %v1465_v25 = vpop.permute.xlu1 %1464 }
 0x757   :  { %v1551_v34 = vpop.permute.xlu1 %1550 }
 0x75b   :  { %1358 = vmax.xlane.f32.xlu0 %v1357_v44  ;;  %v14626_v44 = vld [vmem:[%s19757_s16 + $0x1] ss:$0 sm:$0xff] }
 0x7ab   :  { %v1080_v46 = vpop.xlane.xlu0 %1079 }
 0x7ac   :  { %16734 = vrcp.f32 %v1080_v46  ;;  %v1605_v46 = vld [vmem:[%s19754_s13 + $0x8] sm:$0xff] }
 0x7af   :  { %v1077_v48 = vpop.xlane.xlu0 %1076 }
 0x7b0   :  { %16736 = vrcp.f32 %v1077_v48  ;;  %v1615_v48 = vld [vmem:[%s19755_s14 + $0x38] sm:$0xff] }
 0x7b3   :  { %v885_v22 = vpop.permute.xlu0 %884 }
 0x7b4   :  { %15719 = vmatprep.subr.mxu0 %v885_v22 }
 0x7b5   :  { %15720 = vmatpush3.msra.mxu0 %v885_v22  ;;  %v1613_v22 = vld [vmem:[%s19755_s14 + $0x28] sm:$0xff] }
 0x7b6   :  { %15722 = vmatmul.mubr.msk.f32.vlgmr.msra.gmra.mxu0 %vm396_vm5, %v17406_v3  ;;  %15731 = vmatprep.subr.mxu0 %v1088_v45 }
 0x7b7   :  { %15732 = vmatpush3.msra.mxu0 %v1088_v45  ;;  %v1606_v45 = vld [vmem:[%s19754_s13 + $0x10] sm:$0xff] }
 0x7b8   :  { %15733 = vmatprep.subr.mxu0 %v1086_v47 }
 0x7b9   :  { %15734 = vmatpush3.msra.mxu0 %v1086_v47  ;;  %v16735_v50 = vpop.eup %16734  ;;  %v1604_v47 = vld [vmem:[%s19754_s13] sm:$0xff] }
 0x7ba   :  { %15738 = vmatprep.subr.mxu0 %v1174_v23  ;;  %v1084_v58 = vmul.f32 %v16735_v50, %v16731_v42 }
 0x7bd   :  { %v16737_v54 = vpop.eup %16736 }
 0x7be   :  { %v1083_v56 = vmul.f32 %v16737_v54, %v16733_v43 }
 0x7c0   :  { %15735 = vmatprep.mubr.msk.f32.mxu0 %vm484_vm6, %v1083_v56 }
 0x7c1   :  { %15736 = vmatmul.mubr.msk.f32.vlgmr.msra.gmra.mxu0 %vm484_vm6, %v1084_v58 }
 0x7c2   :  { %15739 = vmatpush3.msra.mxu0 %v1174_v23  ;;  %v1612_v23 = vld [vmem:[%s19755_s14 + $0x20] sm:$0xff] }
 0x7e4   :  { %v1359_v60 = vpop.xlane.xlu0 %1358 }
 0x7e5   :  { %v1361_v61 = vsub.f32 %v1353_v53, %v1359_v60  ;;  %v1607_v53 = vld [vmem:[%s19754_s13 + $0x18] sm:$0xff] }
 0x7e6   :  { %15762 = vmatprep.subr.mxu1 %v1607_v53 }
 0x7e7   :  { %v1364_v63 = vmul.f32 1.442695, %v1361_v61  ;;  %15763 = vmatpush3.msra.mxu1 %v1607_v53 }
 0x7e8   :  { %15764 = vmatprep.subr.mxu1 %v1606_v45 }
 0x7e9   :  { %16738 = vpow2.f32 %v1364_v63  ;;  %15765 = vmatpush3.msra.mxu1 %v1606_v45  ;;  %v14633_v45 = vld [vmem:[%s19757_s16 + $0x2] ss:$0 sm:$0xff] }
 0x7ea   :  { %16740 = vpow2.f32 %v1362_v62  ;;  %15766 = vmatprep.subr.mxu1 %v1605_v46 }
 0x7eb   :  { %15767 = vmatpush3.msra.mxu1 %v1605_v46  ;;  %v17554_v46 = vld [vmem:[%s19750_s9 + $0x38] sm:$0xff] }
 0x7ec   :  { %15768 = vmatprep.subr.mxu1 %v1604_v47 }
 0x7ed   :  { %15769 = vmatpush3.msra.mxu1 %v1604_v47  ;;  %v17559_v47 = vld [vmem:[%s19750_s9 + $0x30] sm:$0xff] }
 0x7ee   :  { %15792 = vmatprep.subr.mxu1 %v17554_v46 }
 0x7f6   :  { %v16739_v0 = vpop.eup %16738 }
 0x7f7   :  { %v1369_v2 = vsel %vm484_vm6, %v16739_v0, 0.0  ;;  %v16741_v3 = vpop.eup %16740 }
 0x7f8   :  { %1370 = vadd.xlane.f32.xlu0 %v1369_v2  ;;  %v1366_v5 = vsel %vm484_vm6, %v16741_v3, 0.0 }
 0x7fc   :  { %1367 = vadd.xlane.f32.xlu0 %v1366_v5 }
 0x812   :  { %1378 = vrot.lane.b32.xlu0 %v17322_v55, %s19761_s20 }
 0x876   :  { %v15723_v6 = vpop.f32.mrf.mxu0 }
 0x877   :  { %v965_v26 = vadd.f32 %v15723_v6, %v17422_v17 }
 0x878   :  { %v959_v7 = vpop.f32.mrf.mxu0 }
 0x879   :  { %v960_v32 = vadd.f32 %v959_v7, %v17424_v18 }
 0x881   :  { %v1371_v10 = vpop.xlane.xlu0 %1370  ;;  %v15737_v11 = vpop.f32.mrf.mxu0 }
 0x882   :  { %16742 = vrcp.f32 %v1371_v10 }
 0x883   :  { %v1163_v12 = vpop.f32.mrf.mxu0 }
 0x884   :  { %15740 = vmatprep.mubr.msk.f32.mxu0 %vm396_vm5, %v1163_v12 }
 0x885   :  { %v1368_v13 = vpop.xlane.xlu0 %1367  ;;  %15741 = vmatmul.mubr.msk.f32.vlgmr.msra.gmra.mxu0 %vm396_vm5, %v15737_v11 }
 0x886   :  { %16744 = vrcp.f32 %v1368_v13 }
 0x889   :  { %v1379_v14 = vpop.permute.xlu0 %1378 }
 0x88a   :  { %15750 = vmatprep.subr.mxu0 %v1379_v14 }
 0x88b   :  { %15751 = vmatpush3.msra.mxu0 %v1379_v14 }
 0x88c   :  { %15752 = vmatprep.subr.mxu0 %v1377_v15 }
 0x88d   :  { %15753 = vmatpush3.msra.mxu0 %v1377_v15 }
 0x88e   :  { %15757 = vmatprep.subr.mxu0 %v1465_v25 }
 0x88f   :  { %v16743_v16 = vpop.eup %16742 }
 0x890   :  { %v1375_v24 = vmul.f32 %v16743_v16, %v16739_v0 }
 0x893   :  { %v16745_v55 = vpop.eup %16744 }
 0x894   :  { %v1374_v19 = vmul.f32 %v16745_v55, %v16741_v3 }
 0x896   :  { %15754 = vmatprep.mubr.msk.f32.mxu0 %vm484_vm6, %v1374_v19 }
 0x897   :  { %15755 = vmatmul.mubr.msk.f32.vlgmr.msra.gmra.mxu0 %vm484_vm6, %v1375_v24 }
 0x898   :  { %15758 = vmatpush3.msra.mxu0 %v1465_v25 }
 0x899   :  { %15773 = vmatprep.subr.mxu0 %v1615_v48 }
 0x945   :  { %v15742_v27 = vpop.f32.mrf.mxu0 }
 0x946   :  { %v1258_v28 = vadd.f32 %v15742_v27, %v965_v26  ;;  %v1611_v27 = vld [vmem:[%s19755_s14 + $0x18] sm:$0xff] }
 0x947   :  { %v1248_v29 = vpop.f32.mrf.mxu0 }
 0x948   :  { %v1257_v35 = vadd.f32 %v1248_v29, %v960_v32  ;;  %v1610_v29 = vld [vmem:[%s19755_s14 + $0x10] sm:$0xff] }
 0x957   :  { %v15756_v30 = vpop.f32.mrf.mxu0 }
 0x959   :  { %v1454_v31 = vpop.f32.mrf.mxu0 }
 0x95a   :  { %15759 = vmatprep.mubr.msk.f32.mxu0 %vm396_vm5, %v1454_v31  ;;  %v1608_v31 = vld [vmem:[%s19755_s14] sm:$0xff] }
 0x95b   :  { %15760 = vmatmul.mubr.msk.f32.vlgmr.msra.gmra.mxu0 %vm396_vm5, %v15756_v30  ;;  %v1609_v30 = vld [vmem:[%s19755_s14 + $0x8] sm:$0xff] }
 0x95c   :  { %15774 = vmatpush3.msra.mxu0 %v1615_v48  ;;  %v17569_v48 = vld [vmem:[%s19750_s9 + $0x28] sm:$0xff] }
 0x95d   :  { %15775 = vmatprep.subr.mxu0 %v1614_v49 }
 0x95e   :  { %15776 = vmatpush3.msra.mxu0 %v1614_v49  ;;  %v17576_v49 = vld [vmem:[%s19750_s9 + $0x20] sm:$0xff] }
 0x95f   :  { %15777 = vmatprep.subr.mxu0 %v1613_v22 }
 0x960   :  { %15778 = vmatpush3.msra.mxu0 %v1613_v22 }
 0x961   :  { %15779 = vmatprep.subr.mxu0 %v1612_v23 }
 0x962   :  { %15780 = vmatpush3.msra.mxu0 %v1612_v23 }
 0x963   :  { %15781 = vmatprep.subr.mxu0 %v1611_v27 }
 0x964   :  { %15782 = vmatpush3.msra.mxu0 %v1611_v27 }
 0x965   :  { %15783 = vmatprep.subr.mxu0 %v1610_v29 }
 0x966   :  { %15784 = vmatpush3.msra.mxu0 %v1610_v29 }
 0x967   :  { %15785 = vmatprep.subr.mxu0 %v1609_v30 }
 0x968   :  { %15786 = vmatpush3.msra.mxu0 %v1609_v30 }
 0x969   :  { %15787 = vmatprep.subr.mxu0 %v1608_v31 }
 0x96a   :  { %15788 = vmatpush3.msra.mxu0 %v1608_v31 }
 0xa1b   :  { %v15761_v33 = vpop.f32.mrf.mxu0 }
 0xa1c   :  { %v1549_v36 = vadd.f32 %v15761_v33, %v1258_v28  ;;  %v14627_v28 = vld [vmem:[%s19756_s15] ss:$0 sm:$0xff] }
 0xa1d   :  { %v1539_v37 = vpop.f32.mrf.mxu0 }
 0xa1e   :  { %v1548_v38 = vadd.f32 %v1539_v37, %v1257_v35  ;;  %v1554_v39 = vadd.f32 %v1551_v34, %v1549_v36 }
 0xa20   :  { %v1553_v40 = vadd.f32 %v1551_v34, %v1548_v38  ;;  %v17467_v17 = vadd.f32 %v1554_v39, %v17253_v8 }
 0xa22   :  { %v17470_v41 = vadd.f32 %v1553_v40, %v17255_v9  ;;  %v1562_v42 = vsel %vm251_vm2, %v17467_v17, 0.0  ;;  %v1568_v57 = vmul.f32 %v17467_v17, %v17467_v17 }
 0xa23   :  { %1563 = vadd.xlane.f32.xlu1 %v1562_v42 }
 0xa24   :  { %v1559_v18 = vsel %vm251_vm2, %v17470_v41, 0.0  ;;  %v1567_v21 = vmul.f32 %v17470_v41, %v17470_v41  ;;  %v1572_v20 = vsel %vm251_vm2, %v1568_v57, 0.0 }
 0xa25   :  { %1560 = vadd.xlane.f32.xlu0 %v1559_v18 }
 0xa26   :  { %v1569_v43 = vsel %vm251_vm2, %v1567_v21, 0.0 }
 0xa29   :  { %1570 = vadd.xlane.f32.xlu0 %v1569_v43 }
 0xa2d   :  { %1573 = vadd.xlane.f32.xlu0 %v1572_v20 }
 0xa34   :  { %1706 = vrot.lane.b32.xlu1 %v14627_v28, %s17130_s28 }
 0xa43   :  { %1599 = vrot.lane.b32.xlu0 %v14626_v44, %s17127_s30 }
 0xaac   :  { %v1564_v56 = vpop.xlane.xlu1 %1563 }
 0xaad   :  { %v1566_v59 = vmul.f32 0.03125, %v1564_v56 }
 0xaae   :  { %v1561_v50 = vpop.xlane.xlu0 %1560 }
 0xaaf   :  { %v1565_v54 = vmul.f32 0.03125, %v1561_v50  ;;  %v1578_v0 = vmul.f32 %v1566_v59, %v1566_v59  ;;  %v1584_v15 = vsub.f32 %v17467_v17, %v1566_v59 }
 0xab0   :  { %v1707_v38 = vpop.permute.xlu1 %1706 }
 0xab1   :  { %v1577_v60 = vmul.f32 %v1565_v54, %v1565_v54  ;;  %v1583_v11 = vsub.f32 %v17470_v41, %v1565_v54 }
 0xab2   :  { %v1571_v58 = vpop.xlane.xlu0 %1570 }
 0xab3   :  { %v1575_v61 = vmul.f32 0.03125, %v1571_v58 }
 0xab5   :  { %v1579_v62 = vsub.f32 %v1575_v61, %v1577_v60 }
 0xab6   :  { %v1574_v63 = vpop.xlane.xlu0 %1573 }
 0xab7   :  { %v1581_v2 = vmax.f32 %v1579_v62, 0.0  ;;  %v1576_v3 = vmul.f32 0.03125, %v1574_v63 }
 0xab9   :  { %v1585_v5 = vadd.f32 1e-06, %v1581_v2  ;;  %v1580_v6 = vsub.f32 %v1576_v3, %v1578_v0 }
 0xaba   :  { %v1600_v14 = vpop.permute.xlu0 %1599 }
 0xabb   :  { %16746 = vrsqrt.f32 %v1585_v5  ;;  %v1582_v7 = vmax.f32 %v1580_v6, 0.0 }
 0xabd   :  { %v1586_v10 = vadd.f32 1e-06, %v1582_v7 }
 0xabf   :  { %16748 = vrsqrt.f32 %v1586_v10 }
 0xac8   :  { %v16747_v12 = vpop.eup %16746 }
 0xac9   :  { %v1589_v13 = vmul.f32 %v16747_v12, %v1583_v11 }
 0xacb   :  { %v1597_v16 = vmul.f32 %v14626_v44, %v1589_v13 }
 0xacc   :  { %v16749_v55 = vpop.eup %16748 }
 0xacd   :  { %v1590_v19 = vmul.f32 %v16749_v55, %v1584_v15  ;;  %v1602_v24 = vadd.f32 %v1600_v14, %v1597_v16 }
 0xacf   :  { %v1598_v25 = vmul.f32 %v14626_v44, %v1590_v19  ;;  %15770 = vmatprep.mubr.msk.f32.mxu1 %vm251_vm2, %v1602_v24 }
 0xad1   :  { %v1603_v26 = vadd.f32 %v1600_v14, %v1598_v25  ;;  %v17587_v25 = vld [vmem:[%s19751_s10 + $0x1] ss:$0 sm:$0xff] }
 0xad3   :  { %15771 = vmatmul.mubr.msk.f32.vlgmr.msra.gmra.mxu1 %vm251_vm2, %v1603_v26 }
 0xad4   :  { %15793 = vmatpush3.msra.mxu1 %v17554_v46 }
 0xad5   :  { %15794 = vmatprep.subr.mxu1 %v17559_v47 }
 0xad6   :  { %15795 = vmatpush3.msra.mxu1 %v17559_v47 }
 0xad7   :  { %15796 = vmatprep.subr.mxu1 %v17569_v48 }
 0xad8   :  { %15797 = vmatpush3.msra.mxu1 %v17569_v48 }
 0xad9   :  { %15798 = vmatprep.subr.mxu1 %v17576_v49 }
 0xada   :  { %15799 = vmatpush3.msra.mxu1 %v17576_v49 }
 0xb93   :  { %v15772_v32 = vpop.f32.mrf.mxu1 }
 0xb94   :  { %v1701_v33 = vadd.f32 %v15772_v32, %v14627_v28 }
 0xb95   :  { %v1695_v34 = vpop.f32.mrf.mxu1 }
 0xb96   :  { %v1696_v35 = vadd.f32 %v14627_v28, %v1695_v34  ;;  %v1705_v37 = vmax.f32 %v1701_v33, 0.0 }
 0xb98   :  { %v1704_v36 = vmax.f32 %v1696_v35, 0.0 }
 0xb9a   :  { %15789 = vmatprep.mubr.msk.f32.mxu0 %vm1709_vm7, %v1704_v36 }
 0xb9b   :  { %15790 = vmatmul.mubr.msk.f32.vlgmr.msra.gmra.mxu0 %vm1709_vm7, %v1705_v37 }
 0xc5b   :  { %v15791_v39 = vpop.f32.mrf.mxu0 }
 0xc5c   :  { %v1788_v40 = vadd.f32 %v15791_v39, %v1707_v38 }
 0xc5d   :  { %v1782_v42 = vpop.f32.mrf.mxu0 }
 0xc5e   :  { %v17533_v18 = vadd.f32 %v1788_v40, %v17467_v17  ;;  %v1783_v21 = vadd.f32 %v1782_v42, %v1707_v38 }
 0xc60   :  { %v17536_v43 = vadd.f32 %v1783_v21, %v17470_v41  ;;  %v1798_v57 = vsel %vm251_vm2, %v17533_v18, 0.0  ;;  %v1804_v44 = vmul.f32 %v17533_v18, %v17533_v18 }
 0xc61   :  { %1799 = vadd.xlane.f32.xlu0 %v1798_v57 }
 0xc62   :  { %v1795_v20 = vsel %vm251_vm2, %v17536_v43, 0.0  ;;  %v1803_v53 = vmul.f32 %v17536_v43, %v17536_v43  ;;  %v1808_v41 = vsel %vm251_vm2, %v1804_v44, 0.0 }
 0xc63   :  { %1796 = vadd.xlane.f32.xlu1 %v1795_v20 }
 0xc64   :  { %v1805_v17 = vsel %vm251_vm2, %v1803_v53, 0.0 }
 0xc65   :  { %1806 = vadd.xlane.f32.xlu0 %v1805_v17 }
 0xc67   :  { %1809 = vadd.xlane.f32.xlu1 %v1808_v41 }
 0xc7b   :  { %1835 = vrot.lane.b32.xlu0 %v14633_v45, %s17127_s30 }
 0xcea   :  { %v1800_v22 = vpop.xlane.xlu0 %1799 }
 0xceb   :  { %v1802_v50 = vmul.f32 0.03125, %v1800_v22 }
 0xcec   :  { %v1797_v23 = vpop.xlane.xlu1 %1796 }
 0xced   :  { %v1801_v54 = vmul.f32 0.03125, %v1797_v23  ;;  %v1814_v61 = vmul.f32 %v1802_v50, %v1802_v50  ;;  %v1820_v11 = vsub.f32 %v17533_v18, %v1802_v50 }
 0xcee   :  { %v1807_v56 = vpop.xlane.xlu0 %1806 }
 0xcef   :  { %v1813_v58 = vmul.f32 %v1801_v54, %v1801_v54  ;;  %v1811_v59 = vmul.f32 0.03125, %v1807_v56  ;;  %v1819_v7 = vsub.f32 %v17536_v43, %v1801_v54 }
 0xcf0   :  { %v1810_v60 = vpop.xlane.xlu1 %1809 }
 0xcf1   :  { %v1815_v62 = vsub.f32 %v1811_v59, %v1813_v58  ;;  %v1812_v63 = vmul.f32 0.03125, %v1810_v60 }
 0xcf2   :  { %v1836_v14 = vpop.permute.xlu0 %1835 }
 0xcf3   :  { %v1817_v0 = vmax.f32 %v1815_v62, 0.0  ;;  %v1816_v2 = vsub.f32 %v1812_v63, %v1814_v61 }
 0xcf5   :  { %v1821_v3 = vadd.f32 1e-06, %v1817_v0  ;;  %v1818_v5 = vmax.f32 %v1816_v2, 0.0 }
 0xcf7   :  { %16750 = vrsqrt.f32 %v1821_v3  ;;  %v1822_v6 = vadd.f32 1e-06, %v1818_v5 }
 0xcf9   :  { %16752 = vrsqrt.f32 %v1822_v6 }
 0xd04   :  { %v16751_v10 = vpop.eup %16750 }
 0xd05   :  { %v1825_v12 = vmul.f32 %v16751_v10, %v1819_v7 }
 0xd06   :  { %v16753_v13 = vpop.eup %16752 }
 0xd07   :  { %v1826_v15 = vmul.f32 %v16753_v13, %v1820_v11  ;;  %v1833_v16 = vmul.f32 %v14633_v45, %v1825_v12 }
 0xd09   :  { %v1834_v55 = vmul.f32 %v14633_v45, %v1826_v15  ;;  %v1838_v19 = vadd.f32 %v1836_v14, %v1833_v16 }
 0xd0b   :  { %v1839_v24 = vadd.f32 %v1836_v14, %v1834_v55  ;;  %15800 = vmatprep.mubr.msk.f32.mxu1 %vm251_vm2, %v1838_v19 }
 0xd0d   :  { %15801 = vmatmul.mubr.msk.f32.vlgmr.msra.gmra.mxu1 %vm251_vm2, %v1839_v24 }
 0xdcd   :  { %v15802_v26 = vpop.f32.mrf.mxu1 }
 0xdce   :  { %v17590_v27 = vadd.f32 %v15802_v26, %v17587_v25 }
 0xdcf   :  { %v1925_v28 = vpop.f32.mrf.mxu1 }
 0xdd0   :  { %v17593_v29 = vadd.f32 %v17587_v25, %v1925_v28  ;;  %1938 = vrot.lane.b32.xlu1 %v17590_v27, %s17127_s30 }
 0xdd2   :  { %15807 = vmatprep.mubr.msk.f32.mxu1 %vm396_vm5, %v17593_v29 }
 0xdd4   :  { %1936 = vrot.lane.b32.xlu1 %v17593_v29, %s17127_s30 }
 0xe42   :  { %v1939_v30 = vpop.permute.xlu1 %1938 }
 0xe43   :  { %15803 = vmatprep.subr.msk.mxu1 %vm396_vm5, %v1939_v30 }
 0xe44   :  { %15804 = vmatpush3.xpose.msk.msra.mxu1 %vm396_vm5, %v1939_v30 }
 0xe46   :  { %v1937_v31 = vpop.permute.xlu1 %1936 }
 0xe47   :  { %15805 = vmatprep.subr.msk.mxu1 %vm396_vm5, %v1937_v31 }
 0xe48   :  { %15806 = vmatpush3.xpose.msk.msra.mxu1 %vm396_vm5, %v1937_v31 }
 0xe4b   :  { %15808 = vmatmul.mubr.msk.f32.vlgmr.msra.gmra.mxu1 %vm396_vm5, %v17590_v27 }
 0xf0b   :  { %v15809_v32 = vpop.f32.mrf.mxu1 }
 0xf0c   :  { %v2024_v33 = vmul.f32 0.35355338, %v15809_v32 }
 0xf0d   :  { %v2014_v34 = vpop.f32.mrf.mxu1 }
 0xf0e   :  { %v2023_v35 = vmul.f32 0.35355338, %v2014_v34  ;;  %v2026_v36 = vadd.f32 %v2024_v33, %v17356_v1 }
 0xf10   :  { %v2030_v37 = vsel %vm484_vm6, %v2026_v36, -inf  ;;  %v2025_v38 = vadd.f32 %v2023_v35, %v17361_v4 }
 0xf11   :  { %2031 = vmax.xlane.f32.xlu0 %v2030_v37 }
 0xf12   :  { %v2027_v39 = vsel %vm484_vm6, %v2025_v38, -inf }
 0xf13   :  { %2028 = vmax.xlane.f32.xlu1 %v2027_v39 }
 0xf24   :  { %2051 = vrot.lane.b32.xlu1 %v17590_v27, %s17130_s28 }
 0xf28   :  { %2142 = vrot.lane.b32.xlu1 %v17590_v27, %s17128_s22 }
 0xf2c   :  { %2140 = vrot.lane.b32.xlu1 %v17593_v29, %s17128_s22 }
 0xf30   :  { %2136 = vrot.lane.b32.xlu1 %v17593_v29, %s17129_s23 }
 0xf9a   :  { %v2032_v40 = vpop.xlane.xlu0 %2031 }
 0xf9b   :  { %v2034_v42 = vsub.f32 %v2026_v36, %v2032_v40 }
 0xf9c   :  { %v2029_v21 = vpop.xlane.xlu1 %2028 }
 0xf9d   :  { %v2037_v57 = vmul.f32 1.442695, %v2034_v42  ;;  %v2033_v20 = vsub.f32 %v2025_v38, %v2029_v21 }
 0xf9f   :  { %16754 = vpow2.f32 %v2037_v57  ;;  %v2035_v53 = vmul.f32 1.442695, %v2033_v20 }
 0xfa0   :  { %v2052_v44 = vpop.permute.xlu1 %2051 }
 0xfa1   :  { %16756 = vpow2.f32 %v2035_v53  ;;  %15810 = vmatprep.subr.mxu0 %v2052_v44 }
 0xfa2   :  { %15811 = vmatpush3.msra.mxu0 %v2052_v44 }
 0xfa4   :  { %v2143_v56 = vpop.permute.xlu1 %2142 }
 0xfa8   :  { %v2141_v58 = vpop.permute.xlu1 %2140 }
 0xfac   :  { %v16755_v17 = vpop.eup %16754  ;;  %v2137_v63 = vpop.permute.xlu1 %2136 }
 0xfad   :  { %v2042_v41 = vsel %vm484_vm6, %v16755_v17, 0.0 }
 0xfae   :  { %v16757_v45 = vpop.eup %16756  ;;  %2043 = vadd.xlane.f32.xlu0 %v2042_v41 }
 0xfaf   :  { %v2039_v22 = vsel %vm484_vm6, %v16757_v45, 0.0 }
 0xfb2   :  { %2040 = vadd.xlane.f32.xlu0 %v2039_v22 }
 0xfc8   :  { %2049 = vrot.lane.b32.xlu0 %v17593_v29, %s17130_s28 }
 0xfcc   :  { %2138 = vrot.lane.b32.xlu0 %v17590_v27, %s17129_s23 }
0x1037   :  { %v2044_v23 = vpop.xlane.xlu0 %2043 }
0x1038   :  { %16758 = vrcp.f32 %v2044_v23 }
0x103b   :  { %v2041_v50 = vpop.xlane.xlu0 %2040 }
0x103c   :  { %16760 = vrcp.f32 %v2041_v50 }
0x103f   :  { %v2050_v54 = vpop.permute.xlu0 %2049 }
0x1040   :  { %15812 = vmatprep.subr.mxu0 %v2050_v54 }
0x1041   :  { %15813 = vmatpush3.msra.mxu0 %v2050_v54 }
0x1042   :  { %15817 = vmatprep.subr.msk.mxu0 %vm396_vm5, %v2143_v56 }
0x1043   :  { %v2139_v0 = vpop.permute.xlu0 %2138 }
0x1045   :  { %v16759_v59 = vpop.eup %16758 }
0x1046   :  { %v2048_v62 = vmul.f32 %v16759_v59, %v16755_v17 }
0x1049   :  { %v16761_v60 = vpop.eup %16760 }
0x104a   :  { %v2047_v61 = vmul.f32 %v16761_v60, %v16757_v45 }
0x104c   :  { %15814 = vmatprep.mubr.msk.f32.mxu0 %vm484_vm6, %v2047_v61  ;;  %v17095_v61 = vld [vmem:[%s19743_s2] sm:$0xff] }
0x104d   :  { %15815 = vmatmul.mubr.msk.f32.vlgmr.msra.gmra.mxu0 %vm484_vm6, %v2048_v62 }
0x104e   :  { %15818 = vmatpush3.xpose.msk.msra.mxu0 %vm396_vm5, %v2143_v56  ;;  %15821 = vmatprep.mubr.msk.f32.mxu0 %vm396_vm5, %v2137_v63 }
0x104f   :  { %15819 = vmatprep.subr.msk.mxu0 %vm396_vm5, %v2141_v58 }
0x1052   :  { %15820 = vmatpush3.xpose.msk.msra.mxu0 %vm396_vm5, %v2141_v58  ;;  %v17094_v58 = vld [vmem:[%s19743_s2 + $0x8] sm:$0xff]  ;;  %s19778_s2 = smov 40  }
0x1055   :  { %15822 = vmatmul.mubr.msk.f32.vlgmr.msra.gmra.mxu0 %vm396_vm5, %v2139_v0 }
0x110d   :  { %v17633_v2 = vpop.f32.mrf.mxu0 }
0x110f   :  { %v2127_v3 = vpop.f32.mrf.mxu0 }
0x1110   :  { %15838 = vmatprep.mubr.msk.f32.mxu0 %vm396_vm5, %v2127_v3 }
0x1115   :  { %v15823_v5 = vpop.f32.mrf.mxu0 }
0x1116   :  { %v2228_v6 = vmul.f32 0.35355338, %v15823_v5 }
0x1117   :  { %v2218_v7 = vpop.f32.mrf.mxu0 }
0x1118   :  { %v2227_v10 = vmul.f32 0.35355338, %v2218_v7  ;;  %v2230_v11 = vadd.f32 %v2228_v6, %v17356_v1 }
0x111a   :  { %v2234_v12 = vsel %vm484_vm6, %v2230_v11, -inf  ;;  %v2229_v13 = vadd.f32 %v2227_v10, %v17361_v4 }
0x111b   :  { %2235 = vmax.xlane.f32.xlu0 %v2234_v12 }
0x111c   :  { %v2231_v14 = vsel %vm484_vm6, %v2229_v13, -inf }
0x111d   :  { %2232 = vmax.xlane.f32.xlu1 %v2231_v14 }
0x112e   :  { %2255 = vrot.lane.b32.xlu1 %v17590_v27, %s17131_s29 }
0x1132   :  { %2341 = vrot.lane.b32.xlu1 %v17569_v48, %s17136_s1 }
0x1136   :  { %2516 = vrot.lane.b32.xlu1 %v17590_v27, %s17132_s0 }
0x113a   :  { %2514 = vrot.lane.b32.xlu1 %v17593_v29, %s17132_s0 }
0x113e   :  { %2512 = vrot.lane.b32.xlu1 %v17590_v27, %s17133_s6 }
0x1142   :  { %2805 = vrot.lane.b32.xlu1 %v17593_v29, %s19767_s18 }
0x1146   :  { %2803 = vrot.lane.b32.xlu1 %v17590_v27, %s19765_s19 }
0x11a4   :  { %v2236_v1 = vpop.xlane.xlu0 %2235 }
0x11a5   :  { %v2238_v4 = vsub.f32 %v2230_v11, %v2236_v1 }
0x11a6   :  { %v2233_v15 = vpop.xlane.xlu1 %2232 }
0x11a7   :  { %v2241_v16 = vmul.f32 1.442695, %v2238_v4  ;;  %v2237_v48 = vsub.f32 %v2229_v13, %v2233_v15 }
0x11a9   :  { %16762 = vpow2.f32 %v2241_v16  ;;  %v2239_v55 = vmul.f32 1.442695, %v2237_v48 }
0x11aa   :  { %v2256_v19 = vpop.permute.xlu1 %2255 }
0x11ab   :  { %16764 = vpow2.f32 %v2239_v55  ;;  %15824 = vmatprep.subr.mxu1 %v2256_v19 }
0x11ac   :  { %15825 = vmatpush3.msra.mxu1 %v2256_v19 }
0x11ae   :  { %v2342_v34 = vpop.permute.xlu1 %2341 }
0x11b2   :  { %v2517_v39 = vpop.permute.xlu1 %2516 }
0x11b6   :  { %v16763_v24 = vpop.eup %16762  ;;  %v2515_v21 = vpop.permute.xlu1 %2514 }
0x11b7   :  { %v2246_v26 = vsel %vm484_vm6, %v16763_v24, 0.0 }
0x11b8   :  { %v16765_v28 = vpop.eup %16764  ;;  %2247 = vadd.xlane.f32.xlu0 %v2246_v26 }
0x11b9   :  { %v2243_v30 = vsel %vm484_vm6, %v16765_v28, 0.0 }
0x11ba   :  { %v2513_v53 = vpop.permute.xlu1 %2512 }
0x11bc   :  { %2244 = vadd.xlane.f32.xlu0 %v2243_v30 }
0x11be   :  { %v2806_v17 = vpop.permute.xlu1 %2805 }
0x11c2   :  { %v2804_v41 = vpop.permute.xlu1 %2803 }
0x11d2   :  { %2253 = vrot.lane.b32.xlu0 %v17593_v29, %s17131_s29 }
0x11d6   :  { %2510 = vrot.lane.b32.xlu0 %v17593_v29, %s17133_s6 }
0x11da   :  { %2807 = vrot.lane.b32.xlu0 %v17590_v27, %s19767_s18 }
0x11de   :  { %2801 = vrot.lane.b32.xlu0 %v17593_v29, %s19765_s19  ;;  %s19769_s19 = smov 8  }
0x1241   :  { %v2248_v31 = vpop.xlane.xlu0 %2247 }
0x1242   :  { %16766 = vrcp.f32 %v2248_v31 }
0x1245   :  { %v2245_v32 = vpop.xlane.xlu0 %2244 }
0x1246   :  { %16768 = vrcp.f32 %v2245_v32 }
0x1249   :  { %v2254_v33 = vpop.permute.xlu0 %2253 }
0x124a   :  { %15826 = vmatprep.subr.mxu1 %v2254_v33 }
0x124b   :  { %15827 = vmatpush3.msra.mxu1 %v2254_v33 }
0x124c   :  { %15831 = vmatprep.subr.mxu1 %v2342_v34 }
0x124d   :  { %v2511_v40 = vpop.permute.xlu0 %2510 }
0x124f   :  { %v16767_v35 = vpop.eup %16766 }
0x1250   :  { %v2252_v38 = vmul.f32 %v16767_v35, %v16763_v24 }
0x1251   :  { %v2808_v20 = vpop.permute.xlu0 %2807 }
0x1253   :  { %v16769_v36 = vpop.eup %16768 }
0x1254   :  { %v2251_v37 = vmul.f32 %v16769_v36, %v16765_v28 }
0x1255   :  { %v2802_v44 = vpop.permute.xlu0 %2801 }
0x1256   :  { %15828 = vmatprep.mubr.msk.f32.mxu1 %vm484_vm6, %v2251_v37 }
0x1257   :  { %15829 = vmatmul.mubr.msk.f32.vlgmr.msra.gmra.mxu1 %vm484_vm6, %v2252_v38 }
0x1258   :  { %15832 = vmatpush3.msra.mxu1 %v2342_v34 }
0x1259   :  { %15841 = vmatprep.subr.msk.mxu1 %vm396_vm5, %v2517_v39 }
0x1317   :  { %v15830_v42 = vpop.f32.mrf.mxu1 }
0x1319   :  { %v2331_v57 = vpop.f32.mrf.mxu1 }
0x131a   :  { %15833 = vmatprep.mubr.msk.f32.mxu1 %vm396_vm5, %v2331_v57 }
0x131b   :  { %15834 = vmatmul.mubr.msk.f32.vlgmr.msra.gmra.mxu1 %vm396_vm5, %v15830_v42 }
0x131c   :  { %15842 = vmatpush3.xpose.msk.msra.mxu1 %vm396_vm5, %v2517_v39  ;;  %15845 = vmatprep.mubr.msk.f32.mxu1 %vm396_vm5, %v2511_v40 }
0x131d   :  { %15843 = vmatprep.subr.msk.mxu1 %vm396_vm5, %v2515_v21 }
0x1320   :  { %15844 = vmatpush3.xpose.msk.msra.mxu1 %vm396_vm5, %v2515_v21 }
0x1321   :  { %15860 = vmatprep.subr.msk.mxu1 %vm396_vm5, %v2808_v20 }
0x1323   :  { %15846 = vmatmul.mubr.msk.f32.vlgmr.msra.gmra.mxu1 %vm396_vm5, %v2513_v53 }
0x1324   :  { %15861 = vmatpush3.xpose.msk.msra.mxu1 %vm396_vm5, %v2808_v20  ;;  %15864 = vmatprep.mubr.msk.f32.mxu1 %vm396_vm5, %v2802_v44 }
0x1325   :  { %15862 = vmatprep.subr.msk.mxu1 %vm396_vm5, %v2806_v17 }
0x1328   :  { %15863 = vmatpush3.xpose.msk.msra.mxu1 %vm396_vm5, %v2806_v17 }
0x132b   :  { %15865 = vmatmul.mubr.msk.f32.vlgmr.msra.gmra.mxu1 %vm396_vm5, %v2804_v41 }
0x13db   :  { %v17680_v45 = vpop.f32.mrf.mxu1 }
0x13dd   :  { %v17682_v22 = vpop.f32.mrf.mxu1 }
0x13e3   :  { %v15847_v23 = vpop.f32.mrf.mxu1 }
0x13e4   :  { %v2602_v50 = vmul.f32 0.35355338, %v15847_v23 }
0x13e5   :  { %v2592_v54 = vpop.f32.mrf.mxu1 }
0x13e6   :  { %v2601_v56 = vmul.f32 0.35355338, %v2592_v54  ;;  %v2604_v59 = vadd.f32 %v17094_v58, %v2602_v50 }
0x13e8   :  { %v2608_v60 = vsel %vm484_vm6, %v2604_v59, -inf  ;;  %v2603_v62 = vadd.f32 %v17095_v61, %v2601_v56 }
0x13e9   :  { %2609 = vmax.xlane.f32.xlu1 %v2608_v60 }
0x13ea   :  { %v2605_v63 = vsel %vm484_vm6, %v2603_v62, -inf }
0x13eb   :  { %2606 = vmax.xlane.f32.xlu0 %v2605_v63  ;;  %v15866_v0 = vpop.f32.mrf.mxu1 }
0x13ed   :  { %v2883_v3 = vpop.f32.mrf.mxu1 }
0x13ee   :  { %v2892_v5 = vmul.f32 0.35355338, %v2883_v3 }
0x13f0   :  { %v2894_v6 = vadd.f32 %v17095_v61, %v2892_v5 }
0x13f2   :  { %v2896_v7 = vsel %vm484_vm6, %v2894_v6, -inf }
0x13fa   :  { %2629 = vrot.lane.b32.xlu1 %v17590_v27, %s19777_s26 }
0x13fe   :  { %2627 = vrot.lane.b32.xlu1 %v17593_v29, %s19777_s26 }
0x1422   :  { %2897 = vmax.xlane.f32.xlu1 %v2896_v7 }
0x1433   :  { %2715 = vrot.lane.b32.xlu1 %v17559_v47, %s17136_s1 }
0x1437   :  { %2918 = vrot.lane.b32.xlu1 %v17593_v29, %s19778_s2 }
0x143b   :  { %3006 = vrot.lane.b32.xlu1 %v17554_v46, %s17136_s1  ;;  %v2893_v46 = vmul.f32 0.35355338, %v15866_v0 }
0x143f   :  { %3092 = vrot.lane.b32.xlu1 %v17587_v25, %s17136_s1  ;;  %v2895_v25 = vadd.f32 %v17094_v58, %v2893_v46  ;;  %v14675_v46 = vld [vmem:[%s19757_s16 + $0x3] ss:$0 sm:$0xff] }
0x1441   :  { %v2899_v16 = vsel %vm484_vm6, %v2895_v25, -inf }
0x1472   :  { %v2610_v10 = vpop.xlane.xlu1 %2609 }
0x1473   :  { %v2612_v11 = vsub.f32 %v2604_v59, %v2610_v10 }
0x1474   :  { %v2607_v12 = vpop.xlane.xlu0 %2606 }
0x1475   :  { %v2615_v13 = vmul.f32 1.442695, %v2612_v11  ;;  %v2611_v14 = vsub.f32 %v2603_v62, %v2607_v12 }
0x1476   :  { %v2630_v48 = vpop.permute.xlu1 %2629 }
0x1477   :  { %16770 = vpow2.f32 %v2615_v13  ;;  %v2613_v1 = vmul.f32 1.442695, %v2611_v14 }
0x1479   :  { %16772 = vpow2.f32 %v2613_v1 }
0x147a   :  { %v2628_v19 = vpop.permute.xlu1 %2627 }
0x1484   :  { %v16771_v4 = vpop.eup %16770 }
0x1485   :  { %v2620_v47 = vsel %vm484_vm6, %v16771_v4, 0.0 }
0x1486   :  { %v16773_v15 = vpop.eup %16772  ;;  %2621 = vadd.xlane.f32.xlu0 %v2620_v47 }
0x1487   :  { %v2617_v29 = vsel %vm484_vm6, %v16773_v15, 0.0 }
0x148a   :  { %2618 = vadd.xlane.f32.xlu0 %v2617_v29  ;;  %v14679_v29 = vld [vmem:[%s19754_s13 + $0x38] sm:$0xff] }
0x148b   :  { %15879 = vmatprep.subr.mxu1 %v14679_v29 }
0x148c   :  { %15880 = vmatpush3.msra.mxu1 %v14679_v29 }
0x14a0   :  { %2426 = vrot.lane.b32.xlu0 %v17576_v49, %s17136_s1 }
0x14ab   :  { %v2898_v26 = vpop.xlane.xlu1 %2897 }
0x14ac   :  { %v2902_v34 = vsub.f32 %v2894_v6, %v2898_v26  ;;  %v14684_v26 = vld [vmem:[%s19755_s14 + $0x60] sm:$0xff] }
0x14ae   :  { %v2904_v37 = vmul.f32 1.442695, %v2902_v34 }
0x14af   :  { %v2716_v49 = vpop.permute.xlu1 %2715 }
0x14b3   :  { %v2919_v23 = vpop.permute.xlu1 %2918 }
0x14b7   :  { %v3007_v58 = vpop.permute.xlu1 %3006 }
0x14bb   :  { %v3093_v6 = vpop.permute.xlu1 %3092 }
0x14bf   :  { %2900 = vmax.xlane.f32.xlu0 %v2899_v16  ;;  %v14677_v16 = vld [vmem:[%s19754_s13 + $0x28] sm:$0xff] }
0x150f   :  { %v2622_v55 = vpop.xlane.xlu0 %2621 }
0x1510   :  { %16774 = vrcp.f32 %v2622_v55  ;;  %v14687_v55 = vld [vmem:[%s19755_s14 + $0x78] sm:$0xff] }
0x1513   :  { %v2619_v24 = vpop.xlane.xlu0 %2618 }
0x1514   :  { %16776 = vrcp.f32 %v2619_v24  ;;  %v14685_v24 = vld [vmem:[%s19755_s14 + $0x68] sm:$0xff] }
0x1517   :  { %v2427_v28 = vpop.permute.xlu0 %2426 }
0x1518   :  { %15836 = vmatprep.subr.mxu0 %v2427_v28 }
0x1519   :  { %15837 = vmatpush3.msra.mxu0 %v2427_v28 }
0x151a   :  { %15839 = vmatmul.mubr.msk.f32.vlgmr.msra.gmra.mxu0 %vm396_vm5, %v17633_v2  ;;  %15848 = vmatprep.subr.mxu0 %v2630_v48 }
0x151b   :  { %15849 = vmatpush3.msra.mxu0 %v2630_v48  ;;  %v14676_v48 = vld [vmem:[%s19754_s13 + $0x20] sm:$0xff] }
0x151c   :  { %15850 = vmatprep.subr.mxu0 %v2628_v19 }
0x151d   :  { %15851 = vmatpush3.msra.mxu0 %v2628_v19  ;;  %v16775_v30 = vpop.eup %16774  ;;  %v14686_v19 = vld [vmem:[%s19755_s14 + $0x70] sm:$0xff] }
0x151e   :  { %15855 = vmatprep.subr.mxu0 %v2716_v49  ;;  %v2626_v33 = vmul.f32 %v16775_v30, %v16771_v4 }
0x1521   :  { %v16777_v31 = vpop.eup %16776 }
0x1522   :  { %v2625_v32 = vmul.f32 %v16777_v31, %v16773_v15 }
0x1524   :  { %15852 = vmatprep.mubr.msk.f32.mxu0 %vm484_vm6, %v2625_v32 }
0x1525   :  { %15853 = vmatmul.mubr.msk.f32.vlgmr.msra.gmra.mxu0 %vm484_vm6, %v2626_v33 }
0x1526   :  { %15856 = vmatpush3.msra.mxu0 %v2716_v49 }
0x1548   :  { %v2901_v35 = vpop.xlane.xlu0 %2900 }
0x1549   :  { %v2903_v36 = vsub.f32 %v2895_v25, %v2901_v35  ;;  %v14678_v25 = vld [vmem:[%s19754_s13 + $0x30] sm:$0xff] }
0x154a   :  { %15881 = vmatprep.subr.mxu1 %v14678_v25 }
0x154b   :  { %v2906_v2 = vmul.f32 1.442695, %v2903_v36  ;;  %15882 = vmatpush3.msra.mxu1 %v14678_v25 }
0x154c   :  { %15883 = vmatprep.subr.mxu1 %v14677_v16 }
0x154d   :  { %16778 = vpow2.f32 %v2906_v2  ;;  %15884 = vmatpush3.msra.mxu1 %v14677_v16 }
0x154e   :  { %16780 = vpow2.f32 %v2904_v37  ;;  %15885 = vmatprep.subr.mxu1 %v14676_v48 }
0x154f   :  { %15886 = vmatpush3.msra.mxu1 %v14676_v48 }
0x155a   :  { %v16779_v38 = vpop.eup %16778 }
0x155b   :  { %v2911_v39 = vsel %vm484_vm6, %v16779_v38, 0.0  ;;  %v16781_v40 = vpop.eup %16780 }
0x155c   :  { %2912 = vadd.xlane.f32.xlu0 %v2911_v39  ;;  %v2908_v42 = vsel %vm484_vm6, %v16781_v40, 0.0 }
0x1560   :  { %2909 = vadd.xlane.f32.xlu0 %v2908_v42 }
0x1576   :  { %2920 = vrot.lane.b32.xlu0 %v17590_v27, %s19778_s2 }
0x15da   :  { %v15840_v21 = vpop.f32.mrf.mxu0 }
0x15db   :  { %v2507_v59 = vadd.f32 %v15840_v21, %v17680_v45 }
0x15dc   :  { %v2501_v57 = vpop.f32.mrf.mxu0 }
0x15dd   :  { %v2502_v3 = vadd.f32 %v2501_v57, %v17682_v22 }
0x15e5   :  { %v2913_v20 = vpop.xlane.xlu0 %2912  ;;  %v15854_v53 = vpop.f32.mrf.mxu0 }
0x15e6   :  { %16782 = vrcp.f32 %v2913_v20 }
0x15e7   :  { %v2705_v44 = vpop.f32.mrf.mxu0 }
0x15e8   :  { %15857 = vmatprep.mubr.msk.f32.mxu0 %vm396_vm5, %v2705_v44 }
0x15e9   :  { %v2910_v17 = vpop.xlane.xlu0 %2909  ;;  %15858 = vmatmul.mubr.msk.f32.vlgmr.msra.gmra.mxu0 %vm396_vm5, %v15854_v53 }
0x15ea   :  { %16784 = vrcp.f32 %v2910_v17 }
0x15ed   :  { %v2921_v41 = vpop.permute.xlu0 %2920 }
0x15ee   :  { %15867 = vmatprep.subr.mxu0 %v2921_v41 }
0x15ef   :  { %15868 = vmatpush3.msra.mxu0 %v2921_v41 }
0x15f0   :  { %15869 = vmatprep.subr.mxu0 %v2919_v23 }
0x15f1   :  { %15870 = vmatpush3.msra.mxu0 %v2919_v23 }
0x15f2   :  { %15874 = vmatprep.subr.mxu0 %v3007_v58 }
0x15f3   :  { %v16783_v50 = vpop.eup %16782 }
0x15f4   :  { %v2917_v56 = vmul.f32 %v16783_v50, %v16779_v38 }
0x15f7   :  { %v16785_v27 = vpop.eup %16784 }
0x15f8   :  { %v2916_v54 = vmul.f32 %v16785_v27, %v16781_v40 }
0x15fa   :  { %15871 = vmatprep.mubr.msk.f32.mxu0 %vm484_vm6, %v2916_v54 }
0x15fb   :  { %15872 = vmatmul.mubr.msk.f32.vlgmr.msra.gmra.mxu0 %vm484_vm6, %v2917_v56 }
0x15fc   :  { %15875 = vmatpush3.msra.mxu0 %v3007_v58  ;;  %v14683_v58 = vld [vmem:[%s19755_s14 + $0x58] sm:$0xff] }
0x15fd   :  { %15890 = vmatprep.subr.mxu0 %v14687_v55 }
0x16a9   :  { %v15859_v60 = vpop.f32.mrf.mxu0 }
0x16aa   :  { %v2800_v61 = vadd.f32 %v15859_v60, %v2507_v59  ;;  %v14689_v59 = vld [vmem:[%s19756_s15 + $0x1] ss:$0 sm:$0xff]  ;;  %v14682_v60 = vld [vmem:[%s19755_s14 + $0x50] sm:$0xff] }
0x16ab   :  { %v2790_v62 = vpop.f32.mrf.mxu0 }
0x16ac   :  { %v2799_v7 = vadd.f32 %v2790_v62, %v2502_v3  ;;  %v14680_v62 = vld [vmem:[%s19755_s14 + $0x40] sm:$0xff] }
0x16bb   :  { %v15873_v63 = vpop.f32.mrf.mxu0 }
0x16bd   :  { %v2996_v0 = vpop.f32.mrf.mxu0 }
0x16be   :  { %15876 = vmatprep.mubr.msk.f32.mxu0 %vm396_vm5, %v2996_v0 }
0x16bf   :  { %15877 = vmatmul.mubr.msk.f32.vlgmr.msra.gmra.mxu0 %vm396_vm5, %v15873_v63 }
0x16c0   :  { %15891 = vmatpush3.msra.mxu0 %v14687_v55 }
0x16c1   :  { %15892 = vmatprep.subr.mxu0 %v14686_v19 }
0x16c2   :  { %15893 = vmatpush3.msra.mxu0 %v14686_v19 }
0x16c3   :  { %15894 = vmatprep.subr.mxu0 %v14685_v24 }
0x16c4   :  { %15895 = vmatpush3.msra.mxu0 %v14685_v24 }
0x16c5   :  { %15896 = vmatprep.subr.mxu0 %v14684_v26 }
0x16c6   :  { %15897 = vmatpush3.msra.mxu0 %v14684_v26  ;;  %v3422_v26 = vld [vmem:[%s19752_s11 + $0x110] sm:$0xff] }
0x16c7   :  { %15898 = vmatprep.subr.mxu0 %v14683_v58  ;;  %3456 = vmatprep.subr.mxu1 %v3422_v26 }
0x16c8   :  { %15899 = vmatpush3.msra.mxu0 %v14683_v58  ;;  %v3395_v58 = vld [vmem:[%s19752_s11 + $0x38] sm:$0xff] }
0x16c9   :  { %15900 = vmatprep.subr.mxu0 %v14682_v60 }
0x16ca   :  { %15901 = vmatpush3.msra.mxu0 %v14682_v60  ;;  %v3399_v60 = vld [vmem:[%s19752_s11 + $0x58] sm:$0xff] }
0x177f   :  { %v15878_v5 = vpop.f32.mrf.mxu0 }
0x1780   :  { %v3091_v10 = vadd.f32 %v15878_v5, %v2800_v61  ;;  %v14681_v61 = vld [vmem:[%s19755_s14 + $0x48] sm:$0xff] }
0x1781   :  { %v3081_v11 = vpop.f32.mrf.mxu0  ;;  %15902 = vmatprep.subr.mxu0 %v14681_v61 }
0x1782   :  { %v3090_v12 = vadd.f32 %v3081_v11, %v2799_v7  ;;  %v3096_v13 = vadd.f32 %v3093_v6, %v3091_v10  ;;  %15903 = vmatpush3.msra.mxu0 %v14681_v61  ;;  %v3392_v61 = vld [vmem:[%s19752_s11 + $0x20] sm:$0xff] }
0x1783   :  { %15904 = vmatprep.subr.mxu0 %v14680_v62 }
0x1784   :  { %v3095_v14 = vadd.f32 %v3093_v6, %v3090_v12  ;;  %v17727_v45 = vadd.f32 %v3096_v13, %v17533_v18  ;;  %15905 = vmatpush3.msra.mxu0 %v14680_v62  ;;  %v3396_v62 = vld [vmem:[%s19752_s11 + $0x40] sm:$0xff] }
0x1786   :  { %v17730_v1 = vadd.f32 %v3095_v14, %v17536_v43  ;;  %v3104_v4 = vsel %vm251_vm2, %v17727_v45, 0.0  ;;  %v3110_v18 = vmul.f32 %v17727_v45, %v17727_v45 }
0x1787   :  { %3105 = vadd.xlane.f32.xlu1 %v3104_v4 }
0x1788   :  { %v3101_v22 = vsel %vm251_vm2, %v17730_v1, 0.0  ;;  %v3109_v47 = vmul.f32 %v17730_v1, %v17730_v1  ;;  %v3114_v43 = vsel %vm251_vm2, %v3110_v18, 0.0 }
0x1789   :  { %3102 = vadd.xlane.f32.xlu0 %v3101_v22 }
0x178a   :  { %v3111_v15 = vsel %vm251_vm2, %v3109_v47, 0.0 }
0x178d   :  { %3112 = vadd.xlane.f32.xlu0 %v3111_v15  ;;  %v162_v15 = vld [vmem:[%s19749_s8] sm:$0xff] }
0x178e   :  { %v17813_v29 = vadd.f32 %v17314_v52, %v162_v15 }
0x1790   :  { %v3602_v48 = vsel %vm251_vm2, %v17813_v29, 0.0  ;;  %v3610_v55 = vmul.f32 %v17813_v29, %v17813_v29 }
0x1791   :  { %3115 = vadd.xlane.f32.xlu0 %v3114_v43 }
0x1798   :  { %3251 = vrot.lane.b32.xlu1 %v14689_v59, %s17130_s28 }
0x17a7   :  { %3141 = vrot.lane.b32.xlu0 %v14675_v46, %s17127_s30 }
0x1810   :  { %v3106_v30 = vpop.xlane.xlu1 %3105 }
0x1811   :  { %v3108_v32 = vmul.f32 0.03125, %v3106_v30  ;;  %v3423_v30 = vld [vmem:[%s19752_s11 + $0x118] sm:$0xff] }
0x1812   :  { %v3103_v28 = vpop.xlane.xlu0 %3102  ;;  %15909 = vmatprep.subr.mxu0 %v3423_v30 }
0x1813   :  { %v3107_v49 = vmul.f32 0.03125, %v3103_v28  ;;  %v3120_v37 = vmul.f32 %v3108_v32, %v3108_v32  ;;  %v3126_v17 = vsub.f32 %v17727_v45, %v3108_v32  ;;  %v3421_v28 = vld [vmem:[%s19752_s11 + $0x108] sm:$0xff]  ;;  %v3416_v32 = vld [vmem:[%s19752_s11 + $0xe0] sm:$0xff] }
0x1814   :  { %v3252_v10 = vpop.permute.xlu1 %3251 }
0x1815   :  { %v3119_v33 = vmul.f32 %v3107_v49, %v3107_v49  ;;  %v3125_v57 = vsub.f32 %v17730_v1, %v3107_v49  ;;  %v3419_v49 = vld [vmem:[%s19752_s11 + $0xf8] sm:$0xff] }
0x1816   :  { %v3113_v31 = vpop.xlane.xlu0 %3112 }
0x1817   :  { %v3117_v34 = vmul.f32 0.03125, %v3113_v31  ;;  %v3418_v31 = vld [vmem:[%s19752_s11 + $0xf0] sm:$0xff] }
0x1819   :  { %v3121_v35 = vsub.f32 %v3117_v34, %v3119_v33  ;;  %v3420_v33 = vld [vmem:[%s19752_s11 + $0x100] sm:$0xff]  ;;  %v3415_v34 = vld [vmem:[%s19752_s11 + $0xd8] sm:$0xff] }
0x181a   :  { %v3116_v36 = vpop.xlane.xlu0 %3115 }
0x181b   :  { %v3123_v2 = vmax.f32 %v3121_v35, 0.0  ;;  %v3118_v38 = vmul.f32 0.03125, %v3116_v36  ;;  %v3413_v35 = vld [vmem:[%s19752_s11 + $0xc8] sm:$0xff] }
0x181c   :  { %v3417_v36 = vld [vmem:[%s19752_s11 + $0xe8] sm:$0xff] }
0x181d   :  { %v3127_v39 = vadd.f32 1e-06, %v3123_v2  ;;  %v3122_v40 = vsub.f32 %v3118_v38, %v3120_v37  ;;  %v3412_v37 = vld [vmem:[%s19752_s11 + $0xc0] sm:$0xff]  ;;  %v3410_v38 = vld [vmem:[%s19752_s11 + $0xb0] sm:$0xff] }
0x181e   :  { %v3142_v44 = vpop.permute.xlu0 %3141  ;;  %v17866_v2 = vld [vmem:[%s19757_s16 + $0x5] ss:$0 sm:$0xff] }
0x181f   :  { %16786 = vrsqrt.f32 %v3127_v39  ;;  %v3124_v42 = vmax.f32 %v3122_v40, 0.0  ;;  %v3414_v39 = vld [vmem:[%s19752_s11 + $0xd0] sm:$0xff]  ;;  %v3409_v40 = vld [vmem:[%s19752_s11 + $0xa8] sm:$0xff] }
0x1821   :  { %v3128_v21 = vadd.f32 1e-06, %v3124_v42  ;;  %v3407_v42 = vld [vmem:[%s19752_s11 + $0x98] sm:$0xff] }
0x1823   :  { %16788 = vrsqrt.f32 %v3128_v21  ;;  %v3411_v21 = vld [vmem:[%s19752_s11 + $0xb8] sm:$0xff] }
0x182c   :  { %v16787_v20 = vpop.eup %16786 }
0x182d   :  { %v3131_v53 = vmul.f32 %v16787_v20, %v3125_v57  ;;  %v17886_v57 = vld [vmem:[%s19757_s16 + $0x4] ss:$0 sm:$0xff]  ;;  %v3406_v20 = vld [vmem:[%s19752_s11 + $0x90] sm:$0xff] }
0x182f   :  { %v3139_v41 = vmul.f32 %v14675_v46, %v3131_v53  ;;  %v3404_v53 = vld [vmem:[%s19752_s11 + $0x80] sm:$0xff] }
0x1830   :  { %v16789_v23 = vpop.eup %16788 }
0x1831   :  { %v3132_v50 = vmul.f32 %v16789_v23, %v3126_v17  ;;  %v3144_v27 = vadd.f32 %v3142_v44, %v3139_v41  ;;  %v3408_v17 = vld [vmem:[%s19752_s11 + $0xa0] sm:$0xff]  ;;  %v3401_v41 = vld [vmem:[%s19752_s11 + $0x68] sm:$0xff] }
0x1832   :  { %v3400_v23 = vld [vmem:[%s19752_s11 + $0x60] sm:$0xff] }
0x1833   :  { %v3140_v54 = vmul.f32 %v14675_v46, %v3132_v50  ;;  %15887 = vmatprep.mubr.msk.f32.mxu1 %vm251_vm2, %v3144_v27  ;;  %v3405_v50 = vld [vmem:[%s19752_s11 + $0x88] sm:$0xff]  ;;  %v3398_v27 = vld [vmem:[%s19752_s11 + $0x50] sm:$0xff] }
0x1835   :  { %v3145_v56 = vadd.f32 %v3142_v44, %v3140_v54  ;;  %v3403_v44 = vld [vmem:[%s19752_s11 + $0x78] sm:$0xff]  ;;  %v3397_v54 = vld [vmem:[%s19752_s11 + $0x48] sm:$0xff] }
0x1837   :  { %15888 = vmatmul.mubr.msk.f32.vlgmr.msra.gmra.mxu1 %vm251_vm2, %v3145_v56  ;;  %v3402_v56 = vld [vmem:[%s19752_s11 + $0x70] sm:$0xff] }
0x1838   :  { %3457 = vmatpush1.msra.mxu1 %v3421_v28 }
0x1839   :  { %3458 = vmatprep.subr.mxu1 %v3419_v49 }
0x183a   :  { %3459 = vmatpush1.msra.mxu1 %v3418_v31 }
0x183b   :  { %3460 = vmatprep.subr.mxu1 %v3416_v32 }
0x183c   :  { %3461 = vmatpush1.msra.mxu1 %v3415_v34 }
0x183d   :  { %3462 = vmatprep.subr.mxu1 %v3413_v35 }
0x183e   :  { %3463 = vmatpush1.msra.mxu1 %v3412_v37 }
0x183f   :  { %3464 = vmatprep.subr.mxu1 %v3410_v38 }
0x1840   :  { %3465 = vmatpush1.msra.mxu1 %v3409_v40 }
0x1841   :  { %3466 = vmatprep.subr.mxu1 %v3407_v42 }
0x1842   :  { %3467 = vmatpush1.msra.mxu1 %v3406_v20 }
0x1843   :  { %3468 = vmatprep.subr.mxu1 %v3404_v53 }
0x1844   :  { %3469 = vmatpush1.msra.mxu1 %v3403_v44 }
0x1845   :  { %3470 = vmatprep.subr.mxu1 %v3401_v41 }
0x1846   :  { %3471 = vmatpush1.msra.mxu1 %v3400_v23 }
0x1847   :  { %3472 = vmatprep.subr.mxu1 %v3398_v27 }
0x1848   :  { %3473 = vmatpush1.msra.mxu1 %v3397_v54 }
0x1849   :  { %3474 = vmatprep.subr.mxu1 %v3395_v58 }
0x18f7   :  { %v15889_v63 = vpop.f32.mrf.mxu1 }
0x18f8   :  { %v3246_v0 = vadd.f32 %v15889_v63, %v14689_v59  ;;  %v3391_v63 = vld [vmem:[%s19752_s11 + $0x18] sm:$0xff] }
0x18f9   :  { %v3240_v3 = vpop.f32.mrf.mxu1 }
0x18fa   :  { %v3241_v5 = vadd.f32 %v14689_v59, %v3240_v3  ;;  %v3250_v7 = vmax.f32 %v3246_v0, 0.0  ;;  %v3394_v59 = vld [vmem:[%s19752_s11 + $0x30] sm:$0xff]  ;;  %v3389_v0 = vld [vmem:[%s19752_s11 + $0x8] sm:$0xff]  ;;  %v3388_v3 = vld [vmem:[%s19752_s11] sm:$0xff] }
0x18fb   :  { %3475 = vmatpush1.msra.mxu1 %v3394_v59  ;;  %v17971_v59 = vld [vmem:[%s19750_s9 + $0x50] sm:$0xff] }
0x18fc   :  { %v3249_v6 = vmax.f32 %v3241_v5, 0.0  ;;  %3476 = vmatprep.subr.mxu1 %v3392_v61  ;;  %v3393_v5 = vld [vmem:[%s19752_s11 + $0x28] sm:$0xff] }
0x18fd   :  { %3477 = vmatpush1.msra.mxu1 %v3391_v63  ;;  %v17985_v63 = vld [vmem:[%s19750_s9 + $0x48] sm:$0xff] }
0x18fe   :  { %15906 = vmatprep.mubr.msk.f32.mxu0 %vm1709_vm7, %v3249_v6  ;;  %3478 = vmatprep.subr.mxu1 %v3389_v0  ;;  %v17952_v6 = vld [vmem:[%s19750_s9 + $0x58] sm:$0xff] }
0x18ff   :  { %15907 = vmatmul.mubr.msk.f32.vlgmr.msra.gmra.mxu0 %vm1709_vm7, %v3250_v7  ;;  %3479 = vmatpush1.msra.mxu1 %v3388_v3  ;;  %v3390_v7 = vld [vmem:[%s19752_s11 + $0x10] sm:$0xff]  ;;  %s19771_s11 = smov 16  }
0x1900   :  { %15910 = vmatpush3.msra.mxu0 %v3423_v30  ;;  %15936 = vmatprep.subr.mxu1 %v17952_v6 }
0x1901   :  { %15911 = vmatprep.subr.mxu0 %v3420_v33 }
0x1902   :  { %15912 = vmatpush3.msra.mxu0 %v3420_v33 }
0x1903   :  { %15913 = vmatprep.subr.mxu0 %v3417_v36 }
0x1904   :  { %15914 = vmatpush3.msra.mxu0 %v3417_v36 }
0x1905   :  { %15915 = vmatprep.subr.mxu0 %v3414_v39 }
0x1906   :  { %15916 = vmatpush3.msra.mxu0 %v3414_v39 }
0x1907   :  { %15917 = vmatprep.subr.mxu0 %v3411_v21 }
0x1908   :  { %15918 = vmatpush3.msra.mxu0 %v3411_v21 }
0x1909   :  { %15919 = vmatprep.subr.mxu0 %v3408_v17 }
0x190a   :  { %15920 = vmatpush3.msra.mxu0 %v3408_v17 }
0x190b   :  { %15921 = vmatprep.subr.mxu0 %v3405_v50 }
0x190c   :  { %15922 = vmatpush3.msra.mxu0 %v3405_v50 }
0x190d   :  { %15923 = vmatprep.subr.mxu0 %v3402_v56 }
0x190e   :  { %15924 = vmatpush3.msra.mxu0 %v3402_v56 }
0x190f   :  { %15925 = vmatprep.subr.mxu0 %v3399_v60 }
0x1910   :  { %15926 = vmatpush3.msra.mxu0 %v3399_v60 }
0x1911   :  { %15927 = vmatprep.subr.mxu0 %v3396_v62 }
0x1912   :  { %15928 = vmatpush3.msra.mxu0 %v3396_v62 }
0x1913   :  { %15929 = vmatprep.subr.mxu0 %v3393_v5 }
0x1914   :  { %15930 = vmatpush3.msra.mxu0 %v3393_v5 }
0x1915   :  { %15931 = vmatprep.subr.mxu0 %v3390_v7 }
0x1916   :  { %15932 = vmatpush3.msra.mxu0 %v3390_v7 }
0x19bf   :  { %v15908_v11 = vpop.f32.mrf.mxu0 }
0x19c0   :  { %v3332_v12 = vadd.f32 %v15908_v11, %v3252_v10 }
0x19c1   :  { %v3326_v13 = vpop.f32.mrf.mxu0 }
0x19c2   :  { %v17793_v14 = vadd.f32 %v3332_v12, %v17727_v45  ;;  %v3327_v4 = vadd.f32 %v3326_v13, %v3252_v10  ;;  %v17139_v10 = vmov 0.0  }
0x19c3   :  { %3512 = vmatprep.mubr.f32.mxu1 %v17139_v10 }
0x19c4   :  { %v17796_v22 = vadd.f32 %v3327_v4, %v17730_v1  ;;  %v3342_v47 = vsel %vm251_vm2, %v17793_v14, 0.0  ;;  %v3348_v45 = vmul.f32 %v17793_v14, %v17793_v14  ;;  %v163_v1 = vld [vmem:[%s19749_s8 + $0x8] sm:$0xff]  ;;  %s19779_s8 = smov 72  }
0x19c5   :  { %3343 = vadd.xlane.f32.xlu0 %v3342_v47  ;;  %v17817_v25 = vadd.f32 %v17312_v51, %v163_v1  ;;  %v3612_v51 = vsel %vm251_vm2, %v3610_v55, 0.0 }
0x19c6   :  { %v3339_v18 = vsel %vm251_vm2, %v17796_v22, 0.0  ;;  %v3347_v43 = vmul.f32 %v17796_v22, %v17796_v22  ;;  %v3352_v16 = vsel %vm251_vm2, %v3348_v45, 0.0 }
0x19c7   :  { %3340 = vadd.xlane.f32.xlu1 %v3339_v18  ;;  %v3605_v52 = vsel %vm251_vm2, %v17817_v25, 0.0  ;;  %v3611_v19 = vmul.f32 %v17817_v25, %v17817_v25 }
0x19c8   :  { %v3349_v46 = vsel %vm251_vm2, %v3347_v43, 0.0 }
0x19c9   :  { %3350 = vadd.xlane.f32.xlu0 %v3349_v46  ;;  %v3615_v24 = vsel %vm251_vm2, %v3611_v19, 0.0 }
0x19cb   :  { %3353 = vadd.xlane.f32.xlu1 %v3352_v16 }
0x19cd   :  { %3603 = vadd.xlane.f32.xlu0 %v3602_v48 }
0x19cf   :  { %3606 = vadd.xlane.f32.xlu1 %v3605_v52 }
0x19d1   :  { %3613 = vadd.xlane.f32.xlu0 %v3612_v51 }
0x19d3   :  { %3616 = vadd.xlane.f32.xlu1 %v3615_v24 }
0x19e4   :  { %3642 = vrot.lane.b32.xlu1 %v17866_v2, %s17127_s30 }
0x19e7   :  { %3379 = vrot.lane.b32.xlu0 %v17886_v57, %s17127_s30 }
0x1a4e   :  { %v3344_v11 = vpop.xlane.xlu0 %3343 }
0x1a4f   :  { %v3346_v13 = vmul.f32 0.03125, %v3344_v11 }
0x1a50   :  { %v3341_v12 = vpop.xlane.xlu1 %3340 }
0x1a51   :  { %v3345_v4 = vmul.f32 0.03125, %v3341_v12  ;;  %v3358_v45 = vmul.f32 %v3346_v13, %v3346_v13  ;;  %v3364_v20 = vsub.f32 %v17793_v14, %v3346_v13  ;;  %v3426_v12 = vlaneseq }
0x1a52   :  { %v3351_v47 = vpop.xlane.xlu0 %3350 }
0x1a53   :  { %v3357_v15 = vmul.f32 %v3345_v4, %v3345_v4  ;;  %v3355_v18 = vmul.f32 0.03125, %v3351_v47  ;;  %v3363_v42 = vsub.f32 %v17796_v22, %v3345_v4  ;;  %v18004_v13 = vshrl.u32 %v3426_v12, 7 }
0x1a54   :  { %v3354_v43 = vpop.xlane.xlu1 %3353 }
0x1a55   :  { %v3359_v1 = vsub.f32 %v3355_v18, %v3357_v15  ;;  %v3356_v46 = vmul.f32 0.03125, %v3354_v43  ;;  %v3428_v4 = vsub.s32 0, %v18004_v13  ;;  %v3432_v47 = vsub.s32 1, %v18004_v13 }
0x1a56   :  { %v3604_v16 = vpop.xlane.xlu0 %3603 }
0x1a57   :  { %v3361_v48 = vmax.f32 %v3359_v1, 0.0  ;;  %v3360_v55 = vsub.f32 %v3356_v46, %v3358_v45  ;;  %v3608_v52 = vmul.f32 0.03125, %v3604_v16 }
0x1a58   :  { %v3607_v19 = vpop.xlane.xlu1 %3606 }
0x1a59   :  { %v3365_v51 = vadd.f32 1e-06, %v3361_v48  ;;  %v3362_v24 = vmax.f32 %v3360_v55, 0.0  ;;  %v3609_v26 = vmul.f32 0.03125, %v3607_v19  ;;  %v3620_v30 = vmul.f32 %v3608_v52, %v3608_v52  ;;  %v18028_v55 = vld [vmem:[%s19751_s10 + $0x2] ss:$0 sm:$0xff] }
0x1a5a   :  { %v3614_v28 = vpop.xlane.xlu0 %3613  ;;  %v3626_v54 = vsub.f32 %v17813_v29, %v3608_v52 }
0x1a5b   :  { %16790 = vrsqrt.f32 %v3365_v51  ;;  %v3366_v49 = vadd.f32 1e-06, %v3362_v24  ;;  %v3618_v31 = vmul.f32 0.03125, %v3614_v28  ;;  %v3621_v33 = vmul.f32 %v3609_v26, %v3609_v26 }
0x1a5c   :  { %v3617_v32 = vpop.xlane.xlu1 %3616  ;;  %v3627_v60 = vsub.f32 %v17817_v25, %v3609_v26 }
0x1a5d   :  { %16792 = vrsqrt.f32 %v3366_v49  ;;  %v3622_v34 = vsub.f32 %v3618_v31, %v3620_v30  ;;  %v3619_v35 = vmul.f32 0.03125, %v3617_v32  ;;  %v18051_v49 = vld [vmem:[%s19745_s4 + $0x8] sm:$0xff]  ;;  %v18056_v32 = vld [vmem:[%s19745_s4] sm:$0xff] }
0x1a5e   :  { %v3380_v17 = vpop.permute.xlu0 %3379 }
0x1a5f   :  { %v3624_v36 = vmax.f32 %v3622_v34, 0.0  ;;  %v3623_v37 = vsub.f32 %v3619_v35, %v3621_v33 }
0x1a60   :  { %v3643_v0 = vpop.permute.xlu1 %3642 }
0x1a61   :  { %v3628_v38 = vadd.f32 1e-06, %v3624_v36  ;;  %v3625_v39 = vmax.f32 %v3623_v37, 0.0 }
0x1a63   :  { %16794 = vrsqrt.f32 %v3628_v38  ;;  %v3629_v40 = vadd.f32 1e-06, %v3625_v39 }
0x1a65   :  { %16796 = vrsqrt.f32 %v3629_v40 }
0x1a68   :  { %v16791_v21 = vpop.eup %16790 }
0x1a69   :  { %v3369_v53 = vmul.f32 %v16791_v21, %v3363_v42 }
0x1a6a   :  { %v16793_v44 = vpop.eup %16792 }
0x1a6b   :  { %v3370_v41 = vmul.f32 %v16793_v44, %v3364_v20  ;;  %v3377_v23 = vmul.f32 %v17886_v57, %v3369_v53 }
0x1a6d   :  { %v3378_v50 = vmul.f32 %v17886_v57, %v3370_v41  ;;  %v3382_v27 = vadd.f32 %v3380_v17, %v3377_v23 }
0x1a6f   :  { %v3383_v56 = vadd.f32 %v3380_v17, %v3378_v50  ;;  %v3384_v58 = vsel %vm251_vm2, %v3382_v27, %v17255_v9 }
0x1a70   :  { %v16795_v22 = vpop.eup %16794  ;;  %v3386_v14 = vsel %vm1709_vm7, %v3384_v58, %v17255_v9 }
0x1a71   :  { %14696 = vmatmul.mubr.msk.f32.vlgmr.msra.gmra.mxu1 %vm3441_vm8, %v3386_v14  ;;  %15933 = vmatprep.mubr.msk.f32.mxu0 %vm3441_vm8, %v3386_v14  ;;  %v3385_v57 = vsel %vm251_vm2, %v3383_v56, %v17253_v8  ;;  %v3632_v61 = vmul.f32 %v16795_v22, %v3626_v54 }
0x1a72   :  { %v16797_v62 = vpop.eup %16796  ;;  %15937 = vmatpush3.msra.mxu1 %v17952_v6  ;;  %v3387_v9 = vsel %vm1709_vm7, %v3385_v57, %v17253_v8  ;;  %3518 = vmatprep.mubr.f32.mxu1 %v17139_v10  ;;  %v17994_v8 = vld [vmem:[%s19750_s9 + $0x40] sm:$0xff] }
0x1a73   :  { %15938 = vmatprep.subr.mxu1 %v17971_v59  ;;  %15934 = vmatmul.mubr.msk.f32.vlgmr.msra.gmra.mxu0 %vm3441_vm8, %v3387_v9  ;;  %v3633_v3 = vmul.f32 %v16797_v62, %v3627_v60  ;;  %v3640_v5 = vmul.f32 %v17866_v2, %v3632_v61 }
0x1a74   :  { %15939 = vmatpush3.msra.mxu1 %v17971_v59 }
0x1a75   :  { %15940 = vmatprep.subr.mxu1 %v17985_v63  ;;  %v3641_v7 = vmul.f32 %v17866_v2, %v3633_v3  ;;  %v3645_v10 = vadd.f32 %v3643_v0, %v3640_v5  ;;  %14697 = vmatmul.mubr.msk.f32.gmra.mxu1 %vm3441_vm8, %v3387_v9  ;;  %v3424_v2 = vld [vmem:[%s19753_s12] sm:$0x7] }
0x1a76   :  { %15941 = vmatpush3.msra.mxu1 %v17985_v63  ;;  %v18011_v15 = vrot.slane %v3424_v2, %v3428_v4  ;;  %v18013_v18 = vrot.slane %v3424_v2, %v3432_v47 }
0x1a77   :  { %v3646_v11 = vadd.f32 %v3643_v0, %v3641_v7  ;;  %15942 = vmatprep.subr.mxu1 %v17994_v8  ;;  %15944 = vmatprep.mubr.msk.f32.mxu1 %vm251_vm2, %v3645_v10 }
0x1a78   :  { %15943 = vmatpush3.msra.mxu1 %v17994_v8 }
0x1a79   :  { %15945 = vmatmul.mubr.msk.f32.vlgmr.msra.gmra.mxu1 %vm251_vm2, %v3646_v11 }
0x1b31   :  { %v3514_v43 = vpop.f32.mrf.mxu1 }
0x1b32   :  { %v18016_v45 = vadd.f32 %v3514_v43, %v18011_v15 }
0x1b33   :  { %v3516_v1 = vpop.f32.mrf.mxu1  ;;  %v18084_v0 = vpop.f32.mrf.mxu0 }
0x1b34   :  { %v18019_v46 = vadd.f32 %v3516_v1, %v18013_v18 }
0x1b35   :  { %v18021_v16 = vpop.f32.mrf.mxu1  ;;  %v18086_v3 = vpop.f32.mrf.mxu0 }
0x1b37   :  { %v18023_v48 = vpop.f32.mrf.mxu1 }
0x1b39   :  { %v15946_v52 = vpop.f32.mrf.mxu1 }
0x1b3a   :  { %v18031_v19 = vadd.f32 %v15946_v52, %v18028_v55 }
0x1b3b   :  { %v3732_v51 = vpop.f32.mrf.mxu1 }
0x1b3c   :  { %v18034_v24 = vadd.f32 %v18028_v55, %v3732_v51  ;;  %3745 = vrot.lane.b32.xlu1 %v18031_v19, %s17127_s30 }
0x1b3e   :  { %15951 = vmatprep.mubr.msk.f32.mxu1 %vm396_vm5, %v18034_v24 }
0x1b40   :  { %3743 = vrot.lane.b32.xlu1 %v18034_v24, %s17127_s30 }
0x1bae   :  { %v3746_v26 = vpop.permute.xlu1 %3745 }
0x1baf   :  { %15947 = vmatprep.subr.msk.mxu1 %vm396_vm5, %v3746_v26 }
0x1bb0   :  { %15948 = vmatpush3.xpose.msk.msra.mxu1 %vm396_vm5, %v3746_v26 }
0x1bb2   :  { %v3744_v28 = vpop.permute.xlu1 %3743 }
0x1bb3   :  { %15949 = vmatprep.subr.msk.mxu1 %vm396_vm5, %v3744_v28 }
0x1bb4   :  { %15950 = vmatpush3.xpose.msk.msra.mxu1 %vm396_vm5, %v3744_v28 }
0x1bb7   :  { %15952 = vmatmul.mubr.msk.f32.vlgmr.msra.gmra.mxu1 %vm396_vm5, %v18031_v19 }
0x1c77   :  { %v15953_v30 = vpop.f32.mrf.mxu1 }
0x1c78   :  { %v3831_v31 = vmul.f32 0.35355338, %v15953_v30 }
0x1c79   :  { %v3821_v33 = vpop.f32.mrf.mxu1 }
0x1c7a   :  { %v3833_v34 = vadd.f32 %v3831_v31, %v18051_v49  ;;  %v3830_v35 = vmul.f32 0.35355338, %v3821_v33 }
0x1c7c   :  { %v3832_v36 = vadd.f32 %v3830_v35, %v18056_v32  ;;  %v3837_v37 = vsel %vm484_vm6, %v3833_v34, -inf }
0x1c7d   :  { %3838 = vmax.xlane.f32.xlu1 %v3837_v37 }
0x1c7e   :  { %v3834_v38 = vsel %vm484_vm6, %v3832_v36, -inf }
0x1c7f   :  { %3835 = vmax.xlane.f32.xlu0 %v3834_v38 }
0x1c8e   :  { %3856 = vrot.lane.b32.xlu1 %v18034_v24, %s17130_s28 }
0x1c92   :  { %3949 = vrot.lane.b32.xlu1 %v18031_v19, %s17128_s22 }
0x1c96   :  { %3947 = vrot.lane.b32.xlu1 %v18034_v24, %s17128_s22 }
0x1c9a   :  { %3945 = vrot.lane.b32.xlu1 %v18031_v19, %s17129_s23 }
0x1d06   :  { %v3839_v39 = vpop.xlane.xlu1 %3838 }
0x1d07   :  { %v3841_v40 = vsub.f32 %v3833_v34, %v3839_v39 }
0x1d08   :  { %v3836_v42 = vpop.xlane.xlu0 %3835 }
0x1d09   :  { %v3844_v21 = vmul.f32 1.442695, %v3841_v40  ;;  %v3840_v20 = vsub.f32 %v3832_v36, %v3836_v42 }
0x1d0a   :  { %v3857_v54 = vpop.permute.xlu1 %3856 }
0x1d0b   :  { %16798 = vpow2.f32 %v3844_v21  ;;  %v3842_v53 = vmul.f32 1.442695, %v3840_v20 }
0x1d0d   :  { %16800 = vpow2.f32 %v3842_v53 }
0x1d0e   :  { %v3950_v58 = vpop.permute.xlu1 %3949 }
0x1d12   :  { %v3948_v62 = vpop.permute.xlu1 %3947 }
0x1d16   :  { %v3946_v9 = vpop.permute.xlu1 %3945 }
0x1d18   :  { %v16799_v44 = vpop.eup %16798 }
0x1d19   :  { %v3849_v17 = vsel %vm484_vm6, %v16799_v44, 0.0 }
0x1d1a   :  { %v16801_v41 = vpop.eup %16800  ;;  %3850 = vadd.xlane.f32.xlu0 %v3849_v17 }
0x1d1b   :  { %v3846_v23 = vsel %vm484_vm6, %v16801_v41, 0.0 }
0x1d1e   :  { %3847 = vadd.xlane.f32.xlu0 %v3846_v23 }
0x1d34   :  { %3858 = vrot.lane.b32.xlu0 %v18031_v19, %s17130_s28 }
0x1d38   :  { %3943 = vrot.lane.b32.xlu0 %v18034_v24, %s17129_s23 }
0x1da3   :  { %v3851_v50 = vpop.xlane.xlu0 %3850 }
0x1da4   :  { %16802 = vrcp.f32 %v3851_v50 }
0x1da7   :  { %v3848_v27 = vpop.xlane.xlu0 %3847 }
0x1da8   :  { %16804 = vrcp.f32 %v3848_v27 }
0x1dab   :  { %v3859_v56 = vpop.permute.xlu0 %3858 }
0x1dac   :  { %15954 = vmatprep.subr.mxu0 %v3859_v56 }
0x1dad   :  { %15955 = vmatpush3.msra.mxu0 %v3859_v56 }
0x1dae   :  { %15956 = vmatprep.subr.mxu0 %v3857_v54 }
0x1daf   :  { %15957 = vmatpush3.msra.mxu0 %v3857_v54  ;;  %v3944_v61 = vpop.permute.xlu0 %3943 }
0x1db0   :  { %15961 = vmatprep.subr.msk.mxu0 %vm396_vm5, %v3950_v58 }
0x1db1   :  { %v16803_v22 = vpop.eup %16802 }
0x1db2   :  { %v3855_v57 = vmul.f32 %v16803_v22, %v16799_v44 }
0x1db5   :  { %v16805_v14 = vpop.eup %16804 }
0x1db6   :  { %v3854_v60 = vmul.f32 %v16805_v14, %v16801_v41 }
0x1db8   :  { %15958 = vmatprep.mubr.msk.f32.mxu0 %vm484_vm6, %v3854_v60 }
0x1db9   :  { %15959 = vmatmul.mubr.msk.f32.vlgmr.msra.gmra.mxu0 %vm484_vm6, %v3855_v57 }
0x1dba   :  { %15962 = vmatpush3.xpose.msk.msra.mxu0 %vm396_vm5, %v3950_v58  ;;  %15965 = vmatprep.mubr.msk.f32.mxu0 %vm396_vm5, %v3944_v61 }
0x1dbb   :  { %15963 = vmatprep.subr.msk.mxu0 %vm396_vm5, %v3948_v62 }
0x1dbe   :  { %15964 = vmatpush3.xpose.msk.msra.mxu0 %vm396_vm5, %v3948_v62 }
0x1dc1   :  { %15966 = vmatmul.mubr.msk.f32.vlgmr.msra.gmra.mxu0 %vm396_vm5, %v3946_v9 }
0x1e79   :  { %v18088_v5 = vpop.f32.mrf.mxu0 }
0x1e7b   :  { %v3934_v7 = vpop.f32.mrf.mxu0 }
0x1e7c   :  { %15982 = vmatprep.mubr.msk.f32.mxu0 %vm396_vm5, %v3934_v7 }
0x1e81   :  { %v15967_v10 = vpop.f32.mrf.mxu0 }
0x1e82   :  { %v4035_v11 = vmul.f32 0.35355338, %v15967_v10 }
0x1e83   :  { %v4025_v12 = vpop.f32.mrf.mxu0 }
0x1e84   :  { %v4037_v4 = vadd.f32 %v4035_v11, %v18051_v49  ;;  %v4034_v2 = vmul.f32 0.35355338, %v4025_v12 }
0x1e86   :  { %v4041_v47 = vsel %vm484_vm6, %v4037_v4, -inf  ;;  %v4036_v43 = vadd.f32 %v4034_v2, %v18056_v32 }
0x1e87   :  { %4042 = vmax.xlane.f32.xlu1 %v4041_v47 }
0x1e88   :  { %v4038_v1 = vsel %vm484_vm6, %v4036_v43, -inf }
0x1e89   :  { %4039 = vmax.xlane.f32.xlu0 %v4038_v1 }
0x1e98   :  { %4060 = vrot.lane.b32.xlu1 %v18034_v24, %s17131_s29 }
0x1e9c   :  { %4148 = vrot.lane.b32.xlu1 %v17985_v63, %s17136_s1 }
0x1ea0   :  { %4323 = vrot.lane.b32.xlu1 %v18031_v19, %s17132_s0 }
0x1ea4   :  { %4317 = vrot.lane.b32.xlu1 %v18034_v24, %s17133_s6 }
0x1ea8   :  { %4614 = vrot.lane.b32.xlu1 %v18031_v19, %s19779_s8 }
0x1eac   :  { %4608 = vrot.lane.b32.xlu1 %v18034_v24, %s19780_s27 }
0x1f10   :  { %v4043_v52 = vpop.xlane.xlu1 %4042 }
0x1f11   :  { %v4045_v51 = vsub.f32 %v4037_v4, %v4043_v52 }
0x1f12   :  { %v4040_v26 = vpop.xlane.xlu0 %4039 }
0x1f13   :  { %v4048_v28 = vmul.f32 1.442695, %v4045_v51  ;;  %v4044_v30 = vsub.f32 %v4036_v43, %v4040_v26 }
0x1f14   :  { %v4061_v38 = vpop.permute.xlu1 %4060 }
0x1f15   :  { %16806 = vpow2.f32 %v4048_v28  ;;  %v4046_v31 = vmul.f32 1.442695, %v4044_v30 }
0x1f17   :  { %16808 = vpow2.f32 %v4046_v31 }
0x1f18   :  { %v4149_v40 = vpop.permute.xlu1 %4148 }
0x1f1c   :  { %v4324_v44 = vpop.permute.xlu1 %4323 }
0x1f20   :  { %v4318_v17 = vpop.permute.xlu1 %4317 }
0x1f22   :  { %v16807_v63 = vpop.eup %16806 }
0x1f23   :  { %v4053_v33 = vsel %vm484_vm6, %v16807_v63, 0.0 }
0x1f24   :  { %v16809_v34 = vpop.eup %16808  ;;  %4054 = vadd.xlane.f32.xlu0 %v4053_v33  ;;  %v4615_v27 = vpop.permute.xlu1 %4614 }
0x1f25   :  { %v4050_v35 = vsel %vm484_vm6, %v16809_v34, 0.0 }
0x1f28   :  { %4051 = vadd.xlane.f32.xlu0 %v4050_v35  ;;  %v4609_v56 = vpop.permute.xlu1 %4608 }
0x1f3e   :  { %4062 = vrot.lane.b32.xlu0 %v18031_v19, %s17131_s29 }
0x1f42   :  { %4321 = vrot.lane.b32.xlu0 %v18034_v24, %s17132_s0 }
0x1f46   :  { %4319 = vrot.lane.b32.xlu0 %v18031_v19, %s17133_s6 }
0x1f4a   :  { %4612 = vrot.lane.b32.xlu0 %v18034_v24, %s19779_s8 }
0x1f4e   :  { %4610 = vrot.lane.b32.xlu0 %v18031_v19, %s19780_s27 }
0x1fad   :  { %v4055_v36 = vpop.xlane.xlu0 %4054 }
0x1fae   :  { %16810 = vrcp.f32 %v4055_v36 }
0x1fb1   :  { %v4052_v37 = vpop.xlane.xlu0 %4051 }
0x1fb2   :  { %16812 = vrcp.f32 %v4052_v37 }
0x1fb5   :  { %v4063_v39 = vpop.permute.xlu0 %4062 }
0x1fb6   :  { %15968 = vmatprep.subr.mxu1 %v4063_v39 }
0x1fb7   :  { %15969 = vmatpush3.msra.mxu1 %v4063_v39 }
0x1fb8   :  { %15970 = vmatprep.subr.mxu1 %v4061_v38 }
0x1fb9   :  { %15971 = vmatpush3.msra.mxu1 %v4061_v38  ;;  %v4322_v23 = vpop.permute.xlu0 %4321 }
0x1fba   :  { %15975 = vmatprep.subr.mxu1 %v4149_v40 }
0x1fbb   :  { %v16811_v42 = vpop.eup %16810 }
0x1fbc   :  { %v4059_v53 = vmul.f32 %v16811_v42, %v16807_v63 }
0x1fbd   :  { %v4320_v54 = vpop.permute.xlu0 %4319 }
0x1fbf   :  { %v16813_v21 = vpop.eup %16812 }
0x1fc0   :  { %v4058_v20 = vmul.f32 %v16813_v21, %v16809_v34 }
0x1fc1   :  { %v4613_v58 = vpop.permute.xlu0 %4612 }
0x1fc2   :  { %15972 = vmatprep.mubr.msk.f32.mxu1 %vm484_vm6, %v4058_v20 }
0x1fc3   :  { %15973 = vmatmul.mubr.msk.f32.vlgmr.msra.gmra.mxu1 %vm484_vm6, %v4059_v53 }
0x1fc4   :  { %15976 = vmatpush3.msra.mxu1 %v4149_v40 }
0x1fc5   :  { %15985 = vmatprep.subr.msk.mxu1 %vm396_vm5, %v4324_v44  ;;  %v4611_v22 = vpop.permute.xlu0 %4610 }
0x2083   :  { %v15974_v41 = vpop.f32.mrf.mxu1 }
0x2085   :  { %v4138_v50 = vpop.f32.mrf.mxu1 }
0x2086   :  { %15977 = vmatprep.mubr.msk.f32.mxu1 %vm396_vm5, %v4138_v50 }
0x2087   :  { %15978 = vmatmul.mubr.msk.f32.vlgmr.msra.gmra.mxu1 %vm396_vm5, %v15974_v41 }
0x2088   :  { %15986 = vmatpush3.xpose.msk.msra.mxu1 %vm396_vm5, %v4324_v44  ;;  %15989 = vmatprep.mubr.msk.f32.mxu1 %vm396_vm5, %v4318_v17 }
0x2089   :  { %15987 = vmatprep.subr.msk.mxu1 %vm396_vm5, %v4322_v23 }
0x208c   :  { %15988 = vmatpush3.xpose.msk.msra.mxu1 %vm396_vm5, %v4322_v23 }
0x208d   :  { %16004 = vmatprep.subr.msk.mxu1 %vm396_vm5, %v4615_v27 }
0x208f   :  { %15990 = vmatmul.mubr.msk.f32.vlgmr.msra.gmra.mxu1 %vm396_vm5, %v4320_v54 }
0x2090   :  { %16005 = vmatpush3.xpose.msk.msra.mxu1 %vm396_vm5, %v4615_v27  ;;  %16008 = vmatprep.mubr.msk.f32.mxu1 %vm396_vm5, %v4609_v56 }
0x2091   :  { %16006 = vmatprep.subr.msk.mxu1 %vm396_vm5, %v4613_v58 }
0x2094   :  { %16007 = vmatpush3.xpose.msk.msra.mxu1 %vm396_vm5, %v4613_v58 }
0x2097   :  { %16009 = vmatmul.mubr.msk.f32.vlgmr.msra.gmra.mxu1 %vm396_vm5, %v4611_v22 }
0x2147   :  { %v18135_v14 = vpop.f32.mrf.mxu1 }
0x2149   :  { %v18137_v60 = vpop.f32.mrf.mxu1 }
0x214f   :  { %v15991_v57 = vpop.f32.mrf.mxu1 }
0x2150   :  { %v4409_v61 = vmul.f32 0.35355338, %v15991_v57 }
0x2151   :  { %v4399_v62 = vpop.f32.mrf.mxu1 }
0x2152   :  { %v4411_v9 = vadd.f32 %v4409_v61, %v18051_v49  ;;  %v4408_v7 = vmul.f32 0.35355338, %v4399_v62 }
0x2154   :  { %v4410_v10 = vadd.f32 %v4408_v7, %v18056_v32  ;;  %v4415_v11 = vsel %vm484_vm6, %v4411_v9, -inf }
0x2155   :  { %4416 = vmax.xlane.f32.xlu0 %v4415_v11 }
0x2156   :  { %v4412_v12 = vsel %vm484_vm6, %v4410_v10, -inf }
0x2157   :  { %4413 = vmax.xlane.f32.xlu1 %v4412_v12  ;;  %v16010_v4 = vpop.f32.mrf.mxu1 }
0x2158   :  { %v4700_v39 = vmul.f32 0.35355338, %v16010_v4  ;;  %v18176_v4 = vadd.f32 %v18021_v16, %v18011_v15 }
0x2159   :  { %v4690_v2 = vpop.f32.mrf.mxu1 }
0x215a   :  { %v4699_v47 = vmul.f32 0.35355338, %v4690_v2  ;;  %v4702_v40 = vadd.f32 %v4700_v39, %v18051_v49  ;;  %v18225_v39 = vld [vmem:[%s19750_s9 + $0x70] sm:$0xff] }
0x215c   :  { %v4701_v43 = vadd.f32 %v4699_v47, %v18056_v32 }
0x215e   :  { %v4703_v1 = vsel %vm484_vm6, %v4701_v43, -inf }
0x2168   :  { %4233 = vrot.lane.b32.xlu1 %v17994_v8, %s17136_s1 }
0x216c   :  { %4434 = vrot.lane.b32.xlu1 %v18034_v24, %s19777_s26 }
0x2190   :  { %4704 = vmax.xlane.f32.xlu1 %v4703_v1 }
0x21de   :  { %v4417_v52 = vpop.xlane.xlu0 %4416 }
0x21df   :  { %v4419_v51 = vsub.f32 %v4411_v9, %v4417_v52 }
0x21e0   :  { %v4414_v26 = vpop.xlane.xlu1 %4413 }
0x21e1   :  { %v4422_v28 = vmul.f32 1.442695, %v4419_v51  ;;  %v4418_v30 = vsub.f32 %v4410_v10, %v4414_v26 }
0x21e3   :  { %16814 = vpow2.f32 %v4422_v28  ;;  %v4420_v31 = vmul.f32 1.442695, %v4418_v30 }
0x21e4   :  { %v4234_v63 = vpop.permute.xlu1 %4233 }
0x21e5   :  { %16816 = vpow2.f32 %v4420_v31  ;;  %15980 = vmatprep.subr.mxu0 %v4234_v63 }
0x21e6   :  { %15981 = vmatpush3.msra.mxu0 %v4234_v63 }
0x21e7   :  { %15983 = vmatmul.mubr.msk.f32.vlgmr.msra.gmra.mxu0 %vm396_vm5, %v18088_v5  ;;  %v4706_v5 = vsel %vm484_vm6, %v4702_v40, -inf }
0x21e8   :  { %v4435_v35 = vpop.permute.xlu1 %4434 }
0x21f0   :  { %v16815_v8 = vpop.eup %16814 }
0x21f1   :  { %v4427_v32 = vsel %vm484_vm6, %v16815_v8, 0.0 }
0x21f2   :  { %v16817_v33 = vpop.eup %16816  ;;  %4428 = vadd.xlane.f32.xlu0 %v4427_v32 }
0x21f3   :  { %v4424_v34 = vsel %vm484_vm6, %v16817_v33, 0.0 }
0x21f6   :  { %4425 = vadd.xlane.f32.xlu0 %v4424_v34 }
0x220c   :  { %4436 = vrot.lane.b32.xlu0 %v18031_v19, %s19777_s26 }
0x2219   :  { %v4705_v36 = vpop.xlane.xlu1 %4704 }
0x221a   :  { %v4709_v37 = vsub.f32 %v4701_v43, %v4705_v36 }
0x221c   :  { %v4711_v38 = vmul.f32 1.442695, %v4709_v37  ;;  %v14743_v37 = vld [vmem:[%s19757_s16 + $0x6] ss:$0 sm:$0xff] }
0x221e   :  { %16818 = vpow2.f32 %v4711_v38  ;;  %v18218_v38 = vld [vmem:[%s19750_s9 + $0x78] sm:$0xff] }
0x221f   :  { %16023 = vmatprep.subr.mxu1 %v18218_v38 }
0x2220   :  { %16024 = vmatpush3.msra.mxu1 %v18218_v38 }
0x2221   :  { %16025 = vmatprep.subr.mxu1 %v18225_v39 }
0x2222   :  { %16026 = vmatpush3.msra.mxu1 %v18225_v39 }
0x222b   :  { %v16819_v42 = vpop.eup %16818  ;;  %4707 = vmax.xlane.f32.xlu0 %v4706_v5  ;;  %v18237_v5 = vld [vmem:[%s19750_s9 + $0x60] sm:$0xff] }
0x222c   :  { %v4715_v21 = vsel %vm484_vm6, %v16819_v42, 0.0 }
0x222f   :  { %4716 = vadd.xlane.f32.xlu0 %v4715_v21 }
0x2245   :  { %4522 = vrot.lane.b32.xlu0 %v17971_v59, %s17136_s1 }
0x2249   :  { %4899 = vrot.lane.b32.xlu0 %v18028_v55, %s17136_s1 }
0x227b   :  { %v4429_v20 = vpop.xlane.xlu0 %4428 }
0x227c   :  { %16820 = vrcp.f32 %v4429_v20 }
0x227f   :  { %v4426_v53 = vpop.xlane.xlu0 %4425 }
0x2280   :  { %16822 = vrcp.f32 %v4426_v53 }
0x2283   :  { %v4437_v44 = vpop.permute.xlu0 %4436 }
0x2284   :  { %15992 = vmatprep.subr.mxu0 %v4437_v44 }
0x2285   :  { %15993 = vmatpush3.msra.mxu0 %v4437_v44 }
0x2286   :  { %15994 = vmatprep.subr.mxu0 %v4435_v35 }
0x2287   :  { %15995 = vmatpush3.msra.mxu0 %v4435_v35 }
0x2289   :  { %v16821_v49 = vpop.eup %16820 }
0x228a   :  { %v4433_v23 = vmul.f32 %v16821_v49, %v16815_v8 }
0x228d   :  { %v16823_v17 = vpop.eup %16822 }
0x228e   :  { %v4432_v41 = vmul.f32 %v16823_v17, %v16817_v33 }
0x2290   :  { %15996 = vmatprep.mubr.msk.f32.mxu0 %vm484_vm6, %v4432_v41 }
0x2291   :  { %15997 = vmatmul.mubr.msk.f32.vlgmr.msra.gmra.mxu0 %vm484_vm6, %v4433_v23 }
0x22a7   :  { %v15984_v22 = vpop.f32.mrf.mxu0 }
0x22a8   :  { %v4314_v2 = vadd.f32 %v15984_v22, %v18135_v14 }
0x22a9   :  { %v4308_v57 = vpop.f32.mrf.mxu0 }
0x22aa   :  { %v4309_v15 = vadd.f32 %v4308_v57, %v18137_v60 }
0x22b4   :  { %v4708_v59 = vpop.xlane.xlu0 %4707 }
0x22b5   :  { %v4710_v50 = vsub.f32 %v4702_v40, %v4708_v59  ;;  %v18230_v40 = vld [vmem:[%s19750_s9 + $0x68] sm:$0xff] }
0x22b6   :  { %16027 = vmatprep.subr.mxu1 %v18230_v40 }
0x22b7   :  { %v4713_v55 = vmul.f32 1.442695, %v4710_v50  ;;  %16028 = vmatpush3.msra.mxu1 %v18230_v40 }
0x22b8   :  { %v4717_v56 = vpop.xlane.xlu0 %4716  ;;  %16029 = vmatprep.subr.mxu1 %v18237_v5 }
0x22b9   :  { %16824 = vpow2.f32 %v4713_v55  ;;  %16030 = vmatpush3.msra.mxu1 %v18237_v5 }
0x22ba   :  { %16826 = vrcp.f32 %v4717_v56 }
0x22bc   :  { %v4523_v58 = vpop.permute.xlu0 %4522 }
0x22bd   :  { %15999 = vmatprep.subr.mxu0 %v4523_v58 }
0x22be   :  { %16000 = vmatpush3.msra.mxu0 %v4523_v58 }
0x22c0   :  { %v4900_v14 = vpop.permute.xlu0 %4899 }
0x22c6   :  { %v16825_v27 = vpop.eup %16824 }
0x22c7   :  { %v4718_v54 = vsel %vm484_vm6, %v16825_v27, 0.0  ;;  %v16827_v61 = vpop.eup %16826 }
0x22c8   :  { %4719 = vadd.xlane.f32.xlu1 %v4718_v54  ;;  %v4723_v10 = vmul.f32 %v16827_v61, %v16819_v42 }
0x22d9   :  { %4727 = vrot.lane.b32.xlu1 %v18031_v19, %s19778_s2 }
0x22dd   :  { %4725 = vrot.lane.b32.xlu1 %v18034_v24, %s19778_s2 }
0x22e1   :  { %4813 = vrot.lane.b32.xlu1 %v17952_v6, %s17136_s1 }
0x2351   :  { %v15998_v62 = vpop.f32.mrf.mxu0  ;;  %v4720_v9 = vpop.xlane.xlu1 %4719 }
0x2352   :  { %16828 = vrcp.f32 %v4720_v9 }
0x2353   :  { %v4512_v7 = vpop.f32.mrf.mxu0 }
0x2354   :  { %16001 = vmatprep.mubr.msk.f32.mxu0 %vm396_vm5, %v4512_v7 }
0x2355   :  { %v4728_v11 = vpop.permute.xlu1 %4727  ;;  %16002 = vmatmul.mubr.msk.f32.vlgmr.msra.gmra.mxu0 %vm396_vm5, %v15998_v62 }
0x2356   :  { %16011 = vmatprep.subr.mxu0 %v4728_v11  ;;  %16015 = vmatprep.mubr.msk.f32.mxu0 %vm484_vm6, %v4723_v10 }
0x2357   :  { %16012 = vmatpush3.msra.mxu0 %v4728_v11 }
0x2359   :  { %v4726_v19 = vpop.permute.xlu1 %4725 }
0x235a   :  { %16013 = vmatprep.subr.mxu0 %v4726_v19 }
0x235b   :  { %16014 = vmatpush3.msra.mxu0 %v4726_v19 }
0x235d   :  { %v4814_v6 = vpop.permute.xlu1 %4813 }
0x235e   :  { %16018 = vmatprep.subr.mxu0 %v4814_v6 }
0x235f   :  { %v16829_v24 = vpop.eup %16828 }
0x2360   :  { %v4724_v12 = vmul.f32 %v16829_v24, %v16825_v27 }
0x2362   :  { %16016 = vmatmul.mubr.msk.f32.vlgmr.msra.gmra.mxu0 %vm484_vm6, %v4724_v12 }
0x2363   :  { %16019 = vmatpush3.msra.mxu0 %v4814_v6 }
0x2364   :  { %16034 = vmatprep.subr.msk.mxu0 %vm396_vm5, %v18176_v4 }
0x2415   :  { %v16003_v47 = vpop.f32.mrf.mxu0 }
0x2416   :  { %v4607_v43 = vadd.f32 %v16003_v47, %v4314_v2  ;;  %v18251_v47 = vld [vmem:[%s19751_s10 + $0x3] ss:$0 sm:$0xff] }
0x2417   :  { %v4597_v1 = vpop.f32.mrf.mxu0 }
0x2418   :  { %v4606_v26 = vadd.f32 %v4597_v1, %v4309_v15 }
0x2422   :  { %v16017_v52 = vpop.f32.mrf.mxu0 }
0x2424   :  { %v4803_v51 = vpop.f32.mrf.mxu0 }
0x2425   :  { %16020 = vmatprep.mubr.msk.f32.mxu0 %vm396_vm5, %v4803_v51 }
0x2426   :  { %16021 = vmatmul.mubr.msk.f32.vlgmr.msra.gmra.mxu0 %vm396_vm5, %v16017_v52 }
0x2427   :  { %16035 = vmatpush3.xpose.msk.msra.mxu0 %vm396_vm5, %v18176_v4 }
0x2428   :  { %16036 = vmatprep.subr.msk.mxu0 %vm396_vm5, %v18016_v45 }
0x242b   :  { %16037 = vmatpush3.xpose.msk.msra.mxu0 %vm396_vm5, %v18016_v45 }
0x24e6   :  { %v16022_v16 = vpop.f32.mrf.mxu0 }
0x24e7   :  { %v4898_v28 = vadd.f32 %v16022_v16, %v4607_v43 }
0x24e8   :  { %v4888_v30 = vpop.f32.mrf.mxu0 }
0x24e9   :  { %v4897_v31 = vadd.f32 %v4888_v30, %v4606_v26  ;;  %v4903_v63 = vadd.f32 %v4900_v14, %v4898_v28  ;;  %v18280_v30 = vld [vmem:[%s19744_s3] sm:$0xff] }
0x24eb   :  { %v4902_v8 = vadd.f32 %v4900_v14, %v4897_v31  ;;  %v18192_v32 = vadd.f32 %v4903_v63, %v17817_v25  ;;  %v18275_v14 = vld [vmem:[%s19744_s3 + $0x8] sm:$0xff] }
0x24ed   :  { %v18195_v33 = vadd.f32 %v4902_v8, %v17813_v29  ;;  %v4911_v34 = vsel %vm251_vm2, %v18192_v32, 0.0  ;;  %v4917_v25 = vmul.f32 %v18192_v32, %v18192_v32 }
0x24ee   :  { %4912 = vadd.xlane.f32.xlu0 %v4911_v34 }
0x24ef   :  { %v4908_v60 = vsel %vm251_vm2, %v18195_v33, 0.0  ;;  %v4916_v35 = vmul.f32 %v18195_v33, %v18195_v33  ;;  %v4921_v29 = vsel %vm251_vm2, %v4917_v25, 0.0 }
0x24f0   :  { %4909 = vadd.xlane.f32.xlu1 %v4908_v60 }
0x24f1   :  { %v4918_v36 = vsel %vm251_vm2, %v4916_v35, 0.0 }
0x24f2   :  { %4919 = vadd.xlane.f32.xlu0 %v4918_v36 }
0x24f6   :  { %4922 = vadd.xlane.f32.xlu0 %v4921_v29 }
0x2501   :  { %4948 = vrot.lane.b32.xlu1 %v14743_v37, %s17127_s30 }
0x2505   :  { %5251 = vrot.lane.b32.xlu1 %v18016_v45, %s17129_s23 }
0x250c   :  { %5253 = vrot.lane.b32.xlu0 %v18176_v4, %s17129_s23 }
0x2577   :  { %v4913_v42 = vpop.xlane.xlu0 %4912 }
0x2578   :  { %v4915_v44 = vmul.f32 0.03125, %v4913_v42 }
0x2579   :  { %v4910_v21 = vpop.xlane.xlu1 %4909 }
0x257a   :  { %v4914_v20 = vmul.f32 0.03125, %v4910_v21  ;;  %v4927_v59 = vmul.f32 %v4915_v44, %v4915_v44  ;;  %v4933_v9 = vsub.f32 %v18192_v32, %v4915_v44 }
0x257b   :  { %v4920_v53 = vpop.xlane.xlu0 %4919 }
0x257c   :  { %v4926_v49 = vmul.f32 %v4914_v20, %v4914_v20  ;;  %v4924_v17 = vmul.f32 0.03125, %v4920_v53  ;;  %v4932_v57 = vsub.f32 %v18195_v33, %v4914_v20 }
0x257d   :  { %v4949_v11 = vpop.permute.xlu1 %4948 }
0x257e   :  { %v4928_v41 = vsub.f32 %v4924_v17, %v4926_v49 }
0x257f   :  { %v4923_v23 = vpop.xlane.xlu0 %4922 }
0x2580   :  { %v4930_v50 = vmax.f32 %v4928_v41, 0.0  ;;  %v4925_v55 = vmul.f32 0.03125, %v4923_v23 }
0x2581   :  { %v5252_v51 = vpop.permute.xlu1 %5251 }
0x2582   :  { %v4934_v27 = vadd.f32 1e-06, %v4930_v50  ;;  %v4929_v54 = vsub.f32 %v4925_v55, %v4927_v59 }
0x2583   :  { %v5254_v56 = vpop.permute.xlu0 %5253 }
0x2584   :  { %16830 = vrsqrt.f32 %v4934_v27  ;;  %v4931_v58 = vmax.f32 %v4929_v54, 0.0  ;;  %16048 = vmatprep.subr.msk.mxu0 %vm396_vm5, %v5254_v56 }
0x2586   :  { %v4935_v22 = vadd.f32 1e-06, %v4931_v58 }
0x2588   :  { %16832 = vrsqrt.f32 %v4935_v22 }
0x2591   :  { %v16831_v61 = vpop.eup %16830 }
0x2592   :  { %v4938_v62 = vmul.f32 %v16831_v61, %v4932_v57 }
0x2594   :  { %v4946_v7 = vmul.f32 %v14743_v37, %v4938_v62 }
0x2595   :  { %v16833_v10 = vpop.eup %16832 }
0x2596   :  { %v4951_v19 = vadd.f32 %v4949_v11, %v4946_v7  ;;  %v4939_v6 = vmul.f32 %v16833_v10, %v4933_v9 }
0x2598   :  { %16031 = vmatprep.mubr.msk.f32.mxu1 %vm251_vm2, %v4951_v19  ;;  %v4947_v24 = vmul.f32 %v14743_v37, %v4939_v6 }
0x259a   :  { %v4952_v12 = vadd.f32 %v4949_v11, %v4947_v24 }
0x259c   :  { %16032 = vmatmul.mubr.msk.f32.vlgmr.msra.gmra.mxu1 %vm251_vm2, %v4952_v12 }
0x265c   :  { %v16033_v2 = vpop.f32.mrf.mxu1 }
0x265d   :  { %v18257_v52 = vadd.f32 %v16033_v2, %v18251_v47 }
0x265e   :  { %v5038_v43 = vpop.f32.mrf.mxu1 }
0x265f   :  { %v18254_v1 = vadd.f32 %v18251_v47, %v5038_v43 }
0x2661   :  { %5247 = vrot.lane.b32.xlu1 %v18254_v1, %s17129_s23  ;;  %16038 = vmatprep.mubr.msk.f32.mxu0 %vm396_vm5, %v18254_v1 }
0x2662   :  { %16039 = vmatmul.mubr.msk.f32.vlgmr.msra.gmra.mxu0 %vm396_vm5, %v18257_v52 }
0x2663   :  { %16049 = vmatpush3.xpose.msk.msra.mxu0 %vm396_vm5, %v5254_v56 }
0x2664   :  { %16050 = vmatprep.subr.msk.mxu0 %vm396_vm5, %v5252_v51 }
0x2665   :  { %5249 = vrot.lane.b32.xlu1 %v18257_v52, %s17129_s23 }
0x2667   :  { %16051 = vmatpush3.xpose.msk.msra.mxu0 %vm396_vm5, %v5252_v51 }
0x26d3   :  { %v5248_v15 = vpop.permute.xlu1 %5247 }
0x26d4   :  { %16052 = vmatprep.mubr.msk.f32.mxu0 %vm396_vm5, %v5248_v15 }
0x26d7   :  { %v5250_v16 = vpop.permute.xlu1 %5249 }
0x26d8   :  { %16053 = vmatmul.mubr.msk.f32.vlgmr.msra.gmra.mxu0 %vm396_vm5, %v5250_v16 }
0x2722   :  { %v16040_v26 = vpop.f32.mrf.mxu0 }
0x2723   :  { %v5135_v28 = vmul.f32 0.35355338, %v16040_v26 }
0x2724   :  { %v5125_v31 = vpop.f32.mrf.mxu0 }
0x2725   :  { %v5137_v63 = vadd.f32 %v5135_v28, %v18275_v14  ;;  %v5134_v8 = vmul.f32 0.35355338, %v5125_v31 }
0x2727   :  { %v5136_v34 = vadd.f32 %v5134_v8, %v18280_v30  ;;  %v5141_v60 = vsel %vm484_vm6, %v5137_v63, -inf }
0x2728   :  { %5142 = vmax.xlane.f32.xlu1 %v5141_v60 }
0x2729   :  { %v5138_v35 = vsel %vm484_vm6, %v5136_v34, -inf }
0x272a   :  { %5139 = vmax.xlane.f32.xlu0 %v5138_v35 }
0x2798   :  { %v16054_v36 = vpop.f32.mrf.mxu0 }
0x2799   :  { %v5339_v29 = vmul.f32 0.35355338, %v16054_v36 }
0x279a   :  { %v5329_v25 = vpop.f32.mrf.mxu0 }
0x279b   :  { %v5338_v37 = vmul.f32 0.35355338, %v5329_v25  ;;  %v5341_v21 = vadd.f32 %v5339_v29, %v18275_v14 }
0x279d   :  { %v5340_v42 = vadd.f32 %v5338_v37, %v18280_v30  ;;  %v5345_v53 = vsel %vm484_vm6, %v5341_v21, -inf }
0x279f   :  { %v5342_v20 = vsel %vm484_vm6, %v5340_v42, -inf }
0x27a0   :  { %5343 = vmax.xlane.f32.xlu0 %v5342_v20 }
0x27a4   :  { %5346 = vmax.xlane.f32.xlu0 %v5345_v53 }
0x27b1   :  { %v5143_v44 = vpop.xlane.xlu1 %5142 }
0x27b2   :  { %v5145_v49 = vsub.f32 %v5137_v63, %v5143_v44 }
0x27b3   :  { %v5140_v17 = vpop.xlane.xlu0 %5139 }
0x27b4   :  { %v5148_v41 = vmul.f32 1.442695, %v5145_v49  ;;  %v5144_v23 = vsub.f32 %v5136_v34, %v5140_v17 }
0x27b6   :  { %16834 = vpow2.f32 %v5148_v41  ;;  %v5146_v59 = vmul.f32 1.442695, %v5144_v23 }
0x27b8   :  { %16836 = vpow2.f32 %v5146_v59 }
0x27c3   :  { %v16835_v50 = vpop.eup %16834 }
0x27c4   :  { %v5153_v55 = vsel %vm484_vm6, %v16835_v50, 0.0 }
0x27c5   :  { %v16837_v27 = vpop.eup %16836  ;;  %5154 = vadd.xlane.f32.xlu1 %v5153_v55 }
0x27c6   :  { %v5150_v54 = vsel %vm484_vm6, %v16837_v27, 0.0 }
0x27c7   :  { %5151 = vadd.xlane.f32.xlu0 %v5150_v54 }
0x2829   :  { %v5344_v56 = vpop.xlane.xlu0 %5343 }
0x282a   :  { %v5348_v58 = vsub.f32 %v5340_v42, %v5344_v56 }
0x282c   :  { %v5350_v22 = vmul.f32 1.442695, %v5348_v58 }
0x282d   :  { %v5347_v57 = vpop.xlane.xlu0 %5346 }
0x282e   :  { %16838 = vpow2.f32 %v5350_v22  ;;  %v5349_v61 = vsub.f32 %v5341_v21, %v5347_v57 }
0x2830   :  { %v5352_v62 = vmul.f32 1.442695, %v5349_v61 }
0x2832   :  { %16840 = vpow2.f32 %v5352_v62 }
0x283b   :  { %v16839_v9 = vpop.eup %16838 }
0x283c   :  { %v5354_v7 = vsel %vm484_vm6, %v16839_v9, 0.0 }
0x283d   :  { %5355 = vadd.xlane.f32.xlu0 %v5354_v7 }
0x283f   :  { %v16841_v10 = vpop.eup %16840 }
0x2840   :  { %v5357_v11 = vsel %vm484_vm6, %v16841_v10, 0.0 }
0x2841   :  { %5358 = vadd.xlane.f32.xlu1 %v5357_v11 }
0x2850   :  { %v5152_v19 = vpop.xlane.xlu0 %5151 }
0x2851   :  { %16842 = vrcp.f32 %v5152_v19 }
0x2852   :  { %5160 = vrot.lane.b32.xlu1 %v18016_v45, %s17127_s30 }
0x2853   :  { %5162 = vrot.lane.b32.xlu0 %v18176_v4, %s17127_s30 }
0x2856   :  { %5366 = vrot.lane.b32.xlu1 %v18176_v4, %s17128_s22 }
0x2857   :  { %5452 = vrot.lane.b32.xlu0 %v18230_v40, %s17136_s1  ;;  %v5155_v40 = vpop.xlane.xlu1 %5154 }
0x2858   :  { %16844 = vrcp.f32 %v5155_v40 }
0x285a   :  { %5364 = vrot.lane.b32.xlu1 %v18016_v45, %s17128_s22 }
0x285b   :  { %5625 = vrot.lane.b32.xlu0 %v18016_v45, %s17133_s6 }
0x285e   :  { %v16843_v6 = vpop.eup %16842  ;;  %5627 = vrot.lane.b32.xlu1 %v18176_v4, %s17133_s6 }
0x285f   :  { %5623 = vrot.lane.b32.xlu0 %v18257_v52, %s17133_s6  ;;  %v5158_v24 = vmul.f32 %v16843_v6, %v16837_v27 }
0x2861   :  { %16045 = vmatprep.mubr.msk.f32.mxu1 %vm484_vm6, %v5158_v24 }
0x2862   :  { %5621 = vrot.lane.b32.xlu1 %v18254_v1, %s17133_s6 }
0x2863   :  { %5916 = vrot.lane.b32.xlu0 %v18016_v45, %s19780_s27 }
0x2865   :  { %v16845_v51 = vpop.eup %16844 }
0x2866   :  { %5918 = vrot.lane.b32.xlu1 %v18176_v4, %s19780_s27  ;;  %v5159_v16 = vmul.f32 %v16845_v51, %v16835_v50 }
0x2867   :  { %5914 = vrot.lane.b32.xlu0 %v18257_v52, %s19780_s27 }
0x286a   :  { %5912 = vrot.lane.b32.xlu1 %v18254_v1, %s19780_s27 }
0x28c6   :  { %v5356_v12 = vpop.xlane.xlu0 %5355 }
0x28c7   :  { %16846 = vrcp.f32 %v5356_v12 }
0x28ca   :  { %v5163_v2 = vpop.permute.xlu0 %5162  ;;  %v5359_v43 = vpop.xlane.xlu1 %5358 }
0x28cb   :  { %16848 = vrcp.f32 %v5359_v43  ;;  %16041 = vmatprep.subr.mxu1 %v5163_v2 }
0x28cc   :  { %16042 = vmatpush3.msra.mxu1 %v5163_v2 }
0x28ce   :  { %v5161_v15 = vpop.permute.xlu1 %5160  ;;  %v5453_v63 = vpop.permute.xlu0 %5452 }
0x28cf   :  { %16043 = vmatprep.subr.mxu1 %v5161_v15 }
0x28d0   :  { %16044 = vmatpush3.msra.mxu1 %v5161_v15 }
0x28d1   :  { %16046 = vmatmul.mubr.msk.f32.vlgmr.msra.gmra.mxu1 %vm484_vm6, %v5159_v16 }
0x28d2   :  { %v5367_v52 = vpop.permute.xlu1 %5366  ;;  %v5626_v29 = vpop.permute.xlu0 %5625 }
0x28d3   :  { %16055 = vmatprep.subr.mxu1 %v5367_v52 }
0x28d4   :  { %v16847_v26 = vpop.eup %16846  ;;  %16056 = vmatpush3.msra.mxu1 %v5367_v52 }
0x28d5   :  { %v5362_v1 = vmul.f32 %v16847_v26, %v16839_v9 }
0x28d6   :  { %v5365_v28 = vpop.permute.xlu1 %5364  ;;  %v5624_v21 = vpop.permute.xlu0 %5623 }
0x28d7   :  { %16057 = vmatprep.subr.mxu1 %v5365_v28  ;;  %16059 = vmatprep.mubr.msk.f32.mxu1 %vm484_vm6, %v5362_v1 }
0x28d8   :  { %v16849_v31 = vpop.eup %16848  ;;  %16058 = vmatpush3.msra.mxu1 %v5365_v28 }
0x28d9   :  { %16062 = vmatprep.subr.mxu1 %v5453_v63  ;;  %v5363_v8 = vmul.f32 %v16849_v31, %v16841_v10 }
0x28da   :  { %v5628_v34 = vpop.permute.xlu1 %5627  ;;  %v5917_v53 = vpop.permute.xlu0 %5916 }
0x28db   :  { %16060 = vmatmul.mubr.msk.f32.vlgmr.msra.gmra.mxu1 %vm484_vm6, %v5363_v8 }
0x28dc   :  { %16063 = vmatpush3.msra.mxu1 %v5453_v63 }
0x28dd   :  { %16072 = vmatprep.subr.msk.mxu1 %vm396_vm5, %v5628_v34 }
0x28de   :  { %v5622_v36 = vpop.permute.xlu1 %5621  ;;  %v5915_v44 = vpop.permute.xlu0 %5914 }
0x28e2   :  { %v5919_v42 = vpop.permute.xlu1 %5918 }
0x28e6   :  { %v5913_v20 = vpop.permute.xlu1 %5912 }
0x2991   :  { %v16047_v60 = vpop.f32.mrf.mxu1 }
0x2993   :  { %v5238_v35 = vpop.f32.mrf.mxu1 }
0x2994   :  { %16069 = vmatprep.mubr.msk.f32.mxu0 %vm396_vm5, %v5238_v35 }
0x299b   :  { %v16061_v25 = vpop.f32.mrf.mxu1 }
0x299d   :  { %v5442_v37 = vpop.f32.mrf.mxu1 }
0x299e   :  { %16064 = vmatprep.mubr.msk.f32.mxu1 %vm396_vm5, %v5442_v37 }
0x299f   :  { %16065 = vmatmul.mubr.msk.f32.vlgmr.msra.gmra.mxu1 %vm396_vm5, %v16061_v25 }
0x29a0   :  { %16073 = vmatpush3.xpose.msk.msra.mxu1 %vm396_vm5, %v5628_v34  ;;  %16076 = vmatprep.mubr.msk.f32.mxu1 %vm396_vm5, %v5622_v36 }
0x29a1   :  { %16074 = vmatprep.subr.msk.mxu1 %vm396_vm5, %v5626_v29 }
0x29a4   :  { %16075 = vmatpush3.xpose.msk.msra.mxu1 %vm396_vm5, %v5626_v29 }
0x29a5   :  { %16091 = vmatprep.subr.msk.mxu1 %vm396_vm5, %v5919_v42 }
0x29a7   :  { %16077 = vmatmul.mubr.msk.f32.vlgmr.msra.gmra.mxu1 %vm396_vm5, %v5624_v21 }
0x29a8   :  { %16092 = vmatpush3.xpose.msk.msra.mxu1 %vm396_vm5, %v5919_v42  ;;  %16095 = vmatprep.mubr.msk.f32.mxu1 %vm396_vm5, %v5913_v20 }
0x29a9   :  { %16093 = vmatprep.subr.msk.mxu1 %vm396_vm5, %v5917_v53 }
0x29ac   :  { %16094 = vmatpush3.xpose.msk.msra.mxu1 %vm396_vm5, %v5917_v53 }
0x29af   :  { %16096 = vmatmul.mubr.msk.f32.vlgmr.msra.gmra.mxu1 %vm396_vm5, %v5915_v44 }
0x2a5f   :  { %v18339_v49 = vpop.f32.mrf.mxu1 }
0x2a61   :  { %v18341_v17 = vpop.f32.mrf.mxu1 }
0x2a67   :  { %v16078_v41 = vpop.f32.mrf.mxu1 }
0x2a68   :  { %v5713_v23 = vmul.f32 0.35355338, %v16078_v41 }
0x2a69   :  { %v5703_v59 = vpop.f32.mrf.mxu1 }
0x2a6a   :  { %v5715_v50 = vadd.f32 %v5713_v23, %v18275_v14  ;;  %v5712_v55 = vmul.f32 0.35355338, %v5703_v59 }
0x2a6c   :  { %v5714_v27 = vadd.f32 %v5712_v55, %v18280_v30  ;;  %v5719_v54 = vsel %vm484_vm6, %v5715_v50, -inf }
0x2a6d   :  { %5720 = vmax.xlane.f32.xlu0 %v5719_v54 }
0x2a6e   :  { %v5716_v56 = vsel %vm484_vm6, %v5714_v27, -inf }
0x2a6f   :  { %5717 = vmax.xlane.f32.xlu1 %v5716_v56  ;;  %v16097_v58 = vpop.f32.mrf.mxu1 }
0x2a70   :  { %v6004_v16 = vmul.f32 0.35355338, %v16097_v58 }
0x2a71   :  { %v5994_v22 = vpop.f32.mrf.mxu1 }
0x2a72   :  { %v6003_v57 = vmul.f32 0.35355338, %v5994_v22  ;;  %v6006_v52 = vadd.f32 %v6004_v16, %v18275_v14  ;;  %v18420_v16 = vld [vmem:[%s19750_s9 + $0x90] sm:$0xff] }
0x2a74   :  { %v6005_v61 = vadd.f32 %v6003_v57, %v18280_v30  ;;  %v6010_v26 = vsel %vm484_vm6, %v6006_v52, -inf }
0x2a76   :  { %v6007_v62 = vsel %vm484_vm6, %v6005_v61, -inf }
0x2a80   :  { %5537 = vrot.lane.b32.xlu1 %v18237_v5, %s17136_s1 }
0x2a84   :  { %5738 = vrot.lane.b32.xlu1 %v18016_v45, %s17132_s0 }
0x2aa8   :  { %6008 = vmax.xlane.f32.xlu1 %v6007_v62 }
0x2af6   :  { %v5721_v9 = vpop.xlane.xlu0 %5720 }
0x2af7   :  { %v5723_v7 = vsub.f32 %v5715_v50, %v5721_v9 }
0x2af8   :  { %v5718_v10 = vpop.xlane.xlu1 %5717 }
0x2af9   :  { %v5726_v11 = vmul.f32 1.442695, %v5723_v7  ;;  %v5722_v19 = vsub.f32 %v5714_v27, %v5718_v10 }
0x2afb   :  { %16850 = vpow2.f32 %v5726_v11  ;;  %v5724_v6 = vmul.f32 1.442695, %v5722_v19 }
0x2afc   :  { %v5538_v24 = vpop.permute.xlu1 %5537 }
0x2afd   :  { %16852 = vpow2.f32 %v5724_v6  ;;  %16067 = vmatprep.subr.mxu0 %v5538_v24 }
0x2afe   :  { %16068 = vmatpush3.msra.mxu0 %v5538_v24 }
0x2aff   :  { %16070 = vmatmul.mubr.msk.f32.vlgmr.msra.gmra.mxu0 %vm396_vm5, %v16047_v60 }
0x2b00   :  { %v5739_v2 = vpop.permute.xlu1 %5738 }
0x2b08   :  { %v16851_v5 = vpop.eup %16850 }
0x2b09   :  { %v5731_v40 = vsel %vm484_vm6, %v16851_v5, 0.0 }
0x2b0a   :  { %v16853_v30 = vpop.eup %16852  ;;  %5732 = vadd.xlane.f32.xlu0 %v5731_v40 }
0x2b0b   :  { %v5728_v12 = vsel %vm484_vm6, %v16853_v30, 0.0 }
0x2b0e   :  { %5729 = vadd.xlane.f32.xlu0 %v5728_v12 }
0x2b24   :  { %5740 = vrot.lane.b32.xlu0 %v18176_v4, %s17132_s0 }
0x2b31   :  { %v6009_v43 = vpop.xlane.xlu1 %6008 }
0x2b32   :  { %v6013_v51 = vsub.f32 %v6005_v61, %v6009_v43 }
0x2b34   :  { %v6015_v15 = vmul.f32 1.442695, %v6013_v51  ;;  %v14785_v51 = vld [vmem:[%s19757_s16 + $0x7] ss:$0 sm:$0xff] }
0x2b36   :  { %16854 = vpow2.f32 %v6015_v15  ;;  %v18413_v15 = vld [vmem:[%s19750_s9 + $0x98] sm:$0xff] }
0x2b37   :  { %16110 = vmatprep.subr.mxu1 %v18413_v15 }
0x2b38   :  { %16111 = vmatpush3.msra.mxu1 %v18413_v15 }
0x2b39   :  { %16112 = vmatprep.subr.mxu1 %v18420_v16 }
0x2b3a   :  { %16113 = vmatpush3.msra.mxu1 %v18420_v16 }
0x2b43   :  { %v16855_v1 = vpop.eup %16854  ;;  %6011 = vmax.xlane.f32.xlu0 %v6010_v26  ;;  %v18432_v26 = vld [vmem:[%s19750_s9 + $0x80] sm:$0xff] }
0x2b44   :  { %v6019_v28 = vsel %vm484_vm6, %v16855_v1, 0.0 }
0x2b47   :  { %6020 = vadd.xlane.f32.xlu0 %v6019_v28 }
0x2b5d   :  { %5826 = vrot.lane.b32.xlu0 %v18225_v39, %s17136_s1 }
0x2b61   :  { %6203 = vrot.lane.b32.xlu0 %v18251_v47, %s17136_s1 }
0x2b93   :  { %v5733_v31 = vpop.xlane.xlu0 %5732 }
0x2b94   :  { %16856 = vrcp.f32 %v5733_v31 }
0x2b97   :  { %v5730_v63 = vpop.xlane.xlu0 %5729 }
0x2b98   :  { %16858 = vrcp.f32 %v5730_v63 }
0x2b9b   :  { %v5741_v8 = vpop.permute.xlu0 %5740 }
0x2b9c   :  { %16079 = vmatprep.subr.mxu0 %v5741_v8 }
0x2b9d   :  { %16080 = vmatpush3.msra.mxu0 %v5741_v8 }
0x2b9e   :  { %16081 = vmatprep.subr.mxu0 %v5739_v2 }
0x2b9f   :  { %16082 = vmatpush3.msra.mxu0 %v5739_v2 }
0x2ba1   :  { %v16857_v14 = vpop.eup %16856 }
0x2ba2   :  { %v5737_v35 = vmul.f32 %v16857_v14, %v16851_v5 }
0x2ba5   :  { %v16859_v34 = vpop.eup %16858 }
0x2ba6   :  { %v5736_v60 = vmul.f32 %v16859_v34, %v16853_v30 }
0x2ba8   :  { %16083 = vmatprep.mubr.msk.f32.mxu0 %vm484_vm6, %v5736_v60 }
0x2ba9   :  { %16084 = vmatmul.mubr.msk.f32.vlgmr.msra.gmra.mxu0 %vm484_vm6, %v5737_v35 }
0x2bbf   :  { %v16071_v21 = vpop.f32.mrf.mxu0 }
0x2bc0   :  { %v5618_v56 = vadd.f32 %v16071_v21, %v18339_v49 }
0x2bc1   :  { %v5612_v20 = vpop.f32.mrf.mxu0 }
0x2bc2   :  { %v5613_v9 = vadd.f32 %v5612_v20, %v18341_v17 }
0x2bcc   :  { %v6012_v39 = vpop.xlane.xlu0 %6011 }
0x2bcd   :  { %v6014_v36 = vsub.f32 %v6006_v52, %v6012_v39  ;;  %v18425_v52 = vld [vmem:[%s19750_s9 + $0x88] sm:$0xff] }
0x2bce   :  { %16114 = vmatprep.subr.mxu1 %v18425_v52 }
0x2bcf   :  { %v6017_v47 = vmul.f32 1.442695, %v6014_v36  ;;  %16115 = vmatpush3.msra.mxu1 %v18425_v52 }
0x2bd0   :  { %v6021_v37 = vpop.xlane.xlu0 %6020  ;;  %16116 = vmatprep.subr.mxu1 %v18432_v26 }
0x2bd1   :  { %16860 = vpow2.f32 %v6017_v47  ;;  %16117 = vmatpush3.msra.mxu1 %v18432_v26 }
0x2bd2   :  { %16862 = vrcp.f32 %v6021_v37 }
0x2bd4   :  { %v5827_v42 = vpop.permute.xlu0 %5826 }
0x2bd5   :  { %16086 = vmatprep.subr.mxu0 %v5827_v42 }
0x2bd6   :  { %16087 = vmatpush3.msra.mxu0 %v5827_v42 }
0x2bd8   :  { %v6204_v10 = vpop.permute.xlu0 %6203 }
0x2bde   :  { %v16861_v25 = vpop.eup %16860 }
0x2bdf   :  { %v6022_v29 = vsel %vm484_vm6, %v16861_v25, 0.0  ;;  %v16863_v53 = vpop.eup %16862 }
0x2be0   :  { %6023 = vadd.xlane.f32.xlu1 %v6022_v29  ;;  %v6027_v59 = vmul.f32 %v16863_v53, %v16855_v1 }
0x2bf1   :  { %6031 = vrot.lane.b32.xlu1 %v18176_v4, %s19779_s8 }
0x2bf5   :  { %6029 = vrot.lane.b32.xlu1 %v18016_v45, %s19779_s8 }
0x2bf9   :  { %6117 = vrot.lane.b32.xlu1 %v18218_v38, %s17136_s1 }
0x2c69   :  { %v16085_v44 = vpop.f32.mrf.mxu0  ;;  %v6024_v41 = vpop.xlane.xlu1 %6023 }
0x2c6a   :  { %16864 = vrcp.f32 %v6024_v41 }
0x2c6b   :  { %v5816_v23 = vpop.f32.mrf.mxu0 }
0x2c6c   :  { %16088 = vmatprep.mubr.msk.f32.mxu0 %vm396_vm5, %v5816_v23 }
0x2c6d   :  { %16089 = vmatmul.mubr.msk.f32.vlgmr.msra.gmra.mxu0 %vm396_vm5, %v16085_v44  ;;  %v6032_v50 = vpop.permute.xlu1 %6031 }
0x2c6e   :  { %16098 = vmatprep.subr.mxu0 %v6032_v50  ;;  %16102 = vmatprep.mubr.msk.f32.mxu0 %vm484_vm6, %v6027_v59 }
0x2c6f   :  { %16099 = vmatpush3.msra.mxu0 %v6032_v50 }
0x2c71   :  { %v6030_v55 = vpop.permute.xlu1 %6029 }
0x2c72   :  { %16100 = vmatprep.subr.mxu0 %v6030_v55 }
0x2c73   :  { %16101 = vmatpush3.msra.mxu0 %v6030_v55 }
0x2c75   :  { %v6118_v54 = vpop.permute.xlu1 %6117 }
0x2c76   :  { %16105 = vmatprep.subr.mxu0 %v6118_v54 }
0x2c77   :  { %v16865_v38 = vpop.eup %16864 }
0x2c78   :  { %v6028_v27 = vmul.f32 %v16865_v38, %v16861_v25 }
0x2c7a   :  { %16103 = vmatmul.mubr.msk.f32.vlgmr.msra.gmra.mxu0 %vm484_vm6, %v6028_v27 }
0x2c7b   :  { %16106 = vmatpush3.msra.mxu0 %v6118_v54 }
0x2d2d   :  { %v16090_v58 = vpop.f32.mrf.mxu0 }
0x2d2e   :  { %v5911_v22 = vadd.f32 %v16090_v58, %v5618_v56 }
0x2d2f   :  { %v5901_v57 = vpop.f32.mrf.mxu0 }
0x2d30   :  { %v5910_v11 = vadd.f32 %v5901_v57, %v5613_v9 }
0x2d3a   :  { %v16104_v61 = vpop.f32.mrf.mxu0 }
0x2d3c   :  { %v6107_v62 = vpop.f32.mrf.mxu0 }
0x2d3d   :  { %16107 = vmatprep.mubr.msk.f32.mxu0 %vm396_vm5, %v6107_v62 }
0x2d3e   :  { %16108 = vmatmul.mubr.msk.f32.vlgmr.msra.gmra.mxu0 %vm396_vm5, %v16104_v61 }
0x2dfe   :  { %v16109_v7 = vpop.f32.mrf.mxu0 }
0x2dff   :  { %v6202_v19 = vadd.f32 %v16109_v7, %v5911_v22  ;;  %v18450_v22 = vld [vmem:[%s19751_s10 + $0x4] ss:$0 sm:$0xff] }
0x2e00   :  { %v6192_v6 = vpop.f32.mrf.mxu0 }
0x2e01   :  { %v6207_v24 = vadd.f32 %v6204_v10, %v6202_v19  ;;  %v6201_v5 = vadd.f32 %v6192_v6, %v5910_v11  ;;  %v18474_v19 = vld [vmem:[%s19744_s3 + $0x18] sm:$0xff] }
0x2e03   :  { %v18383_v49 = vadd.f32 %v6207_v24, %v18192_v32  ;;  %v6206_v40 = vadd.f32 %v6204_v10, %v6201_v5  ;;  %v18479_v5 = vld [vmem:[%s19744_s3 + $0x10] sm:$0xff] }
0x2e05   :  { %v18386_v30 = vadd.f32 %v6206_v40, %v18195_v33  ;;  %v6215_v12 = vsel %vm251_vm2, %v18383_v49, 0.0  ;;  %v6221_v32 = vmul.f32 %v18383_v49, %v18383_v49 }
0x2e06   :  { %6216 = vadd.xlane.f32.xlu0 %v6215_v12 }
0x2e07   :  { %v6212_v17 = vsel %vm251_vm2, %v18386_v30, 0.0  ;;  %v6220_v2 = vmul.f32 %v18386_v30, %v18386_v30  ;;  %v6225_v33 = vsel %vm251_vm2, %v6221_v32, 0.0 }
0x2e08   :  { %6213 = vadd.xlane.f32.xlu1 %v6212_v17 }
0x2e09   :  { %v6222_v43 = vsel %vm251_vm2, %v6220_v2, 0.0 }
0x2e0a   :  { %6223 = vadd.xlane.f32.xlu0 %v6222_v43 }
0x2e0e   :  { %6226 = vadd.xlane.f32.xlu0 %v6225_v33 }
0x2e19   :  { %6252 = vrot.lane.b32.xlu1 %v14785_v51, %s17127_s30 }
0x2e1d   :  { %6351 = vrot.lane.b32.xlu1 %v18016_v45, %s17130_s28 }
0x2e21   :  { %6559 = vrot.lane.b32.xlu1 %v18176_v4, %s17131_s29 }
0x2e24   :  { %6353 = vrot.lane.b32.xlu0 %v18176_v4, %s17130_s28 }
0x2e25   :  { %6557 = vrot.lane.b32.xlu1 %v18016_v45, %s17131_s29 }
0x2e8f   :  { %v6217_v1 = vpop.xlane.xlu0 %6216 }
0x2e90   :  { %v6219_v8 = vmul.f32 0.03125, %v6217_v1 }
0x2e91   :  { %v6214_v28 = vpop.xlane.xlu1 %6213 }
0x2e92   :  { %v6218_v31 = vmul.f32 0.03125, %v6214_v28  ;;  %v6231_v36 = vmul.f32 %v6219_v8, %v6219_v8  ;;  %v6237_v50 = vsub.f32 %v18383_v49, %v6219_v8 }
0x2e93   :  { %v6224_v63 = vpop.xlane.xlu0 %6223 }
0x2e94   :  { %v6230_v14 = vmul.f32 %v6218_v31, %v6218_v31  ;;  %v6228_v34 = vmul.f32 0.03125, %v6224_v63  ;;  %v6236_v41 = vsub.f32 %v18386_v30, %v6218_v31 }
0x2e95   :  { %v6253_v60 = vpop.permute.xlu1 %6252 }
0x2e96   :  { %v6232_v35 = vsub.f32 %v6228_v34, %v6230_v14 }
0x2e97   :  { %v6227_v39 = vpop.xlane.xlu0 %6226 }
0x2e98   :  { %v6234_v47 = vmax.f32 %v6232_v35, 0.0  ;;  %v6229_v25 = vmul.f32 0.03125, %v6227_v39 }
0x2e99   :  { %v6352_v42 = vpop.permute.xlu1 %6351 }
0x2e9a   :  { %v6238_v29 = vadd.f32 1e-06, %v6234_v47  ;;  %v6233_v37 = vsub.f32 %v6229_v25, %v6231_v36 }
0x2e9b   :  { %v6354_v21 = vpop.permute.xlu0 %6353 }
0x2e9c   :  { %16866 = vrsqrt.f32 %v6238_v29  ;;  %v6235_v20 = vmax.f32 %v6233_v37, 0.0  ;;  %16121 = vmatprep.subr.msk.mxu0 %vm396_vm5, %v6354_v21 }
0x2e9d   :  { %16122 = vmatpush3.xpose.msk.msra.mxu0 %vm396_vm5, %v6354_v21  ;;  %v6560_v44 = vpop.permute.xlu1 %6559 }
0x2e9e   :  { %v6239_v53 = vadd.f32 1e-06, %v6235_v20  ;;  %16123 = vmatprep.subr.msk.mxu0 %vm396_vm5, %v6352_v42 }
0x2ea0   :  { %16868 = vrsqrt.f32 %v6239_v53 }
0x2ea1   :  { %16124 = vmatpush3.xpose.msk.msra.mxu0 %vm396_vm5, %v6352_v42  ;;  %v6558_v7 = vpop.permute.xlu1 %6557 }
0x2ea2   :  { %16135 = vmatprep.subr.msk.mxu0 %vm396_vm5, %v6560_v44 }
0x2ea9   :  { %v16867_v23 = vpop.eup %16866 }
0x2eaa   :  { %v6242_v59 = vmul.f32 %v16867_v23, %v6236_v41 }
0x2eac   :  { %v6250_v55 = vmul.f32 %v14785_v51, %v6242_v59 }
0x2ead   :  { %v16869_v38 = vpop.eup %16868 }
0x2eae   :  { %v6255_v27 = vadd.f32 %v6253_v60, %v6250_v55  ;;  %v6243_v54 = vmul.f32 %v16869_v38, %v6237_v50 }
0x2eb0   :  { %16118 = vmatprep.mubr.msk.f32.mxu1 %vm251_vm2, %v6255_v27  ;;  %v6251_v56 = vmul.f32 %v14785_v51, %v6243_v54 }
0x2eb2   :  { %v6256_v58 = vadd.f32 %v6253_v60, %v6251_v56 }
0x2eb4   :  { %16119 = vmatmul.mubr.msk.f32.vlgmr.msra.gmra.mxu1 %vm251_vm2, %v6256_v58 }
0x2f74   :  { %v16120_v57 = vpop.f32.mrf.mxu1 }
0x2f75   :  { %v18453_v61 = vadd.f32 %v16120_v57, %v18450_v22 }
0x2f76   :  { %v6342_v62 = vpop.f32.mrf.mxu1 }
0x2f77   :  { %v18456_v9 = vadd.f32 %v18450_v22, %v6342_v62  ;;  %6555 = vrot.lane.b32.xlu1 %v18453_v61, %s17129_s23 }
0x2f79   :  { %6553 = vrot.lane.b32.xlu0 %v18456_v9, %s17129_s23  ;;  %16125 = vmatprep.mubr.msk.f32.mxu0 %vm396_vm5, %v18456_v9 }
0x2f7a   :  { %16126 = vmatmul.mubr.msk.f32.vlgmr.msra.gmra.mxu0 %vm396_vm5, %v18453_v61 }
0x2f7b   :  { %16136 = vmatpush3.xpose.msk.msra.mxu0 %vm396_vm5, %v6560_v44 }
0x2f7c   :  { %16137 = vmatprep.subr.msk.mxu0 %vm396_vm5, %v6558_v7 }
0x2f7f   :  { %16138 = vmatpush3.xpose.msk.msra.mxu0 %vm396_vm5, %v6558_v7 }
0x2fe9   :  { %v6556_v11 = vpop.permute.xlu1 %6555 }
0x2feb   :  { %v6554_v10 = vpop.permute.xlu0 %6553 }
0x2fec   :  { %16139 = vmatprep.mubr.msk.f32.mxu0 %vm396_vm5, %v6554_v10 }
0x2fed   :  { %16140 = vmatmul.mubr.msk.f32.vlgmr.msra.gmra.mxu0 %vm396_vm5, %v6556_v11 }
0x303a   :  { %v16127_v6 = vpop.f32.mrf.mxu0 }
0x303b   :  { %v6441_v24 = vmul.f32 0.35355338, %v16127_v6 }
0x303c   :  { %v6431_v40 = vpop.f32.mrf.mxu0 }
0x303d   :  { %v6443_v12 = vadd.f32 %v6441_v24, %v18474_v19  ;;  %v6440_v17 = vmul.f32 0.35355338, %v6431_v40 }
0x303f   :  { %v6442_v2 = vadd.f32 %v6440_v17, %v18479_v5  ;;  %v6447_v43 = vsel %vm484_vm6, %v6443_v12, -inf }
0x3040   :  { %6448 = vmax.xlane.f32.xlu1 %v6447_v43 }
0x3041   :  { %v6444_v32 = vsel %vm484_vm6, %v6442_v2, -inf }
0x3042   :  { %6445 = vmax.xlane.f32.xlu0 %v6444_v32 }
0x30ad   :  { %v16141_v33 = vpop.f32.mrf.mxu0 }
0x30ae   :  { %v6645_v1 = vmul.f32 0.35355338, %v16141_v33 }
0x30af   :  { %v6635_v51 = vpop.f32.mrf.mxu0 }
0x30b0   :  { %v6644_v28 = vmul.f32 0.35355338, %v6635_v51  ;;  %v6647_v63 = vadd.f32 %v6645_v1, %v18474_v19 }
0x30b2   :  { %v6646_v31 = vadd.f32 %v6644_v28, %v18479_v5  ;;  %v6651_v14 = vsel %vm484_vm6, %v6647_v63, -inf }
0x30b4   :  { %v6648_v8 = vsel %vm484_vm6, %v6646_v31, -inf }
0x30b5   :  { %6649 = vmax.xlane.f32.xlu0 %v6648_v8 }
0x30b9   :  { %6652 = vmax.xlane.f32.xlu0 %v6651_v14 }
0x30c9   :  { %v6449_v34 = vpop.xlane.xlu1 %6448 }
0x30ca   :  { %v6451_v60 = vsub.f32 %v6443_v12, %v6449_v34 }
0x30cb   :  { %v6446_v35 = vpop.xlane.xlu0 %6445 }
0x30cc   :  { %v6454_v39 = vmul.f32 1.442695, %v6451_v60  ;;  %v6450_v36 = vsub.f32 %v6442_v2, %v6446_v35 }
0x30ce   :  { %16870 = vpow2.f32 %v6454_v39  ;;  %v6452_v47 = vmul.f32 1.442695, %v6450_v36 }
0x30d0   :  { %16872 = vpow2.f32 %v6452_v47 }
0x30db   :  { %v16871_v25 = vpop.eup %16870 }
0x30dc   :  { %v6459_v29 = vsel %vm484_vm6, %v16871_v25, 0.0 }
0x30dd   :  { %v16873_v37 = vpop.eup %16872  ;;  %6460 = vadd.xlane.f32.xlu1 %v6459_v29 }
0x30de   :  { %v6456_v42 = vsel %vm484_vm6, %v16873_v37, 0.0 }
0x30df   :  { %6457 = vadd.xlane.f32.xlu0 %v6456_v42 }
0x313e   :  { %v6650_v21 = vpop.xlane.xlu0 %6649 }
0x313f   :  { %v6654_v20 = vsub.f32 %v6646_v31, %v6650_v21 }
0x3141   :  { %v6656_v53 = vmul.f32 1.442695, %v6654_v20 }
0x3142   :  { %v6653_v44 = vpop.xlane.xlu0 %6652 }
0x3143   :  { %16874 = vpow2.f32 %v6656_v53  ;;  %v6655_v41 = vsub.f32 %v6647_v63, %v6653_v44 }
0x3145   :  { %v6658_v23 = vmul.f32 1.442695, %v6655_v41 }
0x3147   :  { %16876 = vpow2.f32 %v6658_v23 }
0x3150   :  { %v16875_v59 = vpop.eup %16874 }
0x3151   :  { %v6660_v50 = vsel %vm484_vm6, %v16875_v59, 0.0 }
0x3152   :  { %6661 = vadd.xlane.f32.xlu0 %v6660_v50 }
0x3154   :  { %v16877_v55 = vpop.eup %16876 }
0x3155   :  { %v6663_v38 = vsel %vm484_vm6, %v16877_v55, 0.0 }
0x3156   :  { %6664 = vadd.xlane.f32.xlu1 %v6663_v38 }
0x3167   :  { %6466 = vrot.lane.b32.xlu1 %v18016_v45, %s17136_s1 }
0x3168   :  { %6468 = vrot.lane.b32.xlu0 %v18176_v4, %s17136_s1  ;;  %v6458_v27 = vpop.xlane.xlu0 %6457 }
0x3169   :  { %16878 = vrcp.f32 %v6458_v27 }
0x316b   :  { %6672 = vrot.lane.b32.xlu1 %v18176_v4, %s17140_s24 }
0x316c   :  { %6758 = vrot.lane.b32.xlu0 %v18425_v52, %s17136_s1  ;;  %v6461_v52 = vpop.xlane.xlu1 %6460 }
0x316d   :  { %16880 = vrcp.f32 %v6461_v52 }
0x316f   :  { %6670 = vrot.lane.b32.xlu1 %v18016_v45, %s17140_s24 }
0x3170   :  { %6931 = vrot.lane.b32.xlu0 %v18016_v45, %s19777_s26 }
0x3173   :  { %6933 = vrot.lane.b32.xlu1 %v18176_v4, %s19777_s26 }
0x3174   :  { %6929 = vrot.lane.b32.xlu0 %v18453_v61, %s17133_s6 }
0x3176   :  { %v16879_v54 = vpop.eup %16878 }
0x3177   :  { %6927 = vrot.lane.b32.xlu1 %v18456_v9, %s17133_s6  ;;  %v6464_v56 = vmul.f32 %v16879_v54, %v16873_v37 }
0x3178   :  { %7222 = vrot.lane.b32.xlu0 %v18016_v45, %s19778_s2 }
0x3179   :  { %16132 = vmatprep.mubr.msk.f32.mxu1 %vm484_vm6, %v6464_v56 }
0x317a   :  { %v16881_v7 = vpop.eup %16880 }
0x317b   :  { %7224 = vrot.lane.b32.xlu1 %v18176_v4, %s19778_s2  ;;  %v6465_v11 = vmul.f32 %v16881_v7, %v16871_v25 }
0x317c   :  { %7220 = vrot.lane.b32.xlu0 %v18453_v61, %s19780_s27 }
0x317f   :  { %7218 = vrot.lane.b32.xlu1 %v18456_v9, %s19780_s27 }
0x31db   :  { %v6662_v58 = vpop.xlane.xlu0 %6661 }
0x31dc   :  { %16882 = vrcp.f32 %v6662_v58 }
0x31df   :  { %v6469_v57 = vpop.permute.xlu0 %6468  ;;  %v6665_v62 = vpop.xlane.xlu1 %6664 }
0x31e0   :  { %16884 = vrcp.f32 %v6665_v62  ;;  %16128 = vmatprep.subr.mxu1 %v6469_v57 }
0x31e1   :  { %16129 = vmatpush3.msra.mxu1 %v6469_v57 }
0x31e3   :  { %v6467_v10 = vpop.permute.xlu1 %6466  ;;  %v6759_v12 = vpop.permute.xlu0 %6758 }
0x31e4   :  { %16130 = vmatprep.subr.mxu1 %v6467_v10 }
0x31e5   :  { %16131 = vmatpush3.msra.mxu1 %v6467_v10 }
0x31e6   :  { %16133 = vmatmul.mubr.msk.f32.vlgmr.msra.gmra.mxu1 %vm484_vm6, %v6465_v11 }
0x31e7   :  { %v6673_v61 = vpop.permute.xlu1 %6672  ;;  %v6932_v1 = vpop.permute.xlu0 %6931 }
0x31e8   :  { %16142 = vmatprep.subr.mxu1 %v6673_v61 }
0x31e9   :  { %v16883_v6 = vpop.eup %16882  ;;  %16143 = vmatpush3.msra.mxu1 %v6673_v61 }
0x31ea   :  { %v6668_v9 = vmul.f32 %v16883_v6, %v16875_v59 }
0x31eb   :  { %v6671_v24 = vpop.permute.xlu1 %6670  ;;  %v6930_v63 = vpop.permute.xlu0 %6929 }
0x31ec   :  { %16144 = vmatprep.subr.mxu1 %v6671_v24  ;;  %16146 = vmatprep.mubr.msk.f32.mxu1 %vm484_vm6, %v6668_v9 }
0x31ed   :  { %v16885_v40 = vpop.eup %16884  ;;  %16145 = vmatpush3.msra.mxu1 %v6671_v24 }
0x31ee   :  { %16149 = vmatprep.subr.mxu1 %v6759_v12  ;;  %v6669_v17 = vmul.f32 %v16885_v40, %v16877_v55 }
0x31ef   :  { %v6934_v2 = vpop.permute.xlu1 %6933  ;;  %v7223_v14 = vpop.permute.xlu0 %7222 }
0x31f0   :  { %16147 = vmatmul.mubr.msk.f32.vlgmr.msra.gmra.mxu1 %vm484_vm6, %v6669_v17 }
0x31f1   :  { %16150 = vmatpush3.msra.mxu1 %v6759_v12 }
0x31f2   :  { %16159 = vmatprep.subr.msk.mxu1 %vm396_vm5, %v6934_v2 }
0x31f3   :  { %v6928_v33 = vpop.permute.xlu1 %6927  ;;  %v7221_v34 = vpop.permute.xlu0 %7220 }
0x31f7   :  { %v7225_v31 = vpop.permute.xlu1 %7224 }
0x31fb   :  { %v7219_v8 = vpop.permute.xlu1 %7218 }
0x32a6   :  { %v16134_v43 = vpop.f32.mrf.mxu1 }
0x32a8   :  { %v6544_v32 = vpop.f32.mrf.mxu1 }
0x32a9   :  { %16156 = vmatprep.mubr.msk.f32.mxu0 %vm396_vm5, %v6544_v32 }
0x32b0   :  { %v16148_v51 = vpop.f32.mrf.mxu1 }
0x32b2   :  { %v6748_v28 = vpop.f32.mrf.mxu1 }
0x32b3   :  { %16151 = vmatprep.mubr.msk.f32.mxu1 %vm396_vm5, %v6748_v28 }
0x32b4   :  { %16152 = vmatmul.mubr.msk.f32.vlgmr.msra.gmra.mxu1 %vm396_vm5, %v16148_v51 }
0x32b5   :  { %16160 = vmatpush3.xpose.msk.msra.mxu1 %vm396_vm5, %v6934_v2  ;;  %16163 = vmatprep.mubr.msk.f32.mxu1 %vm396_vm5, %v6928_v33 }
0x32b6   :  { %16161 = vmatprep.subr.msk.mxu1 %vm396_vm5, %v6932_v1 }
0x32b9   :  { %16162 = vmatpush3.xpose.msk.msra.mxu1 %vm396_vm5, %v6932_v1 }
0x32ba   :  { %16178 = vmatprep.subr.msk.mxu1 %vm396_vm5, %v7225_v31 }
0x32bc   :  { %16164 = vmatmul.mubr.msk.f32.vlgmr.msra.gmra.mxu1 %vm396_vm5, %v6930_v63 }
0x32bd   :  { %16179 = vmatpush3.xpose.msk.msra.mxu1 %vm396_vm5, %v7225_v31  ;;  %16182 = vmatprep.mubr.msk.f32.mxu1 %vm396_vm5, %v7219_v8 }
0x32be   :  { %16180 = vmatprep.subr.msk.mxu1 %vm396_vm5, %v7223_v14 }
0x32c1   :  { %16181 = vmatpush3.xpose.msk.msra.mxu1 %vm396_vm5, %v7223_v14 }
0x32c4   :  { %16183 = vmatmul.mubr.msk.f32.vlgmr.msra.gmra.mxu1 %vm396_vm5, %v7221_v34 }
0x3374   :  { %v18538_v60 = vpop.f32.mrf.mxu1 }
0x3376   :  { %v18540_v35 = vpop.f32.mrf.mxu1 }
0x337c   :  { %v16165_v39 = vpop.f32.mrf.mxu1 }
0x337d   :  { %v7019_v36 = vmul.f32 0.35355338, %v16165_v39 }
0x337e   :  { %v7009_v47 = vpop.f32.mrf.mxu1 }
0x337f   :  { %v7021_v25 = vadd.f32 %v7019_v36, %v18474_v19  ;;  %v7018_v29 = vmul.f32 0.35355338, %v7009_v47 }
0x3381   :  { %v7020_v37 = vadd.f32 %v7018_v29, %v18479_v5  ;;  %v7025_v42 = vsel %vm484_vm6, %v7021_v25, -inf }
0x3382   :  { %7026 = vmax.xlane.f32.xlu0 %v7025_v42 }
0x3383   :  { %v7022_v21 = vsel %vm484_vm6, %v7020_v37, -inf }
0x3384   :  { %7023 = vmax.xlane.f32.xlu1 %v7022_v21  ;;  %v16184_v20 = vpop.f32.mrf.mxu1 }
0x3385   :  { %v7310_v11 = vmul.f32 0.35355338, %v16184_v20 }
0x3386   :  { %v7300_v53 = vpop.f32.mrf.mxu1 }
0x3387   :  { %v7309_v44 = vmul.f32 0.35355338, %v7300_v53  ;;  %v7312_v61 = vadd.f32 %v7310_v11, %v18474_v19 }
0x3389   :  { %v7311_v41 = vadd.f32 %v7309_v44, %v18479_v5  ;;  %v7316_v6 = vsel %vm484_vm6, %v7312_v61, -inf }
0x338b   :  { %v7313_v23 = vsel %vm484_vm6, %v7311_v41, -inf }
0x3395   :  { %6843 = vrot.lane.b32.xlu1 %v18432_v26, %s17136_s1 }
0x3399   :  { %7044 = vrot.lane.b32.xlu1 %v18016_v45, %s19771_s11 }
0x33bd   :  { %7314 = vmax.xlane.f32.xlu1 %v7313_v23 }
0x340b   :  { %v7027_v59 = vpop.xlane.xlu0 %7026 }
0x340c   :  { %v7029_v50 = vsub.f32 %v7021_v25, %v7027_v59 }
0x340d   :  { %v7024_v55 = vpop.xlane.xlu1 %7023 }
0x340e   :  { %v7032_v38 = vmul.f32 1.442695, %v7029_v50  ;;  %v7028_v27 = vsub.f32 %v7020_v37, %v7024_v55  ;;  %v18578_v37 = vadd.f32 %v18023_v48, %v18013_v18 }
0x3410   :  { %16886 = vpow2.f32 %v7032_v38  ;;  %v7030_v54 = vmul.f32 1.442695, %v7028_v27 }
0x3411   :  { %v6844_v26 = vpop.permute.xlu1 %6843 }
0x3412   :  { %16888 = vpow2.f32 %v7030_v54  ;;  %16154 = vmatprep.subr.mxu0 %v6844_v26 }
0x3413   :  { %16155 = vmatpush3.msra.mxu0 %v6844_v26 }
0x3414   :  { %16157 = vmatmul.mubr.msk.f32.vlgmr.msra.gmra.mxu0 %vm396_vm5, %v16134_v43 }
0x3415   :  { %v7045_v57 = vpop.permute.xlu1 %7044 }
0x341d   :  { %v16887_v56 = vpop.eup %16886 }
0x341e   :  { %v7037_v52 = vsel %vm484_vm6, %v16887_v56, 0.0 }
0x341f   :  { %v16889_v5 = vpop.eup %16888  ;;  %7038 = vadd.xlane.f32.xlu0 %v7037_v52 }
0x3420   :  { %v7034_v58 = vsel %vm484_vm6, %v16889_v5, 0.0 }
0x3423   :  { %7035 = vadd.xlane.f32.xlu0 %v7034_v58  ;;  %v14827_v58 = vld [vmem:[%s19757_s16 + $0x8] ss:$0 sm:$0xff] }
0x3439   :  { %7046 = vrot.lane.b32.xlu0 %v18176_v4, %s19771_s11 }
0x3446   :  { %v7315_v62 = vpop.xlane.xlu1 %7314 }
0x3447   :  { %v7319_v7 = vsub.f32 %v7311_v41, %v7315_v62  ;;  %v18627_v62 = vld [vmem:[%s19750_s9 + $0xb0] sm:$0xff] }
0x3449   :  { %v7321_v10 = vmul.f32 1.442695, %v7319_v7  ;;  %v18632_v7 = vld [vmem:[%s19750_s9 + $0xa8] sm:$0xff] }
0x344b   :  { %16890 = vpow2.f32 %v7321_v10  ;;  %v18639_v10 = vld [vmem:[%s19750_s9 + $0xa0] sm:$0xff] }
0x3458   :  { %v16891_v9 = vpop.eup %16890  ;;  %7317 = vmax.xlane.f32.xlu0 %v7316_v6 }
0x3459   :  { %v7325_v24 = vsel %vm484_vm6, %v16891_v9, 0.0 }
0x345c   :  { %7326 = vadd.xlane.f32.xlu0 %v7325_v24 }
0x3472   :  { %7132 = vrot.lane.b32.xlu0 %v18420_v16, %s17136_s1 }
0x3476   :  { %7509 = vrot.lane.b32.xlu0 %v18450_v22, %s17136_s1 }
0x34a8   :  { %v7039_v40 = vpop.xlane.xlu0 %7038 }
0x34a9   :  { %16892 = vrcp.f32 %v7039_v40 }
0x34ac   :  { %v7036_v12 = vpop.xlane.xlu0 %7035 }
0x34ad   :  { %16894 = vrcp.f32 %v7036_v12 }
0x34b0   :  { %v7047_v17 = vpop.permute.xlu0 %7046 }
0x34b1   :  { %16166 = vmatprep.subr.mxu0 %v7047_v17 }
0x34b2   :  { %16167 = vmatpush3.msra.mxu0 %v7047_v17 }
0x34b3   :  { %16168 = vmatprep.subr.mxu0 %v7045_v57 }
0x34b4   :  { %16169 = vmatpush3.msra.mxu0 %v7045_v57  ;;  %v18620_v57 = vld [vmem:[%s19750_s9 + $0xb8] sm:$0xff] }
0x34b5   :  { %16197 = vmatprep.subr.mxu1 %v18620_v57 }
0x34b6   :  { %v16893_v19 = vpop.eup %16892  ;;  %16198 = vmatpush3.msra.mxu1 %v18620_v57 }
0x34b7   :  { %v7043_v32 = vmul.f32 %v16893_v19, %v16887_v56  ;;  %16199 = vmatprep.subr.mxu1 %v18627_v62 }
0x34b8   :  { %16200 = vmatpush3.msra.mxu1 %v18627_v62 }
0x34b9   :  { %16201 = vmatprep.subr.mxu1 %v18632_v7 }
0x34ba   :  { %v16895_v2 = vpop.eup %16894  ;;  %16202 = vmatpush3.msra.mxu1 %v18632_v7 }
0x34bb   :  { %v7042_v43 = vmul.f32 %v16895_v2, %v16889_v5  ;;  %16203 = vmatprep.subr.mxu1 %v18639_v10 }
0x34bc   :  { %16204 = vmatpush3.msra.mxu1 %v18639_v10 }
0x34bd   :  { %16170 = vmatprep.mubr.msk.f32.mxu0 %vm484_vm6, %v7042_v43 }
0x34be   :  { %16171 = vmatmul.mubr.msk.f32.vlgmr.msra.gmra.mxu0 %vm484_vm6, %v7043_v32 }
0x34d4   :  { %v16158_v63 = vpop.f32.mrf.mxu0 }
0x34d5   :  { %v6924_v42 = vadd.f32 %v16158_v63, %v18538_v60 }
0x34d6   :  { %v6918_v8 = vpop.f32.mrf.mxu0 }
0x34d7   :  { %v6919_v18 = vadd.f32 %v6918_v8, %v18540_v35 }
0x34e1   :  { %v7318_v16 = vpop.xlane.xlu0 %7317 }
0x34e2   :  { %v7320_v33 = vsub.f32 %v7312_v61, %v7318_v16 }
0x34e4   :  { %v7323_v22 = vmul.f32 1.442695, %v7320_v33 }
0x34e5   :  { %v7327_v28 = vpop.xlane.xlu0 %7326 }
0x34e6   :  { %16896 = vpow2.f32 %v7323_v22 }
0x34e7   :  { %16898 = vrcp.f32 %v7327_v28 }
0x34e9   :  { %v7133_v31 = vpop.permute.xlu0 %7132 }
0x34ea   :  { %16173 = vmatprep.subr.mxu0 %v7133_v31 }
0x34eb   :  { %16174 = vmatpush3.msra.mxu0 %v7133_v31 }
0x34ed   :  { %v7510_v60 = vpop.permute.xlu0 %7509 }
0x34f3   :  { %v16897_v51 = vpop.eup %16896 }
0x34f4   :  { %v7328_v1 = vsel %vm484_vm6, %v16897_v51, 0.0  ;;  %v16899_v14 = vpop.eup %16898 }
0x34f5   :  { %7329 = vadd.xlane.f32.xlu1 %v7328_v1  ;;  %v7333_v47 = vmul.f32 %v16899_v14, %v16891_v9 }
0x3506   :  { %7337 = vrot.lane.b32.xlu1 %v18176_v4, %s19769_s19 }
0x350a   :  { %7335 = vrot.lane.b32.xlu1 %v18016_v45, %s19769_s19 }
0x350e   :  { %7423 = vrot.lane.b32.xlu1 %v18413_v15, %s17136_s1 }
0x357e   :  { %v16172_v34 = vpop.f32.mrf.mxu0  ;;  %v7330_v39 = vpop.xlane.xlu1 %7329 }
0x357f   :  { %16900 = vrcp.f32 %v7330_v39 }
0x3580   :  { %v7122_v36 = vpop.f32.mrf.mxu0 }
0x3581   :  { %16175 = vmatprep.mubr.msk.f32.mxu0 %vm396_vm5, %v7122_v36 }
0x3582   :  { %16176 = vmatmul.mubr.msk.f32.vlgmr.msra.gmra.mxu0 %vm396_vm5, %v16172_v34  ;;  %v7338_v4 = vpop.permute.xlu1 %7337 }
0x3583   :  { %16185 = vmatprep.subr.mxu0 %v7338_v4  ;;  %16189 = vmatprep.mubr.msk.f32.mxu0 %vm484_vm6, %v7333_v47 }
0x3584   :  { %16186 = vmatpush3.msra.mxu0 %v7338_v4 }
0x3586   :  { %v7336_v45 = vpop.permute.xlu1 %7335 }
0x3587   :  { %16187 = vmatprep.subr.mxu0 %v7336_v45 }
0x3588   :  { %16188 = vmatpush3.msra.mxu0 %v7336_v45 }
0x358a   :  { %v7424_v15 = vpop.permute.xlu1 %7423 }
0x358b   :  { %16192 = vmatprep.subr.mxu0 %v7424_v15 }
0x358c   :  { %v16901_v25 = vpop.eup %16900 }
0x358d   :  { %v7334_v29 = vmul.f32 %v16901_v25, %v16897_v51  ;;  %v18653_v25 = vld [vmem:[%s19751_s10 + $0x5] ss:$0 sm:$0xff] }
0x358f   :  { %16190 = vmatmul.mubr.msk.f32.vlgmr.msra.gmra.mxu0 %vm484_vm6, %v7334_v29 }
0x3590   :  { %16193 = vmatpush3.msra.mxu0 %v7424_v15 }
0x3591   :  { %16208 = vmatprep.subr.msk.mxu0 %vm396_vm5, %v18578_v37 }
0x3642   :  { %v16177_v21 = vpop.f32.mrf.mxu0 }
0x3643   :  { %v7217_v20 = vadd.f32 %v16177_v21, %v6924_v42 }
0x3644   :  { %v7207_v53 = vpop.f32.mrf.mxu0 }
0x3645   :  { %v7216_v23 = vadd.f32 %v7207_v53, %v6919_v18 }
0x364f   :  { %v16191_v44 = vpop.f32.mrf.mxu0 }
0x3651   :  { %v7413_v41 = vpop.f32.mrf.mxu0 }
0x3652   :  { %16194 = vmatprep.mubr.msk.f32.mxu0 %vm396_vm5, %v7413_v41  ;;  %v18677_v41 = vld [vmem:[%s19744_s3 + $0x28] sm:$0xff] }
0x3653   :  { %16195 = vmatmul.mubr.msk.f32.vlgmr.msra.gmra.mxu0 %vm396_vm5, %v16191_v44 }
0x3654   :  { %16209 = vmatpush3.xpose.msk.msra.mxu0 %vm396_vm5, %v18578_v37 }
0x3655   :  { %16210 = vmatprep.subr.msk.mxu0 %vm396_vm5, %v18019_v46 }
0x3658   :  { %16211 = vmatpush3.xpose.msk.msra.mxu0 %vm396_vm5, %v18019_v46 }
0x3713   :  { %v16196_v48 = vpop.f32.mrf.mxu0 }
0x3714   :  { %v7508_v59 = vadd.f32 %v16196_v48, %v7217_v20 }
0x3715   :  { %v7498_v50 = vpop.f32.mrf.mxu0 }
0x3716   :  { %v7513_v55 = vadd.f32 %v7510_v60, %v7508_v59  ;;  %v7507_v38 = vadd.f32 %v7498_v50, %v7216_v23 }
0x3718   :  { %v18594_v27 = vadd.f32 %v7513_v55, %v18383_v49  ;;  %v7512_v54 = vadd.f32 %v7510_v60, %v7507_v38  ;;  %v18682_v60 = vld [vmem:[%s19744_s3 + $0x20] sm:$0xff] }
0x371a   :  { %v18597_v26 = vadd.f32 %v7512_v54, %v18386_v30  ;;  %v7521_v56 = vsel %vm251_vm2, %v18594_v27, 0.0  ;;  %v7527_v49 = vmul.f32 %v18594_v27, %v18594_v27 }
0x371b   :  { %7522 = vadd.xlane.f32.xlu0 %v7521_v56 }
0x371c   :  { %v7518_v35 = vsel %vm251_vm2, %v18597_v26, 0.0  ;;  %v7526_v52 = vmul.f32 %v18597_v26, %v18597_v26  ;;  %v7531_v30 = vsel %vm251_vm2, %v7527_v49, 0.0 }
0x371d   :  { %7519 = vadd.xlane.f32.xlu1 %v7518_v35 }
0x371e   :  { %v7528_v5 = vsel %vm251_vm2, %v7526_v52, 0.0 }
0x371f   :  { %7529 = vadd.xlane.f32.xlu0 %v7528_v5 }
0x3723   :  { %7532 = vadd.xlane.f32.xlu0 %v7531_v30 }
0x372e   :  { %7558 = vrot.lane.b32.xlu1 %v14827_v58, %s17127_s30 }
0x3732   :  { %7861 = vrot.lane.b32.xlu1 %v18019_v46, %s17129_s23 }
0x3739   :  { %7863 = vrot.lane.b32.xlu0 %v18578_v37, %s17129_s23 }
0x37a4   :  { %v7523_v11 = vpop.xlane.xlu0 %7522 }
0x37a5   :  { %v7525_v24 = vmul.f32 0.03125, %v7523_v11 }
0x37a6   :  { %v7520_v61 = vpop.xlane.xlu1 %7519 }
0x37a7   :  { %v7524_v6 = vmul.f32 0.03125, %v7520_v61  ;;  %v7537_v2 = vmul.f32 %v7525_v24, %v7525_v24  ;;  %v7543_v8 = vsub.f32 %v18594_v27, %v7525_v24 }
0x37a8   :  { %v7530_v9 = vpop.xlane.xlu0 %7529 }
0x37a9   :  { %v7536_v40 = vmul.f32 %v7524_v6, %v7524_v6  ;;  %v7534_v12 = vmul.f32 0.03125, %v7530_v9  ;;  %v7542_v28 = vsub.f32 %v18597_v26, %v7524_v6 }
0x37aa   :  { %v7559_v39 = vpop.permute.xlu1 %7558 }
0x37ab   :  { %v7538_v17 = vsub.f32 %v7534_v12, %v7536_v40 }
0x37ac   :  { %v7533_v19 = vpop.xlane.xlu0 %7532 }
0x37ad   :  { %v7540_v43 = vmax.f32 %v7538_v17, 0.0  ;;  %v7535_v32 = vmul.f32 0.03125, %v7533_v19 }
0x37ae   :  { %v7862_v20 = vpop.permute.xlu1 %7861 }
0x37af   :  { %v7544_v16 = vadd.f32 1e-06, %v7540_v43  ;;  %v7539_v33 = vsub.f32 %v7535_v32, %v7537_v2 }
0x37b0   :  { %v7864_v22 = vpop.permute.xlu0 %7863 }
0x37b1   :  { %16902 = vrsqrt.f32 %v7544_v16  ;;  %v7541_v51 = vmax.f32 %v7539_v33, 0.0  ;;  %16222 = vmatprep.subr.msk.mxu0 %vm396_vm5, %v7864_v22 }
0x37b3   :  { %v7545_v1 = vadd.f32 1e-06, %v7541_v51 }
0x37b5   :  { %16904 = vrsqrt.f32 %v7545_v1 }
0x37be   :  { %v16903_v31 = vpop.eup %16902 }
0x37bf   :  { %v7548_v63 = vmul.f32 %v16903_v31, %v7542_v28 }
0x37c1   :  { %v7556_v14 = vmul.f32 %v14827_v58, %v7548_v63 }
0x37c2   :  { %v16905_v34 = vpop.eup %16904 }
0x37c3   :  { %v7561_v36 = vadd.f32 %v7559_v39, %v7556_v14  ;;  %v7549_v47 = vmul.f32 %v16905_v34, %v7543_v8 }
0x37c5   :  { %16205 = vmatprep.mubr.msk.f32.mxu1 %vm251_vm2, %v7561_v36  ;;  %v7557_v4 = vmul.f32 %v14827_v58, %v7549_v47 }
0x37c7   :  { %v7562_v45 = vadd.f32 %v7559_v39, %v7557_v4 }
0x37c9   :  { %16206 = vmatmul.mubr.msk.f32.vlgmr.msra.gmra.mxu1 %vm251_vm2, %v7562_v45 }
0x3889   :  { %v16207_v15 = vpop.f32.mrf.mxu1 }
0x388a   :  { %v18659_v21 = vadd.f32 %v16207_v15, %v18653_v25 }
0x388b   :  { %v7648_v29 = vpop.f32.mrf.mxu1 }
0x388c   :  { %v18656_v42 = vadd.f32 %v18653_v25, %v7648_v29 }
0x388e   :  { %7857 = vrot.lane.b32.xlu1 %v18656_v42, %s17129_s23  ;;  %16212 = vmatprep.mubr.msk.f32.mxu0 %vm396_vm5, %v18656_v42 }
0x388f   :  { %16213 = vmatmul.mubr.msk.f32.vlgmr.msra.gmra.mxu0 %vm396_vm5, %v18659_v21 }
0x3890   :  { %16223 = vmatpush3.xpose.msk.msra.mxu0 %vm396_vm5, %v7864_v22 }
0x3891   :  { %16224 = vmatprep.subr.msk.mxu0 %vm396_vm5, %v7862_v20 }
0x3892   :  { %7859 = vrot.lane.b32.xlu1 %v18659_v21, %s17129_s23 }
0x3894   :  { %16225 = vmatpush3.xpose.msk.msra.mxu0 %vm396_vm5, %v7862_v20 }
0x3900   :  { %v7858_v53 = vpop.permute.xlu1 %7857 }
0x3901   :  { %16226 = vmatprep.mubr.msk.f32.mxu0 %vm396_vm5, %v7858_v53 }
0x3904   :  { %v7860_v44 = vpop.permute.xlu1 %7859 }
0x3905   :  { %16227 = vmatmul.mubr.msk.f32.vlgmr.msra.gmra.mxu0 %vm396_vm5, %v7860_v44 }
0x394f   :  { %v16214_v18 = vpop.f32.mrf.mxu0 }
0x3950   :  { %v7745_v48 = vmul.f32 0.35355338, %v16214_v18 }
0x3951   :  { %v7735_v23 = vpop.f32.mrf.mxu0 }
0x3952   :  { %v7747_v59 = vadd.f32 %v7745_v48, %v18677_v41  ;;  %v7744_v50 = vmul.f32 0.35355338, %v7735_v23 }
0x3954   :  { %v7746_v55 = vadd.f32 %v7744_v50, %v18682_v60  ;;  %v7751_v38 = vsel %vm484_vm6, %v7747_v59, -inf }
0x3955   :  { %7752 = vmax.xlane.f32.xlu1 %v7751_v38 }
0x3956   :  { %v7748_v54 = vsel %vm484_vm6, %v7746_v55, -inf }
0x3957   :  { %7749 = vmax.xlane.f32.xlu0 %v7748_v54 }
0x39c5   :  { %v16228_v56 = vpop.f32.mrf.mxu0 }
0x39c6   :  { %v7949_v52 = vmul.f32 0.35355338, %v16228_v56 }
0x39c7   :  { %v7939_v35 = vpop.f32.mrf.mxu0 }
0x39c8   :  { %v7948_v5 = vmul.f32 0.35355338, %v7939_v35  ;;  %v7951_v30 = vadd.f32 %v7949_v52, %v18677_v41 }
0x39ca   :  { %v7950_v49 = vadd.f32 %v7948_v5, %v18682_v60  ;;  %v7955_v11 = vsel %vm484_vm6, %v7951_v30, -inf }
0x39cc   :  { %v7952_v58 = vsel %vm484_vm6, %v7950_v49, -inf }
0x39cd   :  { %7953 = vmax.xlane.f32.xlu0 %v7952_v58 }
0x39d1   :  { %7956 = vmax.xlane.f32.xlu0 %v7955_v11 }
0x39de   :  { %v7753_v61 = vpop.xlane.xlu1 %7752 }
0x39df   :  { %v7755_v6 = vsub.f32 %v7747_v59, %v7753_v61 }
0x39e0   :  { %v7750_v9 = vpop.xlane.xlu0 %7749 }
0x39e1   :  { %v7758_v24 = vmul.f32 1.442695, %v7755_v6  ;;  %v7754_v40 = vsub.f32 %v7746_v55, %v7750_v9 }
0x39e3   :  { %16906 = vpow2.f32 %v7758_v24  ;;  %v7756_v12 = vmul.f32 1.442695, %v7754_v40 }
0x39e5   :  { %16908 = vpow2.f32 %v7756_v12 }
0x39f0   :  { %v16907_v17 = vpop.eup %16906 }
0x39f1   :  { %v7763_v19 = vsel %vm484_vm6, %v16907_v17, 0.0 }
0x39f2   :  { %v16909_v2 = vpop.eup %16908  ;;  %7764 = vadd.xlane.f32.xlu1 %v7763_v19 }
0x39f3   :  { %v7760_v43 = vsel %vm484_vm6, %v16909_v2, 0.0 }
0x39f4   :  { %7761 = vadd.xlane.f32.xlu0 %v7760_v43 }
0x3a56   :  { %v7954_v32 = vpop.xlane.xlu0 %7953 }
0x3a57   :  { %v7958_v16 = vsub.f32 %v7950_v49, %v7954_v32 }
0x3a59   :  { %v7960_v33 = vmul.f32 1.442695, %v7958_v16 }
0x3a5a   :  { %v7957_v22 = vpop.xlane.xlu0 %7956 }
0x3a5b   :  { %16910 = vpow2.f32 %v7960_v33  ;;  %v7959_v51 = vsub.f32 %v7951_v30, %v7957_v22 }
0x3a5d   :  { %v7962_v1 = vmul.f32 1.442695, %v7959_v51 }
0x3a5f   :  { %16912 = vpow2.f32 %v7962_v1 }
0x3a68   :  { %v16911_v28 = vpop.eup %16910 }
0x3a69   :  { %v7964_v31 = vsel %vm484_vm6, %v16911_v28, 0.0 }
0x3a6a   :  { %7965 = vadd.xlane.f32.xlu0 %v7964_v31 }
0x3a6c   :  { %v16913_v63 = vpop.eup %16912 }
0x3a6d   :  { %v7967_v8 = vsel %vm484_vm6, %v16913_v63, 0.0 }
0x3a6e   :  { %7968 = vadd.xlane.f32.xlu1 %v7967_v8 }
0x3a7d   :  { %v7762_v14 = vpop.xlane.xlu0 %7761 }
0x3a7e   :  { %16914 = vrcp.f32 %v7762_v14 }
0x3a7f   :  { %7770 = vrot.lane.b32.xlu1 %v18019_v46, %s17127_s30 }
0x3a80   :  { %7772 = vrot.lane.b32.xlu0 %v18578_v37, %s17127_s30 }
0x3a83   :  { %7976 = vrot.lane.b32.xlu1 %v18578_v37, %s17128_s22 }
0x3a84   :  { %8062 = vrot.lane.b32.xlu0 %v18632_v7, %s17136_s1  ;;  %v7765_v7 = vpop.xlane.xlu1 %7764 }
0x3a85   :  { %16916 = vrcp.f32 %v7765_v7 }
0x3a87   :  { %7974 = vrot.lane.b32.xlu1 %v18019_v46, %s17128_s22 }
0x3a88   :  { %8235 = vrot.lane.b32.xlu0 %v18019_v46, %s17133_s6 }
0x3a8b   :  { %v16915_v34 = vpop.eup %16914  ;;  %8237 = vrot.lane.b32.xlu1 %v18578_v37, %s17133_s6 }
0x3a8c   :  { %8233 = vrot.lane.b32.xlu0 %v18659_v21, %s17133_s6  ;;  %v7768_v39 = vmul.f32 %v16915_v34, %v16909_v2 }
0x3a8e   :  { %16219 = vmatprep.mubr.msk.f32.mxu1 %vm484_vm6, %v7768_v39 }
0x3a8f   :  { %8231 = vrot.lane.b32.xlu1 %v18656_v42, %s17133_s6 }
0x3a90   :  { %8526 = vrot.lane.b32.xlu0 %v18019_v46, %s19780_s27 }
0x3a92   :  { %v16917_v45 = vpop.eup %16916 }
0x3a93   :  { %8528 = vrot.lane.b32.xlu1 %v18578_v37, %s19780_s27  ;;  %v7769_v29 = vmul.f32 %v16917_v45, %v16907_v17 }
0x3a94   :  { %8524 = vrot.lane.b32.xlu0 %v18659_v21, %s19780_s27 }
0x3a97   :  { %8522 = vrot.lane.b32.xlu1 %v18656_v42, %s19780_s27 }
0x3af3   :  { %v7966_v36 = vpop.xlane.xlu0 %7965 }
0x3af4   :  { %16918 = vrcp.f32 %v7966_v36 }
0x3af7   :  { %v7773_v47 = vpop.permute.xlu0 %7772  ;;  %v7969_v4 = vpop.xlane.xlu1 %7968 }
0x3af8   :  { %16920 = vrcp.f32 %v7969_v4  ;;  %16215 = vmatprep.subr.mxu1 %v7773_v47 }
0x3af9   :  { %16216 = vmatpush3.msra.mxu1 %v7773_v47 }
0x3afb   :  { %v7771_v15 = vpop.permute.xlu1 %7770  ;;  %v8063_v18 = vpop.permute.xlu0 %8062 }
0x3afc   :  { %16217 = vmatprep.subr.mxu1 %v7771_v15 }
0x3afd   :  { %16218 = vmatpush3.msra.mxu1 %v7771_v15 }
0x3afe   :  { %16220 = vmatmul.mubr.msk.f32.vlgmr.msra.gmra.mxu1 %vm484_vm6, %v7769_v29 }
0x3aff   :  { %v7977_v21 = vpop.permute.xlu1 %7976  ;;  %v8236_v54 = vpop.permute.xlu0 %8235 }
0x3b00   :  { %16229 = vmatprep.subr.mxu1 %v7977_v21 }
0x3b01   :  { %v16919_v20 = vpop.eup %16918  ;;  %16230 = vmatpush3.msra.mxu1 %v7977_v21 }
0x3b02   :  { %v7972_v42 = vmul.f32 %v16919_v20, %v16911_v28 }
0x3b03   :  { %v7975_v53 = vpop.permute.xlu1 %7974  ;;  %v8234_v52 = vpop.permute.xlu0 %8233 }
0x3b04   :  { %16231 = vmatprep.subr.mxu1 %v7975_v53  ;;  %16233 = vmatprep.mubr.msk.f32.mxu1 %vm484_vm6, %v7972_v42 }
0x3b05   :  { %v16921_v44 = vpop.eup %16920  ;;  %16232 = vmatpush3.msra.mxu1 %v7975_v53 }
0x3b06   :  { %16236 = vmatprep.subr.mxu1 %v8063_v18  ;;  %v7973_v48 = vmul.f32 %v16921_v44, %v16913_v63 }
0x3b07   :  { %v8238_v23 = vpop.permute.xlu1 %8237  ;;  %v8527_v49 = vpop.permute.xlu0 %8526 }
0x3b08   :  { %16234 = vmatmul.mubr.msk.f32.vlgmr.msra.gmra.mxu1 %vm484_vm6, %v7973_v48 }
0x3b09   :  { %16237 = vmatpush3.msra.mxu1 %v8063_v18 }
0x3b0a   :  { %16246 = vmatprep.subr.msk.mxu1 %vm396_vm5, %v8238_v23 }
0x3b0b   :  { %v8232_v55 = vpop.permute.xlu1 %8231  ;;  %v8525_v30 = vpop.permute.xlu0 %8524 }
0x3b0f   :  { %v8529_v35 = vpop.permute.xlu1 %8528 }
0x3b13   :  { %v8523_v5 = vpop.permute.xlu1 %8522 }
0x3bbe   :  { %v16221_v59 = vpop.f32.mrf.mxu1 }
0x3bc0   :  { %v7848_v50 = vpop.f32.mrf.mxu1 }
0x3bc1   :  { %16243 = vmatprep.mubr.msk.f32.mxu0 %vm396_vm5, %v7848_v50 }
0x3bc8   :  { %v16235_v38 = vpop.f32.mrf.mxu1 }
0x3bca   :  { %v8052_v56 = vpop.f32.mrf.mxu1 }
0x3bcb   :  { %16238 = vmatprep.mubr.msk.f32.mxu1 %vm396_vm5, %v8052_v56 }
0x3bcc   :  { %16239 = vmatmul.mubr.msk.f32.vlgmr.msra.gmra.mxu1 %vm396_vm5, %v16235_v38 }
0x3bcd   :  { %16247 = vmatpush3.xpose.msk.msra.mxu1 %vm396_vm5, %v8238_v23  ;;  %16250 = vmatprep.mubr.msk.f32.mxu1 %vm396_vm5, %v8232_v55 }
0x3bce   :  { %16248 = vmatprep.subr.msk.mxu1 %vm396_vm5, %v8236_v54 }
0x3bd1   :  { %16249 = vmatpush3.xpose.msk.msra.mxu1 %vm396_vm5, %v8236_v54 }
0x3bd2   :  { %16265 = vmatprep.subr.msk.mxu1 %vm396_vm5, %v8529_v35 }
0x3bd4   :  { %16251 = vmatmul.mubr.msk.f32.vlgmr.msra.gmra.mxu1 %vm396_vm5, %v8234_v52 }
0x3bd5   :  { %16266 = vmatpush3.xpose.msk.msra.mxu1 %vm396_vm5, %v8529_v35  ;;  %16269 = vmatprep.mubr.msk.f32.mxu1 %vm396_vm5, %v8523_v5 }
0x3bd6   :  { %16267 = vmatprep.subr.msk.mxu1 %vm396_vm5, %v8527_v49 }
0x3bd9   :  { %16268 = vmatpush3.xpose.msk.msra.mxu1 %vm396_vm5, %v8527_v49 }
0x3bdc   :  { %16270 = vmatmul.mubr.msk.f32.vlgmr.msra.gmra.mxu1 %vm396_vm5, %v8525_v30 }
0x3c8c   :  { %v18741_v58 = vpop.f32.mrf.mxu1 }
0x3c8e   :  { %v18743_v11 = vpop.f32.mrf.mxu1 }
0x3c94   :  { %v16252_v61 = vpop.f32.mrf.mxu1 }
0x3c95   :  { %v8323_v6 = vmul.f32 0.35355338, %v16252_v61 }
0x3c96   :  { %v8313_v9 = vpop.f32.mrf.mxu1 }
0x3c97   :  { %v8325_v24 = vadd.f32 %v8323_v6, %v18677_v41  ;;  %v8322_v40 = vmul.f32 0.35355338, %v8313_v9 }
0x3c99   :  { %v8324_v12 = vadd.f32 %v8322_v40, %v18682_v60  ;;  %v8329_v17 = vsel %vm484_vm6, %v8325_v24, -inf }
0x3c9a   :  { %8330 = vmax.xlane.f32.xlu0 %v8329_v17 }
0x3c9b   :  { %v8326_v19 = vsel %vm484_vm6, %v8324_v12, -inf }
0x3c9c   :  { %8327 = vmax.xlane.f32.xlu1 %v8326_v19  ;;  %v16271_v2 = vpop.f32.mrf.mxu1 }
0x3c9d   :  { %v8614_v4 = vmul.f32 0.35355338, %v16271_v2 }
0x3c9e   :  { %v8604_v43 = vpop.f32.mrf.mxu1 }
0x3c9f   :  { %v8613_v32 = vmul.f32 0.35355338, %v8604_v43  ;;  %v8616_v45 = vadd.f32 %v8614_v4, %v18677_v41  ;;  %v14881_v4 = vld [vmem:[%s19755_s14 + $0xb8] sm:$0xff] }
0x3ca1   :  { %v8615_v16 = vadd.f32 %v8613_v32, %v18682_v60  ;;  %v8620_v15 = vsel %vm484_vm6, %v8616_v45, -inf }
0x3ca3   :  { %v8617_v33 = vsel %vm484_vm6, %v8615_v16, -inf }
0x3cad   :  { %8147 = vrot.lane.b32.xlu1 %v18639_v10, %s17136_s1 }
0x3cb1   :  { %8348 = vrot.lane.b32.xlu1 %v18019_v46, %s17132_s0 }
0x3cd5   :  { %8618 = vmax.xlane.f32.xlu1 %v8617_v33 }
0x3d23   :  { %v8331_v22 = vpop.xlane.xlu0 %8330 }
0x3d24   :  { %v8333_v51 = vsub.f32 %v8325_v24, %v8331_v22 }
0x3d25   :  { %v8328_v1 = vpop.xlane.xlu1 %8327 }
0x3d26   :  { %v8336_v28 = vmul.f32 1.442695, %v8333_v51  ;;  %v8332_v31 = vsub.f32 %v8324_v12, %v8328_v1 }
0x3d28   :  { %16922 = vpow2.f32 %v8336_v28  ;;  %v8334_v63 = vmul.f32 1.442695, %v8332_v31 }
0x3d29   :  { %v8148_v8 = vpop.permute.xlu1 %8147 }
0x3d2a   :  { %16924 = vpow2.f32 %v8334_v63  ;;  %16241 = vmatprep.subr.mxu0 %v8148_v8 }
0x3d2b   :  { %16242 = vmatpush3.msra.mxu0 %v8148_v8 }
0x3d2c   :  { %16244 = vmatmul.mubr.msk.f32.vlgmr.msra.gmra.mxu0 %vm396_vm5, %v16221_v59 }
0x3d2d   :  { %v8349_v39 = vpop.permute.xlu1 %8348 }
0x3d35   :  { %v16923_v10 = vpop.eup %16922 }
0x3d36   :  { %v8341_v14 = vsel %vm484_vm6, %v16923_v10, 0.0 }
0x3d37   :  { %v16925_v60 = vpop.eup %16924  ;;  %8342 = vadd.xlane.f32.xlu0 %v8341_v14 }
0x3d38   :  { %v8338_v34 = vsel %vm484_vm6, %v16925_v60, 0.0 }
0x3d3b   :  { %8339 = vadd.xlane.f32.xlu0 %v8338_v34  ;;  %v14869_v34 = vld [vmem:[%s19757_s16 + $0x9] ss:$0 sm:$0xff] }
0x3d51   :  { %8350 = vrot.lane.b32.xlu0 %v18578_v37, %s17132_s0 }
0x3d5e   :  { %v8619_v7 = vpop.xlane.xlu1 %8618 }
0x3d5f   :  { %v8623_v36 = vsub.f32 %v8615_v16, %v8619_v7  ;;  %v14872_v7 = vld [vmem:[%s19754_s13 + $0x50] sm:$0xff] }
0x3d61   :  { %v8625_v47 = vmul.f32 1.442695, %v8623_v36  ;;  %v14871_v36 = vld [vmem:[%s19754_s13 + $0x48] sm:$0xff] }
0x3d63   :  { %16926 = vpow2.f32 %v8625_v47  ;;  %v14870_v47 = vld [vmem:[%s19754_s13 + $0x40] sm:$0xff] }
0x3d70   :  { %v16927_v29 = vpop.eup %16926  ;;  %8621 = vmax.xlane.f32.xlu0 %v8620_v15  ;;  %v14879_v15 = vld [vmem:[%s19755_s14 + $0xa8] sm:$0xff] }
0x3d71   :  { %v8629_v21 = vsel %vm484_vm6, %v16927_v29, 0.0 }
0x3d74   :  { %8630 = vadd.xlane.f32.xlu0 %v8629_v21 }
0x3d8a   :  { %8436 = vrot.lane.b32.xlu0 %v18627_v62, %s17136_s1 }
0x3d8e   :  { %8813 = vrot.lane.b32.xlu0 %v18653_v25, %s17136_s1 }
0x3dc0   :  { %v8343_v20 = vpop.xlane.xlu0 %8342 }
0x3dc1   :  { %16928 = vrcp.f32 %v8343_v20 }
0x3dc4   :  { %v8340_v42 = vpop.xlane.xlu0 %8339 }
0x3dc5   :  { %16930 = vrcp.f32 %v8340_v42 }
0x3dc8   :  { %v8351_v53 = vpop.permute.xlu0 %8350 }
0x3dc9   :  { %16253 = vmatprep.subr.mxu0 %v8351_v53 }
0x3dca   :  { %16254 = vmatpush3.msra.mxu0 %v8351_v53 }
0x3dcb   :  { %16255 = vmatprep.subr.mxu0 %v8349_v39 }
0x3dcc   :  { %16256 = vmatpush3.msra.mxu0 %v8349_v39  ;;  %v14873_v39 = vld [vmem:[%s19754_s13 + $0x58] sm:$0xff] }
0x3dcd   :  { %16284 = vmatprep.subr.mxu1 %v14873_v39 }
0x3dce   :  { %v16929_v41 = vpop.eup %16928  ;;  %16285 = vmatpush3.msra.mxu1 %v14873_v39  ;;  %v14889_v39 = vld [vmem:[%s19757_s16 + $0xa] ss:$0 sm:$0xff] }
0x3dcf   :  { %v8347_v48 = vmul.f32 %v16929_v41, %v16923_v10  ;;  %16286 = vmatprep.subr.mxu1 %v14872_v7 }
0x3dd0   :  { %16287 = vmatpush3.msra.mxu1 %v14872_v7  ;;  %v18873_v7 = vld [vmem:[%s19750_s9 + $0xd8] sm:$0xff] }
0x3dd1   :  { %16288 = vmatprep.subr.mxu1 %v14871_v36 }
0x3dd2   :  { %v16931_v44 = vpop.eup %16930  ;;  %16289 = vmatpush3.msra.mxu1 %v14871_v36  ;;  %v18878_v36 = vld [vmem:[%s19750_s9 + $0xd0] sm:$0xff] }
0x3dd3   :  { %v8346_v18 = vmul.f32 %v16931_v44, %v16925_v60  ;;  %16290 = vmatprep.subr.mxu1 %v14870_v47 }
0x3dd4   :  { %16291 = vmatpush3.msra.mxu1 %v14870_v47  ;;  %v18887_v47 = vld [vmem:[%s19750_s9 + $0xc8] sm:$0xff] }
0x3dd5   :  { %16257 = vmatprep.mubr.msk.f32.mxu0 %vm484_vm6, %v8346_v18  ;;  %16314 = vmatprep.subr.mxu1 %v18873_v7 }
0x3dd6   :  { %16258 = vmatmul.mubr.msk.f32.vlgmr.msra.gmra.mxu0 %vm484_vm6, %v8347_v48 }
0x3dec   :  { %v16245_v54 = vpop.f32.mrf.mxu0 }
0x3ded   :  { %v8228_v40 = vadd.f32 %v16245_v54, %v18741_v58 }
0x3dee   :  { %v8222_v56 = vpop.f32.mrf.mxu0 }
0x3def   :  { %v8223_v32 = vadd.f32 %v8222_v56, %v18743_v11 }
0x3df9   :  { %v8622_v62 = vpop.xlane.xlu0 %8621 }
0x3dfa   :  { %v8624_v23 = vsub.f32 %v8616_v45, %v8622_v62  ;;  %v14880_v45 = vld [vmem:[%s19755_s14 + $0xb0] sm:$0xff] }
0x3dfc   :  { %v8627_v25 = vmul.f32 1.442695, %v8624_v23 }
0x3dfd   :  { %v8631_v55 = vpop.xlane.xlu0 %8630 }
0x3dfe   :  { %16932 = vpow2.f32 %v8627_v25 }
0x3dff   :  { %16934 = vrcp.f32 %v8631_v55 }
0x3e01   :  { %v8437_v38 = vpop.permute.xlu0 %8436 }
0x3e02   :  { %16260 = vmatprep.subr.mxu0 %v8437_v38 }
0x3e03   :  { %16261 = vmatpush3.msra.mxu0 %v8437_v38 }
0x3e05   :  { %v8814_v33 = vpop.permute.xlu0 %8813 }
0x3e0b   :  { %v16933_v59 = vpop.eup %16932 }
0x3e0c   :  { %v8632_v50 = vsel %vm484_vm6, %v16933_v59, 0.0  ;;  %v16935_v35 = vpop.eup %16934 }
0x3e0d   :  { %8633 = vadd.xlane.f32.xlu1 %v8632_v50  ;;  %v8637_v30 = vmul.f32 %v16935_v35, %v16927_v29  ;;  %v14878_v29 = vld [vmem:[%s19755_s14 + $0xa0] sm:$0xff] }
0x3e1e   :  { %8641 = vrot.lane.b32.xlu1 %v18578_v37, %s19779_s8 }
0x3e22   :  { %8639 = vrot.lane.b32.xlu1 %v18019_v46, %s19779_s8 }
0x3e26   :  { %8727 = vrot.lane.b32.xlu1 %v18620_v57, %s17136_s1 }
0x3e96   :  { %v16259_v52 = vpop.f32.mrf.mxu0  ;;  %v8634_v5 = vpop.xlane.xlu1 %8633 }
0x3e97   :  { %16936 = vrcp.f32 %v8634_v5 }
0x3e98   :  { %v8426_v49 = vpop.f32.mrf.mxu0 }
0x3e99   :  { %16262 = vmatprep.mubr.msk.f32.mxu0 %vm396_vm5, %v8426_v49 }
0x3e9a   :  { %16263 = vmatmul.mubr.msk.f32.vlgmr.msra.gmra.mxu0 %vm396_vm5, %v16259_v52  ;;  %v8642_v61 = vpop.permute.xlu1 %8641 }
0x3e9b   :  { %16272 = vmatprep.subr.mxu0 %v8642_v61  ;;  %16276 = vmatprep.mubr.msk.f32.mxu0 %vm484_vm6, %v8637_v30 }
0x3e9c   :  { %16273 = vmatpush3.msra.mxu0 %v8642_v61 }
0x3e9e   :  { %v8640_v6 = vpop.permute.xlu1 %8639 }
0x3e9f   :  { %16274 = vmatprep.subr.mxu0 %v8640_v6 }
0x3ea0   :  { %16275 = vmatpush3.msra.mxu0 %v8640_v6 }
0x3ea2   :  { %v8728_v24 = vpop.permute.xlu1 %8727 }
0x3ea3   :  { %16279 = vmatprep.subr.mxu0 %v8728_v24 }
0x3ea4   :  { %v16937_v57 = vpop.eup %16936 }
0x3ea5   :  { %v8638_v9 = vmul.f32 %v16937_v57, %v16933_v59 }
0x3ea7   :  { %16277 = vmatmul.mubr.msk.f32.vlgmr.msra.gmra.mxu0 %vm484_vm6, %v8638_v9 }
0x3ea8   :  { %16280 = vmatpush3.msra.mxu0 %v8728_v24 }
0x3ea9   :  { %16295 = vmatprep.subr.mxu0 %v14881_v4 }
0x3f5a   :  { %v16264_v12 = vpop.f32.mrf.mxu0 }
0x3f5b   :  { %v8521_v17 = vadd.f32 %v16264_v12, %v8228_v40  ;;  %v14883_v40 = vld [vmem:[%s19756_s15 + $0x2] ss:$0 sm:$0xff]  ;;  %v14877_v12 = vld [vmem:[%s19755_s14 + $0x98] sm:$0xff] }
0x3f5c   :  { %v8511_v19 = vpop.f32.mrf.mxu0 }
0x3f5d   :  { %v8520_v22 = vadd.f32 %v8511_v19, %v8223_v32  ;;  %v14875_v19 = vld [vmem:[%s19755_s14 + $0x88] sm:$0xff] }
0x3f67   :  { %v16278_v2 = vpop.f32.mrf.mxu0 }
0x3f69   :  { %v8717_v43 = vpop.f32.mrf.mxu0 }
0x3f6a   :  { %16281 = vmatprep.mubr.msk.f32.mxu0 %vm396_vm5, %v8717_v43 }
0x3f6b   :  { %16282 = vmatmul.mubr.msk.f32.vlgmr.msra.gmra.mxu0 %vm396_vm5, %v16278_v2  ;;  %v14874_v2 = vld [vmem:[%s19755_s14 + $0x80] sm:$0xff] }
0x3f6c   :  { %16296 = vmatpush3.msra.mxu0 %v14881_v4  ;;  %v18893_v4 = vld [vmem:[%s19750_s9 + $0xc0] sm:$0xff] }
0x3f6d   :  { %16297 = vmatprep.subr.mxu0 %v14880_v45 }
0x3f6e   :  { %16298 = vmatpush3.msra.mxu0 %v14880_v45 }
0x3f6f   :  { %16299 = vmatprep.subr.mxu0 %v14879_v15 }
0x3f70   :  { %16300 = vmatpush3.msra.mxu0 %v14879_v15 }
0x3f71   :  { %16301 = vmatprep.subr.mxu0 %v14878_v29 }
0x3f72   :  { %16302 = vmatpush3.msra.mxu0 %v14878_v29 }
0x3f73   :  { %16303 = vmatprep.subr.mxu0 %v14877_v12 }
0x3f74   :  { %16304 = vmatpush3.msra.mxu0 %v14877_v12 }
0x402b   :  { %v16283_v16 = vpop.f32.mrf.mxu0 }
0x402c   :  { %v8812_v51 = vadd.f32 %v16283_v16, %v8521_v17  ;;  %v14876_v17 = vld [vmem:[%s19755_s14 + $0x90] sm:$0xff] }
0x402d   :  { %v8802_v1 = vpop.f32.mrf.mxu0  ;;  %16305 = vmatprep.subr.mxu0 %v14876_v17 }
0x402e   :  { %v8817_v28 = vadd.f32 %v8814_v33, %v8812_v51  ;;  %v8811_v31 = vadd.f32 %v8802_v1, %v8520_v22  ;;  %16306 = vmatpush3.msra.mxu0 %v14876_v17 }
0x402f   :  { %16307 = vmatprep.subr.mxu0 %v14875_v19 }
0x4030   :  { %v18785_v58 = vadd.f32 %v8817_v28, %v18594_v27  ;;  %v8816_v63 = vadd.f32 %v8814_v33, %v8811_v31  ;;  %16308 = vmatpush3.msra.mxu0 %v14875_v19 }
0x4031   :  { %16309 = vmatprep.subr.mxu0 %v14874_v2 }
0x4032   :  { %v18788_v8 = vadd.f32 %v8816_v63, %v18597_v26  ;;  %v8825_v10 = vsel %vm251_vm2, %v18785_v58, 0.0  ;;  %v8831_v27 = vmul.f32 %v18785_v58, %v18785_v58  ;;  %16310 = vmatpush3.msra.mxu0 %v14874_v2 }
0x4033   :  { %8826 = vadd.xlane.f32.xlu0 %v8825_v10 }
0x4034   :  { %v8822_v11 = vsel %vm251_vm2, %v18788_v8, 0.0  ;;  %v8830_v14 = vmul.f32 %v18788_v8, %v18788_v8  ;;  %v8835_v26 = vsel %vm251_vm2, %v8831_v27, 0.0 }
0x4035   :  { %8823 = vadd.xlane.f32.xlu1 %v8822_v11 }
0x4036   :  { %v8832_v60 = vsel %vm251_vm2, %v8830_v14, 0.0 }
0x4037   :  { %8833 = vadd.xlane.f32.xlu0 %v8832_v60 }
0x403b   :  { %8836 = vadd.xlane.f32.xlu0 %v8835_v26 }
0x4046   :  { %8862 = vrot.lane.b32.xlu1 %v14869_v34, %s17127_s30 }
0x4051   :  { %8972 = vrot.lane.b32.xlu0 %v14883_v40, %s17130_s28 }
0x40bc   :  { %v8827_v21 = vpop.xlane.xlu0 %8826 }
0x40bd   :  { %v8829_v41 = vmul.f32 0.03125, %v8827_v21 }
0x40be   :  { %v8824_v20 = vpop.xlane.xlu1 %8823 }
0x40bf   :  { %v8828_v42 = vmul.f32 0.03125, %v8824_v20  ;;  %v8841_v23 = vmul.f32 %v8829_v41, %v8829_v41  ;;  %v8847_v49 = vsub.f32 %v18785_v58, %v8829_v41 }
0x40c0   :  { %v8834_v53 = vpop.xlane.xlu0 %8833 }
0x40c1   :  { %v8840_v44 = vmul.f32 %v8828_v42, %v8828_v42  ;;  %v8838_v18 = vmul.f32 0.03125, %v8834_v53  ;;  %v8846_v56 = vsub.f32 %v18788_v8, %v8828_v42 }
0x40c2   :  { %v8863_v5 = vpop.permute.xlu1 %8862 }
0x40c3   :  { %v8842_v48 = vsub.f32 %v8838_v18, %v8840_v44 }
0x40c4   :  { %v8837_v62 = vpop.xlane.xlu0 %8836 }
0x40c5   :  { %v8844_v25 = vmax.f32 %v8842_v48, 0.0  ;;  %v8839_v59 = vmul.f32 0.03125, %v8837_v62 }
0x40c7   :  { %v8848_v50 = vadd.f32 1e-06, %v8844_v25  ;;  %v8843_v55 = vsub.f32 %v8839_v59, %v8841_v23 }
0x40c8   :  { %v8973_v1 = vpop.permute.xlu0 %8972 }
0x40c9   :  { %16938 = vrsqrt.f32 %v8848_v50  ;;  %v8845_v38 = vmax.f32 %v8843_v55, 0.0 }
0x40cb   :  { %v8849_v54 = vadd.f32 1e-06, %v8845_v38 }
0x40cd   :  { %16940 = vrsqrt.f32 %v8849_v54 }
0x40d6   :  { %v16939_v35 = vpop.eup %16938 }
0x40d7   :  { %v8852_v52 = vmul.f32 %v16939_v35, %v8846_v56 }
0x40d9   :  { %v8860_v30 = vmul.f32 %v14869_v34, %v8852_v52 }
0x40da   :  { %v16941_v61 = vpop.eup %16940 }
0x40db   :  { %v8853_v6 = vmul.f32 %v16941_v61, %v8847_v49  ;;  %v8865_v57 = vadd.f32 %v8863_v5, %v8860_v30 }
0x40dd   :  { %v8861_v9 = vmul.f32 %v14869_v34, %v8853_v6  ;;  %16292 = vmatprep.mubr.msk.f32.mxu1 %vm251_vm2, %v8865_v57  ;;  %v18905_v57 = vld [vmem:[%s19751_s10 + $0x6] ss:$0 sm:$0xff] }
0x40df   :  { %v8866_v24 = vadd.f32 %v8863_v5, %v8861_v9 }
0x40e1   :  { %16293 = vmatmul.mubr.msk.f32.vlgmr.msra.gmra.mxu1 %vm251_vm2, %v8866_v24 }
0x40e2   :  { %16315 = vmatpush3.msra.mxu1 %v18873_v7 }
0x40e3   :  { %16316 = vmatprep.subr.mxu1 %v18878_v36 }
0x40e4   :  { %16317 = vmatpush3.msra.mxu1 %v18878_v36 }
0x40e5   :  { %16318 = vmatprep.subr.mxu1 %v18887_v47 }
0x40e6   :  { %16319 = vmatpush3.msra.mxu1 %v18887_v47 }
0x40e7   :  { %16320 = vmatprep.subr.mxu1 %v18893_v4 }
0x40e8   :  { %16321 = vmatpush3.msra.mxu1 %v18893_v4 }
0x41a1   :  { %v16294_v43 = vpop.f32.mrf.mxu1 }
0x41a2   :  { %v8967_v32 = vadd.f32 %v16294_v43, %v14883_v40 }
0x41a3   :  { %v8961_v16 = vpop.f32.mrf.mxu1 }
0x41a4   :  { %v8962_v33 = vadd.f32 %v14883_v40, %v8961_v16  ;;  %v8971_v51 = vmax.f32 %v8967_v32, 0.0  ;;  %v18928_v16 = vld [vmem:[%s19745_s4 + $0x8] sm:$0xff] }
0x41a6   :  { %v8970_v22 = vmax.f32 %v8962_v33, 0.0 }
0x41a8   :  { %16311 = vmatprep.mubr.msk.f32.mxu0 %vm1709_vm7, %v8970_v22 }
0x41a9   :  { %16312 = vmatmul.mubr.msk.f32.vlgmr.msra.gmra.mxu0 %vm1709_vm7, %v8971_v51  ;;  %v18934_v51 = vld [vmem:[%s19745_s4] sm:$0xff] }
0x4269   :  { %v16313_v28 = vpop.f32.mrf.mxu0 }
0x426a   :  { %v9053_v31 = vadd.f32 %v16313_v28, %v8973_v1 }
0x426b   :  { %v9047_v63 = vpop.f32.mrf.mxu0 }
0x426c   :  { %v18851_v10 = vadd.f32 %v9053_v31, %v18785_v58  ;;  %v9048_v11 = vadd.f32 %v9047_v63, %v8973_v1 }
0x426e   :  { %v18854_v14 = vadd.f32 %v9048_v11, %v18788_v8  ;;  %v9063_v60 = vsel %vm251_vm2, %v18851_v10, 0.0  ;;  %v9069_v27 = vmul.f32 %v18851_v10, %v18851_v10 }
0x426f   :  { %9064 = vadd.xlane.f32.xlu0 %v9063_v60 }
0x4270   :  { %v9060_v26 = vsel %vm251_vm2, %v18854_v14, 0.0  ;;  %v9068_v34 = vmul.f32 %v18854_v14, %v18854_v14  ;;  %v9073_v58 = vsel %vm251_vm2, %v9069_v27, 0.0 }
0x4271   :  { %9061 = vadd.xlane.f32.xlu1 %v9060_v26 }
0x4272   :  { %v9070_v8 = vsel %vm251_vm2, %v9068_v34, 0.0 }
0x4273   :  { %9074 = vadd.xlane.f32.xlu0 %v9073_v58 }
0x4275   :  { %9071 = vadd.xlane.f32.xlu1 %v9070_v8 }
0x4286   :  { %9100 = vrot.lane.b32.xlu1 %v14889_v39, %s17127_s30 }
0x42f8   :  { %v9065_v45 = vpop.xlane.xlu0 %9064 }
0x42f9   :  { %v9067_v15 = vmul.f32 0.03125, %v9065_v45 }
0x42fa   :  { %v9062_v29 = vpop.xlane.xlu1 %9061 }
0x42fb   :  { %v9066_v21 = vmul.f32 0.03125, %v9062_v29  ;;  %v9079_v42 = vmul.f32 %v9067_v15, %v9067_v15  ;;  %v9085_v55 = vsub.f32 %v18851_v10, %v9067_v15 }
0x42fc   :  { %v9075_v20 = vpop.xlane.xlu0 %9074 }
0x42fd   :  { %v9077_v53 = vmul.f32 0.03125, %v9075_v20  ;;  %v9078_v44 = vmul.f32 %v9066_v21, %v9066_v21  ;;  %v9084_v54 = vsub.f32 %v18854_v14, %v9066_v21 }
0x42fe   :  { %v9072_v41 = vpop.xlane.xlu1 %9071 }
0x42ff   :  { %v9081_v18 = vsub.f32 %v9077_v53, %v9079_v42  ;;  %v9076_v48 = vmul.f32 0.03125, %v9072_v41 }
0x4301   :  { %v9083_v62 = vmax.f32 %v9081_v18, 0.0  ;;  %v9080_v23 = vsub.f32 %v9076_v48, %v9078_v44 }
0x4302   :  { %v9101_v30 = vpop.permute.xlu1 %9100 }
0x4303   :  { %v9087_v25 = vadd.f32 1e-06, %v9083_v62  ;;  %v9082_v59 = vmax.f32 %v9080_v23, 0.0 }
0x4305   :  { %16942 = vrsqrt.f32 %v9087_v25  ;;  %v9086_v50 = vadd.f32 1e-06, %v9082_v59 }
0x4307   :  { %16944 = vrsqrt.f32 %v9086_v50 }
0x4312   :  { %v16943_v38 = vpop.eup %16942 }
0x4313   :  { %v9091_v56 = vmul.f32 %v16943_v38, %v9085_v55 }
0x4314   :  { %v16945_v35 = vpop.eup %16944 }
0x4315   :  { %v9090_v52 = vmul.f32 %v16945_v35, %v9084_v54  ;;  %v9099_v5 = vmul.f32 %v14889_v39, %v9091_v56 }
0x4317   :  { %v9098_v49 = vmul.f32 %v14889_v39, %v9090_v52  ;;  %v9104_v6 = vadd.f32 %v9101_v30, %v9099_v5 }
0x4319   :  { %v9103_v61 = vadd.f32 %v9101_v30, %v9098_v49 }
0x431b   :  { %16322 = vmatprep.mubr.msk.f32.mxu1 %vm251_vm2, %v9103_v61 }
0x431c   :  { %16323 = vmatmul.mubr.msk.f32.vlgmr.msra.gmra.mxu1 %vm251_vm2, %v9104_v6 }
0x43dc   :  { %v16324_v9 = vpop.f32.mrf.mxu1 }
0x43dd   :  { %v18908_v24 = vadd.f32 %v16324_v9, %v18905_v57 }
0x43de   :  { %v9190_v40 = vpop.f32.mrf.mxu1 }
0x43df   :  { %v18911_v12 = vadd.f32 %v18905_v57, %v9190_v40  ;;  %9203 = vrot.lane.b32.xlu0 %v18908_v24, %s17127_s30 }
0x43e1   :  { %9201 = vrot.lane.b32.xlu1 %v18911_v12, %s17127_s30  ;;  %16329 = vmatprep.mubr.msk.f32.mxu1 %vm396_vm5, %v18911_v12 }
0x4451   :  { %v9204_v17 = vpop.permute.xlu0 %9203 }
0x4452   :  { %16325 = vmatprep.subr.msk.mxu1 %vm396_vm5, %v9204_v17 }
0x4453   :  { %16326 = vmatpush3.xpose.msk.msra.mxu1 %vm396_vm5, %v9204_v17  ;;  %v9202_v19 = vpop.permute.xlu1 %9201 }
0x4454   :  { %16327 = vmatprep.subr.msk.mxu1 %vm396_vm5, %v9202_v19 }
0x4457   :  { %16328 = vmatpush3.xpose.msk.msra.mxu1 %vm396_vm5, %v9202_v19 }
0x445a   :  { %16330 = vmatmul.mubr.msk.f32.vlgmr.msra.gmra.mxu1 %vm396_vm5, %v18908_v24 }
0x451a   :  { %v16331_v2 = vpop.f32.mrf.mxu1 }
0x451b   :  { %v9289_v43 = vmul.f32 0.35355338, %v16331_v2 }
0x451c   :  { %v9279_v32 = vpop.f32.mrf.mxu1 }
0x451d   :  { %v9291_v33 = vadd.f32 %v18928_v16, %v9289_v43  ;;  %v9288_v22 = vmul.f32 0.35355338, %v9279_v32 }
0x451f   :  { %v9290_v1 = vadd.f32 %v18934_v51, %v9288_v22  ;;  %v9295_v28 = vsel %vm484_vm6, %v9291_v33, -inf }
0x4520   :  { %9296 = vmax.xlane.f32.xlu0 %v9295_v28 }
0x4521   :  { %v9292_v31 = vsel %vm484_vm6, %v9290_v1, -inf }
0x4522   :  { %9293 = vmax.xlane.f32.xlu1 %v9292_v31 }
0x45a9   :  { %v9297_v63 = vpop.xlane.xlu0 %9296 }
0x45aa   :  { %v9299_v11 = vsub.f32 %v9291_v33, %v9297_v63 }
0x45ab   :  { %v9294_v60 = vpop.xlane.xlu1 %9293 }
0x45ac   :  { %v9302_v27 = vmul.f32 1.442695, %v9299_v11  ;;  %v9298_v26 = vsub.f32 %v9290_v1, %v9294_v60 }
0x45ae   :  { %16946 = vpow2.f32 %v9302_v27  ;;  %v9300_v34 = vmul.f32 1.442695, %v9298_v26 }
0x45b0   :  { %16948 = vpow2.f32 %v9300_v34 }
0x45bb   :  { %v16947_v58 = vpop.eup %16946 }
0x45bc   :  { %v9307_v8 = vsel %vm484_vm6, %v16947_v58, 0.0 }
0x45bd   :  { %v16949_v39 = vpop.eup %16948  ;;  %9308 = vadd.xlane.f32.xlu1 %v9307_v8 }
0x45be   :  { %v9304_v45 = vsel %vm484_vm6, %v16949_v39, 0.0 }
0x45bf   :  { %9305 = vadd.xlane.f32.xlu0 %v9304_v45 }
0x45ce   :  { %9314 = vrot.lane.b32.xlu1 %v18911_v12, %s17130_s28 }
0x45d2   :  { %9407 = vrot.lane.b32.xlu1 %v18908_v24, %s17128_s22 }
0x45d5   :  { %9316 = vrot.lane.b32.xlu0 %v18908_v24, %s17130_s28 }
0x45d6   :  { %9405 = vrot.lane.b32.xlu1 %v18911_v12, %s17128_s22 }
0x45d9   :  { %9401 = vrot.lane.b32.xlu0 %v18911_v12, %s17129_s23 }
0x45da   :  { %9403 = vrot.lane.b32.xlu1 %v18908_v24, %s17129_s23 }
0x4646   :  { %v9309_v15 = vpop.xlane.xlu1 %9308 }
0x4647   :  { %16950 = vrcp.f32 %v9309_v15 }
0x4648   :  { %v9306_v29 = vpop.xlane.xlu0 %9305 }
0x4649   :  { %16952 = vrcp.f32 %v9306_v29 }
0x464a   :  { %v9315_v21 = vpop.permute.xlu1 %9314 }
0x464c   :  { %v9317_v20 = vpop.permute.xlu0 %9316 }
0x464d   :  { %16332 = vmatprep.subr.mxu0 %v9317_v20 }
0x464e   :  { %16333 = vmatpush3.msra.mxu0 %v9317_v20  ;;  %v9408_v42 = vpop.permute.xlu1 %9407 }
0x464f   :  { %16334 = vmatprep.subr.mxu0 %v9315_v21 }
0x4650   :  { %16335 = vmatpush3.msra.mxu0 %v9315_v21  ;;  %v9402_v48 = vpop.permute.xlu0 %9401 }
0x4651   :  { %16339 = vmatprep.subr.msk.mxu0 %vm396_vm5, %v9408_v42 }
0x4652   :  { %v9406_v62 = vpop.permute.xlu1 %9405 }
0x4654   :  { %v16951_v53 = vpop.eup %16950 }
0x4655   :  { %v9313_v18 = vmul.f32 %v16951_v53, %v16947_v58 }
0x4656   :  { %v16953_v41 = vpop.eup %16952  ;;  %v9404_v23 = vpop.permute.xlu1 %9403 }
0x4657   :  { %v9312_v44 = vmul.f32 %v16953_v41, %v16949_v39 }
0x4659   :  { %16336 = vmatprep.mubr.msk.f32.mxu0 %vm484_vm6, %v9312_v44 }
0x465a   :  { %16337 = vmatmul.mubr.msk.f32.vlgmr.msra.gmra.mxu0 %vm484_vm6, %v9313_v18 }
0x465b   :  { %16340 = vmatpush3.xpose.msk.msra.mxu0 %vm396_vm5, %v9408_v42  ;;  %16343 = vmatprep.mubr.msk.f32.mxu0 %vm396_vm5, %v9402_v48 }
0x465c   :  { %16341 = vmatprep.subr.msk.mxu0 %vm396_vm5, %v9406_v62 }
0x465f   :  { %16342 = vmatpush3.xpose.msk.msra.mxu0 %vm396_vm5, %v9406_v62 }
0x4662   :  { %16344 = vmatmul.mubr.msk.f32.vlgmr.msra.gmra.mxu0 %vm396_vm5, %v9404_v23 }
0x471a   :  { %v18961_v25 = vpop.f32.mrf.mxu0 }
0x471c   :  { %v9392_v59 = vpop.f32.mrf.mxu0 }
0x471d   :  { %16360 = vmatprep.mubr.msk.f32.mxu0 %vm396_vm5, %v9392_v59 }
0x4722   :  { %v16345_v50 = vpop.f32.mrf.mxu0 }
0x4723   :  { %v9493_v55 = vmul.f32 0.35355338, %v16345_v50 }
0x4724   :  { %v9483_v38 = vpop.f32.mrf.mxu0 }
0x4725   :  { %v9495_v54 = vadd.f32 %v18928_v16, %v9493_v55  ;;  %v9492_v56 = vmul.f32 0.35355338, %v9483_v38 }
0x4727   :  { %v9494_v35 = vadd.f32 %v18934_v51, %v9492_v56  ;;  %v9499_v52 = vsel %vm484_vm6, %v9495_v54, -inf }
0x4728   :  { %9500 = vmax.xlane.f32.xlu1 %v9499_v52 }
0x4729   :  { %v9496_v5 = vsel %vm484_vm6, %v9494_v35, -inf }
0x472a   :  { %9497 = vmax.xlane.f32.xlu0 %v9496_v5 }
0x4739   :  { %9518 = vrot.lane.b32.xlu1 %v18911_v12, %s17131_s29 }
0x473d   :  { %9606 = vrot.lane.b32.xlu1 %v18887_v47, %s17136_s1 }
0x4741   :  { %9781 = vrot.lane.b32.xlu1 %v18908_v24, %s17132_s0 }
0x4745   :  { %9775 = vrot.lane.b32.xlu1 %v18911_v12, %s17133_s6 }
0x4749   :  { %10072 = vrot.lane.b32.xlu1 %v18908_v24, %s19779_s8 }
0x474d   :  { %10066 = vrot.lane.b32.xlu1 %v18911_v12, %s19780_s27 }
0x47b1   :  { %v9501_v49 = vpop.xlane.xlu1 %9500 }
0x47b2   :  { %v9503_v30 = vsub.f32 %v9495_v54, %v9501_v49 }
0x47b3   :  { %v9498_v61 = vpop.xlane.xlu0 %9497 }
0x47b4   :  { %v9506_v6 = vmul.f32 1.442695, %v9503_v30  ;;  %v9502_v9 = vsub.f32 %v9494_v35, %v9498_v61 }
0x47b5   :  { %v9519_v33 = vpop.permute.xlu1 %9518 }
0x47b6   :  { %16954 = vpow2.f32 %v9506_v6  ;;  %v9504_v40 = vmul.f32 1.442695, %v9502_v9 }
0x47b8   :  { %16956 = vpow2.f32 %v9504_v40 }
0x47b9   :  { %v9607_v1 = vpop.permute.xlu1 %9606 }
0x47bd   :  { %v9782_v60 = vpop.permute.xlu1 %9781 }
0x47c1   :  { %v9776_v27 = vpop.permute.xlu1 %9775 }
0x47c3   :  { %v16955_v47 = vpop.eup %16954 }
0x47c4   :  { %v9511_v17 = vsel %vm484_vm6, %v16955_v47, 0.0 }
0x47c5   :  { %v16957_v19 = vpop.eup %16956  ;;  %9512 = vadd.xlane.f32.xlu0 %v9511_v17  ;;  %v10073_v8 = vpop.permute.xlu1 %10072 }
0x47c6   :  { %v9508_v2 = vsel %vm484_vm6, %v16957_v19, 0.0 }
0x47c9   :  { %9509 = vadd.xlane.f32.xlu0 %v9508_v2  ;;  %v10067_v45 = vpop.permute.xlu1 %10066 }
0x47df   :  { %9520 = vrot.lane.b32.xlu0 %v18908_v24, %s17131_s29 }
0x47e3   :  { %9779 = vrot.lane.b32.xlu0 %v18911_v12, %s17132_s0 }
0x47e7   :  { %9777 = vrot.lane.b32.xlu0 %v18908_v24, %s17133_s6 }
0x47eb   :  { %10070 = vrot.lane.b32.xlu0 %v18911_v12, %s19779_s8 }
0x47ef   :  { %10068 = vrot.lane.b32.xlu0 %v18908_v24, %s19780_s27 }
0x484e   :  { %v9513_v43 = vpop.xlane.xlu0 %9512 }
0x484f   :  { %16958 = vrcp.f32 %v9513_v43 }
0x4852   :  { %v9510_v32 = vpop.xlane.xlu0 %9509 }
0x4853   :  { %16960 = vrcp.f32 %v9510_v32 }
0x4856   :  { %v9521_v22 = vpop.permute.xlu0 %9520 }
0x4857   :  { %16346 = vmatprep.subr.mxu1 %v9521_v22 }
0x4858   :  { %16347 = vmatpush3.msra.mxu1 %v9521_v22 }
0x4859   :  { %16348 = vmatprep.subr.mxu1 %v9519_v33 }
0x485a   :  { %16349 = vmatpush3.msra.mxu1 %v9519_v33  ;;  %v9780_v34 = vpop.permute.xlu0 %9779 }
0x485b   :  { %16353 = vmatprep.subr.mxu1 %v9607_v1 }
0x485c   :  { %v16959_v28 = vpop.eup %16958 }
0x485d   :  { %v9517_v11 = vmul.f32 %v16959_v28, %v16955_v47 }
0x485e   :  { %v9778_v39 = vpop.permute.xlu0 %9777 }
0x4860   :  { %v16961_v31 = vpop.eup %16960 }
0x4861   :  { %v9516_v63 = vmul.f32 %v16961_v31, %v16957_v19 }
0x4862   :  { %v10071_v15 = vpop.permute.xlu0 %10070 }
0x4863   :  { %16350 = vmatprep.mubr.msk.f32.mxu1 %vm484_vm6, %v9516_v63 }
0x4864   :  { %16351 = vmatmul.mubr.msk.f32.vlgmr.msra.gmra.mxu1 %vm484_vm6, %v9517_v11 }
0x4865   :  { %16354 = vmatpush3.msra.mxu1 %v9607_v1 }
0x4866   :  { %16363 = vmatprep.subr.msk.mxu1 %vm396_vm5, %v9782_v60  ;;  %v10069_v29 = vpop.permute.xlu0 %10068 }
0x4924   :  { %v16352_v26 = vpop.f32.mrf.mxu1 }
0x4926   :  { %v9596_v58 = vpop.f32.mrf.mxu1 }
0x4927   :  { %16355 = vmatprep.mubr.msk.f32.mxu1 %vm396_vm5, %v9596_v58 }
0x4928   :  { %16356 = vmatmul.mubr.msk.f32.vlgmr.msra.gmra.mxu1 %vm396_vm5, %v16352_v26 }
0x4929   :  { %16364 = vmatpush3.xpose.msk.msra.mxu1 %vm396_vm5, %v9782_v60  ;;  %16367 = vmatprep.mubr.msk.f32.mxu1 %vm396_vm5, %v9776_v27 }
0x492a   :  { %16365 = vmatprep.subr.msk.mxu1 %vm396_vm5, %v9780_v34 }
0x492d   :  { %16366 = vmatpush3.xpose.msk.msra.mxu1 %vm396_vm5, %v9780_v34 }
0x492e   :  { %16382 = vmatprep.subr.msk.mxu1 %vm396_vm5, %v10073_v8 }
0x4930   :  { %16368 = vmatmul.mubr.msk.f32.vlgmr.msra.gmra.mxu1 %vm396_vm5, %v9778_v39 }
0x4931   :  { %16383 = vmatpush3.xpose.msk.msra.mxu1 %vm396_vm5, %v10073_v8  ;;  %16386 = vmatprep.mubr.msk.f32.mxu1 %vm396_vm5, %v10067_v45 }
0x4932   :  { %16384 = vmatprep.subr.msk.mxu1 %vm396_vm5, %v10071_v15 }
0x4935   :  { %16385 = vmatpush3.xpose.msk.msra.mxu1 %vm396_vm5, %v10071_v15 }
0x4938   :  { %16387 = vmatmul.mubr.msk.f32.vlgmr.msra.gmra.mxu1 %vm396_vm5, %v10069_v29 }
0x49e8   :  { %v19008_v21 = vpop.f32.mrf.mxu1 }
0x49ea   :  { %v19010_v20 = vpop.f32.mrf.mxu1 }
0x49f0   :  { %v16369_v42 = vpop.f32.mrf.mxu1 }
0x49f1   :  { %v9867_v53 = vmul.f32 0.35355338, %v16369_v42 }
0x49f2   :  { %v9857_v41 = vpop.f32.mrf.mxu1 }
0x49f3   :  { %v9869_v44 = vadd.f32 %v18928_v16, %v9867_v53  ;;  %v9866_v18 = vmul.f32 0.35355338, %v9857_v41 }
0x49f5   :  { %v9868_v48 = vadd.f32 %v18934_v51, %v9866_v18  ;;  %v9873_v62 = vsel %vm484_vm6, %v9869_v44, -inf }
0x49f6   :  { %9874 = vmax.xlane.f32.xlu0 %v9873_v62 }
0x49f7   :  { %v9870_v23 = vsel %vm484_vm6, %v9868_v48, -inf }
0x49f8   :  { %9871 = vmax.xlane.f32.xlu1 %v9870_v23  ;;  %v16388_v59 = vpop.f32.mrf.mxu1 }
0x49f9   :  { %v10158_v2 = vmul.f32 0.35355338, %v16388_v59 }
0x49fa   :  { %v10148_v50 = vpop.f32.mrf.mxu1 }
0x49fb   :  { %v10157_v55 = vmul.f32 0.35355338, %v10148_v50  ;;  %v10160_v43 = vadd.f32 %v18928_v16, %v10158_v2 }
0x49fd   :  { %v10159_v38 = vadd.f32 %v18934_v51, %v10157_v55 }
0x49ff   :  { %v10161_v54 = vsel %vm484_vm6, %v10159_v38, -inf }
0x4a09   :  { %9691 = vrot.lane.b32.xlu1 %v18893_v4, %s17136_s1 }
0x4a0d   :  { %9892 = vrot.lane.b32.xlu1 %v18911_v12, %s19777_s26 }
0x4a31   :  { %10162 = vmax.xlane.f32.xlu1 %v10161_v54 }
0x4a7f   :  { %v9875_v56 = vpop.xlane.xlu0 %9874 }
0x4a80   :  { %v9877_v35 = vsub.f32 %v9869_v44, %v9875_v56 }
0x4a81   :  { %v9872_v52 = vpop.xlane.xlu1 %9871 }
0x4a82   :  { %v9880_v5 = vmul.f32 1.442695, %v9877_v35  ;;  %v9876_v49 = vsub.f32 %v9868_v48, %v9872_v52 }
0x4a84   :  { %16962 = vpow2.f32 %v9880_v5  ;;  %v9878_v30 = vmul.f32 1.442695, %v9876_v49 }
0x4a85   :  { %v9692_v61 = vpop.permute.xlu1 %9691 }
0x4a86   :  { %16964 = vpow2.f32 %v9878_v30  ;;  %16358 = vmatprep.subr.mxu0 %v9692_v61 }
0x4a87   :  { %16359 = vmatpush3.msra.mxu0 %v9692_v61 }
0x4a88   :  { %16361 = vmatmul.mubr.msk.f32.vlgmr.msra.gmra.mxu0 %vm396_vm5, %v18961_v25  ;;  %v10164_v25 = vsel %vm484_vm6, %v10160_v43, -inf }
0x4a89   :  { %v9893_v40 = vpop.permute.xlu1 %9892 }
0x4a91   :  { %v16963_v4 = vpop.eup %16962 }
0x4a92   :  { %v9885_v51 = vsel %vm484_vm6, %v16963_v4, 0.0 }
0x4a93   :  { %v16965_v6 = vpop.eup %16964  ;;  %9886 = vadd.xlane.f32.xlu0 %v9885_v51 }
0x4a94   :  { %v9882_v9 = vsel %vm484_vm6, %v16965_v6, 0.0 }
0x4a97   :  { %9883 = vadd.xlane.f32.xlu0 %v9882_v9  ;;  %v14931_v9 = vld [vmem:[%s19757_s16 + $0xb] ss:$0 sm:$0xff] }
0x4aad   :  { %9894 = vrot.lane.b32.xlu0 %v18908_v24, %s19777_s26 }
0x4aba   :  { %v10163_v47 = vpop.xlane.xlu1 %10162 }
0x4abb   :  { %v10167_v17 = vsub.f32 %v10159_v38, %v10163_v47  ;;  %v19090_v47 = vld [vmem:[%s19750_s9 + $0xf0] sm:$0xff] }
0x4abd   :  { %v10169_v19 = vmul.f32 1.442695, %v10167_v17  ;;  %v19095_v17 = vld [vmem:[%s19750_s9 + $0xe8] sm:$0xff] }
0x4abf   :  { %16966 = vpow2.f32 %v10169_v19  ;;  %v19102_v19 = vld [vmem:[%s19750_s9 + $0xe0] sm:$0xff] }
0x4acc   :  { %v16967_v32 = vpop.eup %16966  ;;  %10165 = vmax.xlane.f32.xlu0 %v10164_v25 }
0x4acd   :  { %v10173_v33 = vsel %vm484_vm6, %v16967_v32, 0.0 }
0x4ad0   :  { %10174 = vadd.xlane.f32.xlu0 %v10173_v33 }
0x4ae6   :  { %9980 = vrot.lane.b32.xlu0 %v18878_v36, %s17136_s1 }
0x4aea   :  { %10357 = vrot.lane.b32.xlu0 %v18905_v57, %s17136_s1 }
0x4b1c   :  { %v9887_v22 = vpop.xlane.xlu0 %9886 }
0x4b1d   :  { %16968 = vrcp.f32 %v9887_v22 }
0x4b20   :  { %v9884_v1 = vpop.xlane.xlu0 %9883 }
0x4b21   :  { %16970 = vrcp.f32 %v9884_v1 }
0x4b24   :  { %v9895_v28 = vpop.permute.xlu0 %9894 }
0x4b25   :  { %16370 = vmatprep.subr.mxu0 %v9895_v28 }
0x4b26   :  { %16371 = vmatpush3.msra.mxu0 %v9895_v28 }
0x4b27   :  { %16372 = vmatprep.subr.mxu0 %v9893_v40 }
0x4b28   :  { %16373 = vmatpush3.msra.mxu0 %v9893_v40  ;;  %v19083_v40 = vld [vmem:[%s19750_s9 + $0xf8] sm:$0xff] }
0x4b29   :  { %16401 = vmatprep.subr.mxu1 %v19083_v40 }
0x4b2a   :  { %v16969_v16 = vpop.eup %16968  ;;  %16402 = vmatpush3.msra.mxu1 %v19083_v40 }
0x4b2b   :  { %v9891_v11 = vmul.f32 %v16969_v16, %v16963_v4  ;;  %16403 = vmatprep.subr.mxu1 %v19090_v47 }
0x4b2c   :  { %16404 = vmatpush3.msra.mxu1 %v19090_v47 }
0x4b2d   :  { %16405 = vmatprep.subr.mxu1 %v19095_v17 }
0x4b2e   :  { %v16971_v31 = vpop.eup %16970  ;;  %16406 = vmatpush3.msra.mxu1 %v19095_v17 }
0x4b2f   :  { %v9890_v63 = vmul.f32 %v16971_v31, %v16965_v6  ;;  %16407 = vmatprep.subr.mxu1 %v19102_v19 }
0x4b30   :  { %16408 = vmatpush3.msra.mxu1 %v19102_v19 }
0x4b31   :  { %16374 = vmatprep.mubr.msk.f32.mxu0 %vm484_vm6, %v9890_v63 }
0x4b32   :  { %16375 = vmatmul.mubr.msk.f32.vlgmr.msra.gmra.mxu0 %vm484_vm6, %v9891_v11 }
0x4b48   :  { %v16362_v8 = vpop.f32.mrf.mxu0 }
0x4b49   :  { %v9772_v18 = vadd.f32 %v16362_v8, %v19008_v21 }
0x4b4a   :  { %v9766_v39 = vpop.f32.mrf.mxu0 }
0x4b4b   :  { %v9767_v55 = vadd.f32 %v9766_v39, %v19010_v20 }
0x4b55   :  { %v10166_v36 = vpop.xlane.xlu0 %10165 }
0x4b56   :  { %v10168_v60 = vsub.f32 %v10160_v43, %v10166_v36 }
0x4b58   :  { %v10171_v57 = vmul.f32 1.442695, %v10168_v60 }
0x4b59   :  { %v10175_v34 = vpop.xlane.xlu0 %10174 }
0x4b5a   :  { %16972 = vpow2.f32 %v10171_v57 }
0x4b5b   :  { %16974 = vrcp.f32 %v10175_v34 }
0x4b5d   :  { %v9981_v58 = vpop.permute.xlu0 %9980 }
0x4b5e   :  { %16377 = vmatprep.subr.mxu0 %v9981_v58 }
0x4b5f   :  { %16378 = vmatpush3.msra.mxu0 %v9981_v58 }
0x4b61   :  { %v10358_v54 = vpop.permute.xlu0 %10357 }
0x4b67   :  { %v16973_v27 = vpop.eup %16972 }
0x4b68   :  { %v10176_v26 = vsel %vm484_vm6, %v16973_v27, 0.0  ;;  %v16975_v45 = vpop.eup %16974 }
0x4b69   :  { %10177 = vadd.xlane.f32.xlu1 %v10176_v26  ;;  %v10181_v53 = vmul.f32 %v16975_v45, %v16967_v32 }
0x4b7a   :  { %10185 = vrot.lane.b32.xlu1 %v18908_v24, %s19778_s2 }
0x4b7e   :  { %10183 = vrot.lane.b32.xlu1 %v18911_v12, %s19778_s2 }
0x4b82   :  { %10271 = vrot.lane.b32.xlu1 %v18873_v7, %s17136_s1 }
0x4bf2   :  { %v16376_v15 = vpop.f32.mrf.mxu0  ;;  %v10178_v29 = vpop.xlane.xlu1 %10177 }
0x4bf3   :  { %16976 = vrcp.f32 %v10178_v29 }
0x4bf4   :  { %v9970_v42 = vpop.f32.mrf.mxu0 }
0x4bf5   :  { %16379 = vmatprep.mubr.msk.f32.mxu0 %vm396_vm5, %v9970_v42 }
0x4bf6   :  { %v10186_v41 = vpop.permute.xlu1 %10185  ;;  %16380 = vmatmul.mubr.msk.f32.vlgmr.msra.gmra.mxu0 %vm396_vm5, %v16376_v15 }
0x4bf7   :  { %16389 = vmatprep.subr.mxu0 %v10186_v41  ;;  %16393 = vmatprep.mubr.msk.f32.mxu0 %vm484_vm6, %v10181_v53 }
0x4bf8   :  { %16390 = vmatpush3.msra.mxu0 %v10186_v41 }
0x4bfa   :  { %v10184_v24 = vpop.permute.xlu1 %10183 }
0x4bfb   :  { %16391 = vmatprep.subr.mxu0 %v10184_v24 }
0x4bfc   :  { %16392 = vmatpush3.msra.mxu0 %v10184_v24 }
0x4bfe   :  { %v10272_v44 = vpop.permute.xlu1 %10271 }
0x4bff   :  { %16396 = vmatprep.subr.mxu0 %v10272_v44 }
0x4c00   :  { %v16977_v7 = vpop.eup %16976 }
0x4c01   :  { %v10182_v12 = vmul.f32 %v16977_v7, %v16973_v27 }
0x4c03   :  { %16394 = vmatmul.mubr.msk.f32.vlgmr.msra.gmra.mxu0 %vm484_vm6, %v10182_v12 }
0x4c04   :  { %16397 = vmatpush3.msra.mxu0 %v10272_v44  ;;  %v19120_v44 = vld [vmem:[%s19751_s10 + $0x7] ss:$0 sm:$0xff] }
0x4cb6   :  { %v16381_v48 = vpop.f32.mrf.mxu0 }
0x4cb7   :  { %v10065_v62 = vadd.f32 %v16381_v48, %v9772_v18 }
0x4cb8   :  { %v10055_v23 = vpop.f32.mrf.mxu0 }
0x4cb9   :  { %v10064_v56 = vadd.f32 %v10055_v23, %v9767_v55 }
0x4cc3   :  { %v16395_v59 = vpop.f32.mrf.mxu0 }
0x4cc5   :  { %v10261_v50 = vpop.f32.mrf.mxu0 }
0x4cc6   :  { %16398 = vmatprep.mubr.msk.f32.mxu0 %vm396_vm5, %v10261_v50 }
0x4cc7   :  { %16399 = vmatmul.mubr.msk.f32.vlgmr.msra.gmra.mxu0 %vm396_vm5, %v16395_v59 }
0x4d87   :  { %v16400_v38 = vpop.f32.mrf.mxu0 }
0x4d88   :  { %v10356_v35 = vadd.f32 %v16400_v38, %v10065_v62 }
0x4d89   :  { %v10346_v52 = vpop.f32.mrf.mxu0 }
0x4d8a   :  { %v10355_v5 = vadd.f32 %v10346_v52, %v10064_v56  ;;  %v10361_v49 = vadd.f32 %v10358_v54, %v10356_v35  ;;  %v19144_v35 = vld [vmem:[%s19744_s3 + $0x8] sm:$0xff] }
0x4d8c   :  { %v10360_v30 = vadd.f32 %v10358_v54, %v10355_v5  ;;  %v19053_v21 = vadd.f32 %v10361_v49, %v18851_v10  ;;  %v19150_v49 = vld [vmem:[%s19744_s3] sm:$0xff] }
0x4d8e   :  { %v19056_v61 = vadd.f32 %v10360_v30, %v18854_v14  ;;  %v10369_v4 = vsel %vm251_vm2, %v19053_v21, 0.0  ;;  %v10375_v10 = vmul.f32 %v19053_v21, %v19053_v21 }
0x4d8f   :  { %10370 = vadd.xlane.f32.xlu0 %v10369_v4 }
0x4d90   :  { %v10366_v20 = vsel %vm251_vm2, %v19056_v61, 0.0  ;;  %v10374_v51 = vmul.f32 %v19056_v61, %v19056_v61  ;;  %v10379_v14 = vsel %vm251_vm2, %v10375_v10, 0.0 }
0x4d91   :  { %10367 = vadd.xlane.f32.xlu1 %v10366_v20 }
0x4d92   :  { %v10376_v6 = vsel %vm251_vm2, %v10374_v51, 0.0 }
0x4d93   :  { %10377 = vadd.xlane.f32.xlu0 %v10376_v6 }
0x4d97   :  { %10380 = vadd.xlane.f32.xlu0 %v10379_v14 }
0x4da2   :  { %10406 = vrot.lane.b32.xlu1 %v14931_v9, %s17127_s30 }
0x4da6   :  { %10505 = vrot.lane.b32.xlu1 %v18019_v46, %s17130_s28 }
0x4daa   :  { %10713 = vrot.lane.b32.xlu1 %v18578_v37, %s17131_s29 }
0x4dad   :  { %10507 = vrot.lane.b32.xlu0 %v18578_v37, %s17130_s28 }
0x4dae   :  { %10711 = vrot.lane.b32.xlu1 %v18019_v46, %s17131_s29 }
0x4e18   :  { %v10371_v2 = vpop.xlane.xlu0 %10370 }
0x4e19   :  { %v10373_v33 = vmul.f32 0.03125, %v10371_v2 }
0x4e1a   :  { %v10368_v43 = vpop.xlane.xlu1 %10367 }
0x4e1b   :  { %v10372_v25 = vmul.f32 0.03125, %v10368_v43  ;;  %v10385_v63 = vmul.f32 %v10373_v33, %v10373_v33  ;;  %v10391_v29 = vsub.f32 %v19053_v21, %v10373_v33 }
0x4e1c   :  { %v10378_v32 = vpop.xlane.xlu0 %10377 }
0x4e1d   :  { %v10384_v22 = vmul.f32 %v10372_v25, %v10372_v25  ;;  %v10382_v1 = vmul.f32 0.03125, %v10378_v32  ;;  %v10390_v39 = vsub.f32 %v19056_v61, %v10372_v25 }
0x4e1e   :  { %v10407_v28 = vpop.permute.xlu1 %10406 }
0x4e1f   :  { %v10386_v16 = vsub.f32 %v10382_v1, %v10384_v22 }
0x4e20   :  { %v10381_v31 = vpop.xlane.xlu0 %10380 }
0x4e21   :  { %v10388_v11 = vmax.f32 %v10386_v16, 0.0  ;;  %v10383_v36 = vmul.f32 0.03125, %v10381_v31 }
0x4e22   :  { %v10506_v27 = vpop.permute.xlu1 %10505 }
0x4e23   :  { %v10392_v60 = vadd.f32 1e-06, %v10388_v11  ;;  %v10387_v57 = vsub.f32 %v10383_v36, %v10385_v63 }
0x4e24   :  { %v10508_v26 = vpop.permute.xlu0 %10507 }
0x4e25   :  { %16978 = vrsqrt.f32 %v10392_v60  ;;  %v10389_v34 = vmax.f32 %v10387_v57, 0.0  ;;  %16412 = vmatprep.subr.msk.mxu0 %vm396_vm5, %v10508_v26 }
0x4e26   :  { %16413 = vmatpush3.xpose.msk.msra.mxu0 %vm396_vm5, %v10508_v26  ;;  %v10714_v8 = vpop.permute.xlu1 %10713 }
0x4e27   :  { %v10393_v58 = vadd.f32 1e-06, %v10389_v34  ;;  %16414 = vmatprep.subr.msk.mxu0 %vm396_vm5, %v10506_v27 }
0x4e29   :  { %16980 = vrsqrt.f32 %v10393_v58 }
0x4e2a   :  { %16415 = vmatpush3.xpose.msk.msra.mxu0 %vm396_vm5, %v10506_v27  ;;  %v10712_v59 = vpop.permute.xlu1 %10711 }
0x4e2b   :  { %16426 = vmatprep.subr.msk.mxu0 %vm396_vm5, %v10714_v8 }
0x4e32   :  { %v16979_v45 = vpop.eup %16978 }
0x4e33   :  { %v10396_v15 = vmul.f32 %v16979_v45, %v10390_v39 }
0x4e35   :  { %v10404_v42 = vmul.f32 %v14931_v9, %v10396_v15 }
0x4e36   :  { %v16981_v53 = vpop.eup %16980 }
0x4e37   :  { %v10409_v41 = vadd.f32 %v10407_v28, %v10404_v42  ;;  %v10397_v24 = vmul.f32 %v16981_v53, %v10391_v29 }
0x4e39   :  { %16409 = vmatprep.mubr.msk.f32.mxu1 %vm251_vm2, %v10409_v41  ;;  %v10405_v7 = vmul.f32 %v14931_v9, %v10397_v24 }
0x4e3b   :  { %v10410_v12 = vadd.f32 %v10407_v28, %v10405_v7 }
0x4e3d   :  { %16410 = vmatmul.mubr.msk.f32.vlgmr.msra.gmra.mxu1 %vm251_vm2, %v10410_v12 }
0x4efd   :  { %v16411_v18 = vpop.f32.mrf.mxu1 }
0x4efe   :  { %v19123_v48 = vadd.f32 %v16411_v18, %v19120_v44 }
0x4eff   :  { %v10496_v62 = vpop.f32.mrf.mxu1 }
0x4f00   :  { %v19126_v23 = vadd.f32 %v19120_v44, %v10496_v62  ;;  %10709 = vrot.lane.b32.xlu1 %v19123_v48, %s17129_s23 }
0x4f02   :  { %10707 = vrot.lane.b32.xlu0 %v19126_v23, %s17129_s23  ;;  %16416 = vmatprep.mubr.msk.f32.mxu0 %vm396_vm5, %v19126_v23 }
0x4f03   :  { %16417 = vmatmul.mubr.msk.f32.vlgmr.msra.gmra.mxu0 %vm396_vm5, %v19123_v48 }
0x4f04   :  { %16427 = vmatpush3.xpose.msk.msra.mxu0 %vm396_vm5, %v10714_v8 }
0x4f05   :  { %16428 = vmatprep.subr.msk.mxu0 %vm396_vm5, %v10712_v59 }
0x4f08   :  { %16429 = vmatpush3.xpose.msk.msra.mxu0 %vm396_vm5, %v10712_v59 }
0x4f72   :  { %v10710_v55 = vpop.permute.xlu1 %10709 }
0x4f74   :  { %v10708_v50 = vpop.permute.xlu0 %10707 }
0x4f75   :  { %16430 = vmatprep.mubr.msk.f32.mxu0 %vm396_vm5, %v10708_v50 }
0x4f76   :  { %16431 = vmatmul.mubr.msk.f32.vlgmr.msra.gmra.mxu0 %vm396_vm5, %v10710_v55 }
0x4fc3   :  { %v16418_v38 = vpop.f32.mrf.mxu0 }
0x4fc4   :  { %v10595_v54 = vmul.f32 0.35355338, %v16418_v38 }
0x4fc5   :  { %v10585_v56 = vpop.f32.mrf.mxu0 }
0x4fc6   :  { %v10597_v52 = vadd.f32 %v19144_v35, %v10595_v54  ;;  %v10594_v5 = vmul.f32 0.35355338, %v10585_v56 }
0x4fc8   :  { %v10596_v30 = vadd.f32 %v19150_v49, %v10594_v5  ;;  %v10601_v4 = vsel %vm484_vm6, %v10597_v52, -inf }
0x4fc9   :  { %10602 = vmax.xlane.f32.xlu1 %v10601_v4 }
0x4fca   :  { %v10598_v20 = vsel %vm484_vm6, %v10596_v30, -inf }
0x4fcb   :  { %10599 = vmax.xlane.f32.xlu0 %v10598_v20 }
0x5036   :  { %v16432_v51 = vpop.f32.mrf.mxu0 }
0x5037   :  { %v10799_v10 = vmul.f32 0.35355338, %v16432_v51 }
0x5038   :  { %v10789_v6 = vpop.f32.mrf.mxu0 }
0x5039   :  { %v10798_v14 = vmul.f32 0.35355338, %v10789_v6  ;;  %v10801_v2 = vadd.f32 %v19144_v35, %v10799_v10 }
0x503b   :  { %v10800_v9 = vadd.f32 %v19150_v49, %v10798_v14  ;;  %v10805_v25 = vsel %vm484_vm6, %v10801_v2, -inf }
0x503d   :  { %v10802_v43 = vsel %vm484_vm6, %v10800_v9, -inf }
0x503e   :  { %10803 = vmax.xlane.f32.xlu0 %v10802_v43 }
0x5042   :  { %10806 = vmax.xlane.f32.xlu0 %v10805_v25 }
0x5052   :  { %v10603_v32 = vpop.xlane.xlu1 %10602 }
0x5053   :  { %v10605_v33 = vsub.f32 %v10597_v52, %v10603_v32 }
0x5054   :  { %v10600_v22 = vpop.xlane.xlu0 %10599 }
0x5055   :  { %v10608_v1 = vmul.f32 1.442695, %v10605_v33  ;;  %v10604_v28 = vsub.f32 %v10596_v30, %v10600_v22 }
0x5057   :  { %16982 = vpow2.f32 %v10608_v1  ;;  %v10606_v16 = vmul.f32 1.442695, %v10604_v28 }
0x5059   :  { %16984 = vpow2.f32 %v10606_v16 }
0x5064   :  { %v16983_v31 = vpop.eup %16982 }
0x5065   :  { %v10613_v63 = vsel %vm484_vm6, %v16983_v31, 0.0 }
0x5066   :  { %v16985_v11 = vpop.eup %16984  ;;  %10614 = vadd.xlane.f32.xlu1 %v10613_v63 }
0x5067   :  { %v10610_v36 = vsel %vm484_vm6, %v16985_v11, 0.0 }
0x5068   :  { %10611 = vadd.xlane.f32.xlu0 %v10610_v36 }
0x50c7   :  { %v10804_v60 = vpop.xlane.xlu0 %10803 }
0x50c8   :  { %v10808_v57 = vsub.f32 %v10800_v9, %v10804_v60 }
0x50ca   :  { %v10810_v27 = vmul.f32 1.442695, %v10808_v57 }
0x50cb   :  { %v10807_v26 = vpop.xlane.xlu0 %10806 }
0x50cc   :  { %16986 = vpow2.f32 %v10810_v27  ;;  %v10809_v34 = vsub.f32 %v10801_v2, %v10807_v26 }
0x50ce   :  { %v10812_v58 = vmul.f32 1.442695, %v10809_v34 }
0x50d0   :  { %16988 = vpow2.f32 %v10812_v58 }
0x50d9   :  { %v16987_v8 = vpop.eup %16986 }
0x50da   :  { %v10814_v39 = vsel %vm484_vm6, %v16987_v8, 0.0 }
0x50db   :  { %10815 = vadd.xlane.f32.xlu0 %v10814_v39 }
0x50dd   :  { %v16989_v45 = vpop.eup %16988 }
0x50de   :  { %v10817_v15 = vsel %vm484_vm6, %v16989_v45, 0.0 }
0x50df   :  { %10818 = vadd.xlane.f32.xlu1 %v10817_v15 }
0x50f0   :  { %10620 = vrot.lane.b32.xlu1 %v18019_v46, %s17136_s1 }
0x50f1   :  { %10622 = vrot.lane.b32.xlu0 %v18578_v37, %s17136_s1  ;;  %v10612_v29 = vpop.xlane.xlu0 %10611 }
0x50f2   :  { %16990 = vrcp.f32 %v10612_v29 }
0x50f4   :  { %10826 = vrot.lane.b32.xlu1 %v18578_v37, %s17140_s24 }
0x50f5   :  { %10912 = vrot.lane.b32.xlu0 %v19095_v17, %s17136_s1  ;;  %v10615_v17 = vpop.xlane.xlu1 %10614 }
0x50f6   :  { %16992 = vrcp.f32 %v10615_v17 }
0x50f8   :  { %10824 = vrot.lane.b32.xlu1 %v18019_v46, %s17140_s24 }
0x50f9   :  { %11085 = vrot.lane.b32.xlu0 %v18019_v46, %s19777_s26 }
0x50fc   :  { %11087 = vrot.lane.b32.xlu1 %v18578_v37, %s19777_s26 }
0x50fd   :  { %11083 = vrot.lane.b32.xlu0 %v19123_v48, %s17133_s6 }
0x50ff   :  { %v16991_v42 = vpop.eup %16990 }
0x5100   :  { %11081 = vrot.lane.b32.xlu1 %v19126_v23, %s17133_s6  ;;  %v10618_v53 = vmul.f32 %v16991_v42, %v16985_v11 }
0x5101   :  { %11376 = vrot.lane.b32.xlu0 %v18019_v46, %s19778_s2 }
0x5102   :  { %16423 = vmatprep.mubr.msk.f32.mxu1 %vm484_vm6, %v10618_v53 }
0x5103   :  { %v16993_v12 = vpop.eup %16992 }
0x5104   :  { %11378 = vrot.lane.b32.xlu1 %v18578_v37, %s19778_s2  ;;  %v10619_v62 = vmul.f32 %v16993_v12, %v16983_v31 }
0x5105   :  { %11374 = vrot.lane.b32.xlu0 %v19123_v48, %s19780_s27 }
0x5108   :  { %11372 = vrot.lane.b32.xlu1 %v19126_v23, %s19780_s27 }
0x5164   :  { %v10816_v41 = vpop.xlane.xlu0 %10815 }
0x5165   :  { %16994 = vrcp.f32 %v10816_v41 }
0x5168   :  { %v10623_v24 = vpop.permute.xlu0 %10622  ;;  %v10819_v7 = vpop.xlane.xlu1 %10818 }
0x5169   :  { %16996 = vrcp.f32 %v10819_v7  ;;  %16419 = vmatprep.subr.mxu1 %v10623_v24 }
0x516a   :  { %16420 = vmatpush3.msra.mxu1 %v10623_v24 }
0x516c   :  { %v10621_v18 = vpop.permute.xlu1 %10620  ;;  %v10913_v38 = vpop.permute.xlu0 %10912 }
0x516d   :  { %16421 = vmatprep.subr.mxu1 %v10621_v18 }
0x516e   :  { %16422 = vmatpush3.msra.mxu1 %v10621_v18 }
0x516f   :  { %16424 = vmatmul.mubr.msk.f32.vlgmr.msra.gmra.mxu1 %vm484_vm6, %v10619_v62 }
0x5170   :  { %v10827_v48 = vpop.permute.xlu1 %10826  ;;  %v11086_v20 = vpop.permute.xlu0 %11085 }
0x5171   :  { %16433 = vmatprep.subr.mxu1 %v10827_v48 }
0x5172   :  { %v16995_v59 = vpop.eup %16994  ;;  %16434 = vmatpush3.msra.mxu1 %v10827_v48 }
0x5173   :  { %v10822_v23 = vmul.f32 %v16995_v59, %v16987_v8 }
0x5174   :  { %v10825_v50 = vpop.permute.xlu1 %10824  ;;  %v11084_v10 = vpop.permute.xlu0 %11083 }
0x5175   :  { %16435 = vmatprep.subr.mxu1 %v10825_v50  ;;  %16437 = vmatprep.mubr.msk.f32.mxu1 %vm484_vm6, %v10822_v23 }
0x5176   :  { %v16997_v55 = vpop.eup %16996  ;;  %16436 = vmatpush3.msra.mxu1 %v10825_v50 }
0x5177   :  { %16440 = vmatprep.subr.mxu1 %v10913_v38  ;;  %v10823_v54 = vmul.f32 %v16997_v55, %v16989_v45 }
0x5178   :  { %v11088_v56 = vpop.permute.xlu1 %11087  ;;  %v11377_v9 = vpop.permute.xlu0 %11376 }
0x5179   :  { %16438 = vmatmul.mubr.msk.f32.vlgmr.msra.gmra.mxu1 %vm484_vm6, %v10823_v54 }
0x517a   :  { %16441 = vmatpush3.msra.mxu1 %v10913_v38 }
0x517b   :  { %16450 = vmatprep.subr.msk.mxu1 %vm396_vm5, %v11088_v56 }
0x517c   :  { %v11082_v30 = vpop.permute.xlu1 %11081  ;;  %v11375_v2 = vpop.permute.xlu0 %11374 }
0x5180   :  { %v11379_v6 = vpop.permute.xlu1 %11378 }
0x5184   :  { %v11373_v14 = vpop.permute.xlu1 %11372 }
0x522f   :  { %v16425_v52 = vpop.f32.mrf.mxu1 }
0x5231   :  { %v10698_v5 = vpop.f32.mrf.mxu1 }
0x5232   :  { %16447 = vmatprep.mubr.msk.f32.mxu0 %vm396_vm5, %v10698_v5 }
0x5239   :  { %v16439_v4 = vpop.f32.mrf.mxu1 }
0x523b   :  { %v10902_v51 = vpop.f32.mrf.mxu1 }
0x523c   :  { %16442 = vmatprep.mubr.msk.f32.mxu1 %vm396_vm5, %v10902_v51 }
0x523d   :  { %16443 = vmatmul.mubr.msk.f32.vlgmr.msra.gmra.mxu1 %vm396_vm5, %v16439_v4 }
0x523e   :  { %16451 = vmatpush3.xpose.msk.msra.mxu1 %vm396_vm5, %v11088_v56  ;;  %16454 = vmatprep.mubr.msk.f32.mxu1 %vm396_vm5, %v11082_v30 }
0x523f   :  { %16452 = vmatprep.subr.msk.mxu1 %vm396_vm5, %v11086_v20 }
0x5242   :  { %16453 = vmatpush3.xpose.msk.msra.mxu1 %vm396_vm5, %v11086_v20 }
0x5243   :  { %16469 = vmatprep.subr.msk.mxu1 %vm396_vm5, %v11379_v6 }
0x5245   :  { %16455 = vmatmul.mubr.msk.f32.vlgmr.msra.gmra.mxu1 %vm396_vm5, %v11084_v10 }
0x5246   :  { %16470 = vmatpush3.xpose.msk.msra.mxu1 %vm396_vm5, %v11379_v6  ;;  %16473 = vmatprep.mubr.msk.f32.mxu1 %vm396_vm5, %v11373_v14 }
0x5247   :  { %16471 = vmatprep.subr.msk.mxu1 %vm396_vm5, %v11377_v9 }
0x524a   :  { %16472 = vmatpush3.xpose.msk.msra.mxu1 %vm396_vm5, %v11377_v9 }
0x524d   :  { %16474 = vmatmul.mubr.msk.f32.vlgmr.msra.gmra.mxu1 %vm396_vm5, %v11375_v2 }
0x52fd   :  { %v19208_v43 = vpop.f32.mrf.mxu1 }
0x52ff   :  { %v19210_v25 = vpop.f32.mrf.mxu1 }
0x5305   :  { %v16456_v32 = vpop.f32.mrf.mxu1 }
0x5306   :  { %v11173_v33 = vmul.f32 0.35355338, %v16456_v32 }
0x5307   :  { %v11163_v22 = vpop.f32.mrf.mxu1 }
0x5308   :  { %v11175_v1 = vadd.f32 %v19144_v35, %v11173_v33  ;;  %v11172_v28 = vmul.f32 0.35355338, %v11163_v22  ;;  %v17100_v33 = vld [vmem:[%s19753_s12] sm:$0x7] }
0x530a   :  { %v11174_v16 = vadd.f32 %v19150_v49, %v11172_v28  ;;  %v11179_v31 = vsel %vm484_vm6, %v11175_v1, -inf }
0x530b   :  { %11180 = vmax.xlane.f32.xlu0 %v11179_v31 }
0x530c   :  { %v11176_v63 = vsel %vm484_vm6, %v11174_v16, -inf }
0x530d   :  { %11177 = vmax.xlane.f32.xlu1 %v11176_v63  ;;  %v16475_v11 = vpop.f32.mrf.mxu1 }
0x530e   :  { %v11464_v7 = vmul.f32 0.35355338, %v16475_v11 }
0x530f   :  { %v11454_v36 = vpop.f32.mrf.mxu1 }
0x5310   :  { %v11463_v60 = vmul.f32 0.35355338, %v11454_v36  ;;  %v11466_v12 = vadd.f32 %v19144_v35, %v11464_v7 }
0x5312   :  { %v11465_v57 = vadd.f32 %v19150_v49, %v11463_v60  ;;  %v11470_v18 = vsel %vm484_vm6, %v11466_v12, -inf }
0x5314   :  { %v11467_v27 = vsel %vm484_vm6, %v11465_v57, -inf }
0x531e   :  { %10997 = vrot.lane.b32.xlu1 %v19102_v19, %s17136_s1 }
0x5322   :  { %11198 = vrot.lane.b32.xlu1 %v18019_v46, %s19781_s25 }
0x5346   :  { %11468 = vmax.xlane.f32.xlu1 %v11467_v27 }
0x5394   :  { %v11181_v26 = vpop.xlane.xlu0 %11180 }
0x5395   :  { %v11183_v34 = vsub.f32 %v11175_v1, %v11181_v26 }
0x5396   :  { %v11178_v58 = vpop.xlane.xlu1 %11177 }
0x5397   :  { %v11186_v8 = vmul.f32 1.442695, %v11183_v34  ;;  %v11182_v39 = vsub.f32 %v11174_v16, %v11178_v58 }
0x5399   :  { %16998 = vpow2.f32 %v11186_v8  ;;  %v11184_v45 = vmul.f32 1.442695, %v11182_v39 }
0x539a   :  { %v10998_v15 = vpop.permute.xlu1 %10997 }
0x539b   :  { %17000 = vpow2.f32 %v11184_v45  ;;  %16445 = vmatprep.subr.mxu0 %v10998_v15 }
0x539c   :  { %16446 = vmatpush3.msra.mxu0 %v10998_v15 }
0x539d   :  { %16448 = vmatmul.mubr.msk.f32.vlgmr.msra.gmra.mxu0 %vm396_vm5, %v16425_v52 }
0x539e   :  { %v11199_v53 = vpop.permute.xlu1 %11198 }
0x53a6   :  { %v16999_v19 = vpop.eup %16998 }
0x53a7   :  { %v11191_v29 = vsel %vm484_vm6, %v16999_v19, 0.0 }
0x53a8   :  { %v17001_v49 = vpop.eup %17000  ;;  %11192 = vadd.xlane.f32.xlu0 %v11191_v29 }
0x53a9   :  { %v11188_v42 = vsel %vm484_vm6, %v17001_v49, 0.0 }
0x53ac   :  { %11189 = vadd.xlane.f32.xlu0 %v11188_v42  ;;  %v14973_v42 = vld [vmem:[%s19757_s16 + $0xc] ss:$0 sm:$0xff] }
0x53c2   :  { %11200 = vrot.lane.b32.xlu0 %v18578_v37, %s19781_s25 }
0x53cf   :  { %v11469_v17 = vpop.xlane.xlu1 %11468 }
0x53d0   :  { %v11473_v41 = vsub.f32 %v11465_v57, %v11469_v17  ;;  %v19303_v17 = vld [vmem:[%s19750_s9 + $0x110] sm:$0xff] }
0x53d2   :  { %v11475_v24 = vmul.f32 1.442695, %v11473_v41  ;;  %v19308_v41 = vld [vmem:[%s19750_s9 + $0x108] sm:$0xff] }
0x53d4   :  { %17002 = vpow2.f32 %v11475_v24  ;;  %v19315_v24 = vld [vmem:[%s19750_s9 + $0x100] sm:$0xff] }
0x53e1   :  { %v17003_v62 = vpop.eup %17002  ;;  %11471 = vmax.xlane.f32.xlu0 %v11470_v18 }
0x53e2   :  { %v11479_v48 = vsel %vm484_vm6, %v17003_v62, 0.0 }
0x53e5   :  { %11480 = vadd.xlane.f32.xlu0 %v11479_v48 }
0x53fb   :  { %11286 = vrot.lane.b32.xlu0 %v19090_v47, %s17136_s1 }
0x53ff   :  { %11663 = vrot.lane.b32.xlu0 %v19120_v44, %s17136_s1 }
0x5431   :  { %v11193_v59 = vpop.xlane.xlu0 %11192 }
0x5432   :  { %17004 = vrcp.f32 %v11193_v59 }
0x5435   :  { %v11190_v23 = vpop.xlane.xlu0 %11189 }
0x5436   :  { %17006 = vrcp.f32 %v11190_v23 }
0x5439   :  { %v11201_v50 = vpop.permute.xlu0 %11200 }
0x543a   :  { %16457 = vmatprep.subr.mxu0 %v11201_v50 }
0x543b   :  { %16458 = vmatpush3.msra.mxu0 %v11201_v50 }
0x543c   :  { %16459 = vmatprep.subr.mxu0 %v11199_v53 }
0x543d   :  { %16460 = vmatpush3.msra.mxu0 %v11199_v53  ;;  %v19296_v53 = vld [vmem:[%s19750_s9 + $0x118] sm:$0xff] }
0x543e   :  { %16488 = vmatprep.subr.mxu1 %v19296_v53 }
0x543f   :  { %v17005_v35 = vpop.eup %17004  ;;  %16489 = vmatpush3.msra.mxu1 %v19296_v53 }
0x5440   :  { %v11197_v54 = vmul.f32 %v17005_v35, %v16999_v19  ;;  %16490 = vmatprep.subr.mxu1 %v19303_v17 }
0x5441   :  { %16491 = vmatpush3.msra.mxu1 %v19303_v17 }
0x5442   :  { %16492 = vmatprep.subr.mxu1 %v19308_v41 }
0x5443   :  { %v17007_v55 = vpop.eup %17006  ;;  %16493 = vmatpush3.msra.mxu1 %v19308_v41 }
0x5444   :  { %v11196_v38 = vmul.f32 %v17007_v55, %v17001_v49  ;;  %16494 = vmatprep.subr.mxu1 %v19315_v24 }
0x5445   :  { %16495 = vmatpush3.msra.mxu1 %v19315_v24 }
0x5446   :  { %16461 = vmatprep.mubr.msk.f32.mxu0 %vm484_vm6, %v11196_v38 }
0x5447   :  { %16462 = vmatmul.mubr.msk.f32.vlgmr.msra.gmra.mxu0 %vm484_vm6, %v11197_v54 }
0x545d   :  { %v16449_v20 = vpop.f32.mrf.mxu0 }
0x545f   :  { %v11072_v51 = vpop.f32.mrf.mxu0 }
0x546a   :  { %v11472_v47 = vpop.xlane.xlu0 %11471 }
0x546b   :  { %v11474_v56 = vsub.f32 %v11466_v12, %v11472_v47 }
0x546d   :  { %v11477_v44 = vmul.f32 1.442695, %v11474_v56 }
0x546e   :  { %v11481_v30 = vpop.xlane.xlu0 %11480 }
0x546f   :  { %17008 = vpow2.f32 %v11477_v44 }
0x5470   :  { %17010 = vrcp.f32 %v11481_v30 }
0x5472   :  { %v11287_v4 = vpop.permute.xlu0 %11286 }
0x5473   :  { %16464 = vmatprep.subr.mxu0 %v11287_v4 }
0x5474   :  { %16465 = vmatpush3.msra.mxu0 %v11287_v4 }
0x5476   :  { %v11664_v27 = vpop.permute.xlu0 %11663 }
0x547c   :  { %v17009_v52 = vpop.eup %17008 }
0x547d   :  { %v11482_v5 = vsel %vm484_vm6, %v17009_v52, 0.0  ;;  %v17011_v6 = vpop.eup %17010 }
0x547e   :  { %11483 = vadd.xlane.f32.xlu1 %v11482_v5  ;;  %v11487_v2 = vmul.f32 %v17011_v6, %v17003_v62 }
0x548f   :  { %11491 = vrot.lane.b32.xlu1 %v18578_v37, %s19782_s5 }
0x5493   :  { %11489 = vrot.lane.b32.xlu1 %v18019_v46, %s19782_s5 }
0x5497   :  { %11577 = vrot.lane.b32.xlu1 %v19083_v40, %s17136_s1  ;;  %v3436_v40 = vsub.s32 2, %v18004_v13  ;;  %v11078_v13 = vadd.f32 %v16449_v20, %v19208_v43 }
0x5499   :  { %v3437_v22 = vrot.slane %v17100_v33, %v3436_v40 }
0x549b   :  { %v19251_v16 = vadd.f32 %v18084_v0, %v3437_v22  ;;  %v19259_v57 = vadd.f32 %v18086_v3, %v3437_v22  ;;  %v11073_v0 = vadd.f32 %v11072_v51, %v19210_v25 }
0x5507   :  { %v16463_v10 = vpop.f32.mrf.mxu0  ;;  %v11484_v14 = vpop.xlane.xlu1 %11483 }
0x5508   :  { %17012 = vrcp.f32 %v11484_v14 }
0x5509   :  { %v11276_v9 = vpop.f32.mrf.mxu0 }
0x550a   :  { %16466 = vmatprep.mubr.msk.f32.mxu0 %vm396_vm5, %v11276_v9 }
0x550b   :  { %16467 = vmatmul.mubr.msk.f32.vlgmr.msra.gmra.mxu0 %vm396_vm5, %v16463_v10  ;;  %v11492_v37 = vpop.permute.xlu1 %11491 }
0x550c   :  { %16476 = vmatprep.subr.mxu0 %v11492_v37  ;;  %16480 = vmatprep.mubr.msk.f32.mxu0 %vm484_vm6, %v11487_v2 }
0x550d   :  { %16477 = vmatpush3.msra.mxu0 %v11492_v37 }
0x550f   :  { %v11490_v46 = vpop.permute.xlu1 %11489 }
0x5510   :  { %16478 = vmatprep.subr.mxu0 %v11490_v46 }
0x5511   :  { %16479 = vmatpush3.msra.mxu0 %v11490_v46 }
0x5513   :  { %v11578_v32 = vpop.permute.xlu1 %11577 }
0x5514   :  { %16483 = vmatprep.subr.mxu0 %v11578_v32 }
0x5515   :  { %v17013_v1 = vpop.eup %17012 }
0x5516   :  { %v11488_v28 = vmul.f32 %v17013_v1, %v17009_v52 }
0x5518   :  { %16481 = vmatmul.mubr.msk.f32.vlgmr.msra.gmra.mxu0 %vm484_vm6, %v11488_v28 }
0x5519   :  { %16484 = vmatpush3.msra.mxu0 %v11578_v32  ;;  %v19329_v32 = vld [vmem:[%s19751_s10 + $0x8] ss:$0 sm:$0xff] }
0x551a   :  { %16499 = vmatprep.subr.msk.mxu0 %vm396_vm5, %v19251_v16 }
0x55cb   :  { %v16468_v31 = vpop.f32.mrf.mxu0 }
0x55cc   :  { %v11371_v63 = vadd.f32 %v16468_v31, %v11078_v13 }
0x55cd   :  { %v11361_v11 = vpop.f32.mrf.mxu0 }
0x55ce   :  { %v11370_v26 = vadd.f32 %v11361_v11, %v11073_v0 }
0x55d8   :  { %v16482_v36 = vpop.f32.mrf.mxu0 }
0x55da   :  { %v11567_v60 = vpop.f32.mrf.mxu0 }
0x55db   :  { %16485 = vmatprep.mubr.msk.f32.mxu0 %vm396_vm5, %v11567_v60  ;;  %v19353_v60 = vld [vmem:[%s19744_s3 + $0x18] sm:$0xff] }
0x55dc   :  { %16486 = vmatmul.mubr.msk.f32.vlgmr.msra.gmra.mxu0 %vm396_vm5, %v16482_v36 }
0x55dd   :  { %16500 = vmatpush3.xpose.msk.msra.mxu0 %vm396_vm5, %v19251_v16 }
0x55de   :  { %16501 = vmatprep.subr.msk.mxu0 %vm396_vm5, %v19259_v57 }
0x55e1   :  { %16502 = vmatpush3.xpose.msk.msra.mxu0 %vm396_vm5, %v19259_v57 }
0x569c   :  { %v16487_v43 = vpop.f32.mrf.mxu0 }
0x569d   :  { %v11662_v34 = vadd.f32 %v16487_v43, %v11371_v63 }
0x569e   :  { %v11652_v58 = vpop.f32.mrf.mxu0 }
0x569f   :  { %v11667_v3 = vadd.f32 %v11664_v27, %v11662_v34  ;;  %v11661_v8 = vadd.f32 %v11652_v58, %v11370_v26 }
0x56a1   :  { %v19270_v39 = vadd.f32 %v11667_v3, %v19053_v21  ;;  %v11666_v45 = vadd.f32 %v11664_v27, %v11661_v8  ;;  %v19359_v27 = vld [vmem:[%s19744_s3 + $0x10] sm:$0xff] }
0x56a3   :  { %v19273_v15 = vadd.f32 %v11666_v45, %v19056_v61  ;;  %v11675_v19 = vsel %vm251_vm2, %v19270_v39, 0.0  ;;  %v11681_v21 = vmul.f32 %v19270_v39, %v19270_v39 }
0x56a4   :  { %11676 = vadd.xlane.f32.xlu0 %v11675_v19 }
0x56a5   :  { %v11672_v25 = vsel %vm251_vm2, %v19273_v15, 0.0  ;;  %v11680_v29 = vmul.f32 %v19273_v15, %v19273_v15  ;;  %v11685_v61 = vsel %vm251_vm2, %v11681_v21, 0.0 }
0x56a6   :  { %11673 = vadd.xlane.f32.xlu1 %v11672_v25 }
0x56a7   :  { %v11682_v49 = vsel %vm251_vm2, %v11680_v29, 0.0 }
0x56a8   :  { %11683 = vadd.xlane.f32.xlu0 %v11682_v49 }
0x56ac   :  { %11686 = vadd.xlane.f32.xlu0 %v11685_v61 }
0x56b7   :  { %11712 = vrot.lane.b32.xlu1 %v14973_v42, %s17127_s30 }
0x56bb   :  { %12015 = vrot.lane.b32.xlu1 %v19259_v57, %s17129_s23 }
0x56c2   :  { %12017 = vrot.lane.b32.xlu0 %v19251_v16, %s17129_s23 }
0x572d   :  { %v11677_v7 = vpop.xlane.xlu0 %11676 }
0x572e   :  { %v11679_v48 = vmul.f32 0.03125, %v11677_v7 }
0x572f   :  { %v11674_v12 = vpop.xlane.xlu1 %11673 }
0x5730   :  { %v11678_v18 = vmul.f32 0.03125, %v11674_v12  ;;  %v11691_v55 = vmul.f32 %v11679_v48, %v11679_v48  ;;  %v11697_v51 = vsub.f32 %v19270_v39, %v11679_v48 }
0x5731   :  { %v11684_v62 = vpop.xlane.xlu0 %11683 }
0x5732   :  { %v11690_v59 = vmul.f32 %v11678_v18, %v11678_v18  ;;  %v11688_v23 = vmul.f32 0.03125, %v11684_v62  ;;  %v11696_v30 = vsub.f32 %v19273_v15, %v11678_v18 }
0x5733   :  { %v11713_v14 = vpop.permute.xlu1 %11712 }
0x5734   :  { %v11692_v50 = vsub.f32 %v11688_v23, %v11690_v59 }
0x5735   :  { %v11687_v35 = vpop.xlane.xlu0 %11686 }
0x5736   :  { %v11694_v38 = vmax.f32 %v11692_v50, 0.0  ;;  %v11689_v54 = vmul.f32 0.03125, %v11687_v35 }
0x5737   :  { %v12016_v28 = vpop.permute.xlu1 %12015 }
0x5738   :  { %v11698_v47 = vadd.f32 1e-06, %v11694_v38  ;;  %v11693_v56 = vsub.f32 %v11689_v54, %v11691_v55 }
0x5739   :  { %v12018_v44 = vpop.permute.xlu0 %12017 }
0x573a   :  { %17014 = vrsqrt.f32 %v11698_v47  ;;  %v11695_v52 = vmax.f32 %v11693_v56, 0.0  ;;  %16513 = vmatprep.subr.msk.mxu0 %vm396_vm5, %v12018_v44 }
0x573c   :  { %v11699_v5 = vadd.f32 1e-06, %v11695_v52 }
0x573e   :  { %17016 = vrsqrt.f32 %v11699_v5 }
0x5747   :  { %v17015_v4 = vpop.eup %17014 }
0x5748   :  { %v11702_v20 = vmul.f32 %v17015_v4, %v11696_v30 }
0x574a   :  { %v11710_v6 = vmul.f32 %v14973_v42, %v11702_v20 }
0x574b   :  { %v17017_v10 = vpop.eup %17016 }
0x574c   :  { %v11715_v9 = vadd.f32 %v11713_v14, %v11710_v6  ;;  %v11703_v2 = vmul.f32 %v17017_v10, %v11697_v51 }
0x574e   :  { %16496 = vmatprep.mubr.msk.f32.mxu1 %vm251_vm2, %v11715_v9  ;;  %v11711_v37 = vmul.f32 %v14973_v42, %v11703_v2 }
0x5750   :  { %v11716_v46 = vadd.f32 %v11713_v14, %v11711_v37 }
0x5752   :  { %16497 = vmatmul.mubr.msk.f32.vlgmr.msra.gmra.mxu1 %vm251_vm2, %v11716_v46 }
0x5812   :  { %v16498_v40 = vpop.f32.mrf.mxu1 }
0x5813   :  { %v19335_v1 = vadd.f32 %v16498_v40, %v19329_v32 }
0x5814   :  { %v11802_v33 = vpop.f32.mrf.mxu1 }
0x5815   :  { %v19332_v22 = vadd.f32 %v19329_v32, %v11802_v33 }
0x5817   :  { %12011 = vrot.lane.b32.xlu1 %v19332_v22, %s17129_s23  ;;  %16503 = vmatprep.mubr.msk.f32.mxu0 %vm396_vm5, %v19332_v22 }
0x5818   :  { %16504 = vmatmul.mubr.msk.f32.vlgmr.msra.gmra.mxu0 %vm396_vm5, %v19335_v1 }
0x5819   :  { %16514 = vmatpush3.xpose.msk.msra.mxu0 %vm396_vm5, %v12018_v44 }
0x581a   :  { %16515 = vmatprep.subr.msk.mxu0 %vm396_vm5, %v12016_v28 }
0x581b   :  { %12013 = vrot.lane.b32.xlu1 %v19335_v1, %s17129_s23 }
0x581d   :  { %16516 = vmatpush3.xpose.msk.msra.mxu0 %vm396_vm5, %v12016_v28 }
0x5889   :  { %v12012_v13 = vpop.permute.xlu1 %12011 }
0x588a   :  { %16517 = vmatprep.mubr.msk.f32.mxu0 %vm396_vm5, %v12012_v13 }
0x588d   :  { %v12014_v31 = vpop.permute.xlu1 %12013 }
0x588e   :  { %16518 = vmatmul.mubr.msk.f32.vlgmr.msra.gmra.mxu0 %vm396_vm5, %v12014_v31 }
0x58d8   :  { %v16505_v63 = vpop.f32.mrf.mxu0 }
0x58d9   :  { %v11899_v11 = vmul.f32 0.35355338, %v16505_v63 }
0x58da   :  { %v11889_v36 = vpop.f32.mrf.mxu0 }
0x58db   :  { %v11901_v0 = vadd.f32 %v19353_v60, %v11899_v11  ;;  %v11898_v43 = vmul.f32 0.35355338, %v11889_v36 }
0x58dd   :  { %v11900_v26 = vadd.f32 %v19359_v27, %v11898_v43  ;;  %v11905_v34 = vsel %vm484_vm6, %v11901_v0, -inf }
0x58de   :  { %11906 = vmax.xlane.f32.xlu1 %v11905_v34 }
0x58df   :  { %v11902_v58 = vsel %vm484_vm6, %v11900_v26, -inf }
0x58e0   :  { %11903 = vmax.xlane.f32.xlu0 %v11902_v58 }
0x594e   :  { %v16519_v3 = vpop.f32.mrf.mxu0 }
0x594f   :  { %v12103_v45 = vmul.f32 0.35355338, %v16519_v3 }
0x5950   :  { %v12093_v8 = vpop.f32.mrf.mxu0 }
0x5951   :  { %v12102_v19 = vmul.f32 0.35355338, %v12093_v8  ;;  %v12105_v29 = vadd.f32 %v19353_v60, %v12103_v45 }
0x5953   :  { %v12104_v25 = vadd.f32 %v19359_v27, %v12102_v19  ;;  %v12109_v21 = vsel %vm484_vm6, %v12105_v29, -inf }
0x5955   :  { %v12106_v49 = vsel %vm484_vm6, %v12104_v25, -inf }
0x5956   :  { %12107 = vmax.xlane.f32.xlu0 %v12106_v49 }
0x595a   :  { %12110 = vmax.xlane.f32.xlu0 %v12109_v21 }
0x5967   :  { %v11907_v61 = vpop.xlane.xlu1 %11906 }
0x5968   :  { %v11909_v42 = vsub.f32 %v11901_v0, %v11907_v61 }
0x5969   :  { %v11904_v7 = vpop.xlane.xlu0 %11903 }
0x596a   :  { %v11912_v12 = vmul.f32 1.442695, %v11909_v42  ;;  %v11908_v18 = vsub.f32 %v11900_v26, %v11904_v7 }
0x596c   :  { %17018 = vpow2.f32 %v11912_v12  ;;  %v11910_v62 = vmul.f32 1.442695, %v11908_v18 }
0x596e   :  { %17020 = vpow2.f32 %v11910_v62 }
0x5979   :  { %v17019_v48 = vpop.eup %17018 }
0x597a   :  { %v11917_v59 = vsel %vm484_vm6, %v17019_v48, 0.0 }
0x597b   :  { %v17021_v23 = vpop.eup %17020  ;;  %11918 = vadd.xlane.f32.xlu1 %v11917_v59 }
0x597c   :  { %v11914_v50 = vsel %vm484_vm6, %v17021_v23, 0.0 }
0x597d   :  { %11915 = vadd.xlane.f32.xlu0 %v11914_v50 }
0x59df   :  { %v12108_v35 = vpop.xlane.xlu0 %12107 }
0x59e0   :  { %v12112_v55 = vsub.f32 %v12104_v25, %v12108_v35 }
0x59e2   :  { %v12114_v38 = vmul.f32 1.442695, %v12112_v55 }
0x59e3   :  { %v12111_v54 = vpop.xlane.xlu0 %12110 }
0x59e4   :  { %17022 = vpow2.f32 %v12114_v38  ;;  %v12113_v47 = vsub.f32 %v12105_v29, %v12111_v54 }
0x59e6   :  { %v12116_v56 = vmul.f32 1.442695, %v12113_v47 }
0x59e8   :  { %17024 = vpow2.f32 %v12116_v56 }
0x59f1   :  { %v17023_v44 = vpop.eup %17022 }
0x59f2   :  { %v12118_v52 = vsel %vm484_vm6, %v17023_v44, 0.0 }
0x59f3   :  { %12119 = vadd.xlane.f32.xlu0 %v12118_v52 }
0x59f5   :  { %v17025_v5 = vpop.eup %17024 }
0x59f6   :  { %v12121_v30 = vsel %vm484_vm6, %v17025_v5, 0.0 }
0x59f7   :  { %12122 = vadd.xlane.f32.xlu1 %v12121_v30 }
0x5a06   :  { %v11916_v4 = vpop.xlane.xlu0 %11915 }
0x5a07   :  { %17026 = vrcp.f32 %v11916_v4 }
0x5a08   :  { %11924 = vrot.lane.b32.xlu1 %v19259_v57, %s17127_s30 }
0x5a09   :  { %11926 = vrot.lane.b32.xlu0 %v19251_v16, %s17127_s30 }
0x5a0c   :  { %12130 = vrot.lane.b32.xlu1 %v19251_v16, %s17128_s22 }
0x5a0d   :  { %12216 = vrot.lane.b32.xlu0 %v19308_v41, %s17136_s1  ;;  %v11919_v41 = vpop.xlane.xlu1 %11918 }
0x5a0e   :  { %17028 = vrcp.f32 %v11919_v41 }
0x5a10   :  { %12128 = vrot.lane.b32.xlu1 %v19259_v57, %s17128_s22 }
0x5a11   :  { %12389 = vrot.lane.b32.xlu0 %v19259_v57, %s17133_s6 }
0x5a14   :  { %v17027_v20 = vpop.eup %17026  ;;  %12391 = vrot.lane.b32.xlu1 %v19251_v16, %s17133_s6 }
0x5a15   :  { %12387 = vrot.lane.b32.xlu0 %v19335_v1, %s17133_s6  ;;  %v11922_v51 = vmul.f32 %v17027_v20, %v17021_v23 }
0x5a17   :  { %16510 = vmatprep.mubr.msk.f32.mxu1 %vm484_vm6, %v11922_v51 }
0x5a18   :  { %12385 = vrot.lane.b32.xlu1 %v19332_v22, %s17133_s6 }
0x5a19   :  { %12680 = vrot.lane.b32.xlu0 %v19259_v57, %s19780_s27 }
0x5a1b   :  { %v17029_v9 = vpop.eup %17028 }
0x5a1c   :  { %12682 = vrot.lane.b32.xlu1 %v19251_v16, %s19780_s27  ;;  %v11923_v37 = vmul.f32 %v17029_v9, %v17019_v48 }
0x5a1d   :  { %12678 = vrot.lane.b32.xlu0 %v19335_v1, %s19780_s27 }
0x5a20   :  { %12676 = vrot.lane.b32.xlu1 %v19332_v22, %s19780_s27 }
0x5a7c   :  { %v12120_v6 = vpop.xlane.xlu0 %12119 }
0x5a7d   :  { %17030 = vrcp.f32 %v12120_v6 }
0x5a80   :  { %v11927_v10 = vpop.permute.xlu0 %11926  ;;  %v12123_v14 = vpop.xlane.xlu1 %12122 }
0x5a81   :  { %17032 = vrcp.f32 %v12123_v14  ;;  %16506 = vmatprep.subr.mxu1 %v11927_v10 }
0x5a82   :  { %16507 = vmatpush3.msra.mxu1 %v11927_v10 }
0x5a84   :  { %v11925_v2 = vpop.permute.xlu1 %11924  ;;  %v12217_v28 = vpop.permute.xlu0 %12216 }
0x5a85   :  { %16508 = vmatprep.subr.mxu1 %v11925_v2 }
0x5a86   :  { %16509 = vmatpush3.msra.mxu1 %v11925_v2 }
0x5a87   :  { %16511 = vmatmul.mubr.msk.f32.vlgmr.msra.gmra.mxu1 %vm484_vm6, %v11923_v37 }
0x5a88   :  { %v12131_v46 = vpop.permute.xlu1 %12130  ;;  %v12390_v43 = vpop.permute.xlu0 %12389 }
0x5a89   :  { %16520 = vmatprep.subr.mxu1 %v12131_v46 }
0x5a8a   :  { %v17031_v40 = vpop.eup %17030  ;;  %16521 = vmatpush3.msra.mxu1 %v12131_v46 }
0x5a8b   :  { %v12126_v33 = vmul.f32 %v17031_v40, %v17023_v44 }
0x5a8c   :  { %v12129_v22 = vpop.permute.xlu1 %12128  ;;  %v12388_v58 = vpop.permute.xlu0 %12387 }
0x5a8d   :  { %16522 = vmatprep.subr.mxu1 %v12129_v22  ;;  %16524 = vmatprep.mubr.msk.f32.mxu1 %vm484_vm6, %v12126_v33 }
0x5a8e   :  { %v17033_v1 = vpop.eup %17032  ;;  %16523 = vmatpush3.msra.mxu1 %v12129_v22 }
0x5a8f   :  { %v12127_v13 = vmul.f32 %v17033_v1, %v17025_v5  ;;  %16527 = vmatprep.subr.mxu1 %v12217_v28 }
0x5a90   :  { %v12392_v31 = vpop.permute.xlu1 %12391  ;;  %v12681_v8 = vpop.permute.xlu0 %12680 }
0x5a91   :  { %16525 = vmatmul.mubr.msk.f32.vlgmr.msra.gmra.mxu1 %vm484_vm6, %v12127_v13 }
0x5a92   :  { %16528 = vmatpush3.msra.mxu1 %v12217_v28 }
0x5a93   :  { %16537 = vmatprep.subr.msk.mxu1 %vm396_vm5, %v12392_v31 }
0x5a94   :  { %v12386_v36 = vpop.permute.xlu1 %12385  ;;  %v12679_v45 = vpop.permute.xlu0 %12678 }
0x5a98   :  { %v12683_v34 = vpop.permute.xlu1 %12682 }
0x5a9c   :  { %v12677_v3 = vpop.permute.xlu1 %12676 }
0x5b47   :  { %v16512_v63 = vpop.f32.mrf.mxu1 }
0x5b49   :  { %v12002_v11 = vpop.f32.mrf.mxu1 }
0x5b4a   :  { %16534 = vmatprep.mubr.msk.f32.mxu0 %vm396_vm5, %v12002_v11 }
0x5b51   :  { %v16526_v0 = vpop.f32.mrf.mxu1 }
0x5b53   :  { %v12206_v26 = vpop.f32.mrf.mxu1 }
0x5b54   :  { %16529 = vmatprep.mubr.msk.f32.mxu1 %vm396_vm5, %v12206_v26 }
0x5b55   :  { %16530 = vmatmul.mubr.msk.f32.vlgmr.msra.gmra.mxu1 %vm396_vm5, %v16526_v0 }
0x5b56   :  { %16538 = vmatpush3.xpose.msk.msra.mxu1 %vm396_vm5, %v12392_v31  ;;  %16541 = vmatprep.mubr.msk.f32.mxu1 %vm396_vm5, %v12386_v36 }
0x5b57   :  { %16539 = vmatprep.subr.msk.mxu1 %vm396_vm5, %v12390_v43 }
0x5b5a   :  { %16540 = vmatpush3.xpose.msk.msra.mxu1 %vm396_vm5, %v12390_v43 }
0x5b5b   :  { %16556 = vmatprep.subr.msk.mxu1 %vm396_vm5, %v12683_v34 }
0x5b5d   :  { %16542 = vmatmul.mubr.msk.f32.vlgmr.msra.gmra.mxu1 %vm396_vm5, %v12388_v58 }
0x5b5e   :  { %16557 = vmatpush3.xpose.msk.msra.mxu1 %vm396_vm5, %v12683_v34  ;;  %16560 = vmatprep.mubr.msk.f32.mxu1 %vm396_vm5, %v12677_v3 }
0x5b5f   :  { %16558 = vmatprep.subr.msk.mxu1 %vm396_vm5, %v12681_v8 }
0x5b62   :  { %16559 = vmatpush3.xpose.msk.msra.mxu1 %vm396_vm5, %v12681_v8 }
0x5b65   :  { %16561 = vmatmul.mubr.msk.f32.vlgmr.msra.gmra.mxu1 %vm396_vm5, %v12679_v45 }
0x5c15   :  { %v19417_v19 = vpop.f32.mrf.mxu1 }
0x5c17   :  { %v19419_v25 = vpop.f32.mrf.mxu1 }
0x5c1d   :  { %v16543_v29 = vpop.f32.mrf.mxu1 }
0x5c1e   :  { %v12477_v49 = vmul.f32 0.35355338, %v16543_v29 }
0x5c1f   :  { %v12467_v21 = vpop.f32.mrf.mxu1 }
0x5c20   :  { %v12479_v61 = vadd.f32 %v19353_v60, %v12477_v49  ;;  %v12476_v42 = vmul.f32 0.35355338, %v12467_v21 }
0x5c22   :  { %v12478_v7 = vadd.f32 %v19359_v27, %v12476_v42  ;;  %v12483_v12 = vsel %vm484_vm6, %v12479_v61, -inf }
0x5c23   :  { %12484 = vmax.xlane.f32.xlu0 %v12483_v12 }
0x5c24   :  { %v12480_v18 = vsel %vm484_vm6, %v12478_v7, -inf }
0x5c25   :  { %12481 = vmax.xlane.f32.xlu1 %v12480_v18  ;;  %v16562_v62 = vpop.f32.mrf.mxu1 }
0x5c26   :  { %v12768_v41 = vmul.f32 0.35355338, %v16562_v62 }
0x5c27   :  { %v12758_v48 = vpop.f32.mrf.mxu1 }
0x5c28   :  { %v12767_v59 = vmul.f32 0.35355338, %v12758_v48  ;;  %v12770_v6 = vadd.f32 %v19353_v60, %v12768_v41 }
0x5c2a   :  { %v12769_v23 = vadd.f32 %v19359_v27, %v12767_v59  ;;  %v12774_v10 = vsel %vm484_vm6, %v12770_v6, -inf }
0x5c2c   :  { %v12771_v50 = vsel %vm484_vm6, %v12769_v23, -inf }
0x5c36   :  { %12301 = vrot.lane.b32.xlu1 %v19315_v24, %s17136_s1 }
0x5c3a   :  { %12502 = vrot.lane.b32.xlu1 %v19259_v57, %s17132_s0 }
0x5c5e   :  { %12772 = vmax.xlane.f32.xlu1 %v12771_v50 }
0x5cac   :  { %v12485_v35 = vpop.xlane.xlu0 %12484 }
0x5cad   :  { %v12487_v55 = vsub.f32 %v12479_v61, %v12485_v35 }
0x5cae   :  { %v12482_v38 = vpop.xlane.xlu1 %12481 }
0x5caf   :  { %v12490_v54 = vmul.f32 1.442695, %v12487_v55  ;;  %v12486_v47 = vsub.f32 %v12478_v7, %v12482_v38 }
0x5cb1   :  { %17034 = vpow2.f32 %v12490_v54  ;;  %v12488_v56 = vmul.f32 1.442695, %v12486_v47 }
0x5cb2   :  { %v12302_v44 = vpop.permute.xlu1 %12301 }
0x5cb3   :  { %17036 = vpow2.f32 %v12488_v56  ;;  %16532 = vmatprep.subr.mxu0 %v12302_v44 }
0x5cb4   :  { %16533 = vmatpush3.msra.mxu0 %v12302_v44 }
0x5cb5   :  { %16535 = vmatmul.mubr.msk.f32.vlgmr.msra.gmra.mxu0 %vm396_vm5, %v16512_v63 }
0x5cb6   :  { %v12503_v30 = vpop.permute.xlu1 %12502 }
0x5cbe   :  { %v17035_v24 = vpop.eup %17034 }
0x5cbf   :  { %v12495_v52 = vsel %vm484_vm6, %v17035_v24, 0.0 }
0x5cc0   :  { %v17037_v27 = vpop.eup %17036  ;;  %12496 = vadd.xlane.f32.xlu0 %v12495_v52  ;;  %v19491_v52 = vld [vmem:[%s19750_s9 + $0x138] sm:$0xff] }
0x5cc1   :  { %v12492_v5 = vsel %vm484_vm6, %v17037_v27, 0.0  ;;  %16575 = vmatprep.subr.mxu1 %v19491_v52 }
0x5cc2   :  { %16576 = vmatpush3.msra.mxu1 %v19491_v52 }
0x5cc4   :  { %12493 = vadd.xlane.f32.xlu0 %v12492_v5  ;;  %v19503_v5 = vld [vmem:[%s19750_s9 + $0x128] sm:$0xff] }
0x5cda   :  { %12504 = vrot.lane.b32.xlu0 %v19251_v16, %s17132_s0 }
0x5ce7   :  { %v12773_v4 = vpop.xlane.xlu1 %12772 }
0x5ce8   :  { %v12777_v20 = vsub.f32 %v12769_v23, %v12773_v4 }
0x5cea   :  { %v12779_v51 = vmul.f32 1.442695, %v12777_v20 }
0x5cec   :  { %17038 = vpow2.f32 %v12779_v51 }
0x5cf9   :  { %v17039_v14 = vpop.eup %17038  ;;  %12775 = vmax.xlane.f32.xlu0 %v12774_v10 }
0x5cfa   :  { %v12783_v9 = vsel %vm484_vm6, %v17039_v14, 0.0 }
0x5cfd   :  { %12784 = vadd.xlane.f32.xlu0 %v12783_v9 }
0x5d13   :  { %12590 = vrot.lane.b32.xlu0 %v19303_v17, %s17136_s1 }
0x5d17   :  { %12967 = vrot.lane.b32.xlu0 %v19329_v32, %s17136_s1 }
0x5d49   :  { %v12497_v2 = vpop.xlane.xlu0 %12496 }
0x5d4a   :  { %17040 = vrcp.f32 %v12497_v2 }
0x5d4d   :  { %v12494_v37 = vpop.xlane.xlu0 %12493 }
0x5d4e   :  { %17042 = vrcp.f32 %v12494_v37 }
0x5d51   :  { %v12505_v46 = vpop.permute.xlu0 %12504 }
0x5d52   :  { %16544 = vmatprep.subr.mxu0 %v12505_v46 }
0x5d53   :  { %16545 = vmatpush3.msra.mxu0 %v12505_v46 }
0x5d54   :  { %16546 = vmatprep.subr.mxu0 %v12503_v30 }
0x5d55   :  { %16547 = vmatpush3.msra.mxu0 %v12503_v30  ;;  %v19510_v30 = vld [vmem:[%s19750_s9 + $0x120] sm:$0xff] }
0x5d57   :  { %v17041_v60 = vpop.eup %17040 }
0x5d58   :  { %v12501_v22 = vmul.f32 %v17041_v60, %v17035_v24  ;;  %v15015_v24 = vld [vmem:[%s19757_s16 + $0xd] ss:$0 sm:$0xff] }
0x5d5b   :  { %v17043_v40 = vpop.eup %17042 }
0x5d5c   :  { %v12500_v33 = vmul.f32 %v17043_v40, %v17037_v27  ;;  %v19498_v27 = vld [vmem:[%s19750_s9 + $0x130] sm:$0xff] }
0x5d5d   :  { %16577 = vmatprep.subr.mxu1 %v19498_v27 }
0x5d5e   :  { %16548 = vmatprep.mubr.msk.f32.mxu0 %vm484_vm6, %v12500_v33  ;;  %16578 = vmatpush3.msra.mxu1 %v19498_v27 }
0x5d5f   :  { %16549 = vmatmul.mubr.msk.f32.vlgmr.msra.gmra.mxu0 %vm484_vm6, %v12501_v22  ;;  %16579 = vmatprep.subr.mxu1 %v19503_v5 }
0x5d60   :  { %16580 = vmatpush3.msra.mxu1 %v19503_v5 }
0x5d61   :  { %16581 = vmatprep.subr.mxu1 %v19510_v30 }
0x5d62   :  { %16582 = vmatpush3.msra.mxu1 %v19510_v30 }
0x5d75   :  { %v16536_v11 = vpop.f32.mrf.mxu0 }
0x5d76   :  { %v12382_v49 = vadd.f32 %v16536_v11, %v19417_v19 }
0x5d77   :  { %v12376_v36 = vpop.f32.mrf.mxu0 }
0x5d78   :  { %v12377_v18 = vadd.f32 %v12376_v36, %v19419_v25 }
0x5d82   :  { %v12776_v17 = vpop.xlane.xlu0 %12775 }
0x5d83   :  { %v12778_v1 = vsub.f32 %v12770_v6, %v12776_v17 }
0x5d85   :  { %v12781_v32 = vmul.f32 1.442695, %v12778_v1 }
0x5d86   :  { %v12785_v31 = vpop.xlane.xlu0 %12784 }
0x5d87   :  { %17044 = vpow2.f32 %v12781_v32 }
0x5d88   :  { %17046 = vrcp.f32 %v12785_v31 }
0x5d8a   :  { %v12591_v63 = vpop.permute.xlu0 %12590 }
0x5d8b   :  { %16551 = vmatprep.subr.mxu0 %v12591_v63 }
0x5d8c   :  { %16552 = vmatpush3.msra.mxu0 %v12591_v63 }
0x5d8e   :  { %v12968_v48 = vpop.permute.xlu0 %12967 }
0x5d94   :  { %v17045_v28 = vpop.eup %17044 }
0x5d95   :  { %v12786_v13 = vsel %vm484_vm6, %v17045_v28, 0.0  ;;  %v17047_v0 = vpop.eup %17046 }
0x5d96   :  { %12787 = vadd.xlane.f32.xlu1 %v12786_v13  ;;  %v12791_v58 = vmul.f32 %v17047_v0, %v17039_v14 }
0x5da7   :  { %12795 = vrot.lane.b32.xlu1 %v19251_v16, %s19779_s8 }
0x5dab   :  { %12793 = vrot.lane.b32.xlu1 %v19259_v57, %s19779_s8 }
0x5daf   :  { %12881 = vrot.lane.b32.xlu1 %v19296_v53, %s17136_s1 }
0x5e1f   :  { %v16550_v43 = vpop.f32.mrf.mxu0  ;;  %v12788_v26 = vpop.xlane.xlu1 %12787 }
0x5e20   :  { %17048 = vrcp.f32 %v12788_v26 }
0x5e21   :  { %v12580_v34 = vpop.f32.mrf.mxu0 }
0x5e22   :  { %16553 = vmatprep.mubr.msk.f32.mxu0 %vm396_vm5, %v12580_v34 }
0x5e23   :  { %16554 = vmatmul.mubr.msk.f32.vlgmr.msra.gmra.mxu0 %vm396_vm5, %v16550_v43  ;;  %v12796_v3 = vpop.permute.xlu1 %12795 }
0x5e24   :  { %16563 = vmatprep.subr.mxu0 %v12796_v3  ;;  %16567 = vmatprep.mubr.msk.f32.mxu0 %vm484_vm6, %v12791_v58 }
0x5e25   :  { %16564 = vmatpush3.msra.mxu0 %v12796_v3 }
0x5e27   :  { %v12794_v8 = vpop.permute.xlu1 %12793 }
0x5e28   :  { %16565 = vmatprep.subr.mxu0 %v12794_v8 }
0x5e29   :  { %16566 = vmatpush3.msra.mxu0 %v12794_v8  ;;  %v19528_v8 = vld [vmem:[%s19751_s10 + $0x9] ss:$0 sm:$0xff] }
0x5e2b   :  { %v12882_v29 = vpop.permute.xlu1 %12881 }
0x5e2c   :  { %16570 = vmatprep.subr.mxu0 %v12882_v29 }
0x5e2d   :  { %v17049_v53 = vpop.eup %17048 }
0x5e2e   :  { %v12792_v45 = vmul.f32 %v17049_v53, %v17045_v28 }
0x5e30   :  { %16568 = vmatmul.mubr.msk.f32.vlgmr.msra.gmra.mxu0 %vm484_vm6, %v12792_v45 }
0x5e31   :  { %16571 = vmatpush3.msra.mxu0 %v12882_v29 }
0x5ee3   :  { %v16555_v21 = vpop.f32.mrf.mxu0 }
0x5ee4   :  { %v12675_v61 = vadd.f32 %v16555_v21, %v12382_v49 }
0x5ee5   :  { %v12665_v42 = vpop.f32.mrf.mxu0 }
0x5ee6   :  { %v12674_v59 = vadd.f32 %v12665_v42, %v12377_v18 }
0x5ef0   :  { %v16569_v7 = vpop.f32.mrf.mxu0 }
0x5ef2   :  { %v12871_v12 = vpop.f32.mrf.mxu0 }
0x5ef3   :  { %16572 = vmatprep.mubr.msk.f32.mxu0 %vm396_vm5, %v12871_v12 }
0x5ef4   :  { %16573 = vmatmul.mubr.msk.f32.vlgmr.msra.gmra.mxu0 %vm396_vm5, %v16569_v7 }
0x5fb4   :  { %v16574_v62 = vpop.f32.mrf.mxu0 }
0x5fb5   :  { %v12966_v23 = vadd.f32 %v16574_v62, %v12675_v61  ;;  %v19552_v62 = vld [vmem:[%s19744_s3 + $0x28] sm:$0xff] }
0x5fb6   :  { %v12956_v50 = vpop.f32.mrf.mxu0 }
0x5fb7   :  { %v12971_v35 = vadd.f32 %v12968_v48, %v12966_v23  ;;  %v12965_v55 = vadd.f32 %v12956_v50, %v12674_v59  ;;  %v19558_v23 = vld [vmem:[%s19744_s3 + $0x20] sm:$0xff] }
0x5fb9   :  { %v19461_v19 = vadd.f32 %v12971_v35, %v19270_v39  ;;  %v12970_v38 = vadd.f32 %v12968_v48, %v12965_v55 }
0x5fbb   :  { %v19464_v54 = vadd.f32 %v12970_v38, %v19273_v15  ;;  %v12979_v47 = vsel %vm251_vm2, %v19461_v19, 0.0  ;;  %v12985_v39 = vmul.f32 %v19461_v19, %v19461_v19 }
0x5fbc   :  { %12980 = vadd.xlane.f32.xlu0 %v12979_v47 }
0x5fbd   :  { %v12976_v25 = vsel %vm251_vm2, %v19464_v54, 0.0  ;;  %v12984_v56 = vmul.f32 %v19464_v54, %v19464_v54  ;;  %v12989_v15 = vsel %vm251_vm2, %v12985_v39, 0.0 }
0x5fbe   :  { %12977 = vadd.xlane.f32.xlu1 %v12976_v25 }
0x5fbf   :  { %v12986_v44 = vsel %vm251_vm2, %v12984_v56, 0.0 }
0x5fc0   :  { %12987 = vadd.xlane.f32.xlu0 %v12986_v44 }
0x5fc4   :  { %12990 = vadd.xlane.f32.xlu0 %v12989_v15 }
0x5fcf   :  { %13016 = vrot.lane.b32.xlu1 %v15015_v24, %s17127_s30 }
0x5fd3   :  { %13115 = vrot.lane.b32.xlu1 %v19259_v57, %s17130_s28 }
0x5fd7   :  { %13323 = vrot.lane.b32.xlu1 %v19251_v16, %s17131_s29 }
0x5fda   :  { %13117 = vrot.lane.b32.xlu0 %v19251_v16, %s17130_s28 }
0x5fdb   :  { %13321 = vrot.lane.b32.xlu1 %v19259_v57, %s17131_s29 }
0x6045   :  { %v12981_v4 = vpop.xlane.xlu0 %12980 }
0x6046   :  { %v12983_v6 = vmul.f32 0.03125, %v12981_v4 }
0x6047   :  { %v12978_v20 = vpop.xlane.xlu1 %12977 }
0x6048   :  { %v12982_v51 = vmul.f32 0.03125, %v12978_v20  ;;  %v12995_v46 = vmul.f32 %v12983_v6, %v12983_v6  ;;  %v13001_v36 = vsub.f32 %v19461_v19, %v12983_v6 }
0x6049   :  { %v12988_v41 = vpop.xlane.xlu0 %12987 }
0x604a   :  { %v12994_v10 = vmul.f32 %v12982_v51, %v12982_v51  ;;  %v12992_v14 = vmul.f32 0.03125, %v12988_v41  ;;  %v13000_v31 = vsub.f32 %v19464_v54, %v12982_v51 }
0x604b   :  { %v13017_v9 = vpop.permute.xlu1 %13016 }
0x604c   :  { %v12996_v2 = vsub.f32 %v12992_v14, %v12994_v10 }
0x604d   :  { %v12991_v37 = vpop.xlane.xlu0 %12990 }
0x604e   :  { %v12998_v60 = vmax.f32 %v12996_v2, 0.0  ;;  %v12993_v40 = vmul.f32 0.03125, %v12991_v37 }
0x604f   :  { %v13116_v17 = vpop.permute.xlu1 %13115 }
0x6050   :  { %v13002_v33 = vadd.f32 1e-06, %v12998_v60  ;;  %v12997_v22 = vsub.f32 %v12993_v40, %v12995_v46 }
0x6051   :  { %v13118_v1 = vpop.permute.xlu0 %13117 }
0x6052   :  { %17050 = vrsqrt.f32 %v13002_v33  ;;  %v12999_v32 = vmax.f32 %v12997_v22, 0.0  ;;  %16586 = vmatprep.subr.msk.mxu0 %vm396_vm5, %v13118_v1 }
0x6053   :  { %16587 = vmatpush3.xpose.msk.msra.mxu0 %vm396_vm5, %v13118_v1  ;;  %v13324_v13 = vpop.permute.xlu1 %13323 }
0x6054   :  { %v13003_v28 = vadd.f32 1e-06, %v12999_v32  ;;  %16588 = vmatprep.subr.msk.mxu0 %vm396_vm5, %v13116_v17 }
0x6056   :  { %17052 = vrsqrt.f32 %v13003_v28 }
0x6057   :  { %16589 = vmatpush3.xpose.msk.msra.mxu0 %vm396_vm5, %v13116_v17  ;;  %v13322_v21 = vpop.permute.xlu1 %13321 }
0x6058   :  { %16600 = vmatprep.subr.msk.mxu0 %vm396_vm5, %v13324_v13 }
0x605f   :  { %v17051_v63 = vpop.eup %17050 }
0x6060   :  { %v13006_v11 = vmul.f32 %v17051_v63, %v13000_v31 }
0x6062   :  { %v13014_v0 = vmul.f32 %v15015_v24, %v13006_v11 }
0x6063   :  { %v17053_v43 = vpop.eup %17052 }
0x6064   :  { %v13019_v26 = vadd.f32 %v13017_v9, %v13014_v0  ;;  %v13007_v34 = vmul.f32 %v17053_v43, %v13001_v36 }
0x6066   :  { %16583 = vmatprep.mubr.msk.f32.mxu1 %vm251_vm2, %v13019_v26  ;;  %v13015_v58 = vmul.f32 %v15015_v24, %v13007_v34 }
0x6068   :  { %v13020_v3 = vadd.f32 %v13017_v9, %v13015_v58 }
0x606a   :  { %16584 = vmatmul.mubr.msk.f32.vlgmr.msra.gmra.mxu1 %vm251_vm2, %v13020_v3 }
0x612a   :  { %v16585_v53 = vpop.f32.mrf.mxu1 }
0x612b   :  { %v19531_v45 = vadd.f32 %v16585_v53, %v19528_v8 }
0x612c   :  { %v13106_v29 = vpop.f32.mrf.mxu1 }
0x612d   :  { %v19534_v49 = vadd.f32 %v19528_v8, %v13106_v29  ;;  %13319 = vrot.lane.b32.xlu1 %v19531_v45, %s17129_s23 }
0x612f   :  { %13317 = vrot.lane.b32.xlu0 %v19534_v49, %s17129_s23  ;;  %16590 = vmatprep.mubr.msk.f32.mxu0 %vm396_vm5, %v19534_v49 }
0x6130   :  { %16591 = vmatmul.mubr.msk.f32.vlgmr.msra.gmra.mxu0 %vm396_vm5, %v19531_v45 }
0x6131   :  { %16601 = vmatpush3.xpose.msk.msra.mxu0 %vm396_vm5, %v13324_v13 }
0x6132   :  { %16602 = vmatprep.subr.msk.mxu0 %vm396_vm5, %v13322_v21 }
0x6135   :  { %16603 = vmatpush3.xpose.msk.msra.mxu0 %vm396_vm5, %v13322_v21 }
0x619f   :  { %v13320_v42 = vpop.permute.xlu1 %13319 }
0x61a1   :  { %v13318_v61 = vpop.permute.xlu0 %13317 }
0x61a2   :  { %16604 = vmatprep.mubr.msk.f32.mxu0 %vm396_vm5, %v13318_v61 }
0x61a3   :  { %16605 = vmatmul.mubr.msk.f32.vlgmr.msra.gmra.mxu0 %vm396_vm5, %v13320_v42 }
0x61f0   :  { %v16592_v7 = vpop.f32.mrf.mxu0 }
0x61f1   :  { %v13205_v12 = vmul.f32 0.35355338, %v16592_v7 }
0x61f2   :  { %v13195_v18 = vpop.f32.mrf.mxu0 }
0x61f3   :  { %v13207_v48 = vadd.f32 %v19552_v62, %v13205_v12  ;;  %v13204_v59 = vmul.f32 0.35355338, %v13195_v18 }
0x61f5   :  { %v13206_v50 = vadd.f32 %v19558_v23, %v13204_v59  ;;  %v13211_v35 = vsel %vm484_vm6, %v13207_v48, -inf }
0x61f6   :  { %13212 = vmax.xlane.f32.xlu1 %v13211_v35 }
0x61f7   :  { %v13208_v55 = vsel %vm484_vm6, %v13206_v50, -inf }
0x61f8   :  { %13209 = vmax.xlane.f32.xlu0 %v13208_v55 }
0x6263   :  { %v16606_v38 = vpop.f32.mrf.mxu0 }
0x6264   :  { %v13409_v25 = vmul.f32 0.35355338, %v16606_v38 }
0x6265   :  { %v13399_v47 = vpop.f32.mrf.mxu0 }
0x6266   :  { %v13408_v56 = vmul.f32 0.35355338, %v13399_v47  ;;  %v13411_v39 = vadd.f32 %v19552_v62, %v13409_v25 }
0x6268   :  { %v13410_v44 = vadd.f32 %v19558_v23, %v13408_v56  ;;  %v13415_v24 = vsel %vm484_vm6, %v13411_v39, -inf }
0x626a   :  { %v13412_v15 = vsel %vm484_vm6, %v13410_v44, -inf }
0x626b   :  { %13413 = vmax.xlane.f32.xlu0 %v13412_v15 }
0x626f   :  { %13416 = vmax.xlane.f32.xlu0 %v13415_v24 }
0x627f   :  { %v13213_v4 = vpop.xlane.xlu1 %13212 }
0x6280   :  { %v13215_v20 = vsub.f32 %v13207_v48, %v13213_v4 }
0x6281   :  { %v13210_v51 = vpop.xlane.xlu0 %13209 }
0x6282   :  { %v13218_v41 = vmul.f32 1.442695, %v13215_v20  ;;  %v13214_v6 = vsub.f32 %v13206_v50, %v13210_v51 }
0x6284   :  { %17054 = vpow2.f32 %v13218_v41  ;;  %v13216_v10 = vmul.f32 1.442695, %v13214_v6 }
0x6286   :  { %17056 = vpow2.f32 %v13216_v10 }
0x6291   :  { %v17055_v14 = vpop.eup %17054 }
0x6292   :  { %v13223_v9 = vsel %vm484_vm6, %v17055_v14, 0.0 }
0x6293   :  { %v17057_v2 = vpop.eup %17056  ;;  %13224 = vadd.xlane.f32.xlu1 %v13223_v9 }
0x6294   :  { %v13220_v37 = vsel %vm484_vm6, %v17057_v2, 0.0 }
0x6295   :  { %13221 = vadd.xlane.f32.xlu0 %v13220_v37 }
0x62f4   :  { %v13414_v46 = vpop.xlane.xlu0 %13413 }
0x62f5   :  { %v13418_v60 = vsub.f32 %v13410_v44, %v13414_v46 }
0x62f7   :  { %v13420_v40 = vmul.f32 1.442695, %v13418_v60 }
0x62f8   :  { %v13417_v33 = vpop.xlane.xlu0 %13416 }
0x62f9   :  { %17058 = vpow2.f32 %v13420_v40  ;;  %v13419_v22 = vsub.f32 %v13411_v39, %v13417_v33 }
0x62fb   :  { %v13422_v17 = vmul.f32 1.442695, %v13419_v22 }
0x62fd   :  { %17060 = vpow2.f32 %v13422_v17 }
0x6306   :  { %v17059_v1 = vpop.eup %17058 }
0x6307   :  { %v13424_v32 = vsel %vm484_vm6, %v17059_v1, 0.0 }
0x6308   :  { %13425 = vadd.xlane.f32.xlu0 %v13424_v32 }
0x630a   :  { %v17061_v28 = vpop.eup %17060 }
0x630b   :  { %v13427_v13 = vsel %vm484_vm6, %v17061_v28, 0.0 }
0x630c   :  { %13428 = vadd.xlane.f32.xlu1 %v13427_v13 }
0x631d   :  { %13230 = vrot.lane.b32.xlu1 %v19259_v57, %s17136_s1 }
0x631e   :  { %13232 = vrot.lane.b32.xlu0 %v19251_v16, %s17136_s1  ;;  %v13222_v31 = vpop.xlane.xlu0 %13221 }
0x631f   :  { %17062 = vrcp.f32 %v13222_v31 }
0x6321   :  { %13436 = vrot.lane.b32.xlu1 %v19251_v16, %s17140_s24 }
0x6322   :  { %13522 = vrot.lane.b32.xlu0 %v19503_v5, %s17136_s1  ;;  %v13225_v5 = vpop.xlane.xlu1 %13224 }
0x6323   :  { %17064 = vrcp.f32 %v13225_v5 }
0x6325   :  { %13434 = vrot.lane.b32.xlu1 %v19259_v57, %s17140_s24 }
0x6326   :  { %13695 = vrot.lane.b32.xlu0 %v19259_v57, %s19777_s26 }
0x6329   :  { %13697 = vrot.lane.b32.xlu1 %v19251_v16, %s19777_s26 }
0x632a   :  { %13693 = vrot.lane.b32.xlu0 %v19531_v45, %s17133_s6 }
0x632c   :  { %v17063_v63 = vpop.eup %17062 }
0x632d   :  { %13691 = vrot.lane.b32.xlu1 %v19534_v49, %s17133_s6  ;;  %v13228_v11 = vmul.f32 %v17063_v63, %v17057_v2 }
0x632e   :  { %13986 = vrot.lane.b32.xlu0 %v19259_v57, %s19778_s2 }
0x632f   :  { %16597 = vmatprep.mubr.msk.f32.mxu1 %vm484_vm6, %v13228_v11 }
0x6330   :  { %v17065_v26 = vpop.eup %17064 }
0x6331   :  { %13988 = vrot.lane.b32.xlu1 %v19251_v16, %s19778_s2  ;;  %v13229_v58 = vmul.f32 %v17065_v26, %v17055_v14 }
0x6332   :  { %13984 = vrot.lane.b32.xlu0 %v19531_v45, %s19780_s27 }
0x6335   :  { %13982 = vrot.lane.b32.xlu1 %v19534_v49, %s19780_s27 }
0x6391   :  { %v13426_v36 = vpop.xlane.xlu0 %13425 }
0x6392   :  { %17066 = vrcp.f32 %v13426_v36 }
0x6395   :  { %v13233_v0 = vpop.permute.xlu0 %13232  ;;  %v13429_v43 = vpop.xlane.xlu1 %13428 }
0x6396   :  { %17068 = vrcp.f32 %v13429_v43  ;;  %16593 = vmatprep.subr.mxu1 %v13233_v0 }
0x6397   :  { %16594 = vmatpush3.msra.mxu1 %v13233_v0 }
0x6399   :  { %v13231_v34 = vpop.permute.xlu1 %13230  ;;  %v13523_v21 = vpop.permute.xlu0 %13522 }
0x639a   :  { %16595 = vmatprep.subr.mxu1 %v13231_v34 }
0x639b   :  { %16596 = vmatpush3.msra.mxu1 %v13231_v34 }
0x639c   :  { %16598 = vmatmul.mubr.msk.f32.vlgmr.msra.gmra.mxu1 %vm484_vm6, %v13229_v58 }
0x639d   :  { %v13437_v3 = vpop.permute.xlu1 %13436  ;;  %v13696_v59 = vpop.permute.xlu0 %13695 }
0x639e   :  { %16607 = vmatprep.subr.mxu1 %v13437_v3 }
0x639f   :  { %v17067_v53 = vpop.eup %17066  ;;  %16608 = vmatpush3.msra.mxu1 %v13437_v3 }
0x63a0   :  { %v13432_v45 = vmul.f32 %v17067_v53, %v17059_v1 }
0x63a1   :  { %v13435_v29 = vpop.permute.xlu1 %13434  ;;  %v13694_v55 = vpop.permute.xlu0 %13693 }
0x63a2   :  { %16609 = vmatprep.subr.mxu1 %v13435_v29  ;;  %16611 = vmatprep.mubr.msk.f32.mxu1 %vm484_vm6, %v13432_v45 }
0x63a3   :  { %v17069_v49 = vpop.eup %17068  ;;  %16610 = vmatpush3.msra.mxu1 %v13435_v29 }
0x63a4   :  { %v13433_v61 = vmul.f32 %v17069_v49, %v17061_v28  ;;  %16614 = vmatprep.subr.mxu1 %v13523_v21 }
0x63a5   :  { %v13698_v42 = vpop.permute.xlu1 %13697  ;;  %v13987_v47 = vpop.permute.xlu0 %13986 }
0x63a6   :  { %16612 = vmatmul.mubr.msk.f32.vlgmr.msra.gmra.mxu1 %vm484_vm6, %v13433_v61 }
0x63a7   :  { %16615 = vmatpush3.msra.mxu1 %v13523_v21 }
0x63a8   :  { %16624 = vmatprep.subr.msk.mxu1 %vm396_vm5, %v13698_v42 }
0x63a9   :  { %v13692_v18 = vpop.permute.xlu1 %13691  ;;  %v13985_v25 = vpop.permute.xlu0 %13984 }
0x63ad   :  { %v13989_v35 = vpop.permute.xlu1 %13988 }
0x63b1   :  { %v13983_v38 = vpop.permute.xlu1 %13982 }
0x645c   :  { %v16599_v7 = vpop.f32.mrf.mxu1 }
0x645e   :  { %v13308_v12 = vpop.f32.mrf.mxu1 }
0x645f   :  { %16621 = vmatprep.mubr.msk.f32.mxu0 %vm396_vm5, %v13308_v12 }
0x6466   :  { %v16613_v48 = vpop.f32.mrf.mxu1 }
0x6468   :  { %v13512_v50 = vpop.f32.mrf.mxu1 }
0x6469   :  { %16616 = vmatprep.mubr.msk.f32.mxu1 %vm396_vm5, %v13512_v50 }
0x646a   :  { %16617 = vmatmul.mubr.msk.f32.vlgmr.msra.gmra.mxu1 %vm396_vm5, %v16613_v48 }
0x646b   :  { %16625 = vmatpush3.xpose.msk.msra.mxu1 %vm396_vm5, %v13698_v42  ;;  %16628 = vmatprep.mubr.msk.f32.mxu1 %vm396_vm5, %v13692_v18 }
0x646c   :  { %16626 = vmatprep.subr.msk.mxu1 %vm396_vm5, %v13696_v59 }
0x646f   :  { %16627 = vmatpush3.xpose.msk.msra.mxu1 %vm396_vm5, %v13696_v59 }
0x6470   :  { %16643 = vmatprep.subr.msk.mxu1 %vm396_vm5, %v13989_v35 }
0x6472   :  { %16629 = vmatmul.mubr.msk.f32.vlgmr.msra.gmra.mxu1 %vm396_vm5, %v13694_v55 }
0x6473   :  { %16644 = vmatpush3.xpose.msk.msra.mxu1 %vm396_vm5, %v13989_v35  ;;  %16647 = vmatprep.mubr.msk.f32.mxu1 %vm396_vm5, %v13983_v38 }
0x6474   :  { %16645 = vmatprep.subr.msk.mxu1 %vm396_vm5, %v13987_v47 }
0x6477   :  { %16646 = vmatpush3.xpose.msk.msra.mxu1 %vm396_vm5, %v13987_v47 }
0x647a   :  { %16648 = vmatmul.mubr.msk.f32.vlgmr.msra.gmra.mxu1 %vm396_vm5, %v13985_v25 }
0x652a   :  { %v19616_v56 = vpop.f32.mrf.mxu1 }
0x652c   :  { %v19618_v44 = vpop.f32.mrf.mxu1 }
0x6532   :  { %v16630_v39 = vpop.f32.mrf.mxu1 }
0x6533   :  { %v13783_v15 = vmul.f32 0.35355338, %v16630_v39 }
0x6534   :  { %v13773_v24 = vpop.f32.mrf.mxu1 }
0x6535   :  { %v13785_v4 = vadd.f32 %v19552_v62, %v13783_v15  ;;  %v13782_v20 = vmul.f32 0.35355338, %v13773_v24 }
0x6537   :  { %v13784_v51 = vadd.f32 %v19558_v23, %v13782_v20  ;;  %v13789_v41 = vsel %vm484_vm6, %v13785_v4, -inf }
0x6538   :  { %13790 = vmax.xlane.f32.xlu0 %v13789_v41 }
0x6539   :  { %v13786_v6 = vsel %vm484_vm6, %v13784_v51, -inf }
0x653a   :  { %13787 = vmax.xlane.f32.xlu1 %v13786_v6  ;;  %v16649_v10 = vpop.f32.mrf.mxu1 }
0x653b   :  { %v14074_v5 = vmul.f32 0.35355338, %v16649_v10 }
0x653c   :  { %v14064_v14 = vpop.f32.mrf.mxu1 }
0x653d   :  { %v14073_v9 = vmul.f32 0.35355338, %v14064_v14  ;;  %v14076_v36 = vadd.f32 %v19552_v62, %v14074_v5 }
0x653f   :  { %v14075_v2 = vadd.f32 %v19558_v23, %v14073_v9  ;;  %v14080_v0 = vsel %vm484_vm6, %v14076_v36, -inf }
0x6541   :  { %v14077_v37 = vsel %vm484_vm6, %v14075_v2, -inf }
0x654b   :  { %13607 = vrot.lane.b32.xlu1 %v19510_v30, %s17136_s1 }
0x654f   :  { %13808 = vrot.lane.b32.xlu1 %v19259_v57, %s19781_s25 }
0x6573   :  { %14078 = vmax.xlane.f32.xlu1 %v14077_v37 }
0x65c1   :  { %v13791_v46 = vpop.xlane.xlu0 %13790 }
0x65c2   :  { %v13793_v60 = vsub.f32 %v13785_v4, %v13791_v46 }
0x65c3   :  { %v13788_v40 = vpop.xlane.xlu1 %13787 }
0x65c4   :  { %v13796_v33 = vmul.f32 1.442695, %v13793_v60  ;;  %v13792_v22 = vsub.f32 %v13784_v51, %v13788_v40 }
0x65c6   :  { %17070 = vpow2.f32 %v13796_v33  ;;  %v13794_v17 = vmul.f32 1.442695, %v13792_v22 }
0x65c7   :  { %v13608_v1 = vpop.permute.xlu1 %13607 }
0x65c8   :  { %17072 = vpow2.f32 %v13794_v17  ;;  %16619 = vmatprep.subr.mxu0 %v13608_v1  ;;  %v15057_v17 = vld [vmem:[%s19757_s16 + $0xe] ss:$0 sm:$0xff] }
0x65c9   :  { %16620 = vmatpush3.msra.mxu0 %v13608_v1  ;;  %v15061_v1 = vld [vmem:[%s19754_s13 + $0x78] sm:$0xff] }
0x65ca   :  { %16622 = vmatmul.mubr.msk.f32.vlgmr.msra.gmra.mxu0 %vm396_vm5, %v16599_v7  ;;  %16662 = vmatprep.subr.mxu1 %v15061_v1 }
0x65cb   :  { %v13809_v13 = vpop.permute.xlu1 %13808  ;;  %16663 = vmatpush3.msra.mxu1 %v15061_v1 }
0x65d3   :  { %v17071_v30 = vpop.eup %17070 }
0x65d4   :  { %v13801_v32 = vsel %vm484_vm6, %v17071_v30, 0.0 }
0x65d5   :  { %v17073_v23 = vpop.eup %17072  ;;  %13802 = vadd.xlane.f32.xlu0 %v13801_v32  ;;  %v15059_v32 = vld [vmem:[%s19754_s13 + $0x68] sm:$0xff] }
0x65d6   :  { %v13798_v28 = vsel %vm484_vm6, %v17073_v23, 0.0 }
0x65d9   :  { %13799 = vadd.xlane.f32.xlu0 %v13798_v28  ;;  %v15069_v28 = vld [vmem:[%s19755_s14 + $0xf8] sm:$0xff] }
0x65ef   :  { %13810 = vrot.lane.b32.xlu0 %v19251_v16, %s19781_s25 }
0x65fc   :  { %v14079_v31 = vpop.xlane.xlu1 %14078 }
0x65fd   :  { %v14083_v63 = vsub.f32 %v14075_v2, %v14079_v31  ;;  %v15067_v31 = vld [vmem:[%s19755_s14 + $0xe8] sm:$0xff] }
0x65ff   :  { %v14085_v11 = vmul.f32 1.442695, %v14083_v63  ;;  %v15066_v63 = vld [vmem:[%s19755_s14 + $0xe0] sm:$0xff] }
0x6601   :  { %17074 = vpow2.f32 %v14085_v11 }
0x660e   :  { %v17075_v43 = vpop.eup %17074  ;;  %14081 = vmax.xlane.f32.xlu0 %v14080_v0 }
0x660f   :  { %v14089_v26 = vsel %vm484_vm6, %v17075_v43, 0.0 }
0x6612   :  { %14090 = vadd.xlane.f32.xlu0 %v14089_v26 }
0x6628   :  { %13896 = vrot.lane.b32.xlu0 %v19498_v27, %s17136_s1 }
0x662c   :  { %14273 = vrot.lane.b32.xlu0 %v19528_v8, %s17136_s1 }
0x665e   :  { %v13803_v34 = vpop.xlane.xlu0 %13802 }
0x665f   :  { %17076 = vrcp.f32 %v13803_v34 }
0x6662   :  { %v13800_v58 = vpop.xlane.xlu0 %13799 }
0x6663   :  { %17078 = vrcp.f32 %v13800_v58 }
0x6666   :  { %v13811_v3 = vpop.permute.xlu0 %13810 }
0x6667   :  { %16631 = vmatprep.subr.mxu0 %v13811_v3 }
0x6668   :  { %16632 = vmatpush3.msra.mxu0 %v13811_v3 }
0x6669   :  { %16633 = vmatprep.subr.mxu0 %v13809_v13 }
0x666a   :  { %16634 = vmatpush3.msra.mxu0 %v13809_v13  ;;  %v15068_v13 = vld [vmem:[%s19755_s14 + $0xf0] sm:$0xff] }
0x666c   :  { %v17077_v62 = vpop.eup %17076 }
0x666d   :  { %v13807_v29 = vmul.f32 %v17077_v62, %v17071_v30  ;;  %v15060_v30 = vld [vmem:[%s19754_s13 + $0x70] sm:$0xff] }
0x666e   :  { %16664 = vmatprep.subr.mxu1 %v15060_v30 }
0x666f   :  { %16665 = vmatpush3.msra.mxu1 %v15060_v30 }
0x6670   :  { %v17079_v53 = vpop.eup %17078  ;;  %16666 = vmatprep.subr.mxu1 %v15059_v32 }
0x6671   :  { %v13806_v45 = vmul.f32 %v17079_v53, %v17073_v23  ;;  %16667 = vmatpush3.msra.mxu1 %v15059_v32  ;;  %v15058_v23 = vld [vmem:[%s19754_s13 + $0x60] sm:$0xff] }
0x6672   :  { %16668 = vmatprep.subr.mxu1 %v15058_v23 }
0x6673   :  { %16635 = vmatprep.mubr.msk.f32.mxu0 %vm484_vm6, %v13806_v45  ;;  %16669 = vmatpush3.msra.mxu1 %v15058_v23 }
0x6674   :  { %16636 = vmatmul.mubr.msk.f32.vlgmr.msra.gmra.mxu0 %vm484_vm6, %v13807_v29 }
0x668a   :  { %v16623_v12 = vpop.f32.mrf.mxu0 }
0x668b   :  { %v13688_v25 = vadd.f32 %v16623_v12, %v19616_v56 }
0x668c   :  { %v13682_v18 = vpop.f32.mrf.mxu0 }
0x668d   :  { %v13683_v51 = vadd.f32 %v13682_v18, %v19618_v44 }
0x6697   :  { %v14082_v27 = vpop.xlane.xlu0 %14081 }
0x6698   :  { %v14084_v49 = vsub.f32 %v14076_v36, %v14082_v27 }
0x669a   :  { %v14087_v8 = vmul.f32 1.442695, %v14084_v49 }
0x669b   :  { %v14091_v42 = vpop.xlane.xlu0 %14090 }
0x669c   :  { %17080 = vpow2.f32 %v14087_v8 }
0x669d   :  { %17082 = vrcp.f32 %v14091_v42 }
0x669f   :  { %v13897_v7 = vpop.permute.xlu0 %13896 }
0x66a0   :  { %16638 = vmatprep.subr.mxu0 %v13897_v7 }
0x66a1   :  { %16639 = vmatpush3.msra.mxu0 %v13897_v7 }
0x66a3   :  { %v14274_v6 = vpop.permute.xlu0 %14273 }
0x66a9   :  { %v17081_v21 = vpop.eup %17080 }
0x66aa   :  { %v14092_v61 = vsel %vm484_vm6, %v17081_v21, 0.0  ;;  %v17083_v48 = vpop.eup %17082 }
0x66ab   :  { %14093 = vadd.xlane.f32.xlu1 %v14092_v61  ;;  %v14097_v55 = vmul.f32 %v17083_v48, %v17075_v43 }
0x66bc   :  { %14101 = vrot.lane.b32.xlu1 %v19251_v16, %s19782_s5 }
0x66c0   :  { %14099 = vrot.lane.b32.xlu1 %v19259_v57, %s19782_s5 }
0x66c4   :  { %14187 = vrot.lane.b32.xlu1 %v19491_v52, %s17136_s1 }
0x6734   :  { %v16637_v59 = vpop.f32.mrf.mxu0  ;;  %v14094_v50 = vpop.xlane.xlu1 %14093 }
0x6735   :  { %17084 = vrcp.f32 %v14094_v50 }
0x6736   :  { %v13886_v35 = vpop.f32.mrf.mxu0 }
0x6737   :  { %16640 = vmatprep.mubr.msk.f32.mxu0 %vm396_vm5, %v13886_v35 }
0x6738   :  { %16641 = vmatmul.mubr.msk.f32.vlgmr.msra.gmra.mxu0 %vm396_vm5, %v16637_v59  ;;  %v14102_v16 = vpop.permute.xlu1 %14101 }
0x6739   :  { %16650 = vmatprep.subr.mxu0 %v14102_v16  ;;  %16654 = vmatprep.mubr.msk.f32.mxu0 %vm484_vm6, %v14097_v55 }
0x673a   :  { %16651 = vmatpush3.msra.mxu0 %v14102_v16  ;;  %v15071_v16 = vld [vmem:[%s19756_s15 + $0x3] ss:$0 sm:$0xff] }
0x673c   :  { %v14100_v57 = vpop.permute.xlu1 %14099 }
0x673d   :  { %16652 = vmatprep.subr.mxu0 %v14100_v57 }
0x673e   :  { %16653 = vmatpush3.msra.mxu0 %v14100_v57  ;;  %v15065_v57 = vld [vmem:[%s19755_s14 + $0xd8] sm:$0xff] }
0x6740   :  { %v14188_v47 = vpop.permute.xlu1 %14187 }
0x6741   :  { %16657 = vmatprep.subr.mxu0 %v14188_v47 }
0x6742   :  { %v17085_v52 = vpop.eup %17084 }
0x6743   :  { %v14098_v38 = vmul.f32 %v17085_v52, %v17081_v21  ;;  %v15064_v52 = vld [vmem:[%s19755_s14 + $0xd0] sm:$0xff] }
0x6745   :  { %16655 = vmatmul.mubr.msk.f32.vlgmr.msra.gmra.mxu0 %vm484_vm6, %v14098_v38  ;;  %v15063_v38 = vld [vmem:[%s19755_s14 + $0xc8] sm:$0xff] }
0x6746   :  { %16658 = vmatpush3.msra.mxu0 %v14188_v47  ;;  %v15062_v47 = vld [vmem:[%s19755_s14 + $0xc0] sm:$0xff] }
0x6747   :  { %16673 = vmatprep.subr.mxu0 %v15069_v28 }
0x67f8   :  { %v16642_v39 = vpop.f32.mrf.mxu0 }
0x67f9   :  { %v13981_v15 = vadd.f32 %v16642_v39, %v13688_v25 }
0x67fa   :  { %v13971_v24 = vpop.f32.mrf.mxu0 }
0x67fb   :  { %v13980_v10 = vadd.f32 %v13971_v24, %v13683_v51 }
0x6805   :  { %v16656_v4 = vpop.f32.mrf.mxu0 }
0x6807   :  { %v14177_v20 = vpop.f32.mrf.mxu0 }
0x6808   :  { %16659 = vmatprep.mubr.msk.f32.mxu0 %vm396_vm5, %v14177_v20 }
0x6809   :  { %16660 = vmatmul.mubr.msk.f32.vlgmr.msra.gmra.mxu0 %vm396_vm5, %v16656_v4 }
0x680a   :  { %16674 = vmatpush3.msra.mxu0 %v15069_v28 }
0x680b   :  { %16675 = vmatprep.subr.mxu0 %v15068_v13 }
0x680c   :  { %16676 = vmatpush3.msra.mxu0 %v15068_v13 }
0x680d   :  { %16677 = vmatprep.subr.mxu0 %v15067_v31 }
0x680e   :  { %16678 = vmatpush3.msra.mxu0 %v15067_v31 }
0x680f   :  { %16679 = vmatprep.subr.mxu0 %v15066_v63 }
0x6810   :  { %16680 = vmatpush3.msra.mxu0 %v15066_v63 }
0x6811   :  { %16681 = vmatprep.subr.mxu0 %v15065_v57 }
0x6812   :  { %16682 = vmatpush3.msra.mxu0 %v15065_v57 }
0x6813   :  { %16683 = vmatprep.subr.mxu0 %v15064_v52 }
0x6814   :  { %16684 = vmatpush3.msra.mxu0 %v15064_v52 }
0x6815   :  { %16685 = vmatprep.subr.mxu0 %v15063_v38 }
0x6816   :  { %16686 = vmatpush3.msra.mxu0 %v15063_v38 }
0x6817   :  { %16687 = vmatprep.subr.mxu0 %v15062_v47 }
0x6818   :  { %16688 = vmatpush3.msra.mxu0 %v15062_v47 }
0x68c9   :  { %v16661_v41 = vpop.f32.mrf.mxu0 }
0x68ca   :  { %v14272_v14 = vadd.f32 %v16661_v41, %v13981_v15 }
0x68cb   :  { %v14262_v9 = vpop.f32.mrf.mxu0 }
0x68cc   :  { %v14277_v2 = vadd.f32 %v14274_v6, %v14272_v14  ;;  %v14271_v37 = vadd.f32 %v14262_v9, %v13980_v10 }
0x68ce   :  { %v19660_v56 = vadd.f32 %v14277_v2, %v19461_v19  ;;  %v14276_v46 = vadd.f32 %v14274_v6, %v14271_v37 }
0x68d0   :  { %v19663_v60 = vadd.f32 %v14276_v46, %v19464_v54  ;;  %v14285_v40 = vsel %vm251_vm2, %v19660_v56, 0.0  ;;  %v14291_v19 = vmul.f32 %v19660_v56, %v19660_v56 }
0x68d1   :  { %14286 = vadd.xlane.f32.xlu0 %v14285_v40 }
0x68d2   :  { %v14282_v44 = vsel %vm251_vm2, %v19663_v60, 0.0  ;;  %v14290_v33 = vmul.f32 %v19663_v60, %v19663_v60  ;;  %v14295_v54 = vsel %vm251_vm2, %v14291_v19, 0.0 }
0x68d3   :  { %14283 = vadd.xlane.f32.xlu1 %v14282_v44 }
0x68d4   :  { %v14292_v22 = vsel %vm251_vm2, %v14290_v33, 0.0 }
0x68d5   :  { %14293 = vadd.xlane.f32.xlu0 %v14292_v22 }
0x68d9   :  { %14296 = vadd.xlane.f32.xlu0 %v14295_v54 }
0x68e4   :  { %14322 = vrot.lane.b32.xlu1 %v15057_v17, %s17127_s30 }
0x68ef   :  { %14432 = vrot.lane.b32.xlu0 %v15071_v16, %s17130_s28 }
0x695a   :  { %v14287_v11 = vpop.xlane.xlu0 %14286 }
0x695b   :  { %v14289_v43 = vmul.f32 0.03125, %v14287_v11 }
0x695c   :  { %v14284_v5 = vpop.xlane.xlu1 %14283 }
0x695d   :  { %v14288_v36 = vmul.f32 0.03125, %v14284_v5  ;;  %v14301_v62 = vmul.f32 %v14289_v43, %v14289_v43  ;;  %v14307_v12 = vsub.f32 %v19660_v56, %v14289_v43 }
0x695e   :  { %v14294_v0 = vpop.xlane.xlu0 %14293 }
0x695f   :  { %v14300_v26 = vmul.f32 %v14288_v36, %v14288_v36  ;;  %v14298_v34 = vmul.f32 0.03125, %v14294_v0  ;;  %v14306_v21 = vsub.f32 %v19663_v60, %v14288_v36 }
0x6960   :  { %v14323_v7 = vpop.permute.xlu1 %14322 }
0x6961   :  { %v14302_v58 = vsub.f32 %v14298_v34, %v14300_v26 }
0x6962   :  { %v14297_v3 = vpop.xlane.xlu0 %14296 }
0x6963   :  { %v14304_v53 = vmax.f32 %v14302_v58, 0.0  ;;  %v14299_v45 = vmul.f32 0.03125, %v14297_v3 }
0x6965   :  { %v14308_v29 = vadd.f32 1e-06, %v14304_v53  ;;  %v14303_v27 = vsub.f32 %v14299_v45, %v14301_v62 }
0x6966   :  { %v14433_v51 = vpop.permute.xlu0 %14432 }
0x6967   :  { %17086 = vrsqrt.f32 %v14308_v29  ;;  %v14305_v49 = vmax.f32 %v14303_v27, 0.0 }
0x6969   :  { %v14309_v8 = vadd.f32 1e-06, %v14305_v49 }
0x696b   :  { %17088 = vrsqrt.f32 %v14309_v8 }
0x6974   :  { %v17087_v61 = vpop.eup %17086 }
0x6975   :  { %v14312_v42 = vmul.f32 %v17087_v61, %v14306_v21 }
0x6977   :  { %v14320_v18 = vmul.f32 %v15057_v17, %v14312_v42 }
0x6978   :  { %v17089_v48 = vpop.eup %17088 }
0x6979   :  { %v14313_v59 = vmul.f32 %v17089_v48, %v14307_v12  ;;  %v14325_v50 = vadd.f32 %v14323_v7, %v14320_v18 }
0x697b   :  { %v14321_v35 = vmul.f32 %v15057_v17, %v14313_v59  ;;  %16670 = vmatprep.mubr.msk.f32.mxu1 %vm251_vm2, %v14325_v50 }
0x697d   :  { %v14326_v55 = vadd.f32 %v14323_v7, %v14321_v35 }
0x697f   :  { %16671 = vmatmul.mubr.msk.f32.vlgmr.msra.gmra.mxu1 %vm251_vm2, %v14326_v55 }
0x6a3f   :  { %v16672_v25 = vpop.f32.mrf.mxu1 }
0x6a40   :  { %v14427_v39 = vadd.f32 %v16672_v25, %v15071_v16 }
0x6a41   :  { %v14421_v15 = vpop.f32.mrf.mxu1 }
0x6a42   :  { %v14422_v24 = vadd.f32 %v15071_v16, %v14421_v15  ;;  %v14431_v20 = vmax.f32 %v14427_v39, 0.0 }
0x6a44   :  { %v14430_v4 = vmax.f32 %v14422_v24, 0.0 }
0x6a46   :  { %16689 = vmatprep.mubr.msk.f32.mxu0 %vm1709_vm7, %v14430_v4 }
0x6a47   :  { %16690 = vmatmul.mubr.msk.f32.vlgmr.msra.gmra.mxu0 %vm1709_vm7, %v14431_v20 }
0x6b07   :  { %v16691_v41 = vpop.f32.mrf.mxu0 }
0x6b08   :  { %v14513_v6 = vadd.f32 %v16691_v41, %v14433_v51 }
0x6b09   :  { %v14507_v10 = vpop.f32.mrf.mxu0 }
0x6b0a   :  { %v14517_v14 = vadd.f32 %v14513_v6, %v19660_v56  ;;  %v14508_v9 = vadd.f32 %v14507_v10, %v14433_v51  ;;  %v15077_v56 = vld [vmem:[%s19757_s16 + $0xf] ss:$0 sm:$0xff]  ;;  %s17143_s16 = smov [#allocation2]  }
0x6b0c   :  { %v14516_v2 = vadd.f32 %v14508_v9, %v19663_v60  ;;  %v14523_v37 = vsel %vm251_vm2, %v14517_v14, 0.0  ;;  %v14529_v46 = vmul.f32 %v14517_v14, %v14517_v14 }
0x6b0d   :  { %14524 = vadd.xlane.f32.xlu0 %v14523_v37 }
0x6b0e   :  { %v14520_v40 = vsel %vm251_vm2, %v14516_v2, 0.0  ;;  %v14528_v44 = vmul.f32 %v14516_v2, %v14516_v2  ;;  %v14533_v33 = vsel %vm251_vm2, %v14529_v46, 0.0 }
0x6b0f   :  { %14521 = vadd.xlane.f32.xlu1 %v14520_v40 }
0x6b10   :  { %v14530_v22 = vsel %vm251_vm2, %v14528_v44, 0.0 }
0x6b11   :  { %14534 = vadd.xlane.f32.xlu0 %v14533_v33 }
0x6b13   :  { %14531 = vadd.xlane.f32.xlu1 %v14530_v22 }
0x6b24   :  { %14560 = vrot.lane.b32.xlu1 %v15077_v56, %s17127_s30  ;;  %s14572_s30 = sshll.u32 %s17143_s16, 4  ;;  %s14573_s30 = int_to_ptr.vmem [resolvable:$true] %s14572_s30 }
0x6b25   :  { %s17105_s26 = scalar_lea.vmem %s14573_s30, 256  ;;  %p17110_p1 = scmp.lt.s32.totalorder %s14573_s30, %s14573_s30 }
0x6b26   :  { %p17106_p0 = scmp.ne.s32.totalorder %s14573_s30, %s17105_s26  ;;  %p17111_p2 = scmp.lt.s32.totalorder %s17105_s26, %s17105_s26 }
0x6b28   :  { %p17112_p3 = por %p17111_p2, %p17110_p1 }
0x6b2a   :  { %p17113_p4 = pnand %p17112_p3, %p17106_p0 }
0x6b96   :  { %v14525_v60 = vpop.xlane.xlu0 %14524 }
0x6b97   :  { %v14527_v19 = vmul.f32 0.03125, %v14525_v60 }
0x6b98   :  { %v14522_v54 = vpop.xlane.xlu1 %14521 }
0x6b99   :  { %v14526_v17 = vmul.f32 0.03125, %v14522_v54  ;;  %v14539_v30 = vmul.f32 %v14527_v19, %v14527_v19  ;;  %v14545_v43 = vsub.f32 %v14517_v14, %v14527_v19 }
0x6b9a   :  { %v14535_v1 = vpop.xlane.xlu0 %14534 }
0x6b9b   :  { %v14537_v32 = vmul.f32 0.03125, %v14535_v1  ;;  %v14538_v28 = vmul.f32 %v14526_v17, %v14526_v17  ;;  %v14544_v34 = vsub.f32 %v14516_v2, %v14526_v17 }
0x6b9c   :  { %v14532_v23 = vpop.xlane.xlu1 %14531 }
0x6b9d   :  { %v14541_v13 = vsub.f32 %v14537_v32, %v14539_v30  ;;  %v14536_v31 = vmul.f32 0.03125, %v14532_v23 }
0x6b9f   :  { %v14543_v63 = vmax.f32 %v14541_v13, 0.0  ;;  %v14540_v11 = vsub.f32 %v14536_v31, %v14538_v28 }
0x6ba0   :  { %v14561_v62 = vpop.permute.xlu1 %14560 }
0x6ba1   :  { %v14547_v5 = vadd.f32 1e-06, %v14543_v63  ;;  %v14542_v36 = vmax.f32 %v14540_v11, 0.0 }
0x6ba3   :  { %17090 = vrsqrt.f32 %v14547_v5  ;;  %v14546_v0 = vadd.f32 1e-06, %v14542_v36 }
0x6ba5   :  { %17092 = vrsqrt.f32 %v14546_v0 }
0x6bb0   :  { %v17091_v26 = vpop.eup %17090 }
0x6bb1   :  { %v14551_v58 = vmul.f32 %v17091_v26, %v14545_v43 }
0x6bb2   :  { %v17093_v3 = vpop.eup %17092 }
0x6bb3   :  { %v14550_v53 = vmul.f32 %v17093_v3, %v14544_v34  ;;  %v14559_v45 = vmul.f32 %v15077_v56, %v14551_v58 }
0x6bb5   :  { %v14558_v29 = vmul.f32 %v15077_v56, %v14550_v53  ;;  %v14564_v27 = vadd.f32 %v14561_v62, %v14559_v45 }
0x6bb7   :  { %v14563_v49 = vadd.f32 %v14561_v62, %v14558_v29  ;;  %14566 = vst.msk [vmem:[#allocation2 + $0x8] sm:$0xff] %vm251_vm2, %v14564_v27 }
0x6bb9   :  { %14565 = vst.msk [vmem:[#allocation2] sm:$0xff] %vm251_vm2, %v14563_v49 }
0x6bba   :  { %17116 = shalt.err (!%p17113_p4)
}
0x6bbb   :  { %s17144_s2 = smov 128  }
0x6bbc   :  { %14578 = dma.vmem_to_hbm [thread:$0]  %s14573_s30, 256, %s19758_s17, [#allocation3], %s17144_s2, %s17144_s2, %s19782_s5  }
0x6bbd   :  { %17125 = dma.done.wait [#allocation3], 256  }
0x6bbe   :  { %17126 = vsyncadd [#allocation3], 4294967040 }
0x6bbf   :  { %14582 = vsyncpa [#allocation3], 1 }

</bundles_post_ra>
